<compile_context>
chip_gen: v5e
topology: v5e:2x2
jax: 0.10.0
libtpu: 0.0.40
codegen_flags: <defaults>
</compile_context>

<pallas_src>
import jax
import jax.numpy as jnp
from jax.experimental import pallas as pl
from jax.experimental.pallas import tpu as pltpu


# ----------------------------------------------------------------------------
# In-kernel helpers
# ----------------------------------------------------------------------------
def _sig(x):
    # exp -> EUP, approx reciprocal -> EUP (frees the VPU divide sequence).
    return pl.reciprocal(1.0 + jnp.exp(-x), approx=True)


def _silu(x):
    return x * _sig(x)


def _maxpool2x2(h):
    """(N, H, W, C) -> (N, H//2, W//2, C) 2x2/stride-2 max pool.

    C stays on lanes; H-pair max is a free leading-dim select, W-pair max is a
    small sublane relayout (proven lowering).
    """
    n, hh, ww, c = h.shape
    h = jnp.max(h.reshape(n, hh, ww // 2, 2, c), axis=3)     # pool along W
    t = h.reshape(n, hh // 2, 2, ww // 2, c)
    return jnp.maximum(t[:, :, 0], t[:, :, 1])                # pool along H


# ----------------------------------------------------------------------------
# Fused kernel
# ----------------------------------------------------------------------------
def _fused_kernel(
    im1_ref,       # (N*256, 32)   conv1 im2col (built in wrapper, K padded 25->32)
    w2_ref,        # (400, 32)     conv2 im2col weight * BN2 scale (tap-major rows)
    wslab_ref,     # (6, 128, 128) zero-padded: w1s, w3s, w4s, fc1_w, fc2_w, fc3_w
    bias_ref,      # (8, 128)      rows: bn1,bn2,bn3,bn4,fc1_b,fc2_b,fc3_b,unused
    o_ref,         # (N, 1)
    pad2_ref,      # scratch (N, 16, 16, 16) padded conv2 input (NHWC, C on lanes)
):
    n = pad2_ref.shape[0]

    # ---- stage 1: conv1 (5x5, pad=2, 1->16) + folded BN, 2x2 maxpool, SiLU ----
    h = jnp.dot(im1_ref[...], wslab_ref[0, 0:32, 0:16],
                preferred_element_type=jnp.float32)            # (N*256, 16)
    h = h + bias_ref[0:1, 0:16]
    h = _silu(_maxpool2x2(h.reshape(n, 16, 16, 16)))           # (N, 8, 8, 16)

    # ---- stage 2: conv2 (5x5, dil=2, pad=4, 16->32) as 25 accumulated tap dots ----
    # Zero only the halo; interior gets the stage-1 output.
    zh = jnp.zeros((n, 4, 16, 16), jnp.float32)
    pad2_ref[:, 0:4, :, :] = zh
    pad2_ref[:, 12:16, :, :] = zh
    zw = jnp.zeros((n, 8, 4, 16), jnp.float32)
    pad2_ref[:, 4:12, 0:4, :] = zw
    pad2_ref[:, 4:12, 12:16, :] = zw
    pad2_ref[:, 4:12, 4:12, :] = h

    acc = jnp.zeros((n * 64, 32), jnp.float32)
    for kh in range(5):
        for kw in range(5):
            t = kh * 5 + kw
            lhs = pad2_ref[:, 2 * kh:2 * kh + 8, 2 * kw:2 * kw + 8, :]
            acc = acc + jnp.dot(lhs.reshape(n * 64, 16),
                                w2_ref[t * 16:(t + 1) * 16, :],
                                preferred_element_type=jnp.float32)
    h = acc + bias_ref[1:2, 0:32]
    h = _silu(_maxpool2x2(h.reshape(n, 8, 8, 32)))             # (N, 4, 4, 32)

    # ---- stages 3/4: dilation 4/8 on a 4x4 map -> centre tap only == 1x1 conv ----
    f = h.reshape(n * 16, 32)
    f = _silu(jnp.dot(f, wslab_ref[1, 0:32, 0:64],
                      preferred_element_type=jnp.float32) + bias_ref[2:3, 0:64])
    f = _silu(jnp.dot(f, wslab_ref[2, 0:64, 0:128],
                      preferred_element_type=jnp.float32) + bias_ref[3:4, 0:128])

    # ---- GAP + fc1 -> SiLU -> fc2 -> SiLU -> fc3 -> Sigmoid ----
    g = jnp.mean(f.reshape(n, 16, 128), axis=1)                # (N, 128)
    z = _silu(jnp.dot(g, wslab_ref[3, 0:128, 0:64],
                      preferred_element_type=jnp.float32) + bias_ref[4:5, 0:64])
    z = _silu(jnp.dot(z, wslab_ref[4, 0:64, 0:32],
                      preferred_element_type=jnp.float32) + bias_ref[5:6, 0:32])
    z = jnp.dot(z, wslab_ref[5, 0:32, 0:1],
                preferred_element_type=jnp.float32) + bias_ref[6:7, 0:1]
    o_ref[...] = _sig(z).astype(o_ref.dtype)


# ----------------------------------------------------------------------------
# Wrapper: weight re-layout / BN folding / operand packing + pallas_call.
# ----------------------------------------------------------------------------
def _full_spec(shape):
    nd = len(shape)
    return pl.BlockSpec(shape, lambda *_: (0,) * nd)


def _fold_bn(gamma, beta, mean, var, eps=1e-5):
    scale = gamma / jnp.sqrt(var + eps)
    bias = beta - mean * scale
    return scale, bias


def _conv_im2col_weight(w):
    """PyTorch (Cout, Cin, 5, 5) -> (25*Cin, Cout), tap-major / channel-minor rows."""
    cout, cin = w.shape[0], w.shape[1]
    return jnp.transpose(w, (2, 3, 1, 0)).reshape(25 * cin, cout)


def _pad128(a):
    out = jnp.zeros((128, 128), jnp.float32)
    return out.at[:a.shape[0], :a.shape[1]].set(a)


def _row128(v):
    return jnp.zeros((128,), jnp.float32).at[:v.shape[0]].set(v)


@jax.jit
def enhanced_cnn_forward(x_nchw, p):
    n, cin, hh, ww = x_nchw.shape
    # Guard: dead-tap elimination for conv3/conv4 requires the post-pool2 map to
    # be exactly 4x4 (i.e. a 1x16x16 input).
    assert (cin, hh, ww) == (1, 16, 16), "kernel is specialized to 1x16x16 inputs"

    s1, b1 = _fold_bn(p["bn1_gamma"], p["bn1_beta"], p["bn1_mean"], p["bn1_var"])
    s2, b2 = _fold_bn(p["bn2_gamma"], p["bn2_beta"], p["bn2_mean"], p["bn2_var"])
    s3, b3 = _fold_bn(p["bn3_gamma"], p["bn3_beta"], p["bn3_mean"], p["bn3_var"])
    s4, b4 = _fold_bn(p["bn4_gamma"], p["bn4_beta"], p["bn4_mean"], p["bn4_var"])

    # BN scale folded into the weights (output-channel columns).
    w1s = _conv_im2col_weight(p["conv1_w"]) * s1[None, :]          # (25, 16)
    w2s = _conv_im2col_weight(p["conv2_w"]) * s2[None, :]          # (400, 32)
    w3s = p["conv3_w"][:, :, 2, 2].T * s3[None, :]                 # (32, 64)  centre tap
    w4s = p["conv4_w"][:, :, 2, 2].T * s4[None, :]                 # (64, 128) centre tap

    # conv1 im2col built on the wrapper side (tiny), K padded 25 -> 32.
    xp = jnp.pad(x_nchw[:, 0], ((0, 0), (2, 2), (2, 2)))           # (N, 20, 20)
    im1 = jnp.stack([xp[:, kh:kh + 16, kw:kw + 16]
                     for kh in range(5) for kw in range(5)], axis=-1)
    im1 = im1.reshape(n * 256, 25)
    im1 = jnp.pad(im1, ((0, 0), (0, 7)))                           # (N*256, 32)

    # Packed operands: one weight slab + one bias slab.
    wslab = jnp.stack([_pad128(w1s), _pad128(w3s), _pad128(w4s),
                       _pad128(p["fc1_w"].T), _pad128(p["fc2_w"].T),
                       _pad128(p["fc3_w"].T)])                     # (6, 128, 128)
    bias_slab = jnp.stack([_row128(b1), _row128(b2), _row128(b3), _row128(b4),
                           _row128(p["fc1_b"]), _row128(p["fc2_b"]),
                           _row128(p["fc3_b"]),
                           jnp.zeros((128,), jnp.float32)])        # (8, 128)

    inputs = (im1, w2s, wslab, bias_slab)

    flops = 2 * (n * 256 * 32 * 16 + 25 * n * 64 * 16 * 32 +
                 n * 16 * 32 * 64 + n * 16 * 64 * 128 +
                 n * 128 * 64 + n * 64 * 32 + n * 32)
    transcendentals = n * (8 * 8 * 16 + 4 * 4 * 32 + 16 * 64 + 16 * 128 + 64 + 32 + 1)
    bytes_accessed = 4 * (n * 256 * 32 + 400 * 32 + 6 * 128 * 128 + 8 * 128 + n)

    return pl.pallas_call(
        _fused_kernel,
        out_shape=jax.ShapeDtypeStruct((n, 1), jnp.float32),
        grid=(1,),
        in_specs=[_full_spec(a.shape) for a in inputs],
        out_specs=_full_spec((n, 1)),
        scratch_shapes=[
            pltpu.VMEM((n, 16, 16, 16), jnp.float32),              # padded conv2 input
        ],
        compiler_params=pltpu.CompilerParams(
            dimension_semantics=("arbitrary",)),
        cost_estimate=pl.CostEstimate(
            flops=flops, transcendentals=transcendentals,
            bytes_accessed=bytes_accessed),
    )(*inputs)


def init_params(key):
    keys = jax.random.split(key, 32)
    ki = iter(keys)
    p = {}
    # conv weights: PyTorch layout (Cout, Cin, 5, 5); bias=False per the module.
    conv_dims = [(16, 1), (32, 16), (64, 32), (128, 64)]
    for li, (co, ci) in enumerate(conv_dims, start=1):
        p[f"conv{li}_w"] = 0.1 * jax.random.normal(next(ki), (co, ci, 5, 5), jnp.float32)
        p[f"bn{li}_gamma"] = 1.0 + 0.1 * jax.random.normal(next(ki), (co,), jnp.float32)
        p[f"bn{li}_beta"] = 0.1 * jax.random.normal(next(ki), (co,), jnp.float32)
        p[f"bn{li}_mean"] = 0.1 * jax.random.normal(next(ki), (co,), jnp.float32)
        p[f"bn{li}_var"] = jax.random.uniform(next(ki), (co,), jnp.float32, 0.5, 1.5)
    # fc weights: PyTorch layout (out, in)
    fc_dims = [(64, 128), (32, 64), (1, 32)]
    for li, (o, i) in enumerate(fc_dims, start=1):
        p[f"fc{li}_w"] = 0.1 * jax.random.normal(next(ki), (o, i), jnp.float32)
        p[f"fc{li}_b"] = 0.1 * jax.random.normal(next(ki), (o,), jnp.float32)
    return p


if __name__ == "__main__":
    key = jax.random.PRNGKey(0)
    k_in, k_params = jax.random.split(key)

    # Batch=2, 1 channel, 16x16 spatial (consistent with the module spec).
    x = jax.random.normal(k_in, (2, 1, 16, 16), jnp.float32)
    params = init_params(k_params)

    out = enhanced_cnn_forward(x, params)
    out = jax.block_until_ready(out)

    assert out.shape == (2, 1), out.shape
    assert out.dtype == jnp.float32
    assert bool(jnp.all(jnp.isfinite(out)))
    assert bool(jnp.all((out >= 0.0) & (out <= 1.0)))  # sigmoid output range
    print("KERNEL_OK")
</pallas_src>

<mosaic_0001>
module attributes {stable_mosaic.version = 11 : i64} {
  func.func @_fused_kernel(%arg0: i32, %arg1: memref<512x32xf32, #tpu.memory_space<vmem>>, %arg2: memref<400x32xf32, #tpu.memory_space<vmem>>, %arg3: memref<6x128x128xf32, #tpu.memory_space<vmem>>, %arg4: memref<8x128xf32, #tpu.memory_space<vmem>>, %arg5: memref<2x1xf32, #tpu.memory_space<vmem>>, %arg6: memref<2x16x16x16xf32, #tpu.memory_space<vmem>>) attributes {dimension_semantics = [#tpu.dimension_semantics<arbitrary>], iteration_bounds = array<i64: 1>, scalar_prefetch = 0 : i64, scratch_operands = 1 : i64, tpu.core_type = #tpu.core_type<tc>, window_params = [{pipeline_mode = #tpu.pipeline_mode<synchronous>, transform_indices = @transform_0, window_bounds = array<i64: 512, 32>}, {pipeline_mode = #tpu.pipeline_mode<synchronous>, transform_indices = @transform_1, window_bounds = array<i64: 400, 32>}, {pipeline_mode = #tpu.pipeline_mode<synchronous>, transform_indices = @transform_2, window_bounds = array<i64: 6, 128, 128>}, {pipeline_mode = #tpu.pipeline_mode<synchronous>, transform_indices = @transform_3, window_bounds = array<i64: 8, 128>}, {pipeline_mode = #tpu.pipeline_mode<synchronous>, transform_indices = @transform_4, window_bounds = array<i64: 2, 1>}]} {
    %c0 = arith.constant 0 : index
    %c0_0 = arith.constant 0 : index
    %0 = vector.load %arg1[%c0, %c0_0] : memref<512x32xf32, #tpu.memory_space<vmem>>, vector<512x32xf32>
    %c0_1 = arith.constant 0 : index
    %c0_2 = arith.constant 0 : index
    %c0_3 = arith.constant 0 : index
    %1 = vector.load %arg3[%c0_1, %c0_2, %c0_3] : memref<6x128x128xf32, #tpu.memory_space<vmem>>, vector<1x32x16xf32>
    %2 = vector.shape_cast %1 : vector<1x32x16xf32> to vector<32x16xf32>
    %cst = arith.constant dense<0.000000e+00> : vector<512x16xf32>
    %3 = tpu.matmul %0, %2, %cst {dimension_numbers = #tpu.dot_dimension_numbers<[1], [0], [0], [1], [0, 0, 1, 1], [], []>} : vector<512x32xf32>, vector<32x16xf32>, vector<512x16xf32> -> vector<512x16xf32>
    %c0_4 = arith.constant 0 : index
    %c0_5 = arith.constant 0 : index
    %4 = vector.load %arg4[%c0_4, %c0_5] : memref<8x128xf32, #tpu.memory_space<vmem>>, vector<1x16xf32>
    %5 = vector.broadcast %4 : vector<1x16xf32> to vector<512x16xf32>
    %6 = arith.addf %3, %5 : vector<512x16xf32>
    %7 = vector.shape_cast %6 : vector<512x16xf32> to vector<2x16x16x16xf32>
    %8 = vector.shape_cast %7 : vector<2x16x16x16xf32> to vector<2x16x8x2x16xf32>
    %cst_6 = arith.constant dense<0xFF800000> : vector<2x16x8x16xf32>
    %9 = vector.multi_reduction <maximumf>, %8, %cst_6 [3] : vector<2x16x8x2x16xf32> to vector<2x16x8x16xf32>
    %10 = vector.shape_cast %9 : vector<2x16x8x16xf32> to vector<2x8x2x8x16xf32>
    %11 = vector.extract_strided_slice %10 {offsets = [0, 0, 0, 0, 0], sizes = [2, 8, 1, 8, 16], strides = [1, 1, 1, 1, 1]} : vector<2x8x2x8x16xf32> to vector<2x8x1x8x16xf32>
    %12 = vector.shape_cast %11 : vector<2x8x1x8x16xf32> to vector<2x8x8x16xf32>
    %13 = vector.extract_strided_slice %10 {offsets = [0, 0, 1, 0, 0], sizes = [2, 8, 1, 8, 16], strides = [1, 1, 1, 1, 1]} : vector<2x8x2x8x16xf32> to vector<2x8x1x8x16xf32>
    %14 = vector.shape_cast %13 : vector<2x8x1x8x16xf32> to vector<2x8x8x16xf32>
    %15 = arith.maximumf %12, %14 : vector<2x8x8x16xf32>
    %cst_7 = arith.constant 0.000000e+00 : f32
    %16 = vector.broadcast %cst_7 : f32 to vector<2x8x8x16xf32>
    %17 = arith.subf %16, %15 : vector<2x8x8x16xf32>
    %18 = math.exp %17 : vector<2x8x8x16xf32>
    %cst_8 = arith.constant 1.000000e+00 : f32
    %19 = vector.broadcast %cst_8 : f32 to vector<2x8x8x16xf32>
    %20 = arith.addf %19, %18 : vector<2x8x8x16xf32>
    %21 = tpu.reciprocal %20 {approx = true} : vector<2x8x8x16xf32> -> vector<2x8x8x16xf32>
    %22 = arith.mulf %15, %21 : vector<2x8x8x16xf32>
    %cst_9 = arith.constant 0.000000e+00 : f32
    %23 = vector.broadcast %cst_9 : f32 to vector<2x4x16x16xf32>
    %c0_10 = arith.constant 0 : index
    %c0_11 = arith.constant 0 : index
    %c0_12 = arith.constant 0 : index
    %c0_13 = arith.constant 0 : index
    %24 = vector.load %arg6[%c0_10, %c0_11, %c0_12, %c0_13] : memref<2x16x16x16xf32, #tpu.memory_space<vmem>>, vector<2x4x16x16xf32>
    tpu.vector_store %arg6[%c0_10, %c0_11, %c0_12, %c0_13], %23 {strides = array<i32>} : memref<2x16x16x16xf32, #tpu.memory_space<vmem>>, vector<2x4x16x16xf32>,
    %c0_14 = arith.constant 0 : index
    %c12 = arith.constant 12 : index
    %c0_15 = arith.constant 0 : index
    %c0_16 = arith.constant 0 : index
    %25 = vector.load %arg6[%c0_14, %c12, %c0_15, %c0_16] : memref<2x16x16x16xf32, #tpu.memory_space<vmem>>, vector<2x4x16x16xf32>
    tpu.vector_store %arg6[%c0_14, %c12, %c0_15, %c0_16], %23 {strides = array<i32>} : memref<2x16x16x16xf32, #tpu.memory_space<vmem>>, vector<2x4x16x16xf32>,
    %cst_17 = arith.constant 0.000000e+00 : f32
    %26 = vector.broadcast %cst_17 : f32 to vector<2x8x4x16xf32>
    %c0_18 = arith.constant 0 : index
    %c4 = arith.constant 4 : index
    %c0_19 = arith.constant 0 : index
    %c0_20 = arith.constant 0 : index
    %27 = vector.load %arg6[%c0_18, %c4, %c0_19, %c0_20] : memref<2x16x16x16xf32, #tpu.memory_space<vmem>>, vector<2x8x4x16xf32>
    tpu.vector_store %arg6[%c0_18, %c4, %c0_19, %c0_20], %26 {strides = array<i32>} : memref<2x16x16x16xf32, #tpu.memory_space<vmem>>, vector<2x8x4x16xf32>,
    %c0_21 = arith.constant 0 : index
    %c4_22 = arith.constant 4 : index
    %c12_23 = arith.constant 12 : index
    %c0_24 = arith.constant 0 : index
    %28 = vector.load %arg6[%c0_21, %c4_22, %c12_23, %c0_24] : memref<2x16x16x16xf32, #tpu.memory_space<vmem>>, vector<2x8x4x16xf32>
    tpu.vector_store %arg6[%c0_21, %c4_22, %c12_23, %c0_24], %26 {strides = array<i32>} : memref<2x16x16x16xf32, #tpu.memory_space<vmem>>, vector<2x8x4x16xf32>,
    %c0_25 = arith.constant 0 : index
    %c4_26 = arith.constant 4 : index
    %c4_27 = arith.constant 4 : index
    %c0_28 = arith.constant 0 : index
    %29 = vector.load %arg6[%c0_25, %c4_26, %c4_27, %c0_28] : memref<2x16x16x16xf32, #tpu.memory_space<vmem>>, vector<2x8x8x16xf32>
    tpu.vector_store %arg6[%c0_25, %c4_26, %c4_27, %c0_28], %22 {strides = array<i32>} : memref<2x16x16x16xf32, #tpu.memory_space<vmem>>, vector<2x8x8x16xf32>,
    %cst_29 = arith.constant 0.000000e+00 : f32
    %30 = vector.broadcast %cst_29 : f32 to vector<128x32xf32>
    %c0_30 = arith.constant 0 : index
    %c0_31 = arith.constant 0 : index
    %c0_32 = arith.constant 0 : index
    %c0_33 = arith.constant 0 : index
    %31 = vector.load %arg6[%c0_30, %c0_31, %c0_32, %c0_33] : memref<2x16x16x16xf32, #tpu.memory_space<vmem>>, vector<2x8x8x16xf32>
    %32 = vector.shape_cast %31 : vector<2x8x8x16xf32> to vector<128x16xf32>
    %c0_34 = arith.constant 0 : index
    %c0_35 = arith.constant 0 : index
    %33 = vector.load %arg2[%c0_34, %c0_35] : memref<400x32xf32, #tpu.memory_space<vmem>>, vector<16x32xf32>
    %cst_36 = arith.constant dense<0.000000e+00> : vector<128x32xf32>
    %34 = tpu.matmul %32, %33, %cst_36 {dimension_numbers = #tpu.dot_dimension_numbers<[1], [0], [0], [1], [0, 0, 1, 1], [], []>} : vector<128x16xf32>, vector<16x32xf32>, vector<128x32xf32> -> vector<128x32xf32>
    %35 = arith.addf %30, %34 : vector<128x32xf32>
    %c0_37 = arith.constant 0 : index
    %c0_38 = arith.constant 0 : index
    %c2 = arith.constant 2 : index
    %c0_39 = arith.constant 0 : index
    %36 = vector.load %arg6[%c0_37, %c0_38, %c2, %c0_39] : memref<2x16x16x16xf32, #tpu.memory_space<vmem>>, vector<2x8x8x16xf32>
    %37 = vector.shape_cast %36 : vector<2x8x8x16xf32> to vector<128x16xf32>
    %c16 = arith.constant 16 : index
    %c0_40 = arith.constant 0 : index
    %38 = vector.load %arg2[%c16, %c0_40] : memref<400x32xf32, #tpu.memory_space<vmem>>, vector<16x32xf32>
    %cst_41 = arith.constant dense<0.000000e+00> : vector<128x32xf32>
    %39 = tpu.matmul %37, %38, %cst_41 {dimension_numbers = #tpu.dot_dimension_numbers<[1], [0], [0], [1], [0, 0, 1, 1], [], []>} : vector<128x16xf32>, vector<16x32xf32>, vector<128x32xf32> -> vector<128x32xf32>
    %40 = arith.addf %35, %39 : vector<128x32xf32>
    %c0_42 = arith.constant 0 : index
    %c0_43 = arith.constant 0 : index
    %c4_44 = arith.constant 4 : index
    %c0_45 = arith.constant 0 : index
    %41 = vector.load %arg6[%c0_42, %c0_43, %c4_44, %c0_45] : memref<2x16x16x16xf32, #tpu.memory_space<vmem>>, vector<2x8x8x16xf32>
    %42 = vector.shape_cast %41 : vector<2x8x8x16xf32> to vector<128x16xf32>
    %c32 = arith.constant 32 : index
    %c0_46 = arith.constant 0 : index
    %43 = vector.load %arg2[%c32, %c0_46] : memref<400x32xf32, #tpu.memory_space<vmem>>, vector<16x32xf32>
    %cst_47 = arith.constant dense<0.000000e+00> : vector<128x32xf32>
    %44 = tpu.matmul %42, %43, %cst_47 {dimension_numbers = #tpu.dot_dimension_numbers<[1], [0], [0], [1], [0, 0, 1, 1], [], []>} : vector<128x16xf32>, vector<16x32xf32>, vector<128x32xf32> -> vector<128x32xf32>
    %45 = arith.addf %40, %44 : vector<128x32xf32>
    %c0_48 = arith.constant 0 : index
    %c0_49 = arith.constant 0 : index
    %c6 = arith.constant 6 : index
    %c0_50 = arith.constant 0 : index
    %46 = vector.load %arg6[%c0_48, %c0_49, %c6, %c0_50] : memref<2x16x16x16xf32, #tpu.memory_space<vmem>>, vector<2x8x8x16xf32>
    %47 = vector.shape_cast %46 : vector<2x8x8x16xf32> to vector<128x16xf32>
    %c48 = arith.constant 48 : index
    %c0_51 = arith.constant 0 : index
    %48 = vector.load %arg2[%c48, %c0_51] : memref<400x32xf32, #tpu.memory_space<vmem>>, vector<16x32xf32>
    %cst_52 = arith.constant dense<0.000000e+00> : vector<128x32xf32>
    %49 = tpu.matmul %47, %48, %cst_52 {dimension_numbers = #tpu.dot_dimension_numbers<[1], [0], [0], [1], [0, 0, 1, 1], [], []>} : vector<128x16xf32>, vector<16x32xf32>, vector<128x32xf32> -> vector<128x32xf32>
    %50 = arith.addf %45, %49 : vector<128x32xf32>
    %c0_53 = arith.constant 0 : index
    %c0_54 = arith.constant 0 : index
    %c8 = arith.constant 8 : index
    %c0_55 = arith.constant 0 : index
    %51 = vector.load %arg6[%c0_53, %c0_54, %c8, %c0_55] : memref<2x16x16x16xf32, #tpu.memory_space<vmem>>, vector<2x8x8x16xf32>
    %52 = vector.shape_cast %51 : vector<2x8x8x16xf32> to vector<128x16xf32>
    %c64 = arith.constant 64 : index
    %c0_56 = arith.constant 0 : index
    %53 = vector.load %arg2[%c64, %c0_56] : memref<400x32xf32, #tpu.memory_space<vmem>>, vector<16x32xf32>
    %cst_57 = arith.constant dense<0.000000e+00> : vector<128x32xf32>
    %54 = tpu.matmul %52, %53, %cst_57 {dimension_numbers = #tpu.dot_dimension_numbers<[1], [0], [0], [1], [0, 0, 1, 1], [], []>} : vector<128x16xf32>, vector<16x32xf32>, vector<128x32xf32> -> vector<128x32xf32>
    %55 = arith.addf %50, %54 : vector<128x32xf32>
    %c0_58 = arith.constant 0 : index
    %c2_59 = arith.constant 2 : index
    %c0_60 = arith.constant 0 : index
    %c0_61 = arith.constant 0 : index
    %56 = vector.load %arg6[%c0_58, %c2_59, %c0_60, %c0_61] : memref<2x16x16x16xf32, #tpu.memory_space<vmem>>, vector<2x8x8x16xf32>
    %57 = vector.shape_cast %56 : vector<2x8x8x16xf32> to vector<128x16xf32>
    %c80 = arith.constant 80 : index
    %c0_62 = arith.constant 0 : index
    %58 = vector.load %arg2[%c80, %c0_62] : memref<400x32xf32, #tpu.memory_space<vmem>>, vector<16x32xf32>
    %cst_63 = arith.constant dense<0.000000e+00> : vector<128x32xf32>
    %59 = tpu.matmul %57, %58, %cst_63 {dimension_numbers = #tpu.dot_dimension_numbers<[1], [0], [0], [1], [0, 0, 1, 1], [], []>} : vector<128x16xf32>, vector<16x32xf32>, vector<128x32xf32> -> vector<128x32xf32>
    %60 = arith.addf %55, %59 : vector<128x32xf32>
    %c0_64 = arith.constant 0 : index
    %c2_65 = arith.constant 2 : index
    %c2_66 = arith.constant 2 : index
    %c0_67 = arith.constant 0 : index
    %61 = vector.load %arg6[%c0_64, %c2_65, %c2_66, %c0_67] : memref<2x16x16x16xf32, #tpu.memory_space<vmem>>, vector<2x8x8x16xf32>
    %62 = vector.shape_cast %61 : vector<2x8x8x16xf32> to vector<128x16xf32>
    %c96 = arith.constant 96 : index
    %c0_68 = arith.constant 0 : index
    %63 = vector.load %arg2[%c96, %c0_68] : memref<400x32xf32, #tpu.memory_space<vmem>>, vector<16x32xf32>
    %cst_69 = arith.constant dense<0.000000e+00> : vector<128x32xf32>
    %64 = tpu.matmul %62, %63, %cst_69 {dimension_numbers = #tpu.dot_dimension_numbers<[1], [0], [0], [1], [0, 0, 1, 1], [], []>} : vector<128x16xf32>, vector<16x32xf32>, vector<128x32xf32> -> vector<128x32xf32>
    %65 = arith.addf %60, %64 : vector<128x32xf32>
    %c0_70 = arith.constant 0 : index
    %c2_71 = arith.constant 2 : index
    %c4_72 = arith.constant 4 : index
    %c0_73 = arith.constant 0 : index
    %66 = vector.load %arg6[%c0_70, %c2_71, %c4_72, %c0_73] : memref<2x16x16x16xf32, #tpu.memory_space<vmem>>, vector<2x8x8x16xf32>
    %67 = vector.shape_cast %66 : vector<2x8x8x16xf32> to vector<128x16xf32>
    %c112 = arith.constant 112 : index
    %c0_74 = arith.constant 0 : index
    %68 = vector.load %arg2[%c112, %c0_74] : memref<400x32xf32, #tpu.memory_space<vmem>>, vector<16x32xf32>
    %cst_75 = arith.constant dense<0.000000e+00> : vector<128x32xf32>
    %69 = tpu.matmul %67, %68, %cst_75 {dimension_numbers = #tpu.dot_dimension_numbers<[1], [0], [0], [1], [0, 0, 1, 1], [], []>} : vector<128x16xf32>, vector<16x32xf32>, vector<128x32xf32> -> vector<128x32xf32>
    %70 = arith.addf %65, %69 : vector<128x32xf32>
    %c0_76 = arith.constant 0 : index
    %c2_77 = arith.constant 2 : index
    %c6_78 = arith.constant 6 : index
    %c0_79 = arith.constant 0 : index
    %71 = vector.load %arg6[%c0_76, %c2_77, %c6_78, %c0_79] : memref<2x16x16x16xf32, #tpu.memory_space<vmem>>, vector<2x8x8x16xf32>
    %72 = vector.shape_cast %71 : vector<2x8x8x16xf32> to vector<128x16xf32>
    %c128 = arith.constant 128 : index
    %c0_80 = arith.constant 0 : index
    %73 = vector.load %arg2[%c128, %c0_80] : memref<400x32xf32, #tpu.memory_space<vmem>>, vector<16x32xf32>
    %cst_81 = arith.constant dense<0.000000e+00> : vector<128x32xf32>
    %74 = tpu.matmul %72, %73, %cst_81 {dimension_numbers = #tpu.dot_dimension_numbers<[1], [0], [0], [1], [0, 0, 1, 1], [], []>} : vector<128x16xf32>, vector<16x32xf32>, vector<128x32xf32> -> vector<128x32xf32>
    %75 = arith.addf %70, %74 : vector<128x32xf32>
    %c0_82 = arith.constant 0 : index
    %c2_83 = arith.constant 2 : index
    %c8_84 = arith.constant 8 : index
    %c0_85 = arith.constant 0 : index
    %76 = vector.load %arg6[%c0_82, %c2_83, %c8_84, %c0_85] : memref<2x16x16x16xf32, #tpu.memory_space<vmem>>, vector<2x8x8x16xf32>
    %77 = vector.shape_cast %76 : vector<2x8x8x16xf32> to vector<128x16xf32>
    %c144 = arith.constant 144 : index
    %c0_86 = arith.constant 0 : index
    %78 = vector.load %arg2[%c144, %c0_86] : memref<400x32xf32, #tpu.memory_space<vmem>>, vector<16x32xf32>
    %cst_87 = arith.constant dense<0.000000e+00> : vector<128x32xf32>
    %79 = tpu.matmul %77, %78, %cst_87 {dimension_numbers = #tpu.dot_dimension_numbers<[1], [0], [0], [1], [0, 0, 1, 1], [], []>} : vector<128x16xf32>, vector<16x32xf32>, vector<128x32xf32> -> vector<128x32xf32>
    %80 = arith.addf %75, %79 : vector<128x32xf32>
    %c0_88 = arith.constant 0 : index
    %c4_89 = arith.constant 4 : index
    %c0_90 = arith.constant 0 : index
    %c0_91 = arith.constant 0 : index
    %81 = vector.load %arg6[%c0_88, %c4_89, %c0_90, %c0_91] : memref<2x16x16x16xf32, #tpu.memory_space<vmem>>, vector<2x8x8x16xf32>
    %82 = vector.shape_cast %81 : vector<2x8x8x16xf32> to vector<128x16xf32>
    %c160 = arith.constant 160 : index
    %c0_92 = arith.constant 0 : index
    %83 = vector.load %arg2[%c160, %c0_92] : memref<400x32xf32, #tpu.memory_space<vmem>>, vector<16x32xf32>
    %cst_93 = arith.constant dense<0.000000e+00> : vector<128x32xf32>
    %84 = tpu.matmul %82, %83, %cst_93 {dimension_numbers = #tpu.dot_dimension_numbers<[1], [0], [0], [1], [0, 0, 1, 1], [], []>} : vector<128x16xf32>, vector<16x32xf32>, vector<128x32xf32> -> vector<128x32xf32>
    %85 = arith.addf %80, %84 : vector<128x32xf32>
    %c0_94 = arith.constant 0 : index
    %c4_95 = arith.constant 4 : index
    %c2_96 = arith.constant 2 : index
    %c0_97 = arith.constant 0 : index
    %86 = vector.load %arg6[%c0_94, %c4_95, %c2_96, %c0_97] : memref<2x16x16x16xf32, #tpu.memory_space<vmem>>, vector<2x8x8x16xf32>
    %87 = vector.shape_cast %86 : vector<2x8x8x16xf32> to vector<128x16xf32>
    %c176 = arith.constant 176 : index
    %c0_98 = arith.constant 0 : index
    %88 = vector.load %arg2[%c176, %c0_98] : memref<400x32xf32, #tpu.memory_space<vmem>>, vector<16x32xf32>
    %cst_99 = arith.constant dense<0.000000e+00> : vector<128x32xf32>
    %89 = tpu.matmul %87, %88, %cst_99 {dimension_numbers = #tpu.dot_dimension_numbers<[1], [0], [0], [1], [0, 0, 1, 1], [], []>} : vector<128x16xf32>, vector<16x32xf32>, vector<128x32xf32> -> vector<128x32xf32>
    %90 = arith.addf %85, %89 : vector<128x32xf32>
    %c0_100 = arith.constant 0 : index
    %c4_101 = arith.constant 4 : index
    %c4_102 = arith.constant 4 : index
    %c0_103 = arith.constant 0 : index
    %91 = vector.load %arg6[%c0_100, %c4_101, %c4_102, %c0_103] : memref<2x16x16x16xf32, #tpu.memory_space<vmem>>, vector<2x8x8x16xf32>
    %92 = vector.shape_cast %91 : vector<2x8x8x16xf32> to vector<128x16xf32>
    %c192 = arith.constant 192 : index
    %c0_104 = arith.constant 0 : index
    %93 = vector.load %arg2[%c192, %c0_104] : memref<400x32xf32, #tpu.memory_space<vmem>>, vector<16x32xf32>
    %cst_105 = arith.constant dense<0.000000e+00> : vector<128x32xf32>
    %94 = tpu.matmul %92, %93, %cst_105 {dimension_numbers = #tpu.dot_dimension_numbers<[1], [0], [0], [1], [0, 0, 1, 1], [], []>} : vector<128x16xf32>, vector<16x32xf32>, vector<128x32xf32> -> vector<128x32xf32>
    %95 = arith.addf %90, %94 : vector<128x32xf32>
    %c0_106 = arith.constant 0 : index
    %c4_107 = arith.constant 4 : index
    %c6_108 = arith.constant 6 : index
    %c0_109 = arith.constant 0 : index
    %96 = vector.load %arg6[%c0_106, %c4_107, %c6_108, %c0_109] : memref<2x16x16x16xf32, #tpu.memory_space<vmem>>, vector<2x8x8x16xf32>
    %97 = vector.shape_cast %96 : vector<2x8x8x16xf32> to vector<128x16xf32>
    %c208 = arith.constant 208 : index
    %c0_110 = arith.constant 0 : index
    %98 = vector.load %arg2[%c208, %c0_110] : memref<400x32xf32, #tpu.memory_space<vmem>>, vector<16x32xf32>
    %cst_111 = arith.constant dense<0.000000e+00> : vector<128x32xf32>
    %99 = tpu.matmul %97, %98, %cst_111 {dimension_numbers = #tpu.dot_dimension_numbers<[1], [0], [0], [1], [0, 0, 1, 1], [], []>} : vector<128x16xf32>, vector<16x32xf32>, vector<128x32xf32> -> vector<128x32xf32>
    %100 = arith.addf %95, %99 : vector<128x32xf32>
    %c0_112 = arith.constant 0 : index
    %c4_113 = arith.constant 4 : index
    %c8_114 = arith.constant 8 : index
    %c0_115 = arith.constant 0 : index
    %101 = vector.load %arg6[%c0_112, %c4_113, %c8_114, %c0_115] : memref<2x16x16x16xf32, #tpu.memory_space<vmem>>, vector<2x8x8x16xf32>
    %102 = vector.shape_cast %101 : vector<2x8x8x16xf32> to vector<128x16xf32>
    %c224 = arith.constant 224 : index
    %c0_116 = arith.constant 0 : index
    %103 = vector.load %arg2[%c224, %c0_116] : memref<400x32xf32, #tpu.memory_space<vmem>>, vector<16x32xf32>
    %cst_117 = arith.constant dense<0.000000e+00> : vector<128x32xf32>
    %104 = tpu.matmul %102, %103, %cst_117 {dimension_numbers = #tpu.dot_dimension_numbers<[1], [0], [0], [1], [0, 0, 1, 1], [], []>} : vector<128x16xf32>, vector<16x32xf32>, vector<128x32xf32> -> vector<128x32xf32>
    %105 = arith.addf %100, %104 : vector<128x32xf32>
    %c0_118 = arith.constant 0 : index
    %c6_119 = arith.constant 6 : index
    %c0_120 = arith.constant 0 : index
    %c0_121 = arith.constant 0 : index
    %106 = vector.load %arg6[%c0_118, %c6_119, %c0_120, %c0_121] : memref<2x16x16x16xf32, #tpu.memory_space<vmem>>, vector<2x8x8x16xf32>
    %107 = vector.shape_cast %106 : vector<2x8x8x16xf32> to vector<128x16xf32>
    %c240 = arith.constant 240 : index
    %c0_122 = arith.constant 0 : index
    %108 = vector.load %arg2[%c240, %c0_122] : memref<400x32xf32, #tpu.memory_space<vmem>>, vector<16x32xf32>
    %cst_123 = arith.constant dense<0.000000e+00> : vector<128x32xf32>
    %109 = tpu.matmul %107, %108, %cst_123 {dimension_numbers = #tpu.dot_dimension_numbers<[1], [0], [0], [1], [0, 0, 1, 1], [], []>} : vector<128x16xf32>, vector<16x32xf32>, vector<128x32xf32> -> vector<128x32xf32>
    %110 = arith.addf %105, %109 : vector<128x32xf32>
    %c0_124 = arith.constant 0 : index
    %c6_125 = arith.constant 6 : index
    %c2_126 = arith.constant 2 : index
    %c0_127 = arith.constant 0 : index
    %111 = vector.load %arg6[%c0_124, %c6_125, %c2_126, %c0_127] : memref<2x16x16x16xf32, #tpu.memory_space<vmem>>, vector<2x8x8x16xf32>
    %112 = vector.shape_cast %111 : vector<2x8x8x16xf32> to vector<128x16xf32>
    %c256 = arith.constant 256 : index
    %c0_128 = arith.constant 0 : index
    %113 = vector.load %arg2[%c256, %c0_128] : memref<400x32xf32, #tpu.memory_space<vmem>>, vector<16x32xf32>
    %cst_129 = arith.constant dense<0.000000e+00> : vector<128x32xf32>
    %114 = tpu.matmul %112, %113, %cst_129 {dimension_numbers = #tpu.dot_dimension_numbers<[1], [0], [0], [1], [0, 0, 1, 1], [], []>} : vector<128x16xf32>, vector<16x32xf32>, vector<128x32xf32> -> vector<128x32xf32>
    %115 = arith.addf %110, %114 : vector<128x32xf32>
    %c0_130 = arith.constant 0 : index
    %c6_131 = arith.constant 6 : index
    %c4_132 = arith.constant 4 : index
    %c0_133 = arith.constant 0 : index
    %116 = vector.load %arg6[%c0_130, %c6_131, %c4_132, %c0_133] : memref<2x16x16x16xf32, #tpu.memory_space<vmem>>, vector<2x8x8x16xf32>
    %117 = vector.shape_cast %116 : vector<2x8x8x16xf32> to vector<128x16xf32>
    %c272 = arith.constant 272 : index
    %c0_134 = arith.constant 0 : index
    %118 = vector.load %arg2[%c272, %c0_134] : memref<400x32xf32, #tpu.memory_space<vmem>>, vector<16x32xf32>
    %cst_135 = arith.constant dense<0.000000e+00> : vector<128x32xf32>
    %119 = tpu.matmul %117, %118, %cst_135 {dimension_numbers = #tpu.dot_dimension_numbers<[1], [0], [0], [1], [0, 0, 1, 1], [], []>} : vector<128x16xf32>, vector<16x32xf32>, vector<128x32xf32> -> vector<128x32xf32>
    %120 = arith.addf %115, %119 : vector<128x32xf32>
    %c0_136 = arith.constant 0 : index
    %c6_137 = arith.constant 6 : index
    %c6_138 = arith.constant 6 : index
    %c0_139 = arith.constant 0 : index
    %121 = vector.load %arg6[%c0_136, %c6_137, %c6_138, %c0_139] : memref<2x16x16x16xf32, #tpu.memory_space<vmem>>, vector<2x8x8x16xf32>
    %122 = vector.shape_cast %121 : vector<2x8x8x16xf32> to vector<128x16xf32>
    %c288 = arith.constant 288 : index
    %c0_140 = arith.constant 0 : index
    %123 = vector.load %arg2[%c288, %c0_140] : memref<400x32xf32, #tpu.memory_space<vmem>>, vector<16x32xf32>
    %cst_141 = arith.constant dense<0.000000e+00> : vector<128x32xf32>
    %124 = tpu.matmul %122, %123, %cst_141 {dimension_numbers = #tpu.dot_dimension_numbers<[1], [0], [0], [1], [0, 0, 1, 1], [], []>} : vector<128x16xf32>, vector<16x32xf32>, vector<128x32xf32> -> vector<128x32xf32>
    %125 = arith.addf %120, %124 : vector<128x32xf32>
    %c0_142 = arith.constant 0 : index
    %c6_143 = arith.constant 6 : index
    %c8_144 = arith.constant 8 : index
    %c0_145 = arith.constant 0 : index
    %126 = vector.load %arg6[%c0_142, %c6_143, %c8_144, %c0_145] : memref<2x16x16x16xf32, #tpu.memory_space<vmem>>, vector<2x8x8x16xf32>
    %127 = vector.shape_cast %126 : vector<2x8x8x16xf32> to vector<128x16xf32>
    %c304 = arith.constant 304 : index
    %c0_146 = arith.constant 0 : index
    %128 = vector.load %arg2[%c304, %c0_146] : memref<400x32xf32, #tpu.memory_space<vmem>>, vector<16x32xf32>
    %cst_147 = arith.constant dense<0.000000e+00> : vector<128x32xf32>
    %129 = tpu.matmul %127, %128, %cst_147 {dimension_numbers = #tpu.dot_dimension_numbers<[1], [0], [0], [1], [0, 0, 1, 1], [], []>} : vector<128x16xf32>, vector<16x32xf32>, vector<128x32xf32> -> vector<128x32xf32>
    %130 = arith.addf %125, %129 : vector<128x32xf32>
    %c0_148 = arith.constant 0 : index
    %c8_149 = arith.constant 8 : index
    %c0_150 = arith.constant 0 : index
    %c0_151 = arith.constant 0 : index
    %131 = vector.load %arg6[%c0_148, %c8_149, %c0_150, %c0_151] : memref<2x16x16x16xf32, #tpu.memory_space<vmem>>, vector<2x8x8x16xf32>
    %132 = vector.shape_cast %131 : vector<2x8x8x16xf32> to vector<128x16xf32>
    %c320 = arith.constant 320 : index
    %c0_152 = arith.constant 0 : index
    %133 = vector.load %arg2[%c320, %c0_152] : memref<400x32xf32, #tpu.memory_space<vmem>>, vector<16x32xf32>
    %cst_153 = arith.constant dense<0.000000e+00> : vector<128x32xf32>
    %134 = tpu.matmul %132, %133, %cst_153 {dimension_numbers = #tpu.dot_dimension_numbers<[1], [0], [0], [1], [0, 0, 1, 1], [], []>} : vector<128x16xf32>, vector<16x32xf32>, vector<128x32xf32> -> vector<128x32xf32>
    %135 = arith.addf %130, %134 : vector<128x32xf32>
    %c0_154 = arith.constant 0 : index
    %c8_155 = arith.constant 8 : index
    %c2_156 = arith.constant 2 : index
    %c0_157 = arith.constant 0 : index
    %136 = vector.load %arg6[%c0_154, %c8_155, %c2_156, %c0_157] : memref<2x16x16x16xf32, #tpu.memory_space<vmem>>, vector<2x8x8x16xf32>
    %137 = vector.shape_cast %136 : vector<2x8x8x16xf32> to vector<128x16xf32>
    %c336 = arith.constant 336 : index
    %c0_158 = arith.constant 0 : index
    %138 = vector.load %arg2[%c336, %c0_158] : memref<400x32xf32, #tpu.memory_space<vmem>>, vector<16x32xf32>
    %cst_159 = arith.constant dense<0.000000e+00> : vector<128x32xf32>
    %139 = tpu.matmul %137, %138, %cst_159 {dimension_numbers = #tpu.dot_dimension_numbers<[1], [0], [0], [1], [0, 0, 1, 1], [], []>} : vector<128x16xf32>, vector<16x32xf32>, vector<128x32xf32> -> vector<128x32xf32>
    %140 = arith.addf %135, %139 : vector<128x32xf32>
    %c0_160 = arith.constant 0 : index
    %c8_161 = arith.constant 8 : index
    %c4_162 = arith.constant 4 : index
    %c0_163 = arith.constant 0 : index
    %141 = vector.load %arg6[%c0_160, %c8_161, %c4_162, %c0_163] : memref<2x16x16x16xf32, #tpu.memory_space<vmem>>, vector<2x8x8x16xf32>
    %142 = vector.shape_cast %141 : vector<2x8x8x16xf32> to vector<128x16xf32>
    %c352 = arith.constant 352 : index
    %c0_164 = arith.constant 0 : index
    %143 = vector.load %arg2[%c352, %c0_164] : memref<400x32xf32, #tpu.memory_space<vmem>>, vector<16x32xf32>
    %cst_165 = arith.constant dense<0.000000e+00> : vector<128x32xf32>
    %144 = tpu.matmul %142, %143, %cst_165 {dimension_numbers = #tpu.dot_dimension_numbers<[1], [0], [0], [1], [0, 0, 1, 1], [], []>} : vector<128x16xf32>, vector<16x32xf32>, vector<128x32xf32> -> vector<128x32xf32>
    %145 = arith.addf %140, %144 : vector<128x32xf32>
    %c0_166 = arith.constant 0 : index
    %c8_167 = arith.constant 8 : index
    %c6_168 = arith.constant 6 : index
    %c0_169 = arith.constant 0 : index
    %146 = vector.load %arg6[%c0_166, %c8_167, %c6_168, %c0_169] : memref<2x16x16x16xf32, #tpu.memory_space<vmem>>, vector<2x8x8x16xf32>
    %147 = vector.shape_cast %146 : vector<2x8x8x16xf32> to vector<128x16xf32>
    %c368 = arith.constant 368 : index
    %c0_170 = arith.constant 0 : index
    %148 = vector.load %arg2[%c368, %c0_170] : memref<400x32xf32, #tpu.memory_space<vmem>>, vector<16x32xf32>
    %cst_171 = arith.constant dense<0.000000e+00> : vector<128x32xf32>
    %149 = tpu.matmul %147, %148, %cst_171 {dimension_numbers = #tpu.dot_dimension_numbers<[1], [0], [0], [1], [0, 0, 1, 1], [], []>} : vector<128x16xf32>, vector<16x32xf32>, vector<128x32xf32> -> vector<128x32xf32>
    %150 = arith.addf %145, %149 : vector<128x32xf32>
    %c0_172 = arith.constant 0 : index
    %c8_173 = arith.constant 8 : index
    %c8_174 = arith.constant 8 : index
    %c0_175 = arith.constant 0 : index
    %151 = vector.load %arg6[%c0_172, %c8_173, %c8_174, %c0_175] : memref<2x16x16x16xf32, #tpu.memory_space<vmem>>, vector<2x8x8x16xf32>
    %152 = vector.shape_cast %151 : vector<2x8x8x16xf32> to vector<128x16xf32>
    %c384 = arith.constant 384 : index
    %c0_176 = arith.constant 0 : index
    %153 = vector.load %arg2[%c384, %c0_176] : memref<400x32xf32, #tpu.memory_space<vmem>>, vector<16x32xf32>
    %cst_177 = arith.constant dense<0.000000e+00> : vector<128x32xf32>
    %154 = tpu.matmul %152, %153, %cst_177 {dimension_numbers = #tpu.dot_dimension_numbers<[1], [0], [0], [1], [0, 0, 1, 1], [], []>} : vector<128x16xf32>, vector<16x32xf32>, vector<128x32xf32> -> vector<128x32xf32>
    %155 = arith.addf %150, %154 : vector<128x32xf32>
    %c1 = arith.constant 1 : index
    %c0_178 = arith.constant 0 : index
    %156 = vector.load %arg4[%c1, %c0_178] : memref<8x128xf32, #tpu.memory_space<vmem>>, vector<1x32xf32>
    %157 = vector.broadcast %156 : vector<1x32xf32> to vector<128x32xf32>
    %158 = arith.addf %155, %157 : vector<128x32xf32>
    %159 = vector.shape_cast %158 : vector<128x32xf32> to vector<2x8x8x32xf32>
    %160 = vector.shape_cast %159 : vector<2x8x8x32xf32> to vector<2x8x4x2x32xf32>
    %cst_179 = arith.constant dense<0xFF800000> : vector<2x8x4x32xf32>
    %161 = vector.multi_reduction <maximumf>, %160, %cst_179 [3] : vector<2x8x4x2x32xf32> to vector<2x8x4x32xf32>
    %162 = vector.shape_cast %161 : vector<2x8x4x32xf32> to vector<2x4x2x4x32xf32>
    %163 = vector.extract_strided_slice %162 {offsets = [0, 0, 0, 0, 0], sizes = [2, 4, 1, 4, 32], strides = [1, 1, 1, 1, 1]} : vector<2x4x2x4x32xf32> to vector<2x4x1x4x32xf32>
    %164 = vector.shape_cast %163 : vector<2x4x1x4x32xf32> to vector<2x4x4x32xf32>
    %165 = vector.extract_strided_slice %162 {offsets = [0, 0, 1, 0, 0], sizes = [2, 4, 1, 4, 32], strides = [1, 1, 1, 1, 1]} : vector<2x4x2x4x32xf32> to vector<2x4x1x4x32xf32>
    %166 = vector.shape_cast %165 : vector<2x4x1x4x32xf32> to vector<2x4x4x32xf32>
    %167 = arith.maximumf %164, %166 : vector<2x4x4x32xf32>
    %cst_180 = arith.constant 0.000000e+00 : f32
    %168 = vector.broadcast %cst_180 : f32 to vector<2x4x4x32xf32>
    %169 = arith.subf %168, %167 : vector<2x4x4x32xf32>
    %170 = math.exp %169 : vector<2x4x4x32xf32>
    %cst_181 = arith.constant 1.000000e+00 : f32
    %171 = vector.broadcast %cst_181 : f32 to vector<2x4x4x32xf32>
    %172 = arith.addf %171, %170 : vector<2x4x4x32xf32>
    %173 = tpu.reciprocal %172 {approx = true} : vector<2x4x4x32xf32> -> vector<2x4x4x32xf32>
    %174 = arith.mulf %167, %173 : vector<2x4x4x32xf32>
    %175 = vector.shape_cast %174 : vector<2x4x4x32xf32> to vector<32x32xf32>
    %c1_182 = arith.constant 1 : index
    %c0_183 = arith.constant 0 : index
    %c0_184 = arith.constant 0 : index
    %176 = vector.load %arg3[%c1_182, %c0_183, %c0_184] : memref<6x128x128xf32, #tpu.memory_space<vmem>>, vector<1x32x64xf32>
    %177 = vector.shape_cast %176 : vector<1x32x64xf32> to vector<32x64xf32>
    %cst_185 = arith.constant dense<0.000000e+00> : vector<32x64xf32>
    %178 = tpu.matmul %175, %177, %cst_185 {dimension_numbers = #tpu.dot_dimension_numbers<[1], [0], [0], [1], [0, 0, 1, 1], [], []>} : vector<32x32xf32>, vector<32x64xf32>, vector<32x64xf32> -> vector<32x64xf32>
    %c2_186 = arith.constant 2 : index
    %c0_187 = arith.constant 0 : index
    %179 = vector.load %arg4[%c2_186, %c0_187] : memref<8x128xf32, #tpu.memory_space<vmem>>, vector<1x64xf32>
    %180 = vector.broadcast %179 : vector<1x64xf32> to vector<32x64xf32>
    %181 = arith.addf %178, %180 : vector<32x64xf32>
    %cst_188 = arith.constant 0.000000e+00 : f32
    %182 = vector.broadcast %cst_188 : f32 to vector<32x64xf32>
    %183 = arith.subf %182, %181 : vector<32x64xf32>
    %184 = math.exp %183 : vector<32x64xf32>
    %cst_189 = arith.constant 1.000000e+00 : f32
    %185 = vector.broadcast %cst_189 : f32 to vector<32x64xf32>
    %186 = arith.addf %185, %184 : vector<32x64xf32>
    %187 = tpu.reciprocal %186 {approx = true} : vector<32x64xf32> -> vector<32x64xf32>
    %188 = arith.mulf %181, %187 : vector<32x64xf32>
    %c2_190 = arith.constant 2 : index
    %c0_191 = arith.constant 0 : index
    %c0_192 = arith.constant 0 : index
    %189 = vector.load %arg3[%c2_190, %c0_191, %c0_192] : memref<6x128x128xf32, #tpu.memory_space<vmem>>, vector<1x64x128xf32>
    %190 = vector.shape_cast %189 : vector<1x64x128xf32> to vector<64x128xf32>
    %cst_193 = arith.constant dense<0.000000e+00> : vector<32x128xf32>
    %191 = tpu.matmul %188, %190, %cst_193 {dimension_numbers = #tpu.dot_dimension_numbers<[1], [0], [0], [1], [0, 0, 1, 1], [], []>} : vector<32x64xf32>, vector<64x128xf32>, vector<32x128xf32> -> vector<32x128xf32>
    %c3 = arith.constant 3 : index
    %c0_194 = arith.constant 0 : index
    %192 = vector.load %arg4[%c3, %c0_194] : memref<8x128xf32, #tpu.memory_space<vmem>>, vector<1x128xf32>
    %193 = vector.broadcast %192 : vector<1x128xf32> to vector<32x128xf32>
    %194 = arith.addf %191, %193 : vector<32x128xf32>
    %cst_195 = arith.constant 0.000000e+00 : f32
    %195 = vector.broadcast %cst_195 : f32 to vector<32x128xf32>
    %196 = arith.subf %195, %194 : vector<32x128xf32>
    %197 = math.exp %196 : vector<32x128xf32>
    %cst_196 = arith.constant 1.000000e+00 : f32
    %198 = vector.broadcast %cst_196 : f32 to vector<32x128xf32>
    %199 = arith.addf %198, %197 : vector<32x128xf32>
    %200 = tpu.reciprocal %199 {approx = true} : vector<32x128xf32> -> vector<32x128xf32>
    %201 = arith.mulf %194, %200 : vector<32x128xf32>
    %202 = vector.shape_cast %201 : vector<32x128xf32> to vector<2x16x128xf32>
    %cst_197 = arith.constant dense<0.000000e+00> : vector<2x128xf32>
    %203 = vector.multi_reduction <add>, %202, %cst_197 [1] : vector<2x16x128xf32> to vector<2x128xf32>
    %cst_198 = arith.constant 1.600000e+01 : f32
    %204 = vector.broadcast %cst_198 : f32 to vector<2x128xf32>
    %205 = arith.divf %203, %204 : vector<2x128xf32>
    %c3_199 = arith.constant 3 : index
    %c0_200 = arith.constant 0 : index
    %c0_201 = arith.constant 0 : index
    %206 = vector.load %arg3[%c3_199, %c0_200, %c0_201] : memref<6x128x128xf32, #tpu.memory_space<vmem>>, vector<1x128x64xf32>
    %207 = vector.shape_cast %206 : vector<1x128x64xf32> to vector<128x64xf32>
    %cst_202 = arith.constant dense<0.000000e+00> : vector<2x64xf32>
    %208 = tpu.matmul %205, %207, %cst_202 {dimension_numbers = #tpu.dot_dimension_numbers<[1], [0], [0], [1], [0, 0, 1, 1], [], []>} : vector<2x128xf32>, vector<128x64xf32>, vector<2x64xf32> -> vector<2x64xf32>
    %c4_203 = arith.constant 4 : index
    %c0_204 = arith.constant 0 : index
    %209 = vector.load %arg4[%c4_203, %c0_204] : memref<8x128xf32, #tpu.memory_space<vmem>>, vector<1x64xf32>
    %210 = vector.broadcast %209 : vector<1x64xf32> to vector<2x64xf32>
    %211 = arith.addf %208, %210 : vector<2x64xf32>
    %cst_205 = arith.constant 0.000000e+00 : f32
    %212 = vector.broadcast %cst_205 : f32 to vector<2x64xf32>
    %213 = arith.subf %212, %211 : vector<2x64xf32>
    %214 = math.exp %213 : vector<2x64xf32>
    %cst_206 = arith.constant 1.000000e+00 : f32
    %215 = vector.broadcast %cst_206 : f32 to vector<2x64xf32>
    %216 = arith.addf %215, %214 : vector<2x64xf32>
    %217 = tpu.reciprocal %216 {approx = true} : vector<2x64xf32> -> vector<2x64xf32>
    %218 = arith.mulf %211, %217 : vector<2x64xf32>
    %c4_207 = arith.constant 4 : index
    %c0_208 = arith.constant 0 : index
    %c0_209 = arith.constant 0 : index
    %219 = vector.load %arg3[%c4_207, %c0_208, %c0_209] : memref<6x128x128xf32, #tpu.memory_space<vmem>>, vector<1x64x32xf32>
    %220 = vector.shape_cast %219 : vector<1x64x32xf32> to vector<64x32xf32>
    %cst_210 = arith.constant dense<0.000000e+00> : vector<2x32xf32>
    %221 = tpu.matmul %218, %220, %cst_210 {dimension_numbers = #tpu.dot_dimension_numbers<[1], [0], [0], [1], [0, 0, 1, 1], [], []>} : vector<2x64xf32>, vector<64x32xf32>, vector<2x32xf32> -> vector<2x32xf32>
    %c5 = arith.constant 5 : index
    %c0_211 = arith.constant 0 : index
    %222 = vector.load %arg4[%c5, %c0_211] : memref<8x128xf32, #tpu.memory_space<vmem>>, vector<1x32xf32>
    %223 = vector.broadcast %222 : vector<1x32xf32> to vector<2x32xf32>
    %224 = arith.addf %221, %223 : vector<2x32xf32>
    %cst_212 = arith.constant 0.000000e+00 : f32
    %225 = vector.broadcast %cst_212 : f32 to vector<2x32xf32>
    %226 = arith.subf %225, %224 : vector<2x32xf32>
    %227 = math.exp %226 : vector<2x32xf32>
    %cst_213 = arith.constant 1.000000e+00 : f32
    %228 = vector.broadcast %cst_213 : f32 to vector<2x32xf32>
    %229 = arith.addf %228, %227 : vector<2x32xf32>
    %230 = tpu.reciprocal %229 {approx = true} : vector<2x32xf32> -> vector<2x32xf32>
    %231 = arith.mulf %224, %230 : vector<2x32xf32>
    %c5_214 = arith.constant 5 : index
    %c0_215 = arith.constant 0 : index
    %c0_216 = arith.constant 0 : index
    %232 = vector.load %arg3[%c5_214, %c0_215, %c0_216] : memref<6x128x128xf32, #tpu.memory_space<vmem>>, vector<1x32x1xf32>
    %233 = vector.shape_cast %232 : vector<1x32x1xf32> to vector<32x1xf32>
    %cst_217 = arith.constant dense<0.000000e+00> : vector<2x1xf32>
    %234 = tpu.matmul %231, %233, %cst_217 {dimension_numbers = #tpu.dot_dimension_numbers<[1], [0], [0], [1], [0, 0, 1, 1], [], []>} : vector<2x32xf32>, vector<32x1xf32>, vector<2x1xf32> -> vector<2x1xf32>
    %c6_218 = arith.constant 6 : index
    %c0_219 = arith.constant 0 : index
    %235 = vector.load %arg4[%c6_218, %c0_219] : memref<8x128xf32, #tpu.memory_space<vmem>>, vector<1x1xf32>
    %236 = vector.broadcast %235 : vector<1x1xf32> to vector<2x1xf32>
    %237 = arith.addf %234, %236 : vector<2x1xf32>
    %cst_220 = arith.constant 0.000000e+00 : f32
    %238 = vector.broadcast %cst_220 : f32 to vector<2x1xf32>
    %239 = arith.subf %238, %237 : vector<2x1xf32>
    %240 = math.exp %239 : vector<2x1xf32>
    %cst_221 = arith.constant 1.000000e+00 : f32
    %241 = vector.broadcast %cst_221 : f32 to vector<2x1xf32>
    %242 = arith.addf %241, %240 : vector<2x1xf32>
    %243 = tpu.reciprocal %242 {approx = true} : vector<2x1xf32> -> vector<2x1xf32>
    %c0_222 = arith.constant 0 : index
    %c0_223 = arith.constant 0 : index
    %244 = vector.load %arg5[%c0_222, %c0_223] : memref<2x1xf32, #tpu.memory_space<vmem>>, vector<2x1xf32>
    tpu.vector_store %arg5[%c0_222, %c0_223], %243 {strides = array<i32>} : memref<2x1xf32, #tpu.memory_space<vmem>>, vector<2x1xf32>,
    return
  }
  func.func @transform_0(%arg0: i32) -> (i32, i32) {
    %c0_i32 = arith.constant 0 : i32
    %c0_i32_0 = arith.constant 0 : i32
    %c0_i32_1 = arith.constant 0 : i32
    return %c0_i32, %c0_i32_0 : i32, i32
  }
  func.func @transform_1(%arg0: i32) -> (i32, i32) {
    %c0_i32 = arith.constant 0 : i32
    %c0_i32_0 = arith.constant 0 : i32
    %c0_i32_1 = arith.constant 0 : i32
    return %c0_i32, %c0_i32_0 : i32, i32
  }
  func.func @transform_2(%arg0: i32) -> (i32, i32, i32) {
    %c0_i32 = arith.constant 0 : i32
    %c0_i32_0 = arith.constant 0 : i32
    %c0_i32_1 = arith.constant 0 : i32
    %c0_i32_2 = arith.constant 0 : i32
    return %c0_i32, %c0_i32_0, %c0_i32_1 : i32, i32, i32
  }
  func.func @transform_3(%arg0: i32) -> (i32, i32) {
    %c0_i32 = arith.constant 0 : i32
    %c0_i32_0 = arith.constant 0 : i32
    %c0_i32_1 = arith.constant 0 : i32
    return %c0_i32, %c0_i32_0 : i32, i32
  }
  func.func @transform_4(%arg0: i32) -> (i32, i32) {
    %c0_i32 = arith.constant 0 : i32
    %c0_i32_0 = arith.constant 0 : i32
    %c0_i32_1 = arith.constant 0 : i32
    return %c0_i32, %c0_i32_0 : i32, i32
  }
}

</mosaic_0001>

<bundles_post_ra>
// kernel: enhanced_cnn_forward.1
= control target key start
LH: loop header
LB: loop body
LE: loop exit
PB: predicated region body
PF: predicated region fallthrough
CT: control target
= control target key end

     0   :  { %vm87_vm0 = vcmask 261120   ;;  %vm3626_vm1 = vcmask 130048   ;;  %v10016_v17 = vmov 0.0   ;;  %vm937_vm2 = vcmask 123904   ;;  %s14493_s2 = inlined_call_operand.vmem [shape: f32[6,128,128], index: 2, kind: input, shape index: {}]   ;;  %s14494_s0 = inlined_call_operand.vmem [shape: f32[512,32], index: 0, kind: input, shape index: {}]   ;;  %s14495_s3 = inlined_call_operand.vmem [shape: f32[8,128], index: 3, kind: input, shape index: {}]   ;;  %s14496_s1 = inlined_call_operand.vmem [shape: f32[400,32], index: 1, kind: input, shape index: {}]   ;;  %s14497_s4 = inlined_call_operand.vmem [shape: f32[2,1], index: 4, kind: output, shape index: {}]  }
   0x1   :  { %v84_v0 = vld [vmem:[%s14493_s2 + $0x18] sm:$0xff]  ;;  %v83_v1 = vld [vmem:[%s14493_s2 + $0x10] sm:$0xff]  ;;  %v82_v2 = vld [vmem:[%s14493_s2 + $0x8] sm:$0xff]  ;;  %3635 = vst.msk [vmem:[#allocation2 + $0x100] sm:$0xff] %vm3626_vm1, %v10016_v17  ;;  %vm3822_vm3 = vcmask 1041409   ;;  %vm3824_vm4 = vcmask 1042434  }
   0x2   :  { %292 = vmatpush.msra.mxu0 %v84_v0  ;;  %v81_v3 = vld [vmem:[%s14493_s2] sm:$0xff]  ;;  %v18_v5 = vld [vmem:[%s14494_s0 + $0x8] sm:$0xff]  ;;  %v19_v6 = vld [vmem:[%s14494_s0 + $0x10] sm:$0xff]  ;;  %3636 = vst.msk [vmem:[#allocation2 + $0x108] sm:$0xff] %vm3626_vm1, %v10016_v17  ;;  %vm3826_vm5 = vcmask 1043459   ;;  %vm3828_vm6 = vcmask 1044484  }
   0x3   :  { %v17_v4 = vld [vmem:[%s14494_s0] sm:$0xff]  ;;  %v20_v7 = vld [vmem:[%s14494_s0 + $0x18] sm:$0xff]  ;;  %v22_v9 = vld [vmem:[%s14494_s0 + $0x28] sm:$0xff]  ;;  %3627 = vst.msk [vmem:[#allocation2] sm:$0xff] %vm3626_vm1, %v10016_v17  ;;  %vm3830_vm7 = vcmask 1045509   ;;  %vm3832_vm8 = vcmask 1046534  }
   0x4   :  { %293 = vmatpush.msra.mxu0 %v83_v1  ;;  %v21_v8 = vld [vmem:[%s14494_s0 + $0x20] sm:$0xff]  ;;  %v23_v10 = vld [vmem:[%s14494_s0 + $0x30] sm:$0xff]  ;;  %v24_v11 = vld [vmem:[%s14494_s0 + $0x38] sm:$0xff]  ;;  %3628 = vst.msk [vmem:[#allocation2 + $0x8] sm:$0xff] %vm3626_vm1, %v10016_v17  ;;  %vm3834_vm9 = vcmask 1047559   ;;  %vm3661_vm10 = vcmask 125952  }
   0x5   :  { %v25_v12 = vld [vmem:[%s14494_s0 + $0x40] sm:$0xff]  ;;  %v26_v13 = vld [vmem:[%s14494_s0 + $0x48] sm:$0xff]  ;;  %v27_v14 = vld [vmem:[%s14494_s0 + $0x50] sm:$0xff]  ;;  %3629 = vst.msk [vmem:[#allocation2 + $0x10] sm:$0xff] %vm3626_vm1, %v10016_v17  ;;  %vm7749_vm11 = vcmask 254976   ;;  %vm8561_vm12 = vcmask 523264  }
   0x6   :  { %294 = vmatpush.msra.mxu0 %v82_v2  ;;  %v28_v15 = vld [vmem:[%s14494_s0 + $0x58] sm:$0xff]  ;;  %v29_v16 = vld [vmem:[%s14494_s0 + $0x60] sm:$0xff]  ;;  %v30_v18 = vld [vmem:[%s14494_s0 + $0x68] sm:$0xff]  ;;  %3630 = vst.msk [vmem:[#allocation2 + $0x18] sm:$0xff] %vm3626_vm1, %v10016_v17  ;;  %vm8774_vm14 = vcmask 1024  }
   0x7   :  { %v4008_v19 = vld [vmem:[%s14496_s1 + $0x18] sm:$0xff]  ;;  %v4007_v20 = vld [vmem:[%s14496_s1 + $0x10] sm:$0xff]  ;;  %3631 = vst.msk [vmem:[#allocation2 + $0x20] sm:$0xff] %vm3626_vm1, %v10016_v17  ;;  %v10176_v25 = vld [vmem:[%s14495_s3] ss:$0 sm:$0xff] }
   0x8   :  { %295 = vmatpush.msra.mxu0 %v81_v3  ;;  %9294 = vmatpush.msra.mxu2 %v4008_v19  ;;  %3632 = vst.msk [vmem:[#allocation2 + $0x28] sm:$0xff] %vm3626_vm1, %v10016_v17  ;;  %v31_v22 = vld [vmem:[%s14494_s0 + $0x70] sm:$0xff]  ;;  %v32_v23 = vld [vmem:[%s14494_s0 + $0x78] sm:$0xff]  ;;  %v33_v27 = vld [vmem:[%s14494_s0 + $0x80] sm:$0xff] }
   0x9   :  { %8780 = vmatmul.msk.f32.vlgmr.msra.gmra.mxu0 %vm87_vm0, %v17_v4  ;;  %4071 = vmatpush.msra.mxu1 %v4008_v19  ;;  %v3999_v21 = vld [vmem:[#allocation2 + $0x102] sm:$0xff]  ;;  %3633 = vst.msk [vmem:[#allocation2 + $0x30] sm:$0xff] %vm3626_vm1, %v10016_v17 }
   0xa   :  { %9295 = vmatpush.msra.mxu3 %v4008_v19  ;;  %9296 = vmatpush.msra.mxu2 %v4007_v20  ;;  %3634 = vst.msk [vmem:[#allocation2 + $0x38] sm:$0xff] %vm3626_vm1, %v10016_v17  ;;  %v34_v47 = vld [vmem:[%s14494_s0 + $0x88] sm:$0xff] }
   0xb   :  { %4072 = vmatpush.msra.mxu1 %v4007_v20  ;;  %8852 = vmatmul.msk.f32.vlgmr.msra.gmra.mxu2 %vm3626_vm1, %v3999_v21  ;;  %3637 = vst.msk [vmem:[#allocation2 + $0x110] sm:$0xff] %vm3626_vm1, %v10016_v17 }
   0xc   :  { %9297 = vmatpush.msra.mxu3 %v4007_v20  ;;  %3638 = vst.msk [vmem:[#allocation2 + $0x118] sm:$0xff] %vm3626_vm1, %v10016_v17 }
   0xd   :  { %3639 = vst.msk [vmem:[#allocation2 + $0x120] sm:$0xff] %vm3626_vm1, %v10016_v17 }
   0xe   :  { %3640 = vst.msk [vmem:[#allocation2 + $0x128] sm:$0xff] %vm3626_vm1, %v10016_v17 }
   0xf   :  { %3641 = vst.msk [vmem:[#allocation2 + $0x130] sm:$0xff] %vm3626_vm1, %v10016_v17 }
  0x10   :  { %3642 = vst.msk [vmem:[#allocation2 + $0x138] sm:$0xff] %vm3626_vm1, %v10016_v17 }
  0x11   :  { %8781 = vmatmul.msk.f32.gmra.mxu0 %vm87_vm0, %v18_v5  ;;  %3644 = vst.msk [vmem:[#allocation2 + $0xc0] sm:$0xff] %vm3626_vm1, %v10016_v17 }
  0x12   :  { %3645 = vst.msk [vmem:[#allocation2 + $0xc8] sm:$0xff] %vm3626_vm1, %v10016_v17 }
  0x13   :  { %3646 = vst.msk [vmem:[#allocation2 + $0xd0] sm:$0xff] %vm3626_vm1, %v10016_v17  ;;  %v4000_v24 = vld [vmem:[#allocation2 + $0x112] sm:$0xff] }
  0x14   :  { %3647 = vst.msk [vmem:[#allocation2 + $0xd8] sm:$0xff] %vm3626_vm1, %v10016_v17  ;;  %8853 = vmatmul.msk.f32.gmra.mxu2 %vm3626_vm1, %v4000_v24 }
  0x15   :  { %3648 = vst.msk [vmem:[#allocation2 + $0xe0] sm:$0xff] %vm3626_vm1, %v10016_v17  ;;  %v4001_v34 = vld [vmem:[#allocation2 + $0x122] sm:$0xff] }
  0x16   :  { %3649 = vst.msk [vmem:[#allocation2 + $0xe8] sm:$0xff] %vm3626_vm1, %v10016_v17 }
  0x17   :  { %3650 = vst.msk [vmem:[#allocation2 + $0xf0] sm:$0xff] %vm3626_vm1, %v10016_v17 }
  0x18   :  { %3651 = vst.msk [vmem:[#allocation2 + $0xf8] sm:$0xff] %vm3626_vm1, %v10016_v17 }
  0x19   :  { %8782 = vmatmul.msk.f32.gmra.mxu0 %vm87_vm0, %v19_v6  ;;  %3652 = vst.msk [vmem:[#allocation2 + $0x1c0] sm:$0xff] %vm3626_vm1, %v10016_v17  ;;  %v35_v6 = vld [vmem:[%s14494_s0 + $0x90] sm:$0xff] }
  0x1a   :  { %3653 = vst.msk [vmem:[#allocation2 + $0x1c8] sm:$0xff] %vm3626_vm1, %v10016_v17 }
  0x1b   :  { %3654 = vst.msk [vmem:[#allocation2 + $0x1d0] sm:$0xff] %vm3626_vm1, %v10016_v17 }
  0x1c   :  { %3655 = vst.msk [vmem:[#allocation2 + $0x1d8] sm:$0xff] %vm3626_vm1, %v10016_v17  ;;  %8854 = vmatmul.msk.f32.gmra.mxu2 %vm3626_vm1, %v4001_v34 }
  0x1d   :  { %3656 = vst.msk [vmem:[#allocation2 + $0x1e0] sm:$0xff] %vm3626_vm1, %v10016_v17 }
  0x1e   :  { %3657 = vst.msk [vmem:[#allocation2 + $0x1e8] sm:$0xff] %vm3626_vm1, %v10016_v17 }
  0x1f   :  { %3658 = vst.msk [vmem:[#allocation2 + $0x1f0] sm:$0xff] %vm3626_vm1, %v10016_v17 }
  0x20   :  { %3659 = vst.msk [vmem:[#allocation2 + $0x1f8] sm:$0xff] %vm3626_vm1, %v10016_v17 }
  0x21   :  { %8783 = vmatmul.msk.f32.gmra.mxu0 %vm87_vm0, %v20_v7  ;;  %3662 = vst.msk [vmem:[#allocation2 + $0x40] sm:$0xf] %vm3661_vm10, %v10016_v17 }
  0x22   :  { %3663 = vst.msk [vmem:[#allocation2 + $0x50] sm:$0xf] %vm3661_vm10, %v10016_v17 }
  0x23   :  { %3664 = vst.msk [vmem:[#allocation2 + $0x60] sm:$0xf] %vm3661_vm10, %v10016_v17 }
  0x24   :  { %3665 = vst.msk [vmem:[#allocation2 + $0x70] sm:$0xf] %vm3661_vm10, %v10016_v17 }
  0x25   :  { %3666 = vst.msk [vmem:[#allocation2 + $0x80] sm:$0xf] %vm3661_vm10, %v10016_v17 }
  0x26   :  { %3667 = vst.msk [vmem:[#allocation2 + $0x90] sm:$0xf] %vm3661_vm10, %v10016_v17 }
  0x27   :  { %3668 = vst.msk [vmem:[#allocation2 + $0xa0] sm:$0xf] %vm3661_vm10, %v10016_v17 }
  0x28   :  { %3669 = vst.msk [vmem:[#allocation2 + $0xb0] sm:$0xf] %vm3661_vm10, %v10016_v17 }
  0x29   :  { %8784 = vmatmul.msk.f32.gmra.mxu0 %vm87_vm0, %v21_v8  ;;  %3670 = vst.msk [vmem:[#allocation2 + $0x140] sm:$0xf] %vm3661_vm10, %v10016_v17 }
  0x2a   :  { %3671 = vst.msk [vmem:[#allocation2 + $0x150] sm:$0xf] %vm3661_vm10, %v10016_v17 }
  0x2b   :  { %3672 = vst.msk [vmem:[#allocation2 + $0x160] sm:$0xf] %vm3661_vm10, %v10016_v17 }
  0x2c   :  { %3673 = vst.msk [vmem:[#allocation2 + $0x170] sm:$0xf] %vm3661_vm10, %v10016_v17 }
  0x2d   :  { %3674 = vst.msk [vmem:[#allocation2 + $0x180] sm:$0xf] %vm3661_vm10, %v10016_v17 }
  0x2e   :  { %3675 = vst.msk [vmem:[#allocation2 + $0x190] sm:$0xf] %vm3661_vm10, %v10016_v17 }
  0x2f   :  { %3676 = vst.msk [vmem:[#allocation2 + $0x1a0] sm:$0xf] %vm3661_vm10, %v10016_v17 }
  0x30   :  { %3677 = vst.msk [vmem:[#allocation2 + $0x1b0] sm:$0xf] %vm3661_vm10, %v10016_v17 }
  0x31   :  { %8785 = vmatmul.msk.f32.gmra.mxu0 %vm87_vm0, %v22_v9  ;;  %3678 = vst.msk [vmem:[#allocation2 + $0x4c] sm:$0xf] %vm3661_vm10, %v10016_v17 }
  0x32   :  { %3679 = vst.msk [vmem:[#allocation2 + $0x5c] sm:$0xf] %vm3661_vm10, %v10016_v17 }
  0x33   :  { %3680 = vst.msk [vmem:[#allocation2 + $0x6c] sm:$0xf] %vm3661_vm10, %v10016_v17 }
  0x34   :  { %3681 = vst.msk [vmem:[#allocation2 + $0x7c] sm:$0xf] %vm3661_vm10, %v10016_v17 }
  0x35   :  { %3682 = vst.msk [vmem:[#allocation2 + $0x8c] sm:$0xf] %vm3661_vm10, %v10016_v17 }
  0x36   :  { %3683 = vst.msk [vmem:[#allocation2 + $0x9c] sm:$0xf] %vm3661_vm10, %v10016_v17 }
  0x37   :  { %3684 = vst.msk [vmem:[#allocation2 + $0xac] sm:$0xf] %vm3661_vm10, %v10016_v17 }
  0x38   :  { %3685 = vst.msk [vmem:[#allocation2 + $0xbc] sm:$0xf] %vm3661_vm10, %v10016_v17 }
  0x39   :  { %8786 = vmatmul.msk.f32.gmra.mxu0 %vm87_vm0, %v23_v10  ;;  %3686 = vst.msk [vmem:[#allocation2 + $0x14c] sm:$0xf] %vm3661_vm10, %v10016_v17 }
  0x3a   :  { %3687 = vst.msk [vmem:[#allocation2 + $0x15c] sm:$0xf] %vm3661_vm10, %v10016_v17 }
  0x3b   :  { %3688 = vst.msk [vmem:[#allocation2 + $0x16c] sm:$0xf] %vm3661_vm10, %v10016_v17 }
  0x3c   :  { %3689 = vst.msk [vmem:[#allocation2 + $0x17c] sm:$0xf] %vm3661_vm10, %v10016_v17 }
  0x3d   :  { %3690 = vst.msk [vmem:[#allocation2 + $0x18c] sm:$0xf] %vm3661_vm10, %v10016_v17 }
  0x3e   :  { %3691 = vst.msk [vmem:[#allocation2 + $0x19c] sm:$0xf] %vm3661_vm10, %v10016_v17 }
  0x3f   :  { %3692 = vst.msk [vmem:[#allocation2 + $0x1ac] sm:$0xf] %vm3661_vm10, %v10016_v17 }
  0x40   :  { %3693 = vst.msk [vmem:[#allocation2 + $0x1bc] sm:$0xf] %vm3661_vm10, %v10016_v17 }
  0x41   :  { %8787 = vmatmul.msk.f32.gmra.mxu0 %vm87_vm0, %v24_v11 }
  0x49   :  { %8788 = vmatmul.msk.f32.gmra.mxu0 %vm87_vm0, %v25_v12 }
  0x51   :  { %8789 = vmatmul.msk.f32.gmra.mxu0 %vm87_vm0, %v26_v13 }
  0x59   :  { %8790 = vmatmul.msk.f32.gmra.mxu0 %vm87_vm0, %v27_v14 }
  0x61   :  { %8791 = vmatmul.msk.f32.gmra.mxu0 %vm87_vm0, %v28_v15 }
  0x69   :  { %8792 = vmatmul.msk.f32.gmra.mxu0 %vm87_vm0, %v29_v16 }
  0x71   :  { %8793 = vmatmul.msk.f32.gmra.mxu0 %vm87_vm0, %v30_v18  ;;  %v4002_v18 = vld [vmem:[#allocation2 + $0x132] sm:$0xff] }
  0x72   :  { %8855 = vmatmul.msk.f32.gmra.mxu2 %vm3626_vm1, %v4002_v18 }
  0x79   :  { %8794 = vmatmul.msk.f32.gmra.mxu0 %vm87_vm0, %v31_v22 }
  0x81   :  { %8795 = vmatmul.msk.f32.gmra.mxu0 %vm87_vm0, %v32_v23 }
  0x86   :  { %v297_v26 = vpop.f32.mrf.mxu0 }
  0x87   :  { %v298_v28 = vadd.f32 %v10176_v25, %v297_v26 }
  0x89   :  { %v553_v29 = vrot.slane %v298_v28, 2  ;;  %v554_v30 = vrot.slane %v298_v28, 4  ;;  %v555_v31 = vrot.slane %v298_v28, 6  ;;  %v938_v32 = vsel %vm937_vm2, %v298_v28, -inf  ;;  %8796 = vmatmul.msk.f32.gmra.mxu0 %vm87_vm0, %v33_v27 }
  0x8a   :  { %v939_v33 = vrot.slane %v938_v32, 4 }
  0x8b   :  { %v945_v35 = vsel %vm937_vm2, %v553_v29, -inf  ;;  %v952_v36 = vsel %vm937_vm2, %v554_v30, -inf  ;;  %v959_v37 = vsel %vm937_vm2, %v555_v31, -inf }
  0x8c   :  { %v940_v38 = vmax.f32 %v938_v32, %v939_v33  ;;  %v946_v39 = vrot.slane %v945_v35, 4  ;;  %v953_v40 = vrot.slane %v952_v36, 4  ;;  %v960_v41 = vrot.slane %v959_v37, 4 }
  0x8e   :  { %v941_v42 = vrot.slane %v940_v38, 2  ;;  %v947_v43 = vmax.f32 %v945_v35, %v946_v39  ;;  %v954_v44 = vmax.f32 %v952_v36, %v953_v40  ;;  %v961_v45 = vmax.f32 %v959_v37, %v960_v41  ;;  %v300_v46 = vpop.f32.mrf.mxu0  ;;  %v36_v41 = vld [vmem:[%s14494_s0 + $0x98] sm:$0xff] }
  0x8f   :  { %v301_v48 = vadd.f32 %v10176_v25, %v300_v46 }
  0x90   :  { %v948_v49 = vrot.slane %v947_v43, 2  ;;  %v955_v50 = vrot.slane %v954_v44, 2  ;;  %v962_v51 = vrot.slane %v961_v45, 2  ;;  %v942_v56 = vmax.f32 %v940_v38, %v941_v42 }
  0x91   :  { %v556_v52 = vrot.slane %v301_v48, 2  ;;  %v557_v53 = vrot.slane %v301_v48, 4  ;;  %v558_v54 = vrot.slane %v301_v48, 6  ;;  %v966_v55 = vsel %vm937_vm2, %v301_v48, -inf  ;;  %8797 = vmatmul.msk.f32.gmra.mxu0 %vm87_vm0, %v34_v47 }
  0x92   :  { %v967_v57 = vrot.slane %v966_v55, 4  ;;  %v949_v61 = vmax.f32 %v947_v43, %v948_v49  ;;  %v956_v62 = vmax.f32 %v954_v44, %v955_v50  ;;  %v963_v63 = vmax.f32 %v961_v45, %v962_v51 }
  0x93   :  { %v973_v58 = vsel %vm937_vm2, %v556_v52, -inf  ;;  %v980_v59 = vsel %vm937_vm2, %v557_v53, -inf  ;;  %v987_v60 = vsel %vm937_vm2, %v558_v54, -inf  ;;  %v943_v4 = vrot.slane %v942_v56, 1 }
  0x94   :  { %v968_v0 = vmax.f32 %v966_v55, %v967_v57  ;;  %v974_v1 = vrot.slane %v973_v58, 4  ;;  %v981_v2 = vrot.slane %v980_v59, 4  ;;  %v988_v3 = vrot.slane %v987_v60, 4 }
  0x95   :  { %v950_v11 = vrot.slane %v949_v61, 1  ;;  %v957_v13 = vrot.slane %v956_v62, 1  ;;  %v964_v14 = vrot.slane %v963_v63, 1  ;;  %v10222_v23 = vmax.f32 %v942_v56, %v943_v4 }
  0x96   :  { %v303_v5 = vpop.f32.mrf.mxu0  ;;  %v969_v7 = vrot.slane %v968_v0, 2  ;;  %v975_v8 = vmax.f32 %v973_v58, %v974_v1  ;;  %v982_v9 = vmax.f32 %v980_v59, %v981_v2  ;;  %v989_v10 = vmax.f32 %v987_v60, %v988_v3 }
  0x97   :  { %v304_v12 = vadd.f32 %v10176_v25, %v303_v5  ;;  %v10227_v32 = vmax.f32 %v949_v61, %v950_v11  ;;  %v10229_v33 = vmax.f32 %v956_v62, %v957_v13  ;;  %v10231_v34 = vmax.f32 %v963_v63, %v964_v14  ;;  %v3990_v62 = vld [vmem:[%s14496_s1 + $0x8] sm:$0xff]  ;;  %v37_v13 = vld [vmem:[%s14494_s0 + $0xa0] sm:$0xff] }
  0x98   :  { %v970_v15 = vmax.f32 %v968_v0, %v969_v7  ;;  %v976_v16 = vrot.slane %v975_v8, 2  ;;  %v983_v26 = vrot.slane %v982_v9, 2  ;;  %v990_v27 = vrot.slane %v989_v10, 2  ;;  %4184 = vmatpush.msrb.mxu2 %v3990_v62  ;;  %v3989_v7 = vld [vmem:[%s14496_s1] sm:$0xff]  ;;  %v3992_v62 = vld [vmem:[#allocation2 + $0x12] sm:$0xff] }
  0x99   :  { %8798 = vmatmul.msk.f32.gmra.mxu0 %vm87_vm0, %v35_v6  ;;  %v559_v19 = vrot.slane %v304_v12, 2  ;;  %v560_v20 = vrot.slane %v304_v12, 4  ;;  %v561_v21 = vrot.slane %v304_v12, 6  ;;  %v994_v22 = vsel %vm937_vm2, %v304_v12, -inf  ;;  %v3991_v14 = vld [vmem:[#allocation2 + $0x2] sm:$0xff] }
  0x9a   :  { %v971_v24 = vrot.slane %v970_v15, 1  ;;  %v995_v28 = vrot.slane %v994_v22, 4  ;;  %v10233_v35 = vmax.f32 %v975_v8, %v976_v16  ;;  %v10240_v43 = vmax.f32 %v982_v9, %v983_v26  ;;  %4185 = vmatpush.msrb.mxu2 %v3989_v7  ;;  %8844 = vmatmul.msk.f32.vlgmr.msra.gmra.mxu1 %vm3626_vm1, %v3991_v14 }
  0x9b   :  { %v1001_v29 = vsel %vm937_vm2, %v559_v19, -inf  ;;  %v1008_v30 = vsel %vm937_vm2, %v560_v20, -inf  ;;  %v1015_v31 = vsel %vm937_vm2, %v561_v21, -inf  ;;  %v10242_v44 = vmax.f32 %v989_v10, %v990_v27 }
  0x9c   :  { %v996_v36 = vmax.f32 %v994_v22, %v995_v28  ;;  %v1002_v37 = vrot.slane %v1001_v29, 4  ;;  %v1009_v38 = vrot.slane %v1008_v30, 4  ;;  %v1016_v39 = vrot.slane %v1015_v31, 4 }
  0x9d   :  { %v10238_v42 = vmax.f32 %v970_v15, %v971_v24  ;;  %v978_v58 = vrot.slane %v10233_v35, 1  ;;  %v985_v59 = vrot.slane %v10240_v43, 1  ;;  %v992_v60 = vrot.slane %v10242_v44, 1  ;;  %v3973_v15 = vld [vmem:[#allocation2] sm:$0xff] }
  0x9e   :  { %v306_v40 = vpop.f32.mrf.mxu0  ;;  %v997_v46 = vrot.slane %v996_v36, 2  ;;  %v1003_v47 = vmax.f32 %v1001_v29, %v1002_v37  ;;  %v1010_v48 = vmax.f32 %v1008_v30, %v1009_v38  ;;  %v1017_v49 = vmax.f32 %v1015_v31, %v1016_v39  ;;  %8860 = vmatmul.msk.f32.vlgmr.msrb.gmra.mxu2 %vm3626_vm1, %v3973_v15 }
  0x9f   :  { %v307_v45 = vadd.f32 %v10176_v25, %v306_v40 }
  0xa0   :  { %v998_v54 = vmax.f32 %v996_v36, %v997_v46  ;;  %v1004_v55 = vrot.slane %v1003_v47, 2  ;;  %v1011_v56 = vrot.slane %v1010_v48, 2  ;;  %v1018_v57 = vrot.slane %v1017_v49, 2 }
  0xa1   :  { %v562_v50 = vrot.slane %v307_v45, 2  ;;  %v563_v51 = vrot.slane %v307_v45, 4  ;;  %v564_v52 = vrot.slane %v307_v45, 6  ;;  %v1022_v53 = vsel %vm937_vm2, %v307_v45, -inf  ;;  %8799 = vmatmul.msk.f32.gmra.mxu0 %vm87_vm0, %v36_v41 }
  0xa2   :  { %v1023_v61 = vrot.slane %v1022_v53, 4  ;;  %v999_v63 = vrot.slane %v998_v54, 1  ;;  %v1005_v0 = vmax.f32 %v1003_v47, %v1004_v55  ;;  %v1012_v1 = vmax.f32 %v1010_v48, %v1011_v56  ;;  %8845 = vmatmul.msk.f32.gmra.mxu1 %vm3626_vm1, %v3992_v62 }
  0xa3   :  { %v1019_v2 = vmax.f32 %v1017_v49, %v1018_v57  ;;  %v1029_v4 = vsel %vm937_vm2, %v562_v50, -inf  ;;  %v1036_v5 = vsel %vm937_vm2, %v563_v51, -inf  ;;  %v1043_v6 = vsel %vm937_vm2, %v564_v52, -inf }
  0xa4   :  { %v1024_v3 = vmax.f32 %v1022_v53, %v1023_v61  ;;  %v1000_v8 = vmax.f32 %v998_v54, %v999_v63  ;;  %v1006_v9 = vrot.slane %v1005_v0, 1  ;;  %v1013_v10 = vrot.slane %v1012_v1, 1  ;;  %v3974_v63 = vld [vmem:[#allocation2 + $0x10] sm:$0xff] }
  0xa5   :  { %v1020_v11 = vrot.slane %v1019_v2, 1  ;;  %v1030_v18 = vrot.slane %v1029_v4, 4  ;;  %v1037_v19 = vrot.slane %v1036_v5, 4  ;;  %v1044_v20 = vrot.slane %v1043_v6, 4 }
  0xa6   :  { %v309_v12 = vpop.f32.mrf.mxu0  ;;  %v1025_v16 = vrot.slane %v1024_v3, 2  ;;  %v1007_v21 = vmax.f32 %v1005_v0, %v1006_v9  ;;  %v1014_v22 = vmax.f32 %v1012_v1, %v1013_v10  ;;  %v10265_v26 = vmax.f32 %v10222_v23, %v1000_v8  ;;  %8861 = vmatmul.msk.f32.gmra.mxu2 %vm3626_vm1, %v3974_v63 }
  0xa7   :  { %v1021_v24 = vmax.f32 %v1019_v2, %v1020_v11  ;;  %v1031_v28 = vmax.f32 %v1029_v4, %v1030_v18  ;;  %v1038_v29 = vmax.f32 %v1036_v5, %v1037_v19  ;;  %v1045_v30 = vmax.f32 %v1043_v6, %v1044_v20  ;;  %v39_v20 = vld [vmem:[%s14494_s0 + $0xb0] sm:$0xff] }
  0xa8   :  { %v1026_v27 = vmax.f32 %v1024_v3, %v1025_v16  ;;  %v10269_v31 = vmax.f32 %v10227_v32, %v1007_v21  ;;  %v10272_v36 = vmax.f32 %v10229_v33, %v1014_v22  ;;  %v2858_v38 = vsub.f32 0.0, %v10265_v26 }
  0xa9   :  { %8800 = vmatmul.msk.f32.gmra.mxu0 %vm87_vm0, %v37_v13  ;;  %v10275_v37 = vmax.f32 %v10231_v34, %v1021_v24  ;;  %v1032_v23 = vrot.slane %v1031_v28, 2  ;;  %v1039_v40 = vrot.slane %v1038_v29, 2  ;;  %v1046_v41 = vrot.slane %v1045_v30, 2  ;;  %v38_v34 = vld [vmem:[%s14494_s0 + $0xa8] sm:$0xff] }
  0xaa   :  { %v1027_v39 = vrot.slane %v1026_v27, 1  ;;  %v2859_v45 = vsub.f32 0.0, %v10269_v31  ;;  %v2860_v46 = vsub.f32 0.0, %v10272_v36  ;;  %v2986_v32 = vmul.f32 1.442695, %v2858_v38 }
  0xab   :  { %v2861_v47 = vsub.f32 0.0, %v10275_v37  ;;  %v1033_v49 = vmax.f32 %v1031_v28, %v1032_v23  ;;  %v1040_v33 = vmax.f32 %v1038_v29, %v1039_v40  ;;  %v1047_v50 = vmax.f32 %v1045_v30, %v1046_v41 }
  0xac   :  { %v1028_v48 = vmax.f32 %v1026_v27, %v1027_v39  ;;  %9307 = vpow2.f32 %v2986_v32  ;;  %v2988_v51 = vmul.f32 1.442695, %v2859_v45  ;;  %v2990_v52 = vmul.f32 1.442695, %v2860_v46  ;;  %v3993_v32 = vld [vmem:[#allocation2 + $0x22] sm:$0xff] }
  0xad   :  { %v2992_v53 = vmul.f32 1.442695, %v2861_v47  ;;  %v1034_v55 = vrot.slane %v1033_v49, 1  ;;  %v1041_v56 = vrot.slane %v1040_v33, 1  ;;  %v1048_v57 = vrot.slane %v1047_v50, 1  ;;  %8846 = vmatmul.msk.f32.gmra.mxu1 %vm3626_vm1, %v3993_v32 }
  0xae   :  { %v312_v54 = vpop.f32.mrf.mxu0  ;;  %v10285_v61 = vmax.f32 %v10238_v42, %v1028_v48  ;;  %v979_v0 = vmax.f32 %v10233_v35, %v978_v58  ;;  %v986_v1 = vmax.f32 %v10240_v43, %v985_v59  ;;  %v993_v2 = vmax.f32 %v10242_v44, %v992_v60  ;;  %v3975_v48 = vld [vmem:[#allocation2 + $0x20] sm:$0xff] }
  0xaf   :  { %9309 = vpow2.f32 %v2988_v51  ;;  %v1035_v42 = vmax.f32 %v1033_v49, %v1034_v55  ;;  %v1042_v3 = vmax.f32 %v1040_v33, %v1041_v56  ;;  %v1049_v4 = vmax.f32 %v1047_v50, %v1048_v57  ;;  %8862 = vmatmul.msk.f32.gmra.mxu2 %vm3626_vm1, %v3975_v48 }
  0xb0   :  { %9311 = vpow2.f32 %v2990_v52  ;;  %v2862_v35 = vsub.f32 0.0, %v10285_v61  ;;  %v310_v43 = vadd.f32 %v10176_v25, %v309_v12  ;;  %v10308_v60 = vadd.f32 %v10176_v25, %v312_v54 }
  0xb1   :  { %8801 = vmatmul.msk.f32.gmra.mxu0 %vm87_vm0, %v38_v34  ;;  %9313 = vpow2.f32 %v2992_v53  ;;  %v10301_v58 = vmax.f32 %v979_v0, %v1035_v42  ;;  %v10303_v59 = vmax.f32 %v986_v1, %v1042_v3  ;;  %v10305_v44 = vmax.f32 %v993_v2, %v1049_v4  ;;  %v40_v2 = vld [vmem:[%s14494_s0 + $0xb8] sm:$0xff] }
  0xb2   :  { %v9308_v5 = vpop.eup %9307  ;;  %v2994_v6 = vmul.f32 1.442695, %v2862_v35  ;;  %v565_v7 = vrot.slane %v310_v43, 2  ;;  %v566_v8 = vrot.slane %v310_v43, 4  ;;  %v567_v9 = vrot.slane %v310_v43, 6 }
  0xb3   :  { %v3242_v10 = vadd.f32 1.0, %v9308_v5  ;;  %v2863_v11 = vsub.f32 0.0, %v10301_v58  ;;  %v2864_v13 = vsub.f32 0.0, %v10303_v59  ;;  %v2865_v12 = vsub.f32 0.0, %v10305_v44 }
  0xb4   :  { %9315 = vpow2.f32 %v2994_v6  ;;  %v1050_v15 = vsel %vm937_vm2, %v310_v43, -inf  ;;  %v1057_v16 = vsel %vm937_vm2, %v565_v7, -inf  ;;  %v1064_v18 = vsel %vm937_vm2, %v566_v8, -inf }
  0xb5   :  { %v9310_v14 = vpop.eup %9309  ;;  %9317 = vrcp.f32 %v3242_v10  ;;  %v2996_v24 = vmul.f32 1.442695, %v2863_v11  ;;  %v2998_v27 = vmul.f32 1.442695, %v2864_v13  ;;  %v3000_v30 = vmul.f32 1.442695, %v2865_v12 }
  0xb6   :  { %v10316_v19 = vpop.f32.mrf.mxu0  ;;  %v9312_v21 = vpop.eup %9311  ;;  %v3243_v22 = vadd.f32 1.0, %v9310_v14  ;;  %v1051_v38 = vrot.slane %v1050_v15, 4  ;;  %v1058_v39 = vrot.slane %v1057_v16, 4  ;;  %v1065_v40 = vrot.slane %v1064_v18, 4 }
  0xb7   :  { %v9314_v28 = vpop.eup %9313  ;;  %v3244_v29 = vadd.f32 1.0, %v9312_v21  ;;  %v1071_v41 = vsel %vm937_vm2, %v567_v9, -inf  ;;  %v568_v33 = vrot.slane %v10308_v60, 2  ;;  %v569_v50 = vrot.slane %v10308_v60, 4 }
  0xb8   :  { %v3245_v23 = vadd.f32 1.0, %v9314_v28  ;;  %9319 = vrcp.f32 %v3243_v22  ;;  %v1052_v45 = vmax.f32 %v1050_v15, %v1051_v38  ;;  %v1059_v46 = vmax.f32 %v1057_v16, %v1058_v39 }
  0xb9   :  { %8802 = vmatmul.msk.f32.gmra.mxu0 %vm87_vm0, %v39_v20  ;;  %9321 = vrcp.f32 %v3244_v29  ;;  %v1072_v47 = vrot.slane %v1071_v41, 4  ;;  %v1066_v49 = vmax.f32 %v1064_v18, %v1065_v40  ;;  %v570_v57 = vrot.slane %v10308_v60, 6 }
  0xba   :  { %9323 = vrcp.f32 %v3245_v23  ;;  %v9316_v34 = vpop.eup %9315  ;;  %v1053_v51 = vrot.slane %v1052_v45, 2  ;;  %v1060_v52 = vrot.slane %v1059_v46, 2  ;;  %v1078_v35 = vsel %vm937_vm2, %v10308_v60, -inf }
  0xbb   :  { %9325 = vpow2.f32 %v2996_v24  ;;  %v1073_v53 = vmax.f32 %v1071_v41, %v1072_v47  ;;  %v9318_v54 = vpop.eup %9317  ;;  %v3246_v55 = vadd.f32 1.0, %v9316_v34  ;;  %v1067_v56 = vrot.slane %v1066_v49, 2 }
  0xbc   :  { %9327 = vpow2.f32 %v2998_v27  ;;  %v3498_v62 = vmul.f32 %v9318_v54, %v10265_v26  ;;  %v1054_v63 = vmax.f32 %v1052_v45, %v1053_v51  ;;  %v1061_v0 = vmax.f32 %v1059_v46, %v1060_v52 }
  0xbd   :  { %9329 = vpow2.f32 %v3000_v30  ;;  %v1068_v3 = vmax.f32 %v1066_v49, %v1067_v56  ;;  %v1074_v4 = vrot.slane %v1073_v53, 2  ;;  %v1079_v7 = vrot.slane %v1078_v35, 4 }
  0xbe   :  { %v10329_v1 = vpop.f32.mrf.mxu0  ;;  %v9320_v42 = vpop.eup %9319  ;;  %9331 = vrcp.f32 %v3246_v55  ;;  %v1055_v26 = vrot.slane %v1054_v63, 1  ;;  %v1062_v6 = vrot.slane %v1061_v0, 1  ;;  %v1085_v13 = vsel %vm937_vm2, %v568_v33, -inf }
  0xbf   :  { %v9322_v43 = vpop.eup %9321  ;;  %v3499_v5 = vmul.f32 %v9320_v42, %v10269_v31  ;;  %v1069_v10 = vrot.slane %v1068_v3, 1  ;;  %v1075_v11 = vmax.f32 %v1073_v53, %v1074_v4  ;;  %v1086_v28 = vrot.slane %v1085_v13, 4 }
  0xc0   :  { %v9324_v8 = vpop.eup %9323  ;;  %v3500_v9 = vmul.f32 %v9322_v43, %v10272_v36  ;;  %v10342_v15 = vmax.f32 %v1054_v63, %v1055_v26  ;;  %v10344_v31 = vmax.f32 %v1061_v0, %v1062_v6  ;;  %v1092_v39 = vsel %vm937_vm2, %v569_v50, -inf  ;;  %v41_v50 = vld [vmem:[%s14494_s0 + $0xc0] sm:$0xff] }
  0xc1   :  { %8803 = vmatmul.msk.f32.gmra.mxu0 %vm87_vm0, %v40_v2  ;;  %v9326_v12 = vpop.eup %9325  ;;  %v3501_v14 = vmul.f32 %v9324_v8, %v10275_v37  ;;  %v3823_v60 = vsel %vm3822_vm3, %v3499_v5, %v3498_v62  ;;  %v10347_v36 = vmax.f32 %v1068_v3, %v1069_v10  ;;  %v1076_v21 = vrot.slane %v1075_v11, 1  ;;  %v3976_v62 = vld [vmem:[#allocation2 + $0x30] sm:$0xff] }
  0xc2   :  { %v9328_v16 = vpop.eup %9327  ;;  %v3825_v18 = vsel %vm3824_vm4, %v3500_v9, %v3823_v60  ;;  %v3247_v20 = vadd.f32 1.0, %v9326_v12  ;;  %v1080_v37 = vmax.f32 %v1078_v35, %v1079_v7  ;;  %v1087_v41 = vmax.f32 %v1085_v13, %v1086_v28  ;;  %8863 = vmatmul.msk.f32.gmra.mxu2 %vm3626_vm1, %v3976_v62 }
  0xc3   :  { %v9330_v22 = vpop.eup %9329  ;;  %v3827_v24 = vsel %vm3826_vm5, %v3501_v14, %v3825_v18  ;;  %v3248_v27 = vadd.f32 1.0, %v9328_v16  ;;  %v10350_v38 = vmax.f32 %v1075_v11, %v1076_v21  ;;  %v1093_v46 = vrot.slane %v1092_v39, 4 }
  0xc4   :  { %v9332_v29 = vpop.eup %9331  ;;  %v3249_v30 = vadd.f32 1.0, %v9330_v22  ;;  %9333 = vrcp.f32 %v3247_v20  ;;  %v1081_v40 = vrot.slane %v1080_v37, 2  ;;  %v1099_v47 = vsel %vm937_vm2, %v570_v57, -inf  ;;  %v3994_v57 = vld [vmem:[#allocation2 + $0x32] sm:$0xff] }
  0xc5   :  { %9335 = vrcp.f32 %v3248_v27  ;;  %v3502_v23 = vmul.f32 %v9332_v29, %v10285_v61  ;;  %v316_v32 = vadd.f32 %v10176_v25, %v10316_v19  ;;  %v1088_v33 = vrot.slane %v1087_v41, 2  ;;  %8847 = vmatmul.msk.f32.gmra.mxu1 %vm3626_vm1, %v3994_v57 }
  0xc6   :  { %v321_v45 = vpop.f32.mrf.mxu0  ;;  %9337 = vrcp.f32 %v3249_v30  ;;  %v1082_v49 = vmax.f32 %v1080_v37, %v1081_v40  ;;  %v1100_v34 = vrot.slane %v1099_v47, 4  ;;  %v1094_v61 = vmax.f32 %v1092_v39, %v1093_v46 }
  0xc7   :  { %v3829_v48 = vsel %vm3828_vm6, %v3502_v23, %v3827_v24  ;;  %v571_v51 = vrot.slane %v316_v32, 2  ;;  %v572_v52 = vrot.slane %v316_v32, 4  ;;  %v573_v53 = vrot.slane %v316_v32, 6 }
  0xc8   :  { %v1083_v54 = vrot.slane %v1082_v49, 1  ;;  %v1089_v55 = vmax.f32 %v1087_v41, %v1088_v33  ;;  %v1101_v56 = vmax.f32 %v1099_v47, %v1100_v34  ;;  %v1106_v19 = vsel %vm937_vm2, %v316_v32, -inf  ;;  %v42_v32 = vld [vmem:[%s14494_s0 + $0xc8] sm:$0xff] }
  0xc9   :  { %8804 = vmatmul.msk.f32.gmra.mxu0 %vm87_vm0, %v41_v50  ;;  %v1095_v0 = vrot.slane %v1094_v61, 2  ;;  %v1107_v2 = vrot.slane %v1106_v19, 4  ;;  %v1113_v42 = vsel %vm937_vm2, %v571_v51, -inf  ;;  %v1120_v3 = vsel %vm937_vm2, %v572_v52, -inf }
  0xca   :  { %v9334_v63 = vpop.eup %9333  ;;  %v10368_v43 = vmax.f32 %v1082_v49, %v1083_v54  ;;  %v1090_v5 = vrot.slane %v1089_v55, 1  ;;  %v1102_v26 = vrot.slane %v1101_v56, 2  ;;  %v1114_v10 = vrot.slane %v1113_v42, 4 }
  0xcb   :  { %v9336_v4 = vpop.eup %9335  ;;  %v3503_v35 = vmul.f32 %v9334_v63, %v10301_v58  ;;  %v1096_v8 = vmax.f32 %v1094_v61, %v1095_v0  ;;  %v1108_v9 = vmax.f32 %v1106_v19, %v1107_v2  ;;  %v1121_v22 = vrot.slane %v1120_v3, 4 }
  0xcc   :  { %v9338_v6 = vpop.eup %9337  ;;  %v3504_v7 = vmul.f32 %v9336_v4, %v10303_v59  ;;  %v10373_v12 = vmax.f32 %v1089_v55, %v1090_v5  ;;  %v1103_v14 = vmax.f32 %v1101_v56, %v1102_v26  ;;  %v1115_v18 = vmax.f32 %v1113_v42, %v1114_v10 }
  0xcd   :  { %v3505_v11 = vmul.f32 %v9338_v6, %v10305_v44  ;;  %v3831_v13 = vsel %vm3830_vm7, %v3503_v35, %v3829_v48  ;;  %v1097_v58 = vrot.slane %v1096_v8, 1  ;;  %v1109_v16 = vrot.slane %v1108_v9, 2 }
  0xce   :  { %v3833_v60 = vsel %vm3832_vm8, %v3504_v7, %v3831_v13  ;;  %v1104_v21 = vrot.slane %v1103_v14, 1  ;;  %v1127_v59 = vsel %vm937_vm2, %v573_v53, -inf  ;;  %v324_v24 = vpop.f32.mrf.mxu0  ;;  %v1116_v37 = vrot.slane %v1115_v18, 2 }
  0xcf   :  { %v3835_v20 = vsel %vm3834_vm9, %v3505_v11, %v3833_v60  ;;  %v10379_v44 = vmax.f32 %v1096_v8, %v1097_v58  ;;  %v1110_v27 = vmax.f32 %v1108_v9, %v1109_v16  ;;  %v1128_v28 = vrot.slane %v1127_v59, 4 }
  0xd0   :  { %3957 = vst.msk [vmem:[#allocation2 + $0x44] sm:$0xff] %vm3626_vm1, %v3835_v20  ;;  %v10381_v29 = vmax.f32 %v1103_v14, %v1104_v21  ;;  %v1122_v30 = vmax.f32 %v1120_v3, %v1121_v22  ;;  %v319_v39 = vadd.f32 %v10176_v25, %v10329_v1  ;;  %v10386_v23 = vadd.f32 %v10176_v25, %v321_v45 }
  0xd1   :  { %v1111_v40 = vrot.slane %v1110_v27, 1  ;;  %v1117_v41 = vmax.f32 %v1115_v18, %v1116_v37  ;;  %v1129_v46 = vmax.f32 %v1127_v59, %v1128_v28  ;;  %v10389_v47 = vadd.f32 %v10176_v25, %v324_v24  ;;  %8805 = vmatmul.msk.f32.gmra.mxu0 %vm87_vm0, %v42_v32 }
  0xd2   :  { %v1123_v48 = vrot.slane %v1122_v30, 2  ;;  %v574_v49 = vrot.slane %v319_v39, 2  ;;  %v575_v33 = vrot.slane %v319_v39, 4  ;;  %v576_v34 = vrot.slane %v319_v39, 6 }
  0xd3   :  { %v1112_v1 = vmax.f32 %v1110_v27, %v1111_v40  ;;  %v1118_v50 = vrot.slane %v1117_v41, 1  ;;  %v1130_v45 = vrot.slane %v1129_v46, 2  ;;  %v1134_v61 = vsel %vm937_vm2, %v319_v39, -inf }
  0xd4   :  { %v1124_v51 = vmax.f32 %v1122_v30, %v1123_v48  ;;  %v1135_v52 = vrot.slane %v1134_v61, 4  ;;  %v1141_v25 = vsel %vm937_vm2, %v574_v49, -inf  ;;  %v1148_v53 = vsel %vm937_vm2, %v575_v33, -inf }
  0xd5   :  { %v1119_v54 = vmax.f32 %v1117_v41, %v1118_v50  ;;  %v1131_v55 = vmax.f32 %v1129_v46, %v1130_v45  ;;  %v10399_v56 = vmax.f32 %v10342_v15, %v1112_v1  ;;  %v1142_v19 = vrot.slane %v1141_v25, 4 }
  0xd6   :  { %v1125_v57 = vrot.slane %v1124_v51, 1  ;;  %v1136_v62 = vmax.f32 %v1134_v61, %v1135_v52  ;;  %v1149_v63 = vrot.slane %v1148_v53, 4  ;;  %v1155_v0 = vsel %vm937_vm2, %v576_v34, -inf }
  0xd7   :  { %v1132_v2 = vrot.slane %v1131_v55, 1  ;;  %v10403_v42 = vmax.f32 %v10344_v31, %v1119_v54  ;;  %v2866_v3 = vsub.f32 0.0, %v10399_v56  ;;  %v1143_v4 = vmax.f32 %v1141_v25, %v1142_v19 }
  0xd8   :  { %v1126_v35 = vmax.f32 %v1124_v51, %v1125_v57  ;;  %v1137_v5 = vrot.slane %v1136_v62, 2  ;;  %v1150_v26 = vmax.f32 %v1148_v53, %v1149_v63  ;;  %v1156_v6 = vrot.slane %v1155_v0, 4 }
  0xd9   :  { %v1133_v7 = vmax.f32 %v1131_v55, %v1132_v2  ;;  %v2867_v15 = vsub.f32 0.0, %v10403_v42  ;;  %v3002_v8 = vmul.f32 1.442695, %v2866_v3  ;;  %v1144_v9 = vrot.slane %v1143_v4, 2 }
  0xda   :  { %v10408_v10 = vmax.f32 %v10347_v36, %v1126_v35  ;;  %v1138_v11 = vmax.f32 %v1136_v62, %v1137_v5  ;;  %v1151_v13 = vrot.slane %v1150_v26, 2  ;;  %v1157_v14 = vmax.f32 %v1155_v0, %v1156_v6 }
  0xdb   :  { %v10411_v31 = vmax.f32 %v10350_v38, %v1133_v7  ;;  %9339 = vpow2.f32 %v3002_v8  ;;  %v3004_v60 = vmul.f32 1.442695, %v2867_v15  ;;  %v1145_v58 = vmax.f32 %v1143_v4, %v1144_v9 }
  0xdc   :  { %v2868_v16 = vsub.f32 0.0, %v10408_v10  ;;  %v1139_v18 = vrot.slane %v1138_v11, 1  ;;  %v1152_v20 = vmax.f32 %v1150_v26, %v1151_v13  ;;  %v1158_v21 = vrot.slane %v1157_v14, 2 }
  0xdd   :  { %v2869_v22 = vsub.f32 0.0, %v10411_v31  ;;  %9341 = vpow2.f32 %v3004_v60  ;;  %v1146_v59 = vrot.slane %v1145_v58, 1  ;;  %v577_v36 = vrot.slane %v10386_v23, 2 }
  0xde   :  { %v3006_v24 = vmul.f32 1.442695, %v2868_v16  ;;  %v1140_v27 = vmax.f32 %v1138_v11, %v1139_v18  ;;  %v1153_v37 = vrot.slane %v1152_v20, 1  ;;  %v1159_v28 = vmax.f32 %v1157_v14, %v1158_v21 }
  0xdf   :  { %v3008_v38 = vmul.f32 1.442695, %v2869_v22  ;;  %v1147_v30 = vmax.f32 %v1145_v58, %v1146_v59  ;;  %v578_v39 = vrot.slane %v10386_v23, 4  ;;  %v579_v40 = vrot.slane %v10386_v23, 6 }
  0xe0   :  { %9343 = vpow2.f32 %v3006_v24  ;;  %v1154_v41 = vmax.f32 %v1152_v20, %v1153_v37  ;;  %v1160_v46 = vrot.slane %v1159_v28, 1  ;;  %v10419_v32 = vmax.f32 %v10368_v43, %v1140_v27 }
  0xe1   :  { %v9340_v48 = vpop.eup %9339  ;;  %9345 = vpow2.f32 %v3008_v38  ;;  %v10422_v49 = vmax.f32 %v10373_v12, %v1147_v30  ;;  %v1162_v33 = vsel %vm937_vm2, %v10386_v23, -inf  ;;  %v1169_v34 = vsel %vm937_vm2, %v577_v36, -inf }
  0xe2   :  { %v3250_v1 = vadd.f32 1.0, %v9340_v48  ;;  %v1161_v50 = vmax.f32 %v1159_v28, %v1160_v46  ;;  %v10428_v45 = vmax.f32 %v10379_v44, %v1154_v41  ;;  %v2870_v61 = vsub.f32 0.0, %v10419_v32 }
  0xe3   :  { %v9342_v51 = vpop.eup %9341  ;;  %v2871_v43 = vsub.f32 0.0, %v10422_v49  ;;  %v1163_v52 = vrot.slane %v1162_v33, 4  ;;  %v1170_v25 = vrot.slane %v1169_v34, 4  ;;  %v1176_v12 = vsel %vm937_vm2, %v578_v39, -inf }
  0xe4   :  { %v3251_v53 = vadd.f32 1.0, %v9342_v51  ;;  %9347 = vrcp.f32 %v3250_v1  ;;  %v10434_v23 = vmax.f32 %v10381_v29, %v1161_v50  ;;  %v2872_v54 = vsub.f32 0.0, %v10428_v45 }
  0xe5   :  { %v3010_v55 = vmul.f32 1.442695, %v2870_v61  ;;  %v3012_v19 = vmul.f32 1.442695, %v2871_v43  ;;  %v1164_v44 = vmax.f32 %v1162_v33, %v1163_v52  ;;  %v1171_v57 = vmax.f32 %v1169_v34, %v1170_v25 }
  0xe6   :  { %v9344_v62 = vpop.eup %9343  ;;  %9349 = vrcp.f32 %v3251_v53  ;;  %v2873_v63 = vsub.f32 0.0, %v10434_v23  ;;  %v3014_v0 = vmul.f32 1.442695, %v2872_v54  ;;  %v1177_v2 = vrot.slane %v1176_v12, 4 }
  0xe7   :  { %v9346_v3 = vpop.eup %9345  ;;  %v3252_v4 = vadd.f32 1.0, %v9344_v62  ;;  %9351 = vpow2.f32 %v3010_v55  ;;  %v1165_v35 = vrot.slane %v1164_v44, 2  ;;  %v1172_v5 = vrot.slane %v1171_v57, 2  ;;  %v327_v55 = vpop.f32.mrf.mxu0 }
  0xe8   :  { %v3253_v26 = vadd.f32 1.0, %v9346_v3  ;;  %9353 = vpow2.f32 %v3012_v19  ;;  %v3016_v29 = vmul.f32 1.442695, %v2873_v63  ;;  %v1178_v6 = vmax.f32 %v1176_v12, %v1177_v2 }
  0xe9   :  { %9355 = vrcp.f32 %v3252_v4  ;;  %v1166_v7 = vmax.f32 %v1164_v44, %v1165_v35  ;;  %v1173_v15 = vmax.f32 %v1171_v57, %v1172_v5  ;;  %v1183_v8 = vsel %vm937_vm2, %v579_v40, -inf  ;;  %v10467_v4 = vld [vmem:[%s14495_s3] ss:$0 sm:$0xff] }
  0xea   :  { %v9348_v9 = vpop.eup %9347  ;;  %9357 = vrcp.f32 %v3253_v26  ;;  %v1179_v11 = vrot.slane %v1178_v6, 2  ;;  %v1184_v13 = vrot.slane %v1183_v8, 4  ;;  %v580_v60 = vrot.slane %v10389_v47, 2 }
  0xeb   :  { %9359 = vpow2.f32 %v3014_v0  ;;  %v1167_v14 = vrot.slane %v1166_v7, 1  ;;  %v1174_v16 = vrot.slane %v1173_v15, 1  ;;  %v3506_v21 = vmul.f32 %v9348_v9, %v10399_v56  ;;  %v43_v0 = vld [vmem:[%s14494_s0 + $0xd0] sm:$0xff] }
  0xec   :  { %v9350_v58 = vpop.eup %9349  ;;  %9361 = vpow2.f32 %v3016_v29  ;;  %v1185_v18 = vmax.f32 %v1183_v8, %v1184_v13  ;;  %v1180_v59 = vmax.f32 %v1178_v6, %v1179_v11  ;;  %v581_v37 = vrot.slane %v10389_v47, 4  ;;  %8806 = vmatmul.msk.f32.gmra.mxu0 %vm87_vm0, %v43_v0 }
  0xed   :  { %v9352_v20 = vpop.eup %9351  ;;  %v3507_v22 = vmul.f32 %v9350_v58, %v10403_v42  ;;  %v1190_v28 = vsel %vm937_vm2, %v10389_v47, -inf  ;;  %v10445_v39 = vmax.f32 %v1166_v7, %v1167_v14  ;;  %v1197_v41 = vsel %vm937_vm2, %v580_v60, -inf }
  0xee   :  { %v9354_v36 = vpop.eup %9353  ;;  %v3254_v24 = vadd.f32 1.0, %v9352_v20  ;;  %v1186_v27 = vrot.slane %v1185_v18, 2  ;;  %v1191_v40 = vrot.slane %v1190_v28, 4  ;;  %v10449_v42 = vmax.f32 %v1173_v15, %v1174_v16 }
  0xef   :  { %v9356_v38 = vpop.eup %9355  ;;  %v3255_v30 = vadd.f32 1.0, %v9354_v36  ;;  %v582_v48 = vrot.slane %v10389_v47, 6  ;;  %v3836_v34 = vsel %vm3822_vm3, %v3507_v22, %v3506_v21  ;;  %v1198_v50 = vrot.slane %v1197_v41, 4 }
  0xf0   :  { %v9358_v46 = vpop.eup %9357  ;;  %v3508_v56 = vmul.f32 %v9356_v38, %v10408_v10  ;;  %9363 = vrcp.f32 %v3254_v24  ;;  %v1192_v1 = vmax.f32 %v1190_v28, %v1191_v40  ;;  %v1181_v43 = vrot.slane %v1180_v59, 1 }
  0xf1   :  { %v9360_v33 = vpop.eup %9359  ;;  %9365 = vrcp.f32 %v3255_v30  ;;  %v10453_v52 = vmax.f32 %v1185_v18, %v1186_v27  ;;  %v1204_v25 = vsel %vm937_vm2, %v581_v37, -inf  ;;  %v3509_v10 = vmul.f32 %v9358_v46, %v10411_v31  ;;  %v330_v27 = vpop.f32.mrf.mxu0 }
  0xf2   :  { %v9362_v61 = vpop.eup %9361  ;;  %v3256_v51 = vadd.f32 1.0, %v9360_v33  ;;  %v1193_v53 = vrot.slane %v1192_v1, 2  ;;  %v1199_v54 = vmax.f32 %v1197_v41, %v1198_v50  ;;  %v3837_v47 = vsel %vm3824_vm4, %v3508_v56, %v3836_v34  ;;  %v3995_v33 = vld [vmem:[#allocation2 + $0x42] sm:$0xff] }
  0xf3   :  { %v3257_v12 = vadd.f32 1.0, %v9362_v61  ;;  %v1205_v19 = vrot.slane %v1204_v25, 4  ;;  %v1211_v44 = vsel %vm937_vm2, %v582_v48, -inf  ;;  %v10462_v31 = vmax.f32 %v1180_v59, %v1181_v43  ;;  %v3977_v34 = vld [vmem:[#allocation2 + $0x40] sm:$0xff]  ;;  %8848 = vmatmul.msk.f32.gmra.mxu1 %vm3626_vm1, %v3995_v33 }
  0xf4   :  { %9367 = vrcp.f32 %v3256_v51  ;;  %v1194_v57 = vmax.f32 %v1192_v1, %v1193_v53  ;;  %v1200_v62 = vrot.slane %v1199_v54, 2  ;;  %v1212_v63 = vrot.slane %v1211_v44, 4  ;;  %8864 = vmatmul.msk.f32.gmra.mxu2 %vm3626_vm1, %v3977_v34 }
  0xf5   :  { %9369 = vrcp.f32 %v3257_v12  ;;  %v1206_v3 = vmax.f32 %v1204_v25, %v1205_v19  ;;  %v328_v35 = vadd.f32 %v10467_v4, %v327_v55  ;;  %v3838_v26 = vsel %vm3826_vm5, %v3509_v10, %v3837_v47 }
  0xf6   :  { %v9364_v2 = vpop.eup %9363  ;;  %v1201_v6 = vmax.f32 %v1199_v54, %v1200_v62  ;;  %v1213_v7 = vmax.f32 %v1211_v44, %v1212_v63  ;;  %v1188_v14 = vrot.slane %v10453_v52, 1  ;;  %v1195_v60 = vrot.slane %v1194_v57, 1 }
  0xf7   :  { %v9366_v5 = vpop.eup %9365  ;;  %v3510_v29 = vmul.f32 %v9364_v2, %v10419_v32  ;;  %v1207_v8 = vrot.slane %v1206_v3, 2  ;;  %v583_v9 = vrot.slane %v328_v35, 2  ;;  %v584_v11 = vrot.slane %v328_v35, 4 }
  0xf8   :  { %v3511_v15 = vmul.f32 %v9366_v5, %v10422_v49  ;;  %v1214_v58 = vrot.slane %v1213_v7, 2  ;;  %v585_v49 = vrot.slane %v328_v35, 6  ;;  %v1218_v20 = vsel %vm937_vm2, %v328_v35, -inf }
  0xf9   :  { %v3839_v13 = vsel %vm3828_vm6, %v3510_v29, %v3838_v26  ;;  %v1208_v18 = vmax.f32 %v1206_v3, %v1207_v8  ;;  %v1202_v59 = vrot.slane %v1201_v6, 1  ;;  %v1219_v24 = vrot.slane %v1218_v20, 4 }
  0xfa   :  { %v9368_v32 = vpop.eup %9367  ;;  %v3840_v16 = vsel %vm3830_vm7, %v3511_v15, %v3839_v13  ;;  %v1215_v36 = vmax.f32 %v1213_v7, %v1214_v58  ;;  %v1225_v38 = vsel %vm937_vm2, %v583_v9, -inf  ;;  %v1232_v30 = vsel %vm937_vm2, %v584_v11, -inf  ;;  %v333_v7 = vpop.f32.mrf.mxu0  ;;  %v45_v13 = vld [vmem:[%s14494_s0 + $0xe0] sm:$0xff] }
  0xfb   :  { %v9370_v21 = vpop.eup %9369  ;;  %v3512_v22 = vmul.f32 %v9368_v32, %v10428_v45  ;;  %v1209_v28 = vrot.slane %v1208_v18, 1  ;;  %v1220_v41 = vmax.f32 %v1218_v20, %v1219_v24  ;;  %v1226_v46 = vrot.slane %v1225_v38, 4 }
  0xfc   :  { %v3513_v37 = vmul.f32 %v9370_v21, %v10434_v23  ;;  %v1216_v45 = vrot.slane %v1215_v36, 1  ;;  %v44_v23 = vld [vmem:[%s14494_s0 + $0xd8] sm:$0xff]  ;;  %v10502_v48 = vmax.f32 %v10453_v52, %v1188_v14  ;;  %v1233_v1 = vrot.slane %v1232_v30, 4 }
  0xfd   :  { %v3841_v40 = vsel %vm3832_vm8, %v3512_v22, %v3840_v16  ;;  %v1239_v50 = vsel %vm937_vm2, %v585_v49, -inf  ;;  %8807 = vmatmul.msk.f32.gmra.mxu0 %vm87_vm0, %v44_v23  ;;  %v10509_v61 = vmax.f32 %v1194_v57, %v1195_v60  ;;  %v1221_v51 = vrot.slane %v1220_v41, 2 }
  0xfe   :  { %v3842_v56 = vsel %vm3834_vm9, %v3513_v37, %v3841_v40  ;;  %v1227_v43 = vmax.f32 %v1225_v38, %v1226_v46  ;;  %v1240_v52 = vrot.slane %v1239_v50, 4  ;;  %v10513_v25 = vmax.f32 %v1201_v6, %v1202_v59 }
  0xff   :  { %3958 = vst.msk [vmem:[#allocation2 + $0x54] sm:$0xff] %vm3626_vm1, %v3842_v56  ;;  %v10515_v10 = vmax.f32 %v1208_v18, %v1209_v28  ;;  %v1234_v12 = vmax.f32 %v1232_v30, %v1233_v1  ;;  %v331_v53 = vadd.f32 %v10467_v4, %v330_v27  ;;  %v10520_v54 = vmax.f32 %v1215_v36, %v1216_v45 }
 0x100   :  { %v1222_v55 = vmax.f32 %v1220_v41, %v1221_v51  ;;  %v1228_v47 = vrot.slane %v1227_v43, 2  ;;  %v1241_v19 = vmax.f32 %v1239_v50, %v1240_v52 }
 0x101   :  { %v1235_v44 = vrot.slane %v1234_v12, 2  ;;  %v586_v57 = vrot.slane %v331_v53, 2  ;;  %v587_v62 = vrot.slane %v331_v53, 4  ;;  %v588_v63 = vrot.slane %v331_v53, 6 }
 0x102   :  { %v1223_v0 = vrot.slane %v1222_v55, 1  ;;  %v1229_v2 = vmax.f32 %v1227_v43, %v1228_v47  ;;  %v1242_v3 = vrot.slane %v1241_v19, 2  ;;  %v1246_v35 = vsel %vm937_vm2, %v331_v53, -inf  ;;  %v46_v53 = vld [vmem:[%s14494_s0 + $0xe8] sm:$0xff] }
 0x103   :  { %v1236_v5 = vmax.f32 %v1234_v12, %v1235_v44  ;;  %v1247_v26 = vrot.slane %v1246_v35, 4  ;;  %v1253_v29 = vsel %vm937_vm2, %v586_v57, -inf  ;;  %v1260_v6 = vsel %vm937_vm2, %v587_v62, -inf  ;;  %v336_v12 = vpop.f32.mrf.mxu0 }
 0x104   :  { %v1224_v15 = vmax.f32 %v1222_v55, %v1223_v0  ;;  %v1230_v8 = vrot.slane %v1229_v2, 1  ;;  %v1243_v9 = vmax.f32 %v1241_v19, %v1242_v3  ;;  %v1254_v11 = vrot.slane %v1253_v29, 4 }
 0x105   :  { %v1237_v14 = vrot.slane %v1236_v5, 1  ;;  %v1248_v60 = vmax.f32 %v1246_v35, %v1247_v26  ;;  %v1261_v58 = vrot.slane %v1260_v6, 4  ;;  %v1267_v32 = vsel %vm937_vm2, %v588_v63, -inf  ;;  %8808 = vmatmul.msk.f32.gmra.mxu0 %vm87_vm0, %v45_v13 }
 0x106   :  { %v1231_v16 = vmax.f32 %v1229_v2, %v1230_v8  ;;  %v1244_v18 = vrot.slane %v1243_v9, 1  ;;  %v10545_v49 = vmax.f32 %v10445_v39, %v1224_v15  ;;  %v1255_v20 = vmax.f32 %v1253_v29, %v1254_v11  ;;  %v3996_v44 = vld [vmem:[#allocation2 + $0x52] sm:$0xff] }
 0x107   :  { %v1238_v21 = vmax.f32 %v1236_v5, %v1237_v14  ;;  %v1249_v22 = vrot.slane %v1248_v60, 2  ;;  %v1262_v59 = vmax.f32 %v1260_v6, %v1261_v58  ;;  %v1268_v36 = vrot.slane %v1267_v32, 4  ;;  %v3978_v57 = vld [vmem:[#allocation2 + $0x50] sm:$0xff]  ;;  %8849 = vmatmul.msk.f32.gmra.mxu1 %vm3626_vm1, %v3996_v44 }
 0x108   :  { %v1245_v24 = vmax.f32 %v1243_v9, %v1244_v18  ;;  %v10552_v27 = vmax.f32 %v10449_v42, %v1231_v16  ;;  %v2874_v37 = vsub.f32 0.0, %v10545_v49  ;;  %v1256_v28 = vrot.slane %v1255_v20, 2  ;;  %8865 = vmatmul.msk.f32.gmra.mxu2 %vm3626_vm1, %v3978_v57 }
 0x109   :  { %v10558_v39 = vmax.f32 %v10462_v31, %v1238_v21  ;;  %v1250_v38 = vmax.f32 %v1248_v60, %v1249_v22  ;;  %v1263_v30 = vrot.slane %v1262_v59, 2  ;;  %v1269_v40 = vmax.f32 %v1267_v32, %v1268_v36 }
 0x10a   :  { %v10563_v45 = vmax.f32 %v10502_v48, %v1245_v24  ;;  %v2875_v42 = vsub.f32 0.0, %v10552_v27  ;;  %v3018_v41 = vmul.f32 1.442695, %v2874_v37  ;;  %v1257_v46 = vmax.f32 %v1255_v20, %v1256_v28  ;;  %v47_v37 = vld [vmem:[%s14494_s0 + $0xf0] sm:$0xff] }
 0x10b   :  { %v2876_v23 = vsub.f32 0.0, %v10558_v39  ;;  %v1251_v31 = vrot.slane %v1250_v38, 1  ;;  %v1264_v56 = vmax.f32 %v1262_v59, %v1263_v30  ;;  %v1270_v33 = vrot.slane %v1269_v40, 2 }
 0x10c   :  { %v2877_v34 = vsub.f32 0.0, %v10563_v45  ;;  %9371 = vpow2.f32 %v3018_v41  ;;  %v3020_v48 = vmul.f32 1.442695, %v2875_v42  ;;  %v1258_v1 = vrot.slane %v1257_v46, 1 }
 0x10d   :  { %v3022_v50 = vmul.f32 1.442695, %v2876_v23  ;;  %v1252_v51 = vmax.f32 %v1250_v38, %v1251_v31  ;;  %v1265_v43 = vrot.slane %v1264_v56, 1  ;;  %v1271_v52 = vmax.f32 %v1269_v40, %v1270_v33  ;;  %8809 = vmatmul.msk.f32.gmra.mxu0 %vm87_vm0, %v46_v53  ;;  %v10624_v40 = vpop.f32.mrf.mxu0 }
 0x10e   :  { %9373 = vpow2.f32 %v3020_v48  ;;  %v3024_v55 = vmul.f32 1.442695, %v2877_v34  ;;  %v1259_v47 = vmax.f32 %v1257_v46, %v1258_v1  ;;  %v334_v19 = vadd.f32 %v10467_v4, %v333_v7 }
 0x10f   :  { %9375 = vpow2.f32 %v3022_v50  ;;  %v1266_v62 = vmax.f32 %v1264_v56, %v1265_v43  ;;  %v1272_v63 = vrot.slane %v1271_v52, 1  ;;  %v10584_v0 = vmax.f32 %v10509_v61, %v1252_v51 }
 0x110   :  { %9377 = vpow2.f32 %v3024_v55  ;;  %v10591_v2 = vmax.f32 %v10513_v25, %v1259_v47  ;;  %v589_v3 = vrot.slane %v334_v19, 2  ;;  %v590_v35 = vrot.slane %v334_v19, 4  ;;  %v48_v55 = vld [vmem:[%s14494_s0 + $0xf8] sm:$0xff] }
 0x111   :  { %v1273_v5 = vmax.f32 %v1271_v52, %v1272_v63  ;;  %v10596_v61 = vmax.f32 %v10515_v10, %v1266_v62  ;;  %v2878_v26 = vsub.f32 0.0, %v10584_v0  ;;  %v591_v29 = vrot.slane %v334_v19, 6 }
 0x112   :  { %v9372_v6 = vpop.eup %9371  ;;  %v2879_v7 = vsub.f32 0.0, %v10591_v2  ;;  %v1274_v25 = vsel %vm937_vm2, %v334_v19, -inf  ;;  %v1281_v15 = vsel %vm937_vm2, %v589_v3, -inf  ;;  %v1288_v8 = vsel %vm937_vm2, %v590_v35, -inf }
 0x113   :  { %v3258_v10 = vadd.f32 1.0, %v9372_v6  ;;  %v10608_v9 = vmax.f32 %v10520_v54, %v1273_v5  ;;  %v2880_v11 = vsub.f32 0.0, %v10596_v61  ;;  %v3026_v13 = vmul.f32 1.442695, %v2878_v26 }
 0x114   :  { %v9374_v14 = vpop.eup %9373  ;;  %v3028_v60 = vmul.f32 1.442695, %v2879_v7  ;;  %v1275_v58 = vrot.slane %v1274_v25, 4  ;;  %v1282_v32 = vrot.slane %v1281_v15, 4  ;;  %v10614_v16 = vadd.f32 %v10467_v4, %v336_v12 }
 0x115   :  { %v9376_v18 = vpop.eup %9375  ;;  %v3259_v20 = vadd.f32 1.0, %v9374_v14  ;;  %9379 = vrcp.f32 %v3258_v10  ;;  %v2881_v54 = vsub.f32 0.0, %v10608_v9  ;;  %v3030_v21 = vmul.f32 1.442695, %v2880_v11  ;;  %8810 = vmatmul.msk.f32.gmra.mxu0 %vm87_vm0, %v47_v37  ;;  %v49_v37 = vld [vmem:[%s14494_s0 + $0x100] sm:$0xff] }
 0x116   :  { %v9378_v22 = vpop.eup %9377  ;;  %v3260_v59 = vadd.f32 1.0, %v9376_v18  ;;  %9381 = vpow2.f32 %v3026_v13  ;;  %v1276_v36 = vmax.f32 %v1274_v25, %v1275_v58  ;;  %v1283_v24 = vmax.f32 %v1281_v15, %v1282_v32  ;;  %v342_v58 = vpop.f32.mrf.mxu0 }
 0x117   :  { %v3261_v28 = vadd.f32 1.0, %v9378_v22  ;;  %9383 = vrcp.f32 %v3259_v20  ;;  %v3032_v38 = vmul.f32 1.442695, %v2881_v54  ;;  %v1289_v30 = vrot.slane %v1288_v8, 4 }
 0x118   :  { %9385 = vrcp.f32 %v3260_v59  ;;  %v1277_v42 = vrot.slane %v1276_v36, 2  ;;  %v1284_v41 = vrot.slane %v1283_v24, 2  ;;  %v1295_v17 = vsel %vm937_vm2, %v591_v29, -inf }
 0x119   :  { %9387 = vrcp.f32 %v3261_v28  ;;  %v1290_v46 = vmax.f32 %v1288_v8, %v1289_v30  ;;  %v1296_v23 = vrot.slane %v1295_v17, 4  ;;  %v592_v31 = vrot.slane %v10614_v16, 2 }
 0x11a   :  { %9389 = vpow2.f32 %v3028_v60  ;;  %v1278_v56 = vmax.f32 %v1276_v36, %v1277_v42  ;;  %v1285_v33 = vmax.f32 %v1283_v24, %v1284_v41  ;;  %v593_v34 = vrot.slane %v10614_v16, 4 }
 0x11b   :  { %v9380_v48 = vpop.eup %9379  ;;  %9391 = vpow2.f32 %v3030_v21  ;;  %v1291_v1 = vrot.slane %v1290_v46, 2  ;;  %v1297_v50 = vmax.f32 %v1295_v17, %v1296_v23  ;;  %v594_v51 = vrot.slane %v10614_v16, 6 }
 0x11c   :  { %v9382_v43 = vpop.eup %9381  ;;  %v3514_v52 = vmul.f32 %v9380_v48, %v10545_v49  ;;  %9393 = vpow2.f32 %v3032_v38  ;;  %v1279_v12 = vrot.slane %v1278_v56, 1  ;;  %v1286_v53 = vrot.slane %v1285_v33, 1 }
 0x11d   :  { %v9384_v47 = vpop.eup %9383  ;;  %v3262_v19 = vadd.f32 1.0, %v9382_v43  ;;  %v1292_v44 = vmax.f32 %v1290_v46, %v1291_v1  ;;  %v1298_v57 = vrot.slane %v1297_v50, 2  ;;  %v1302_v62 = vsel %vm937_vm2, %v10614_v16, -inf  ;;  %8811 = vmatmul.msk.f32.gmra.mxu0 %vm87_vm0, %v48_v55 }
 0x11e   :  { %v9386_v63 = vpop.eup %9385  ;;  %v3515_v3 = vmul.f32 %v9384_v47, %v10552_v27  ;;  %v10638_v35 = vmax.f32 %v1278_v56, %v1279_v12  ;;  %v10640_v49 = vmax.f32 %v1285_v33, %v1286_v53  ;;  %v1303_v5 = vrot.slane %v1302_v62, 4 }
 0x11f   :  { %v9388_v26 = vpop.eup %9387  ;;  %v3516_v29 = vmul.f32 %v9386_v63, %v10558_v39  ;;  %9395 = vrcp.f32 %v3262_v19  ;;  %v1293_v6 = vrot.slane %v1292_v44, 1  ;;  %v1299_v7 = vmax.f32 %v1297_v50, %v1298_v57 }
 0x120   :  { %v9390_v25 = vpop.eup %9389  ;;  %v3517_v15 = vmul.f32 %v9388_v26, %v10563_v45  ;;  %v3843_v8 = vsel %vm3822_vm3, %v3515_v3, %v3514_v52  ;;  %v1304_v10 = vmax.f32 %v1302_v62, %v1303_v5  ;;  %v1309_v27 = vsel %vm937_vm2, %v592_v31, -inf  ;;  %v10673_v26 = vpop.f32.mrf.mxu0 }
 0x121   :  { %v9392_v11 = vpop.eup %9391  ;;  %v3844_v13 = vsel %vm3824_vm4, %v3516_v29, %v3843_v8  ;;  %v3263_v14 = vadd.f32 1.0, %v9390_v25  ;;  %v10648_v60 = vmax.f32 %v1292_v44, %v1293_v6  ;;  %v1300_v39 = vrot.slane %v1299_v7, 1 }
 0x122   :  { %v9394_v32 = vpop.eup %9393  ;;  %v3845_v16 = vsel %vm3826_vm5, %v3517_v15, %v3844_v13  ;;  %v3264_v18 = vadd.f32 1.0, %v9392_v11  ;;  %v1305_v20 = vrot.slane %v1304_v10, 2  ;;  %v1310_v54 = vrot.slane %v1309_v27, 4 }
 0x123   :  { %v3265_v45 = vadd.f32 1.0, %v9394_v32  ;;  %9397 = vrcp.f32 %v3263_v14  ;;  %v10651_v21 = vmax.f32 %v1299_v7, %v1300_v39  ;;  %v1316_v22 = vsel %vm937_vm2, %v593_v34, -inf }
 0x124   :  { %9399 = vrcp.f32 %v3264_v18  ;;  %v1306_v59 = vmax.f32 %v1304_v10, %v1305_v20  ;;  %v1311_v36 = vmax.f32 %v1309_v27, %v1310_v54  ;;  %v1317_v24 = vrot.slane %v1316_v22, 4 }
 0x125   :  { %v9396_v28 = vpop.eup %9395  ;;  %9401 = vrcp.f32 %v3265_v45  ;;  %v1323_v38 = vsel %vm937_vm2, %v594_v51, -inf  ;;  %v340_v30 = vadd.f32 %v10467_v4, %v10624_v40  ;;  %v10661_v42 = vadd.f32 %v10467_v4, %v342_v58  ;;  %8812 = vmatmul.msk.f32.gmra.mxu0 %vm87_vm0, %v49_v37 }
 0x126   :  { %v3518_v41 = vmul.f32 %v9396_v28, %v10584_v0  ;;  %v1307_v17 = vrot.slane %v1306_v59, 1  ;;  %v1312_v46 = vrot.slane %v1311_v36, 2  ;;  %v1318_v23 = vmax.f32 %v1316_v22, %v1317_v24 }
 0x127   :  { %v1324_v31 = vrot.slane %v1323_v38, 4  ;;  %v595_v56 = vrot.slane %v340_v30, 2  ;;  %v596_v33 = vrot.slane %v340_v30, 4  ;;  %v597_v34 = vrot.slane %v340_v30, 6 }
 0x128   :  { %v3846_v48 = vsel %vm3828_vm6, %v3518_v41, %v3845_v16  ;;  %v10666_v1 = vmax.f32 %v1306_v59, %v1307_v17  ;;  %v1313_v50 = vmax.f32 %v1311_v36, %v1312_v46  ;;  %v1319_v40 = vrot.slane %v1318_v23, 2 }
 0x129   :  { %v9398_v51 = vpop.eup %9397  ;;  %v1325_v43 = vmax.f32 %v1323_v38, %v1324_v31  ;;  %v1330_v52 = vsel %vm937_vm2, %v340_v30, -inf  ;;  %v1337_v0 = vsel %vm937_vm2, %v595_v56, -inf  ;;  %v1344_v12 = vsel %vm937_vm2, %v596_v33, -inf  ;;  %v50_v38 = vld [vmem:[%s14494_s0 + $0x108] sm:$0xff] }
 0x12a   :  { %v9400_v53 = vpop.eup %9399  ;;  %v3519_v55 = vmul.f32 %v9398_v51, %v10591_v2  ;;  %v1314_v47 = vrot.slane %v1313_v50, 1  ;;  %v1320_v19 = vmax.f32 %v1318_v23, %v1319_v40  ;;  %v1331_v44 = vrot.slane %v1330_v52, 4  ;;  %v10699_v40 = vpop.f32.mrf.mxu0 }
 0x12b   :  { %v9402_v57 = vpop.eup %9401  ;;  %v3520_v62 = vmul.f32 %v9400_v53, %v10596_v61  ;;  %v1326_v63 = vrot.slane %v1325_v43, 2  ;;  %v1338_v3 = vrot.slane %v1337_v0, 4  ;;  %v1345_v5 = vrot.slane %v1344_v12, 4 }
 0x12c   :  { %v3521_v29 = vmul.f32 %v9402_v57, %v10608_v9  ;;  %v3847_v6 = vsel %vm3830_vm7, %v3519_v55, %v3846_v48  ;;  %v10677_v7 = vmax.f32 %v1313_v50, %v1314_v47  ;;  %v1321_v25 = vrot.slane %v1320_v19, 1 }
 0x12d   :  { %v3848_v2 = vsel %vm3832_vm8, %v3520_v62, %v3847_v6  ;;  %v1327_v15 = vmax.f32 %v1325_v43, %v1326_v63  ;;  %v1332_v8 = vmax.f32 %v1330_v52, %v1331_v44  ;;  %v1339_v10 = vmax.f32 %v1337_v0, %v1338_v3  ;;  %8813 = vmatmul.msk.f32.gmra.mxu0 %vm87_vm0, %v50_v38 }
 0x12e   :  { %v3849_v27 = vsel %vm3834_vm9, %v3521_v29, %v3848_v2  ;;  %v10681_v61 = vmax.f32 %v1320_v19, %v1321_v25  ;;  %v1346_v11 = vmax.f32 %v1344_v12, %v1345_v5  ;;  %v1351_v13 = vsel %vm937_vm2, %v597_v34, -inf }
 0x12f   :  { %3959 = vst.msk [vmem:[#allocation2 + $0x64] sm:$0xff] %vm3626_vm1, %v3849_v27  ;;  %v1328_v9 = vrot.slane %v1327_v15, 1  ;;  %v1333_v14 = vrot.slane %v1332_v8, 2  ;;  %v1340_v39 = vrot.slane %v1339_v10, 2  ;;  %v1352_v58 = vrot.slane %v1351_v13, 4 }
 0x130   :  { %v1347_v32 = vrot.slane %v1346_v11, 2  ;;  %v598_v16 = vrot.slane %v10661_v42, 2  ;;  %v599_v18 = vrot.slane %v10661_v42, 4  ;;  %v600_v20 = vrot.slane %v10661_v42, 6 }
 0x131   :  { %v10688_v54 = vmax.f32 %v1327_v15, %v1328_v9  ;;  %v1334_v45 = vmax.f32 %v1332_v8, %v1333_v14  ;;  %v1341_v22 = vmax.f32 %v1339_v10, %v1340_v39  ;;  %v1353_v59 = vmax.f32 %v1351_v13, %v1352_v58 }
 0x132   :  { %v1348_v36 = vmax.f32 %v1346_v11, %v1347_v32  ;;  %v1358_v24 = vsel %vm937_vm2, %v10661_v42, -inf  ;;  %v1365_v37 = vsel %vm937_vm2, %v598_v16, -inf  ;;  %v1372_v28 = vsel %vm937_vm2, %v599_v18, -inf  ;;  %v51_v11 = vld [vmem:[%s14494_s0 + $0x110] sm:$0xff] }
 0x133   :  { %v1335_v30 = vrot.slane %v1334_v45, 1  ;;  %v1342_v41 = vrot.slane %v1341_v22, 1  ;;  %v1354_v17 = vrot.slane %v1353_v59, 2  ;;  %v1359_v46 = vrot.slane %v1358_v24, 4 }
 0x134   :  { %v1349_v23 = vrot.slane %v1348_v36, 1  ;;  %v1366_v31 = vrot.slane %v1365_v37, 4  ;;  %v1373_v56 = vrot.slane %v1372_v28, 4  ;;  %v1379_v33 = vsel %vm937_vm2, %v600_v20, -inf }
 0x135   :  { %v1336_v42 = vmax.f32 %v1334_v45, %v1335_v30  ;;  %v1343_v34 = vmax.f32 %v1341_v22, %v1342_v41  ;;  %v1355_v48 = vmax.f32 %v1353_v59, %v1354_v17  ;;  %v1360_v50 = vmax.f32 %v1358_v24, %v1359_v46  ;;  %8814 = vmatmul.msk.f32.gmra.mxu0 %vm87_vm0, %v51_v11 }
 0x136   :  { %v1350_v51 = vmax.f32 %v1348_v36, %v1349_v23  ;;  %v1367_v43 = vmax.f32 %v1365_v37, %v1366_v31  ;;  %v1374_v52 = vmax.f32 %v1372_v28, %v1373_v56  ;;  %v1380_v0 = vrot.slane %v1379_v33, 4  ;;  %v3997_v12 = vld [vmem:[#allocation2 + $0x62] sm:$0xff]  ;;  %v10728_v36 = vpop.f32.mrf.mxu0 }
 0x137   :  { %v3979_v53 = vld [vmem:[#allocation2 + $0x60] sm:$0xff]  ;;  %v1356_v55 = vrot.slane %v1355_v48, 1  ;;  %v10702_v47 = vmax.f32 %v10638_v35, %v1336_v42  ;;  %v10705_v19 = vmax.f32 %v10640_v49, %v1343_v34  ;;  %v1361_v44 = vrot.slane %v1360_v50, 2  ;;  %8850 = vmatmul.msk.f32.gmra.mxu1 %vm3626_vm1, %v3997_v12 }
 0x138   :  { %8866 = vmatmul.msk.f32.gmra.mxu2 %vm3626_vm1, %v3979_v53  ;;  %v10710_v57 = vmax.f32 %v10648_v60, %v1350_v51  ;;  %v1368_v62 = vrot.slane %v1367_v43, 2  ;;  %v1375_v63 = vrot.slane %v1374_v52, 2  ;;  %v1381_v3 = vmax.f32 %v1379_v33, %v1380_v0 }
 0x139   :  { %v1357_v5 = vmax.f32 %v1355_v48, %v1356_v55  ;;  %v2882_v29 = vsub.f32 0.0, %v10702_v47  ;;  %v2883_v35 = vsub.f32 0.0, %v10705_v19  ;;  %v1362_v6 = vmax.f32 %v1360_v50, %v1361_v44  ;;  %v52_v44 = vld [vmem:[%s14494_s0 + $0x118] sm:$0xff] }
 0x13a   :  { %v2884_v49 = vsub.f32 0.0, %v10710_v57  ;;  %v1369_v25 = vmax.f32 %v1367_v43, %v1368_v62  ;;  %v1376_v2 = vmax.f32 %v1374_v52, %v1375_v63  ;;  %v1382_v15 = vrot.slane %v1381_v3, 2 }
 0x13b   :  { %v10716_v8 = vmax.f32 %v10651_v21, %v1357_v5  ;;  %v3034_v10 = vmul.f32 1.442695, %v2882_v29  ;;  %v3036_v60 = vmul.f32 1.442695, %v2883_v35  ;;  %v1363_v27 = vrot.slane %v1362_v6, 1 }
 0x13c   :  { %v3038_v13 = vmul.f32 1.442695, %v2884_v49  ;;  %v1370_v9 = vrot.slane %v1369_v25, 1  ;;  %v1377_v14 = vrot.slane %v1376_v2, 1  ;;  %v1383_v39 = vmax.f32 %v1381_v3, %v1382_v15 }
 0x13d   :  { %v2885_v58 = vsub.f32 0.0, %v10716_v8  ;;  %9403 = vpow2.f32 %v3034_v10  ;;  %v1364_v32 = vmax.f32 %v1362_v6, %v1363_v27  ;;  %v346_v21 = vadd.f32 %v10467_v4, %v10673_v26  ;;  %8815 = vmatmul.msk.f32.gmra.mxu0 %vm87_vm0, %v52_v44 }
 0x13e   :  { %9405 = vpow2.f32 %v3036_v60  ;;  %v1371_v16 = vmax.f32 %v1369_v25, %v1370_v9  ;;  %v1378_v18 = vmax.f32 %v1376_v2, %v1377_v14  ;;  %v1384_v20 = vrot.slane %v1383_v39, 1  ;;  %v10753_v15 = vpop.f32.mrf.mxu0 }
 0x13f   :  { %9407 = vpow2.f32 %v3038_v13  ;;  %v3040_v45 = vmul.f32 1.442695, %v2885_v58  ;;  %v10726_v22 = vmax.f32 %v10666_v1, %v1364_v32  ;;  %v601_v59 = vrot.slane %v346_v21, 2 }
 0x140   :  { %v1385_v24 = vmax.f32 %v1383_v39, %v1384_v20  ;;  %v10731_v37 = vmax.f32 %v10677_v7, %v1371_v16  ;;  %v10734_v28 = vmax.f32 %v10681_v61, %v1378_v18  ;;  %v602_v26 = vrot.slane %v346_v21, 4 }
 0x141   :  { %9409 = vpow2.f32 %v3040_v45  ;;  %v2886_v38 = vsub.f32 0.0, %v10726_v22  ;;  %v603_v30 = vrot.slane %v346_v21, 6  ;;  %v1386_v41 = vsel %vm937_vm2, %v346_v21, -inf }
 0x142   :  { %v10739_v1 = vmax.f32 %v10688_v54, %v1385_v24  ;;  %v2887_v17 = vsub.f32 0.0, %v10731_v37  ;;  %v2888_v46 = vsub.f32 0.0, %v10734_v28  ;;  %v1387_v23 = vrot.slane %v1386_v41, 4 }
 0x143   :  { %v9404_v7 = vpop.eup %9403  ;;  %v3042_v31 = vmul.f32 1.442695, %v2886_v38  ;;  %v1393_v61 = vsel %vm937_vm2, %v601_v59, -inf  ;;  %v1400_v56 = vsel %vm937_vm2, %v602_v26, -inf  ;;  %v1407_v33 = vsel %vm937_vm2, %v603_v30, -inf }
 0x144   :  { %v9406_v42 = vpop.eup %9405  ;;  %v3266_v34 = vadd.f32 1.0, %v9404_v7  ;;  %v2889_v48 = vsub.f32 0.0, %v10739_v1  ;;  %v3044_v50 = vmul.f32 1.442695, %v2887_v17  ;;  %v3046_v54 = vmul.f32 1.442695, %v2888_v46 }
 0x145   :  { %v9408_v51 = vpop.eup %9407  ;;  %v3267_v43 = vadd.f32 1.0, %v9406_v42  ;;  %9411 = vpow2.f32 %v3042_v31  ;;  %v1388_v52 = vmax.f32 %v1386_v41, %v1387_v23  ;;  %v1394_v0 = vrot.slane %v1393_v61, 4 }
 0x146   :  { %v3268_v12 = vadd.f32 1.0, %v9408_v51  ;;  %9413 = vrcp.f32 %v3266_v34  ;;  %v3048_v53 = vmul.f32 1.442695, %v2889_v48  ;;  %v1401_v55 = vrot.slane %v1400_v56, 4 }
 0x147   :  { %v9410_v62 = vpop.eup %9409  ;;  %9415 = vrcp.f32 %v3267_v43  ;;  %v1389_v63 = vrot.slane %v1388_v52, 2  ;;  %v1395_v3 = vmax.f32 %v1393_v61, %v1394_v0  ;;  %v1408_v5 = vrot.slane %v1407_v33, 4 }
 0x148   :  { %v3269_v29 = vadd.f32 1.0, %v9410_v62  ;;  %9417 = vrcp.f32 %v3268_v12  ;;  %v1402_v35 = vmax.f32 %v1400_v56, %v1401_v55  ;;  %v349_v6 = vadd.f32 %v10467_v4, %v10699_v40 }
 0x149   :  { %9419 = vpow2.f32 %v3044_v50  ;;  %v1390_v49 = vmax.f32 %v1388_v52, %v1389_v63  ;;  %v1396_v25 = vrot.slane %v1395_v3, 2  ;;  %v1409_v2 = vmax.f32 %v1407_v33, %v1408_v5 }
 0x14a   :  { %9421 = vrcp.f32 %v3269_v29  ;;  %v1403_v10 = vrot.slane %v1402_v35, 2  ;;  %v604_v60 = vrot.slane %v349_v6, 2  ;;  %v605_v27 = vrot.slane %v349_v6, 4 }
 0x14b   :  { %v9412_v11 = vpop.eup %9411  ;;  %9423 = vpow2.f32 %v3046_v54  ;;  %v1391_v13 = vrot.slane %v1390_v49, 1  ;;  %v1397_v9 = vmax.f32 %v1395_v3, %v1396_v25  ;;  %v1410_v14 = vrot.slane %v1409_v2, 2  ;;  %v53_v25 = vld [vmem:[%s14494_s0 + $0x120] sm:$0xff] }
 0x14c   :  { %v9414_v39 = vpop.eup %9413  ;;  %9425 = vpow2.f32 %v3048_v53  ;;  %v3270_v58 = vadd.f32 1.0, %v9412_v11  ;;  %v1404_v32 = vmax.f32 %v1402_v35, %v1403_v10  ;;  %v606_v40 = vrot.slane %v349_v6, 6  ;;  %v357_v53 = vpop.f32.mrf.mxu0  ;;  %8816 = vmatmul.msk.f32.gmra.mxu0 %vm87_vm0, %v53_v25 }
 0x14d   :  { %v9416_v21 = vpop.eup %9415  ;;  %v3522_v16 = vmul.f32 %v9414_v39, %v10702_v47  ;;  %v10756_v18 = vmax.f32 %v1390_v49, %v1391_v13  ;;  %v1398_v20 = vrot.slane %v1397_v9, 1  ;;  %v1411_v45 = vmax.f32 %v1409_v2, %v1410_v14 }
 0x14e   :  { %v9418_v59 = vpop.eup %9417  ;;  %v3523_v24 = vmul.f32 %v9416_v21, %v10705_v19  ;;  %9427 = vrcp.f32 %v3270_v58  ;;  %v1405_v26 = vrot.slane %v1404_v32, 1  ;;  %v1414_v38 = vsel %vm937_vm2, %v349_v6, -inf }
 0x14f   :  { %v9420_v30 = vpop.eup %9419  ;;  %v3524_v41 = vmul.f32 %v9418_v59, %v10710_v57  ;;  %v10761_v17 = vmax.f32 %v1397_v9, %v1398_v20  ;;  %v1412_v46 = vrot.slane %v1411_v45, 1  ;;  %v1415_v23 = vrot.slane %v1414_v38, 4 }
 0x150   :  { %v9422_v7 = vpop.eup %9421  ;;  %v3850_v47 = vsel %vm3822_vm3, %v3523_v24, %v3522_v16  ;;  %v3271_v31 = vadd.f32 1.0, %v9420_v30  ;;  %v10764_v61 = vmax.f32 %v1404_v32, %v1405_v26  ;;  %v1421_v56 = vsel %vm937_vm2, %v604_v60, -inf }
 0x151   :  { %v9424_v19 = vpop.eup %9423  ;;  %v3525_v33 = vmul.f32 %v9422_v7, %v10716_v8  ;;  %v3851_v42 = vsel %vm3824_vm4, %v3524_v41, %v3850_v47  ;;  %v10769_v34 = vmax.f32 %v1411_v45, %v1412_v46  ;;  %v1416_v57 = vmax.f32 %v1414_v38, %v1415_v23 }
 0x152   :  { %v9426_v48 = vpop.eup %9425  ;;  %v3272_v50 = vadd.f32 1.0, %v9424_v19  ;;  %9429 = vrcp.f32 %v3271_v31  ;;  %v1422_v54 = vrot.slane %v1421_v56, 4  ;;  %v1428_v51 = vsel %vm937_vm2, %v605_v27, -inf }
 0x153   :  { %v3852_v43 = vsel %vm3826_vm5, %v3525_v33, %v3851_v42  ;;  %v3273_v52 = vadd.f32 1.0, %v9426_v48  ;;  %v1417_v0 = vrot.slane %v1416_v57, 2  ;;  %v1429_v12 = vrot.slane %v1428_v51, 4 }
 0x154   :  { %v9428_v55 = vpop.eup %9427  ;;  %9431 = vrcp.f32 %v3272_v50  ;;  %v1423_v8 = vmax.f32 %v1421_v56, %v1422_v54  ;;  %v1435_v44 = vsel %vm937_vm2, %v606_v40, -inf  ;;  %v352_v62 = vadd.f32 %v10467_v4, %v10728_v36  ;;  %v360_v56 = vpop.f32.mrf.mxu0  ;;  %v10802_v50 = vld [vmem:[%s14495_s3] ss:$0 sm:$0xff] }
 0x155   :  { %9433 = vrcp.f32 %v3273_v52  ;;  %v3526_v63 = vmul.f32 %v9428_v55, %v10726_v22  ;;  %v1418_v3 = vmax.f32 %v1416_v57, %v1417_v0  ;;  %v1430_v5 = vmax.f32 %v1428_v51, %v1429_v12 }
 0x156   :  { %v1424_v29 = vrot.slane %v1423_v8, 2  ;;  %v1436_v35 = vrot.slane %v1435_v44, 4  ;;  %v607_v6 = vrot.slane %v352_v62, 2  ;;  %v608_v49 = vrot.slane %v352_v62, 4 }
 0x157   :  { %v3853_v2 = vsel %vm3828_vm6, %v3526_v63, %v3852_v43  ;;  %v1419_v10 = vrot.slane %v1418_v3, 1  ;;  %v1431_v60 = vrot.slane %v1430_v5, 2  ;;  %v609_v27 = vrot.slane %v352_v62, 6 }
 0x158   :  { %v9430_v4 = vpop.eup %9429  ;;  %v1425_v36 = vmax.f32 %v1423_v8, %v1424_v29  ;;  %v1437_v22 = vmax.f32 %v1435_v44, %v1436_v35  ;;  %v1442_v11 = vsel %vm937_vm2, %v352_v62, -inf  ;;  %v1449_v13 = vsel %vm937_vm2, %v607_v6, -inf  ;;  %v54_v62 = vld [vmem:[%s14494_s0 + $0x128] sm:$0xff] }
 0x159   :  { %v3527_v9 = vmul.f32 %v9430_v4, %v10731_v37  ;;  %v10785_v14 = vmax.f32 %v1418_v3, %v1419_v10  ;;  %v1432_v39 = vmax.f32 %v1430_v5, %v1431_v60  ;;  %v1443_v58 = vrot.slane %v1442_v11, 4  ;;  %8817 = vmatmul.msk.f32.gmra.mxu0 %vm87_vm0, %v54_v62 }
 0x15a   :  { %v9432_v32 = vpop.eup %9431  ;;  %v1426_v40 = vrot.slane %v1425_v36, 1  ;;  %v1438_v21 = vrot.slane %v1437_v22, 2  ;;  %v1450_v16 = vrot.slane %v1449_v13, 4  ;;  %v1456_v20 = vsel %vm937_vm2, %v608_v49, -inf }
 0x15b   :  { %v9434_v45 = vpop.eup %9433  ;;  %v3528_v59 = vmul.f32 %v9432_v32, %v10734_v28  ;;  %v3854_v24 = vsel %vm3830_vm7, %v3527_v9, %v3853_v2  ;;  %v1433_v26 = vrot.slane %v1432_v39, 1  ;;  %v1444_v38 = vmax.f32 %v1442_v11, %v1443_v58 }
 0x15c   :  { %v3529_v30 = vmul.f32 %v9434_v45, %v10739_v1  ;;  %v10791_v37 = vmax.f32 %v1425_v36, %v1426_v40  ;;  %v1439_v41 = vmax.f32 %v1437_v22, %v1438_v21  ;;  %v1451_v46 = vmax.f32 %v1449_v13, %v1450_v16 }
 0x15d   :  { %v3855_v23 = vsel %vm3832_vm8, %v3528_v59, %v3854_v24  ;;  %v10794_v7 = vmax.f32 %v1432_v39, %v1433_v26  ;;  %v1445_v47 = vrot.slane %v1444_v38, 2  ;;  %v1457_v31 = vrot.slane %v1456_v20, 4 }
 0x15e   :  { %v3856_v19 = vsel %vm3834_vm9, %v3529_v30, %v3855_v23  ;;  %v1440_v28 = vrot.slane %v1439_v41, 1  ;;  %v1452_v33 = vrot.slane %v1451_v46, 2  ;;  %v1463_v42 = vsel %vm937_vm2, %v609_v27, -inf }
 0x15f   :  { %3960 = vst.msk [vmem:[#allocation2 + $0x74] sm:$0xff] %vm3626_vm1, %v3856_v19  ;;  %v1446_v1 = vmax.f32 %v1444_v38, %v1445_v47  ;;  %v1458_v57 = vmax.f32 %v1456_v20, %v1457_v31  ;;  %v1464_v48 = vrot.slane %v1463_v42, 4  ;;  %v355_v54 = vadd.f32 %v10802_v50, %v10753_v15  ;;  %v4399_v47 = vld [vmem:[%s14496_s1 + $0x38] sm:$0xff] }
 0x160   :  { %v10806_v51 = vmax.f32 %v1439_v41, %v1440_v28  ;;  %v1453_v43 = vmax.f32 %v1451_v46, %v1452_v33  ;;  %v10809_v52 = vadd.f32 %v10802_v50, %v357_v53  ;;  %v10812_v0 = vadd.f32 %v10802_v50, %v360_v56  ;;  %4462 = vmatpush.msrb.mxu1 %v4399_v47 }
 0x161   :  { %v1447_v12 = vrot.slane %v1446_v1, 1  ;;  %v1459_v55 = vrot.slane %v1458_v57, 2  ;;  %v1465_v8 = vmax.f32 %v1463_v42, %v1464_v48  ;;  %v610_v44 = vrot.slane %v355_v54, 2 }
 0x162   :  { %v1454_v63 = vrot.slane %v1453_v43, 1  ;;  %v611_v3 = vrot.slane %v355_v54, 4  ;;  %v612_v15 = vrot.slane %v355_v54, 6  ;;  %v1470_v5 = vsel %vm937_vm2, %v355_v54, -inf }
 0x163   :  { %v1448_v53 = vmax.f32 %v1446_v1, %v1447_v12  ;;  %v1460_v29 = vmax.f32 %v1458_v57, %v1459_v55  ;;  %v1466_v35 = vrot.slane %v1465_v8, 2  ;;  %v1471_v6 = vrot.slane %v1470_v5, 4 }
 0x164   :  { %v1455_v49 = vmax.f32 %v1453_v43, %v1454_v63  ;;  %v1477_v25 = vsel %vm937_vm2, %v610_v44, -inf  ;;  %v1484_v2 = vsel %vm937_vm2, %v611_v3, -inf  ;;  %v1491_v10 = vsel %vm937_vm2, %v612_v15, -inf  ;;  %v4382_v43 = vld [vmem:[#allocation2 + $0x6] sm:$0xff] }
 0x165   :  { %v1461_v60 = vrot.slane %v1460_v29, 1  ;;  %v1467_v27 = vmax.f32 %v1465_v8, %v1466_v35  ;;  %v10823_v4 = vmax.f32 %v10756_v18, %v1448_v53  ;;  %v1472_v36 = vmax.f32 %v1470_v5, %v1471_v6 }
 0x166   :  { %v10826_v22 = vmax.f32 %v10761_v17, %v1455_v49  ;;  %v1478_v11 = vrot.slane %v1477_v25, 4  ;;  %v1485_v13 = vrot.slane %v1484_v2, 4  ;;  %v1492_v9 = vrot.slane %v1491_v10, 4  ;;  %v3998_v39 = vld [vmem:[#allocation2 + $0x72] sm:$0xff] }
 0x167   :  { %v3980_v58 = vld [vmem:[#allocation2 + $0x70] sm:$0xff]  ;;  %v1462_v32 = vmax.f32 %v1460_v29, %v1461_v60  ;;  %v1468_v40 = vrot.slane %v1467_v27, 1  ;;  %v2890_v21 = vsub.f32 0.0, %v10823_v4  ;;  %v1473_v16 = vrot.slane %v1472_v36, 2  ;;  %8851 = vmatmul.msk.f32.gmra.mxu1 %vm3626_vm1, %v3998_v39 }
 0x168   :  { %8867 = vmatmul.msk.f32.gmra.mxu2 %vm3626_vm1, %v3980_v58  ;;  %v2891_v18 = vsub.f32 0.0, %v10826_v22  ;;  %v1479_v20 = vmax.f32 %v1477_v25, %v1478_v11  ;;  %v1486_v45 = vmax.f32 %v1484_v2, %v1485_v13  ;;  %v1493_v17 = vmax.f32 %v1491_v10, %v1492_v9 }
 0x169   :  { %v1469_v59 = vmax.f32 %v1467_v27, %v1468_v40  ;;  %v10833_v24 = vmax.f32 %v10764_v61, %v1462_v32  ;;  %v3050_v26 = vmul.f32 1.442695, %v2890_v21  ;;  %v1474_v38 = vmax.f32 %v1472_v36, %v1473_v16  ;;  %v55_v61 = vld [vmem:[%s14494_s0 + $0x130] sm:$0xff]  ;;  %v10870_v36 = vpop.f32.mrf.mxu0 }
 0x16a   :  { %v3052_v30 = vmul.f32 1.442695, %v2891_v18  ;;  %v1480_v41 = vrot.slane %v1479_v20, 2  ;;  %v1487_v46 = vrot.slane %v1486_v45, 2  ;;  %v1494_v23 = vrot.slane %v1493_v17, 2  ;;  %8818 = vmatmul.msk.f32.gmra.mxu0 %vm87_vm0, %v55_v61  ;;  %v56_v18 = vld [vmem:[%s14494_s0 + $0x138] sm:$0xff] }
 0x16b   :  { %v10839_v31 = vmax.f32 %v10769_v34, %v1469_v59  ;;  %v2892_v56 = vsub.f32 0.0, %v10833_v24  ;;  %9435 = vpow2.f32 %v3050_v26  ;;  %v1475_v19 = vrot.slane %v1474_v38, 1  ;;  %v4398_v34 = vld [vmem:[%s14496_s1 + $0x30] sm:$0xff] }
 0x16c   :  { %9437 = vpow2.f32 %v3052_v30  ;;  %v1481_v28 = vmax.f32 %v1479_v20, %v1480_v41  ;;  %v1488_v33 = vmax.f32 %v1486_v45, %v1487_v46  ;;  %v1495_v42 = vmax.f32 %v1493_v17, %v1494_v23  ;;  %4463 = vmatpush.msrb.mxu1 %v4398_v34  ;;  %v4383_v46 = vld [vmem:[#allocation2 + $0x16] sm:$0xff] }
 0x16d   :  { %v2893_v1 = vsub.f32 0.0, %v10839_v31  ;;  %v3054_v57 = vmul.f32 1.442695, %v2892_v56  ;;  %v1476_v48 = vmax.f32 %v1474_v38, %v1475_v19  ;;  %v613_v54 = vrot.slane %v10809_v52, 2 }
 0x16e   :  { %v1482_v12 = vrot.slane %v1481_v28, 1  ;;  %v1489_v55 = vrot.slane %v1488_v33, 1  ;;  %v1496_v8 = vrot.slane %v1495_v42, 1  ;;  %v614_v44 = vrot.slane %v10809_v52, 4 }
 0x16f   :  { %9439 = vpow2.f32 %v3054_v57  ;;  %v3056_v62 = vmul.f32 1.442695, %v2893_v1  ;;  %v10853_v63 = vmax.f32 %v10785_v14, %v1476_v48  ;;  %v615_v3 = vrot.slane %v10809_v52, 6  ;;  %8892 = vmatmul.msk.f32.vlgmr.msrb.gmra.mxu1 %vm3626_vm1, %v4382_v43 }
 0x170   :  { %v1483_v15 = vmax.f32 %v1481_v28, %v1482_v12  ;;  %v1490_v5 = vmax.f32 %v1488_v33, %v1489_v55  ;;  %v1497_v53 = vmax.f32 %v1495_v42, %v1496_v8  ;;  %v1498_v29 = vsel %vm937_vm2, %v10809_v52, -inf }
 0x171   :  { %v9436_v35 = vpop.eup %9435  ;;  %9441 = vpow2.f32 %v3056_v62  ;;  %v2894_v6 = vsub.f32 0.0, %v10853_v63  ;;  %v1499_v49 = vrot.slane %v1498_v29, 4  ;;  %v1505_v25 = vsel %vm937_vm2, %v613_v54, -inf  ;;  %v10887_v12 = vpop.f32.mrf.mxu0 }
 0x172   :  { %v9438_v2 = vpop.eup %9437  ;;  %v3274_v14 = vadd.f32 1.0, %v9436_v35  ;;  %v10862_v10 = vmax.f32 %v10791_v37, %v1483_v15  ;;  %v10865_v60 = vmax.f32 %v10794_v7, %v1490_v5  ;;  %v10868_v27 = vmax.f32 %v10806_v51, %v1497_v53  ;;  %8819 = vmatmul.msk.f32.gmra.mxu0 %vm87_vm0, %v56_v18 }
 0x173   :  { %v3275_v52 = vadd.f32 1.0, %v9438_v2  ;;  %v3058_v11 = vmul.f32 1.442695, %v2894_v6  ;;  %v1500_v13 = vmax.f32 %v1498_v29, %v1499_v49  ;;  %v1506_v9 = vrot.slane %v1505_v25, 4 }
 0x174   :  { %9443 = vrcp.f32 %v3274_v14  ;;  %v2895_v39 = vsub.f32 0.0, %v10862_v10  ;;  %v2896_v58 = vsub.f32 0.0, %v10865_v60  ;;  %v2897_v37 = vsub.f32 0.0, %v10868_v27 }
 0x175   :  { %v9440_v32 = vpop.eup %9439  ;;  %9445 = vrcp.f32 %v3275_v52  ;;  %v1501_v7 = vrot.slane %v1500_v13, 2  ;;  %v1507_v40 = vmax.f32 %v1505_v25, %v1506_v9  ;;  %v1512_v51 = vsel %vm937_vm2, %v614_v44, -inf }
 0x176   :  { %v3276_v21 = vadd.f32 1.0, %v9440_v32  ;;  %9447 = vpow2.f32 %v3058_v11  ;;  %v3060_v16 = vmul.f32 1.442695, %v2895_v39  ;;  %v3062_v45 = vmul.f32 1.442695, %v2896_v58 }
 0x177   :  { %v9442_v20 = vpop.eup %9441  ;;  %v1502_v17 = vmax.f32 %v1500_v13, %v1501_v7  ;;  %v1508_v59 = vrot.slane %v1507_v40, 2  ;;  %v1513_v26 = vrot.slane %v1512_v51, 4  ;;  %v3064_v30 = vmul.f32 1.442695, %v2897_v37  ;;  %8893 = vmatmul.msk.f32.gmra.mxu1 %vm3626_vm1, %v4383_v46 }
 0x178   :  { %v3277_v38 = vadd.f32 1.0, %v9442_v20  ;;  %9449 = vrcp.f32 %v3276_v21  ;;  %v1519_v41 = vsel %vm937_vm2, %v615_v3, -inf  ;;  %v616_v56 = vrot.slane %v10812_v0, 2 }
 0x179   :  { %9451 = vpow2.f32 %v3060_v16  ;;  %v1509_v23 = vmax.f32 %v1507_v40, %v1508_v59  ;;  %v1514_v47 = vmax.f32 %v1512_v51, %v1513_v26  ;;  %v1503_v61 = vrot.slane %v1502_v17, 1 }
 0x17a   :  { %v9444_v19 = vpop.eup %9443  ;;  %9453 = vrcp.f32 %v3277_v38  ;;  %v1520_v28 = vrot.slane %v1519_v41, 4  ;;  %v617_v34 = vrot.slane %v10812_v0, 4  ;;  %v618_v1 = vrot.slane %v10812_v0, 6 }
 0x17b   :  { %v9446_v33 = vpop.eup %9445  ;;  %v3530_v42 = vmul.f32 %v9444_v19, %v10823_v4  ;;  %9455 = vpow2.f32 %v3062_v45  ;;  %v1515_v54 = vrot.slane %v1514_v47, 2  ;;  %v1510_v8 = vrot.slane %v1509_v23, 1  ;;  %v57_v45 = vld [vmem:[%s14494_s0 + $0x140] sm:$0xff] }
 0x17c   :  { %v9448_v57 = vpop.eup %9447  ;;  %v3531_v48 = vmul.f32 %v9446_v33, %v10826_v22  ;;  %9457 = vpow2.f32 %v3064_v30  ;;  %v1521_v43 = vmax.f32 %v1519_v41, %v1520_v28  ;;  %v1526_v44 = vsel %vm937_vm2, %v10812_v0, -inf  ;;  %8820 = vmatmul.msk.f32.gmra.mxu0 %vm87_vm0, %v57_v45 }
 0x17d   :  { %v3278_v55 = vadd.f32 1.0, %v9448_v57  ;;  %v1533_v4 = vsel %vm937_vm2, %v616_v56, -inf  ;;  %v1516_v15 = vmax.f32 %v1514_v47, %v1515_v54  ;;  %v1527_v53 = vrot.slane %v1526_v44, 4  ;;  %v4384_v47 = vld [vmem:[#allocation2 + $0x26] sm:$0xff] }
 0x17e   :  { %v9450_v62 = vpop.eup %9449  ;;  %v3857_v3 = vsel %vm3822_vm3, %v3531_v48, %v3530_v42  ;;  %v1522_v5 = vrot.slane %v1521_v43, 2  ;;  %v1534_v35 = vrot.slane %v1533_v4, 4  ;;  %v1540_v6 = vsel %vm937_vm2, %v617_v34, -inf }
 0x17f   :  { %v9452_v29 = vpop.eup %9451  ;;  %v3532_v22 = vmul.f32 %v9450_v62, %v10833_v24  ;;  %9459 = vrcp.f32 %v3278_v55  ;;  %v1517_v2 = vrot.slane %v1516_v15, 1  ;;  %v1528_v0 = vmax.f32 %v1526_v44, %v1527_v53  ;;  %8894 = vmatmul.msk.f32.gmra.mxu1 %vm3626_vm1, %v4384_v47 }
 0x180   :  { %v9454_v49 = vpop.eup %9453  ;;  %v3279_v25 = vadd.f32 1.0, %v9452_v29  ;;  %v1523_v14 = vmax.f32 %v1521_v43, %v1522_v5  ;;  %v10895_v11 = vmax.f32 %v1502_v17, %v1503_v61  ;;  %v10897_v13 = vmax.f32 %v1509_v23, %v1510_v8  ;;  %v369_v23 = vpop.f32.mrf.mxu0 }
 0x181   :  { %v9456_v52 = vpop.eup %9455  ;;  %v1535_v9 = vmax.f32 %v1533_v4, %v1534_v35  ;;  %v1541_v39 = vrot.slane %v1540_v6, 4  ;;  %v3533_v37 = vmul.f32 %v9454_v49, %v10839_v31  ;;  %v3858_v24 = vsel %vm3824_vm4, %v3532_v22, %v3857_v3 }
 0x182   :  { %v9458_v58 = vpop.eup %9457  ;;  %v3280_v32 = vadd.f32 1.0, %v9456_v52  ;;  %9461 = vrcp.f32 %v3279_v25  ;;  %v1524_v40 = vrot.slane %v1523_v14, 1  ;;  %v1529_v51 = vrot.slane %v1528_v0, 2 }
 0x183   :  { %v3281_v7 = vadd.f32 1.0, %v9458_v58  ;;  %v1536_v21 = vrot.slane %v1535_v9, 2  ;;  %v10901_v16 = vmax.f32 %v1516_v15, %v1517_v2  ;;  %v1542_v18 = vmax.f32 %v1540_v6, %v1541_v39 }
 0x184   :  { %9463 = vrcp.f32 %v3280_v32  ;;  %v1547_v20 = vsel %vm937_vm2, %v618_v1, -inf  ;;  %v1530_v31 = vmax.f32 %v1528_v0, %v1529_v51  ;;  %v3859_v38 = vsel %vm3826_vm5, %v3533_v37, %v3858_v24 }
 0x185   :  { %v9460_v17 = vpop.eup %9459  ;;  %9465 = vrcp.f32 %v3281_v7  ;;  %v1537_v59 = vmax.f32 %v1535_v9, %v1536_v21  ;;  %v1548_v26 = vrot.slane %v1547_v20, 4  ;;  %v1543_v41 = vrot.slane %v1542_v18, 2 }
 0x186   :  { %v3534_v30 = vmul.f32 %v9460_v17, %v10853_v63  ;;  %v364_v46 = vadd.f32 %v10802_v50, %v10870_v36  ;;  %v10912_v56 = vmax.f32 %v1523_v14, %v1524_v40  ;;  %v1531_v19 = vrot.slane %v1530_v31, 1 }
 0x187   :  { %v1538_v61 = vrot.slane %v1537_v59, 1  ;;  %v1549_v28 = vmax.f32 %v1547_v20, %v1548_v26  ;;  %v1544_v34 = vmax.f32 %v1542_v18, %v1543_v41  ;;  %v367_v36 = vadd.f32 %v10802_v50, %v10887_v12 }
 0x188   :  { %v9462_v33 = vpop.eup %9461  ;;  %v3860_v42 = vsel %vm3828_vm6, %v3534_v30, %v3859_v38  ;;  %v619_v1 = vrot.slane %v364_v46, 2  ;;  %v620_v57 = vrot.slane %v364_v46, 4  ;;  %v10920_v54 = vadd.f32 %v10802_v50, %v369_v23 }
 0x189   :  { %v3535_v63 = vmul.f32 %v9462_v33, %v10862_v10  ;;  %v1550_v48 = vrot.slane %v1549_v28, 2  ;;  %v10922_v55 = vmax.f32 %v1530_v31, %v1531_v19  ;;  %v621_v8 = vrot.slane %v364_v46, 6  ;;  %v58_v31 = vld [vmem:[%s14494_s0 + $0x148] sm:$0xff]  ;;  %v4385_v19 = vld [vmem:[#allocation2 + $0x36] sm:$0xff] }
 0x18a   :  { %v9464_v43 = vpop.eup %9463  ;;  %v1554_v44 = vsel %vm937_vm2, %v364_v46, -inf  ;;  %v1561_v4 = vsel %vm937_vm2, %v619_v1, -inf  ;;  %v1545_v15 = vrot.slane %v1544_v34, 1  ;;  %v10929_v53 = vmax.f32 %v1537_v59, %v1538_v61  ;;  %8821 = vmatmul.msk.f32.gmra.mxu0 %vm87_vm0, %v58_v31  ;;  %8895 = vmatmul.msk.f32.gmra.mxu1 %vm3626_vm1, %v4385_v19 }
 0x18b   :  { %v9466_v62 = vpop.eup %9465  ;;  %v3536_v3 = vmul.f32 %v9464_v43, %v10865_v60  ;;  %v3861_v10 = vsel %vm3830_vm7, %v3535_v63, %v3860_v42  ;;  %v1555_v5 = vrot.slane %v1554_v44, 4  ;;  %v1562_v29 = vrot.slane %v1561_v4, 4 }
 0x18c   :  { %v3537_v12 = vmul.f32 %v9466_v62, %v10868_v27  ;;  %v1568_v22 = vsel %vm937_vm2, %v620_v57, -inf  ;;  %v10933_v6 = vmax.f32 %v1549_v28, %v1550_v48  ;;  %v1575_v14 = vsel %vm937_vm2, %v621_v8, -inf  ;;  %v10950_v48 = vpop.f32.mrf.mxu0 }
 0x18d   :  { %v3862_v35 = vsel %vm3832_vm8, %v3536_v3, %v3861_v10  ;;  %v1556_v49 = vmax.f32 %v1554_v44, %v1555_v5  ;;  %v1569_v25 = vrot.slane %v1568_v22, 4  ;;  %v1563_v60 = vmax.f32 %v1561_v4, %v1562_v29 }
 0x18e   :  { %v3863_v2 = vsel %vm3834_vm9, %v3537_v12, %v3862_v35  ;;  %v622_v0 = vrot.slane %v367_v36, 2  ;;  %v10938_v27 = vmax.f32 %v1544_v34, %v1545_v15  ;;  %v1576_v39 = vrot.slane %v1575_v14, 4 }
 0x18f   :  { %3961 = vst.msk [vmem:[#allocation2 + $0x84] sm:$0xff] %vm3626_vm1, %v3863_v2  ;;  %v1557_v52 = vrot.slane %v1556_v49, 2  ;;  %v1570_v9 = vmax.f32 %v1568_v22, %v1569_v25  ;;  %v1564_v58 = vrot.slane %v1563_v60, 2  ;;  %v623_v37 = vrot.slane %v367_v36, 4 }
 0x190   :  { %v624_v24 = vrot.slane %v367_v36, 6  ;;  %v1582_v32 = vsel %vm937_vm2, %v367_v36, -inf  ;;  %v1577_v51 = vmax.f32 %v1575_v14, %v1576_v39  ;;  %v1589_v20 = vsel %vm937_vm2, %v622_v0, -inf }
 0x191   :  { %v1558_v7 = vmax.f32 %v1556_v49, %v1557_v52  ;;  %v1571_v40 = vrot.slane %v1570_v9, 2  ;;  %v1583_v21 = vrot.slane %v1582_v32, 4  ;;  %v1565_v18 = vmax.f32 %v1563_v60, %v1564_v58 }
 0x192   :  { %v1596_v45 = vsel %vm937_vm2, %v623_v37, -inf  ;;  %v1603_v17 = vsel %vm937_vm2, %v624_v24, -inf  ;;  %v1552_v59 = vrot.slane %v10933_v6, 1  ;;  %v1578_v30 = vrot.slane %v1577_v51, 2 }
 0x193   :  { %v1559_v26 = vrot.slane %v1558_v7, 1  ;;  %v1572_v38 = vmax.f32 %v1570_v9, %v1571_v40  ;;  %v1566_v41 = vrot.slane %v1565_v18, 1  ;;  %v1584_v46 = vmax.f32 %v1582_v32, %v1583_v21  ;;  %v4386_v9 = vld [vmem:[#allocation2 + $0x46] sm:$0xff] }
 0x194   :  { %v1590_v23 = vrot.slane %v1589_v20, 4  ;;  %v1597_v47 = vrot.slane %v1596_v45, 4  ;;  %v1579_v33 = vmax.f32 %v1577_v51, %v1578_v30  ;;  %v1604_v42 = vrot.slane %v1603_v17, 4  ;;  %8896 = vmatmul.msk.f32.gmra.mxu1 %vm3626_vm1, %v4386_v9 }
 0x195   :  { %v1560_v61 = vmax.f32 %v1558_v7, %v1559_v26  ;;  %v1573_v28 = vrot.slane %v1572_v38, 1  ;;  %v1567_v34 = vmax.f32 %v1565_v18, %v1566_v41  ;;  %v1585_v1 = vrot.slane %v1584_v46, 2 }
 0x196   :  { %v1591_v57 = vmax.f32 %v1589_v20, %v1590_v23  ;;  %v1598_v63 = vmax.f32 %v1596_v45, %v1597_v47  ;;  %v1580_v43 = vrot.slane %v1579_v33, 1  ;;  %v1605_v44 = vmax.f32 %v1603_v17, %v1604_v42  ;;  %v10981_v17 = vpop.f32.mrf.mxu0 }
 0x197   :  { %v1574_v36 = vmax.f32 %v1572_v38, %v1573_v28  ;;  %v10953_v8 = vmax.f32 %v10895_v11, %v1560_v61  ;;  %v10956_v4 = vmax.f32 %v10897_v13, %v1567_v34  ;;  %v1586_v62 = vmax.f32 %v1584_v46, %v1585_v1 }
 0x198   :  { %v1592_v3 = vrot.slane %v1591_v57, 2  ;;  %v1599_v10 = vrot.slane %v1598_v63, 2  ;;  %v1581_v15 = vmax.f32 %v1579_v33, %v1580_v43  ;;  %v1606_v29 = vrot.slane %v1605_v44, 2  ;;  %v4387_v33 = vld [vmem:[#allocation2 + $0x56] sm:$0xff] }
 0x199   :  { %v10959_v5 = vmax.f32 %v10901_v16, %v1574_v36  ;;  %v2898_v12 = vsub.f32 0.0, %v10953_v8  ;;  %v2899_v22 = vsub.f32 0.0, %v10956_v4  ;;  %v1587_v35 = vrot.slane %v1586_v62, 1 }
 0x19a   :  { %v1593_v49 = vmax.f32 %v1591_v57, %v1592_v3  ;;  %v1600_v11 = vmax.f32 %v1598_v63, %v1599_v10  ;;  %v10964_v25 = vmax.f32 %v10912_v56, %v1581_v15  ;;  %v1607_v60 = vmax.f32 %v1605_v44, %v1606_v29 }
 0x19b   :  { %v2900_v13 = vsub.f32 0.0, %v10959_v5  ;;  %v3066_v2 = vmul.f32 1.442695, %v2898_v12  ;;  %v3068_v14 = vmul.f32 1.442695, %v2899_v22  ;;  %v1588_v0 = vmax.f32 %v1586_v62, %v1587_v35  ;;  %v60_v22 = vld [vmem:[%s14494_s0 + $0x158] sm:$0xff] }
 0x19c   :  { %v1594_v52 = vrot.slane %v1593_v49, 1  ;;  %v1601_v16 = vrot.slane %v1600_v11, 1  ;;  %v2901_v39 = vsub.f32 0.0, %v10964_v25  ;;  %v1608_v37 = vrot.slane %v1607_v60, 1  ;;  %8897 = vmatmul.msk.f32.gmra.mxu1 %vm3626_vm1, %v4387_v33 }
 0x19d   :  { %9467 = vpow2.f32 %v3066_v2  ;;  %v3070_v58 = vmul.f32 1.442695, %v2900_v13  ;;  %v10970_v32 = vmax.f32 %v10922_v55, %v1588_v0  ;;  %v1553_v7 = vmax.f32 %v10933_v6, %v1552_v59  ;;  %v59_v55 = vld [vmem:[%s14494_s0 + $0x150] sm:$0xff] }
 0x19e   :  { %9469 = vpow2.f32 %v3068_v14  ;;  %v1595_v24 = vmax.f32 %v1593_v49, %v1594_v52  ;;  %v1602_v56 = vmax.f32 %v1600_v11, %v1601_v16  ;;  %v3072_v40 = vmul.f32 1.442695, %v2901_v39  ;;  %8822 = vmatmul.msk.f32.gmra.mxu0 %vm87_vm0, %v59_v55  ;;  %v11006_v14 = vpop.f32.mrf.mxu0 }
 0x19f   :  { %9471 = vpow2.f32 %v3070_v58  ;;  %v1609_v51 = vmax.f32 %v1607_v60, %v1608_v37  ;;  %v2902_v20 = vsub.f32 0.0, %v10970_v32  ;;  %v625_v45 = vrot.slane %v10920_v54, 2  ;;  %v4388_v37 = vld [vmem:[#allocation2 + $0x66] sm:$0xff] }
 0x1a0   :  { %v10974_v21 = vmax.f32 %v10929_v53, %v1595_v24  ;;  %v10977_v18 = vmax.f32 %v10938_v27, %v1602_v56  ;;  %9473 = vpow2.f32 %v3072_v40  ;;  %v626_v31 = vrot.slane %v10920_v54, 4 }
 0x1a1   :  { %v10986_v6 = vmax.f32 %v1553_v7, %v1609_v51  ;;  %v627_v53 = vrot.slane %v10920_v54, 6  ;;  %v3074_v26 = vmul.f32 1.442695, %v2902_v20  ;;  %v1610_v38 = vsel %vm937_vm2, %v10920_v54, -inf }
 0x1a2   :  { %v2903_v27 = vsub.f32 0.0, %v10974_v21  ;;  %v2904_v59 = vsub.f32 0.0, %v10977_v18  ;;  %v1611_v41 = vrot.slane %v1610_v38, 4  ;;  %v1617_v46 = vsel %vm937_vm2, %v625_v45, -inf }
 0x1a3   :  { %v9468_v30 = vpop.eup %9467  ;;  %v1624_v23 = vsel %vm937_vm2, %v626_v31, -inf  ;;  %v2905_v61 = vsub.f32 0.0, %v10986_v6  ;;  %9475 = vpow2.f32 %v3074_v26  ;;  %v1618_v63 = vrot.slane %v1617_v46, 4 }
 0x1a4   :  { %v9470_v47 = vpop.eup %9469  ;;  %v3282_v19 = vadd.f32 1.0, %v9468_v30  ;;  %v3076_v28 = vmul.f32 1.442695, %v2903_v27  ;;  %v3078_v1 = vmul.f32 1.442695, %v2904_v59  ;;  %v1612_v57 = vmax.f32 %v1610_v38, %v1611_v41  ;;  %8898 = vmatmul.msk.f32.gmra.mxu1 %vm3626_vm1, %v4388_v37 }
 0x1a5   :  { %v9472_v42 = vpop.eup %9471  ;;  %v3283_v34 = vadd.f32 1.0, %v9470_v47  ;;  %v1625_v36 = vrot.slane %v1624_v23, 4  ;;  %v1631_v43 = vsel %vm937_vm2, %v627_v53, -inf  ;;  %v1619_v3 = vmax.f32 %v1617_v46, %v1618_v63 }
 0x1a6   :  { %v3284_v54 = vadd.f32 1.0, %v9472_v42  ;;  %9477 = vrcp.f32 %v3282_v19  ;;  %v9474_v44 = vpop.eup %9473  ;;  %v1613_v62 = vrot.slane %v1612_v57, 2  ;;  %v1632_v10 = vrot.slane %v1631_v43, 4  ;;  %8823 = vmatmul.msk.f32.gmra.mxu0 %vm87_vm0, %v60_v22 }
 0x1a7   :  { %9479 = vrcp.f32 %v3283_v34  ;;  %v3285_v15 = vadd.f32 1.0, %v9474_v44  ;;  %v3080_v12 = vmul.f32 1.442695, %v2905_v61  ;;  %v1626_v29 = vmax.f32 %v1624_v23, %v1625_v36  ;;  %v381_v44 = vpop.f32.mrf.mxu0 }
 0x1a8   :  { %9481 = vrcp.f32 %v3284_v54  ;;  %v1614_v35 = vmax.f32 %v1612_v57, %v1613_v62  ;;  %v1620_v49 = vrot.slane %v1619_v3, 2  ;;  %v1633_v11 = vmax.f32 %v1631_v43, %v1632_v10  ;;  %v61_v62 = vld [vmem:[%s14494_s0 + $0x160] sm:$0xff] }
 0x1a9   :  { %9483 = vpow2.f32 %v3076_v28  ;;  %v9476_v13 = vpop.eup %9475  ;;  %v1627_v2 = vrot.slane %v1626_v29, 2  ;;  %v373_v60 = vadd.f32 %v10802_v50, %v10950_v48 }
 0x1aa   :  { %9485 = vrcp.f32 %v3285_v15  ;;  %v3286_v0 = vadd.f32 1.0, %v9476_v13  ;;  %v1615_v52 = vrot.slane %v1614_v35, 1  ;;  %v1621_v16 = vmax.f32 %v1619_v3, %v1620_v49  ;;  %v4389_v3 = vld [vmem:[#allocation2 + $0x76] sm:$0xff] }
 0x1ab   :  { %9487 = vpow2.f32 %v3078_v1  ;;  %v1628_v39 = vmax.f32 %v1626_v29, %v1627_v2  ;;  %v1634_v58 = vrot.slane %v1633_v11, 2  ;;  %v628_v40 = vrot.slane %v373_v60, 2 }
 0x1ac   :  { %v9478_v9 = vpop.eup %9477  ;;  %9489 = vpow2.f32 %v3080_v12  ;;  %v1622_v7 = vrot.slane %v1621_v16, 1  ;;  %v11011_v20 = vmax.f32 %v1614_v35, %v1615_v52  ;;  %v629_v59 = vrot.slane %v373_v60, 4  ;;  %8899 = vmatmul.msk.f32.gmra.mxu1 %vm3626_vm1, %v4389_v3 }
 0x1ad   :  { %v9480_v24 = vpop.eup %9479  ;;  %v3538_v56 = vmul.f32 %v9478_v9, %v10953_v8  ;;  %9491 = vrcp.f32 %v3286_v0  ;;  %v1629_v45 = vrot.slane %v1628_v39, 1  ;;  %v1635_v55 = vmax.f32 %v1633_v11, %v1634_v58 }
 0x1ae   :  { %v9482_v48 = vpop.eup %9481  ;;  %v3539_v51 = vmul.f32 %v9480_v24, %v10956_v4  ;;  %v11014_v27 = vmax.f32 %v1621_v16, %v1622_v7  ;;  %v1638_v8 = vsel %vm937_vm2, %v373_v60, -inf  ;;  %v630_v46 = vrot.slane %v373_v60, 6  ;;  %8824 = vmatmul.msk.f32.gmra.mxu0 %vm87_vm0, %v61_v62 }
 0x1af   :  { %v9484_v31 = vpop.eup %9483  ;;  %v3540_v53 = vmul.f32 %v9482_v48, %v10959_v5  ;;  %v1636_v41 = vrot.slane %v1635_v55, 1  ;;  %v11019_v47 = vmax.f32 %v1628_v39, %v1629_v45  ;;  %v1639_v19 = vrot.slane %v1638_v8, 4 }
 0x1b0   :  { %v9486_v26 = vpop.eup %9485  ;;  %v3864_v38 = vsel %vm3822_vm3, %v3539_v51, %v3538_v56  ;;  %v3287_v30 = vadd.f32 1.0, %v9484_v31  ;;  %v1645_v61 = vsel %vm937_vm2, %v628_v40, -inf  ;;  %v1652_v54 = vsel %vm937_vm2, %v629_v59, -inf }
 0x1b1   :  { %v9488_v23 = vpop.eup %9487  ;;  %v3541_v4 = vmul.f32 %v9486_v26, %v10964_v25  ;;  %v3865_v28 = vsel %vm3824_vm4, %v3540_v53, %v3864_v38  ;;  %v1646_v42 = vrot.slane %v1645_v61, 4  ;;  %v11023_v57 = vmax.f32 %v1635_v55, %v1636_v41 }
 0x1b2   :  { %v9490_v5 = vpop.eup %9489  ;;  %v3288_v33 = vadd.f32 1.0, %v9488_v23  ;;  %9493 = vrcp.f32 %v3287_v30  ;;  %v1640_v63 = vmax.f32 %v1638_v8, %v1639_v19  ;;  %v1653_v43 = vrot.slane %v1652_v54, 4 }
 0x1b3   :  { %v9492_v34 = vpop.eup %9491  ;;  %v3289_v1 = vadd.f32 1.0, %v9490_v5  ;;  %v1647_v36 = vmax.f32 %v1645_v61, %v1646_v42  ;;  %v1659_v15 = vsel %vm937_vm2, %v630_v46, -inf  ;;  %v376_v12 = vadd.f32 %v10802_v50, %v10981_v17  ;;  %v384_v61 = vpop.f32.mrf.mxu0 }
 0x1b4   :  { %9495 = vrcp.f32 %v3288_v33  ;;  %v3542_v25 = vmul.f32 %v9492_v34, %v10970_v32  ;;  %v1641_v10 = vrot.slane %v1640_v63, 2  ;;  %v3866_v32 = vsel %vm3826_vm5, %v3541_v4, %v3865_v28 }
 0x1b5   :  { %9497 = vrcp.f32 %v3289_v1  ;;  %v1648_v29 = vrot.slane %v1647_v36, 2  ;;  %v1654_v22 = vmax.f32 %v1652_v54, %v1653_v43  ;;  %v1660_v35 = vrot.slane %v1659_v15, 4 }
 0x1b6   :  { %v3867_v49 = vsel %vm3828_vm6, %v3542_v25, %v3866_v32  ;;  %v1642_v11 = vmax.f32 %v1640_v63, %v1641_v10  ;;  %v631_v13 = vrot.slane %v376_v12, 2  ;;  %v632_v2 = vrot.slane %v376_v12, 4 }
 0x1b7   :  { %v1649_v0 = vmax.f32 %v1647_v36, %v1648_v29  ;;  %v1655_v52 = vrot.slane %v1654_v22, 2  ;;  %v1661_v16 = vmax.f32 %v1659_v15, %v1660_v35  ;;  %v1666_v17 = vsel %vm937_vm2, %v376_v12, -inf }
 0x1b8   :  { %v9494_v60 = vpop.eup %9493  ;;  %v1643_v39 = vrot.slane %v1642_v11, 1  ;;  %v1667_v58 = vrot.slane %v1666_v17, 4  ;;  %v1673_v37 = vsel %vm937_vm2, %v631_v13, -inf  ;;  %v633_v31 = vrot.slane %v376_v12, 6  ;;  %v62_v12 = vld [vmem:[%s14494_s0 + $0x168] sm:$0xff] }
 0x1b9   :  { %v3543_v9 = vmul.f32 %v9494_v60, %v10974_v21  ;;  %v1650_v56 = vrot.slane %v1649_v0, 1  ;;  %v1656_v7 = vmax.f32 %v1654_v22, %v1655_v52  ;;  %v1662_v40 = vrot.slane %v1661_v16, 2  ;;  %8825 = vmatmul.msk.f32.gmra.mxu0 %vm87_vm0, %v62_v12 }
 0x1ba   :  { %v9496_v24 = vpop.eup %9495  ;;  %v1674_v48 = vrot.slane %v1673_v37, 4  ;;  %v1668_v53 = vmax.f32 %v1666_v17, %v1667_v58  ;;  %v11043_v8 = vmax.f32 %v1642_v11, %v1643_v39  ;;  %v1680_v46 = vsel %vm937_vm2, %v632_v2, -inf }
 0x1bb   :  { %v9498_v51 = vpop.eup %9497  ;;  %v3544_v45 = vmul.f32 %v9496_v24, %v10977_v18  ;;  %v3868_v55 = vsel %vm3830_vm7, %v3543_v9, %v3867_v49  ;;  %v1657_v21 = vrot.slane %v1656_v7, 1  ;;  %v1663_v26 = vmax.f32 %v1661_v16, %v1662_v40 }
 0x1bc   :  { %v3545_v59 = vmul.f32 %v9498_v51, %v10986_v6  ;;  %v1669_v30 = vrot.slane %v1668_v53, 2  ;;  %v1675_v41 = vmax.f32 %v1673_v37, %v1674_v48  ;;  %v11048_v4 = vmax.f32 %v1649_v0, %v1650_v56 }
 0x1bd   :  { %v3869_v38 = vsel %vm3832_vm8, %v3544_v45, %v3868_v55  ;;  %v1664_v18 = vrot.slane %v1663_v26, 1  ;;  %v1681_v19 = vrot.slane %v1680_v46, 4  ;;  %v11051_v6 = vmax.f32 %v1656_v7, %v1657_v21 }
 0x1be   :  { %v3870_v23 = vsel %vm3834_vm9, %v3545_v59, %v3869_v38  ;;  %v1670_v5 = vmax.f32 %v1668_v53, %v1669_v30  ;;  %v1676_v28 = vrot.slane %v1675_v41, 2  ;;  %v1687_v33 = vsel %vm937_vm2, %v633_v31, -inf }
 0x1bf   :  { %3962 = vst.msk [vmem:[#allocation2 + $0x94] sm:$0xff] %vm3626_vm1, %v3870_v23  ;;  %v11054_v42 = vmax.f32 %v1663_v26, %v1664_v18  ;;  %v1682_v34 = vmax.f32 %v1680_v46, %v1681_v19  ;;  %v1688_v1 = vrot.slane %v1687_v33, 4  ;;  %v379_v63 = vadd.f32 %v10802_v50, %v11006_v14 }
 0x1c0   :  { %v1671_v54 = vrot.slane %v1670_v5, 1  ;;  %v1677_v25 = vmax.f32 %v1675_v41, %v1676_v28  ;;  %v11059_v36 = vadd.f32 %v10802_v50, %v381_v44  ;;  %v11062_v43 = vadd.f32 %v10802_v50, %v384_v61 }
 0x1c1   :  { %v1683_v62 = vrot.slane %v1682_v34, 2  ;;  %v1689_v3 = vmax.f32 %v1687_v33, %v1688_v1  ;;  %v634_v10 = vrot.slane %v379_v63, 2  ;;  %v635_v15 = vrot.slane %v379_v63, 4 }
 0x1c2   :  { %v1672_v32 = vmax.f32 %v1670_v5, %v1671_v54  ;;  %v1678_v29 = vrot.slane %v1677_v25, 1  ;;  %v636_v22 = vrot.slane %v379_v63, 6  ;;  %v1694_v14 = vsel %vm937_vm2, %v379_v63, -inf }
 0x1c3   :  { %v1684_v44 = vmax.f32 %v1682_v34, %v1683_v62  ;;  %v1690_v35 = vrot.slane %v1689_v3, 2  ;;  %v1695_v49 = vrot.slane %v1694_v14, 4  ;;  %v1701_v50 = vsel %vm937_vm2, %v634_v10, -inf  ;;  %v11094_v62 = vpop.f32.mrf.mxu0 }
 0x1c4   :  { %v1679_v11 = vmax.f32 %v1677_v25, %v1678_v29  ;;  %v11071_v13 = vmax.f32 %v11011_v20, %v1672_v32  ;;  %v1702_v2 = vrot.slane %v1701_v50, 4  ;;  %v1708_v60 = vsel %vm937_vm2, %v635_v15, -inf }
 0x1c5   :  { %v1685_v0 = vrot.slane %v1684_v44, 1  ;;  %v1691_v52 = vmax.f32 %v1689_v3, %v1690_v35  ;;  %v1696_v16 = vmax.f32 %v1694_v14, %v1695_v49  ;;  %v1709_v17 = vrot.slane %v1708_v60, 4  ;;  %v63_v3 = vld [vmem:[%s14494_s0 + $0x170] sm:$0xff] }
 0x1c6   :  { %v11075_v9 = vmax.f32 %v11014_v27, %v1679_v11  ;;  %v2906_v39 = vsub.f32 0.0, %v11071_v13  ;;  %v1703_v58 = vmax.f32 %v1701_v50, %v1702_v2  ;;  %v1715_v37 = vsel %vm937_vm2, %v636_v22, -inf  ;;  %8826 = vmatmul.msk.f32.gmra.mxu0 %vm87_vm0, %v63_v3 }
 0x1c7   :  { %v1686_v24 = vmax.f32 %v1684_v44, %v1685_v0  ;;  %v1692_v56 = vrot.slane %v1691_v52, 1  ;;  %v1697_v7 = vrot.slane %v1696_v16, 2  ;;  %v1710_v20 = vmax.f32 %v1708_v60, %v1709_v17 }
 0x1c8   :  { %v2907_v40 = vsub.f32 0.0, %v11075_v9  ;;  %v3082_v48 = vmul.f32 1.442695, %v2906_v39  ;;  %v1704_v51 = vrot.slane %v1703_v58, 2  ;;  %v1716_v45 = vrot.slane %v1715_v37, 4 }
 0x1c9   :  { %v1693_v55 = vmax.f32 %v1691_v52, %v1692_v56  ;;  %v11081_v31 = vmax.f32 %v11019_v47, %v1686_v24  ;;  %v1698_v27 = vmax.f32 %v1696_v16, %v1697_v7  ;;  %v1711_v53 = vrot.slane %v1710_v20, 2 }
 0x1ca   :  { %9499 = vpow2.f32 %v3082_v48  ;;  %v3084_v59 = vmul.f32 1.442695, %v2907_v40  ;;  %v1705_v21 = vmax.f32 %v1703_v58, %v1704_v51  ;;  %v1717_v26 = vmax.f32 %v1715_v37, %v1716_v45  ;;  %v64_v48 = vld [vmem:[%s14494_s0 + $0x178] sm:$0xff] }
 0x1cb   :  { %v11084_v38 = vmax.f32 %v11023_v57, %v1693_v55  ;;  %v2908_v30 = vsub.f32 0.0, %v11081_v31  ;;  %v1699_v41 = vrot.slane %v1698_v27, 1  ;;  %v1712_v46 = vmax.f32 %v1710_v20, %v1711_v53 }
 0x1cc   :  { %9501 = vpow2.f32 %v3084_v59  ;;  %v1706_v23 = vrot.slane %v1705_v21, 1  ;;  %v1718_v18 = vrot.slane %v1717_v26, 2  ;;  %v637_v19 = vrot.slane %v11059_v36, 2 }
 0x1cd   :  { %v2909_v47 = vsub.f32 0.0, %v11084_v38  ;;  %v3086_v61 = vmul.f32 1.442695, %v2908_v30  ;;  %v1700_v5 = vmax.f32 %v1698_v27, %v1699_v41  ;;  %v1713_v28 = vrot.slane %v1712_v46, 1 }
 0x1ce   :  { %v1707_v33 = vmax.f32 %v1705_v21, %v1706_v23  ;;  %v1719_v34 = vmax.f32 %v1717_v26, %v1718_v18  ;;  %v638_v1 = vrot.slane %v11059_v36, 4  ;;  %v639_v57 = vrot.slane %v11059_v36, 6  ;;  %8827 = vmatmul.msk.f32.gmra.mxu0 %vm87_vm0, %v64_v48  ;;  %v11122_v26 = vpop.f32.mrf.mxu0 }
 0x1cf   :  { %9503 = vpow2.f32 %v3086_v61  ;;  %v3088_v63 = vmul.f32 1.442695, %v2909_v47  ;;  %v1714_v54 = vmax.f32 %v1712_v46, %v1713_v28  ;;  %v11092_v25 = vmax.f32 %v11043_v8, %v1700_v5 }
 0x1d0   :  { %v9500_v10 = vpop.eup %9499  ;;  %v1720_v15 = vrot.slane %v1719_v34, 1  ;;  %v11100_v12 = vmax.f32 %v11048_v4, %v1707_v33  ;;  %v1722_v32 = vsel %vm937_vm2, %v11059_v36, -inf  ;;  %v1729_v29 = vsel %vm937_vm2, %v637_v19, -inf }
 0x1d1   :  { %9505 = vpow2.f32 %v3088_v63  ;;  %v3290_v8 = vadd.f32 1.0, %v9500_v10  ;;  %v11107_v22 = vmax.f32 %v11051_v6, %v1714_v54  ;;  %v2910_v14 = vsub.f32 0.0, %v11092_v25 }
 0x1d2   :  { %v9502_v44 = vpop.eup %9501  ;;  %v1721_v35 = vmax.f32 %v1719_v34, %v1720_v15  ;;  %v2911_v49 = vsub.f32 0.0, %v11100_v12  ;;  %v1723_v4 = vrot.slane %v1722_v32, 4  ;;  %v1730_v50 = vrot.slane %v1729_v29, 4 }
 0x1d3   :  { %v3291_v11 = vadd.f32 1.0, %v9502_v44  ;;  %9507 = vrcp.f32 %v3290_v8  ;;  %v2912_v36 = vsub.f32 0.0, %v11107_v22  ;;  %v3090_v2 = vmul.f32 1.442695, %v2910_v14 }
 0x1d4   :  { %v11113_v60 = vmax.f32 %v11054_v42, %v1721_v35  ;;  %v3092_v0 = vmul.f32 1.442695, %v2911_v49  ;;  %v1724_v52 = vmax.f32 %v1722_v32, %v1723_v4  ;;  %v1731_v6 = vmax.f32 %v1729_v29, %v1730_v50 }
 0x1d5   :  { %v9504_v16 = vpop.eup %9503  ;;  %9509 = vrcp.f32 %v3291_v11  ;;  %v3094_v17 = vmul.f32 1.442695, %v2912_v36  ;;  %v1736_v39 = vsel %vm937_vm2, %v638_v1, -inf  ;;  %v1743_v58 = vsel %vm937_vm2, %v639_v57, -inf }
 0x1d6   :  { %v3292_v37 = vadd.f32 1.0, %v9504_v16  ;;  %v2913_v24 = vsub.f32 0.0, %v11113_v60  ;;  %9511 = vpow2.f32 %v3090_v2  ;;  %v1725_v56 = vrot.slane %v1724_v52, 2 }
 0x1d7   :  { %v9506_v7 = vpop.eup %9505  ;;  %9513 = vpow2.f32 %v3092_v0  ;;  %v1732_v20 = vrot.slane %v1731_v6, 2  ;;  %v1737_v42 = vrot.slane %v1736_v39, 4  ;;  %v1744_v40 = vrot.slane %v1743_v58, 4 }
 0x1d8   :  { %v3293_v51 = vadd.f32 1.0, %v9506_v7  ;;  %9515 = vrcp.f32 %v3292_v37  ;;  %v3096_v45 = vmul.f32 1.442695, %v2913_v24  ;;  %v1726_v55 = vmax.f32 %v1724_v52, %v1725_v56 }
 0x1d9   :  { %v9508_v27 = vpop.eup %9507  ;;  %9517 = vpow2.f32 %v3094_v17  ;;  %v1733_v53 = vmax.f32 %v1731_v6, %v1732_v20  ;;  %v1738_v59 = vmax.f32 %v1736_v39, %v1737_v42  ;;  %v1745_v21 = vmax.f32 %v1743_v58, %v1744_v40  ;;  %v393_v58 = vpop.f32.mrf.mxu0 }
 0x1da   :  { %9519 = vrcp.f32 %v3293_v51  ;;  %v1727_v30 = vrot.slane %v1726_v55, 1  ;;  %v640_v41 = vrot.slane %v11062_v43, 2  ;;  %v3546_v23 = vmul.f32 %v9508_v27, %v11071_v13 }
 0x1db   :  { %v9510_v46 = vpop.eup %9509  ;;  %9521 = vpow2.f32 %v3096_v45  ;;  %v1739_v18 = vrot.slane %v1738_v59, 2  ;;  %v1746_v19 = vrot.slane %v1745_v21, 2  ;;  %v1734_v28 = vrot.slane %v1733_v53, 1 }
 0x1dc   :  { %v9512_v47 = vpop.eup %9511  ;;  %v3547_v61 = vmul.f32 %v9510_v46, %v11075_v9  ;;  %v11127_v5 = vmax.f32 %v1726_v55, %v1727_v30  ;;  %v641_v33 = vrot.slane %v11062_v43, 4  ;;  %v642_v54 = vrot.slane %v11062_v43, 6 }
 0x1dd   :  { %v9514_v34 = vpop.eup %9513  ;;  %v3294_v1 = vadd.f32 1.0, %v9512_v47  ;;  %v1740_v57 = vmax.f32 %v1738_v59, %v1739_v18  ;;  %v1747_v63 = vmax.f32 %v1745_v21, %v1746_v19  ;;  %v1750_v15 = vsel %vm937_vm2, %v11062_v43, -inf }
 0x1de   :  { %v9516_v3 = vpop.eup %9515  ;;  %v3871_v13 = vsel %vm3822_vm3, %v3547_v61, %v3546_v23  ;;  %v3295_v10 = vadd.f32 1.0, %v9514_v34  ;;  %v1757_v9 = vsel %vm937_vm2, %v640_v41, -inf  ;;  %v1751_v49 = vrot.slane %v1750_v15, 4 }
 0x1df   :  { %v9518_v32 = vpop.eup %9517  ;;  %v3548_v29 = vmul.f32 %v9516_v3, %v11081_v31  ;;  %9523 = vrcp.f32 %v3294_v1  ;;  %v1741_v8 = vrot.slane %v1740_v57, 1  ;;  %v1748_v14 = vrot.slane %v1747_v63, 1 }
 0x1e0   :  { %v9520_v44 = vpop.eup %9519  ;;  %v3296_v35 = vadd.f32 1.0, %v9518_v32  ;;  %9525 = vrcp.f32 %v3295_v10  ;;  %v1758_v4 = vrot.slane %v1757_v9, 4  ;;  %v11138_v2 = vmax.f32 %v1733_v53, %v1734_v28 }
 0x1e1   :  { %v9522_v50 = vpop.eup %9521  ;;  %v3549_v11 = vmul.f32 %v9520_v44, %v11084_v38  ;;  %v3872_v36 = vsel %vm3824_vm4, %v3548_v29, %v3871_v13  ;;  %v11140_v43 = vmax.f32 %v1740_v57, %v1741_v8  ;;  %v1752_v31 = vmax.f32 %v1750_v15, %v1751_v49  ;;  %v11149_v38 = vld [vmem:[%s14495_s3] ss:$0 sm:$0xff] }
 0x1e2   :  { %v3297_v0 = vadd.f32 1.0, %v9522_v50  ;;  %9527 = vrcp.f32 %v3296_v35  ;;  %v1759_v52 = vmax.f32 %v1757_v9, %v1758_v4  ;;  %v11142_v6 = vmax.f32 %v1747_v63, %v1748_v14  ;;  %v396_v35 = vpop.f32.mrf.mxu0 }
 0x1e3   :  { %v1764_v16 = vsel %vm937_vm2, %v641_v33, -inf  ;;  %v1771_v17 = vsel %vm937_vm2, %v642_v54, -inf  ;;  %v388_v39 = vadd.f32 %v11149_v38, %v11094_v62  ;;  %v1753_v37 = vrot.slane %v1752_v31, 2  ;;  %v65_v62 = vld [vmem:[%s14494_s0 + $0x180] sm:$0xff] }
 0x1e4   :  { %9529 = vrcp.f32 %v3297_v0  ;;  %v1760_v24 = vrot.slane %v1759_v52, 2  ;;  %v1765_v56 = vrot.slane %v1764_v16, 4  ;;  %v3873_v20 = vsel %vm3826_vm5, %v3549_v11, %v3872_v36  ;;  %8828 = vmatmul.msk.f32.gmra.mxu0 %vm87_vm0, %v65_v62 }
 0x1e5   :  { %v9524_v7 = vpop.eup %9523  ;;  %v1772_v42 = vrot.slane %v1771_v17, 4  ;;  %v643_v40 = vrot.slane %v388_v39, 2  ;;  %v644_v48 = vrot.slane %v388_v39, 4  ;;  %v1754_v55 = vmax.f32 %v1752_v31, %v1753_v37 }
 0x1e6   :  { %v9526_v51 = vpop.eup %9525  ;;  %v3550_v45 = vmul.f32 %v9524_v7, %v11092_v25  ;;  %v1761_v27 = vmax.f32 %v1759_v52, %v1760_v24  ;;  %v1766_v53 = vmax.f32 %v1764_v16, %v1765_v56  ;;  %v1778_v30 = vsel %vm937_vm2, %v388_v39, -inf }
 0x1e7   :  { %v3551_v59 = vmul.f32 %v9526_v51, %v11100_v12  ;;  %v1773_v21 = vmax.f32 %v1771_v17, %v1772_v42  ;;  %v1785_v41 = vsel %vm937_vm2, %v643_v40, -inf  ;;  %v1755_v25 = vrot.slane %v1754_v55, 1 }
 0x1e8   :  { %v9528_v46 = vpop.eup %9527  ;;  %v3874_v23 = vsel %vm3828_vm6, %v3550_v45, %v3873_v20  ;;  %v1767_v18 = vrot.slane %v1766_v53, 2  ;;  %v645_v19 = vrot.slane %v388_v39, 6  ;;  %v1779_v33 = vrot.slane %v1778_v30, 4  ;;  %v66_v20 = vld [vmem:[%s14494_s0 + $0x188] sm:$0xff] }
 0x1e9   :  { %v3552_v47 = vmul.f32 %v9528_v46, %v11107_v22  ;;  %v3875_v61 = vsel %vm3830_vm7, %v3551_v59, %v3874_v23  ;;  %v1774_v28 = vrot.slane %v1773_v21, 2  ;;  %v11165_v34 = vmax.f32 %v1754_v55, %v1755_v25 }
 0x1ea   :  { %v9530_v12 = vpop.eup %9529  ;;  %v1762_v1 = vrot.slane %v1761_v27, 1  ;;  %v1768_v57 = vmax.f32 %v1766_v53, %v1767_v18  ;;  %v1786_v63 = vrot.slane %v1785_v41, 4  ;;  %v1780_v10 = vmax.f32 %v1778_v30, %v1779_v33 }
 0x1eb   :  { %v3553_v54 = vmul.f32 %v9530_v12, %v11113_v60  ;;  %v3876_v3 = vsel %vm3832_vm8, %v3552_v47, %v3875_v61  ;;  %v1775_v13 = vmax.f32 %v1773_v21, %v1774_v28  ;;  %v1792_v22 = vsel %vm937_vm2, %v644_v48, -inf }
 0x1ec   :  { %v1769_v15 = vrot.slane %v1768_v57, 1  ;;  %v1787_v9 = vmax.f32 %v1785_v41, %v1786_v63  ;;  %v1799_v32 = vsel %vm937_vm2, %v645_v19, -inf  ;;  %v1781_v14 = vrot.slane %v1780_v10, 2  ;;  %8829 = vmatmul.msk.f32.gmra.mxu0 %vm87_vm0, %v66_v20 }
 0x1ed   :  { %v3877_v29 = vsel %vm3834_vm9, %v3553_v54, %v3876_v3  ;;  %v1776_v8 = vrot.slane %v1775_v13, 1  ;;  %v1793_v44 = vrot.slane %v1792_v22, 4  ;;  %v11173_v49 = vmax.f32 %v1761_v27, %v1762_v1 }
 0x1ee   :  { %3963 = vst.msk [vmem:[#allocation2 + $0xa4] sm:$0xff] %vm3626_vm1, %v3877_v29  ;;  %v11175_v60 = vmax.f32 %v1768_v57, %v1769_v15  ;;  %v1788_v4 = vrot.slane %v1787_v9, 2  ;;  %v1800_v50 = vrot.slane %v1799_v32, 4  ;;  %v1782_v36 = vmax.f32 %v1780_v10, %v1781_v14 }
 0x1ef   :  { %v11177_v11 = vmax.f32 %v1775_v13, %v1776_v8  ;;  %v1794_v0 = vmax.f32 %v1792_v22, %v1793_v44  ;;  %v391_v31 = vadd.f32 %v11149_v38, %v11122_v26  ;;  %v11182_v17 = vadd.f32 %v11149_v38, %v393_v58  ;;  %v67_v8 = vld [vmem:[%s14494_s0 + $0x190] sm:$0xff] }
 0x1f0   :  { %v1789_v52 = vmax.f32 %v1787_v9, %v1788_v4  ;;  %v1801_v16 = vmax.f32 %v1799_v32, %v1800_v50  ;;  %v11185_v39 = vadd.f32 %v11149_v38, %v396_v35  ;;  %v1783_v37 = vrot.slane %v1782_v36, 1 }
 0x1f1   :  { %v1795_v24 = vrot.slane %v1794_v0, 2  ;;  %v646_v56 = vrot.slane %v391_v31, 2  ;;  %v647_v7 = vrot.slane %v391_v31, 4  ;;  %v648_v48 = vrot.slane %v391_v31, 6 }
 0x1f2   :  { %v1790_v42 = vrot.slane %v1789_v52, 1  ;;  %v1802_v40 = vrot.slane %v1801_v16, 2  ;;  %v1806_v26 = vsel %vm937_vm2, %v391_v31, -inf  ;;  %v1784_v58 = vmax.f32 %v1782_v36, %v1783_v37 }
 0x1f3   :  { %v1796_v51 = vmax.f32 %v1794_v0, %v1795_v24  ;;  %v1807_v45 = vrot.slane %v1806_v26, 4  ;;  %v1813_v55 = vsel %vm937_vm2, %v646_v56, -inf  ;;  %v1820_v59 = vsel %vm937_vm2, %v647_v7, -inf }
 0x1f4   :  { %v1791_v27 = vmax.f32 %v1789_v52, %v1790_v42  ;;  %v1803_v53 = vmax.f32 %v1801_v16, %v1802_v40  ;;  %v1814_v62 = vrot.slane %v1813_v55, 4  ;;  %v11195_v30 = vmax.f32 %v11127_v5, %v1784_v58  ;;  %8830 = vmatmul.msk.f32.gmra.mxu0 %vm87_vm0, %v67_v8 }
 0x1f5   :  { %v1797_v21 = vrot.slane %v1796_v51, 1  ;;  %v1808_v41 = vmax.f32 %v1806_v26, %v1807_v45  ;;  %v1821_v46 = vrot.slane %v1820_v59, 4  ;;  %v1827_v19 = vsel %vm937_vm2, %v648_v48, -inf }
 0x1f6   :  { %v1804_v23 = vrot.slane %v1803_v53, 1  ;;  %v11198_v25 = vmax.f32 %v11138_v2, %v1791_v27  ;;  %v1815_v18 = vmax.f32 %v1813_v55, %v1814_v62  ;;  %v2914_v61 = vsub.f32 0.0, %v11195_v30 }
 0x1f7   :  { %v1798_v47 = vmax.f32 %v1796_v51, %v1797_v21  ;;  %v1809_v28 = vrot.slane %v1808_v41, 2  ;;  %v1822_v33 = vmax.f32 %v1820_v59, %v1821_v46  ;;  %v1828_v5 = vrot.slane %v1827_v19, 4 }
 0x1f8   :  { %v1805_v12 = vmax.f32 %v1803_v53, %v1804_v23  ;;  %v2915_v1 = vsub.f32 0.0, %v11198_v25  ;;  %v1816_v57 = vrot.slane %v1815_v18, 2  ;;  %v3098_v54 = vmul.f32 1.442695, %v2914_v61 }
 0x1f9   :  { %v11204_v63 = vmax.f32 %v11140_v43, %v1798_v47  ;;  %v1810_v3 = vmax.f32 %v1808_v41, %v1809_v28  ;;  %v1823_v2 = vrot.slane %v1822_v33, 2  ;;  %v1829_v9 = vmax.f32 %v1827_v19, %v1828_v5  ;;  %v68_v19 = vld [vmem:[%s14494_s0 + $0x198] sm:$0xff] }
 0x1fa   :  { %v11207_v13 = vmax.f32 %v11142_v6, %v1805_v12  ;;  %v3100_v10 = vmul.f32 1.442695, %v2915_v1  ;;  %v1817_v15 = vmax.f32 %v1815_v18, %v1816_v57  ;;  %9531 = vpow2.f32 %v3098_v54  ;;  %v11242_v57 = vpop.f32.mrf.mxu0 }
 0x1fb   :  { %v2916_v22 = vsub.f32 0.0, %v11204_v63  ;;  %v1811_v32 = vrot.slane %v1810_v3, 1  ;;  %v1824_v29 = vmax.f32 %v1822_v33, %v1823_v2  ;;  %v1830_v44 = vrot.slane %v1829_v9, 2 }
 0x1fc   :  { %v2917_v43 = vsub.f32 0.0, %v11207_v13  ;;  %9533 = vpow2.f32 %v3100_v10  ;;  %v1818_v14 = vrot.slane %v1817_v15, 1  ;;  %v649_v50 = vrot.slane %v11182_v17, 2  ;;  %8831 = vmatmul.msk.f32.gmra.mxu0 %vm87_vm0, %v68_v19 }
 0x1fd   :  { %v3102_v6 = vmul.f32 1.442695, %v2916_v22  ;;  %v1812_v35 = vmax.f32 %v1810_v3, %v1811_v32  ;;  %v1825_v4 = vrot.slane %v1824_v29, 1  ;;  %v1831_v31 = vmax.f32 %v1829_v9, %v1830_v44 }
 0x1fe   :  { %v3104_v36 = vmul.f32 1.442695, %v2917_v43  ;;  %v1819_v0 = vmax.f32 %v1817_v15, %v1818_v14  ;;  %v650_v52 = vrot.slane %v11182_v17, 4  ;;  %v651_v24 = vrot.slane %v11182_v17, 6 }
 0x1ff   :  { %9535 = vpow2.f32 %v3102_v6  ;;  %v1826_v16 = vmax.f32 %v1824_v29, %v1825_v4  ;;  %v11218_v37 = vmax.f32 %v11165_v34, %v1812_v35  ;;  %v1832_v56 = vrot.slane %v1831_v31, 1 }
 0x200   :  { %9537 = vpow2.f32 %v3104_v36  ;;  %v11222_v7 = vmax.f32 %v11173_v49, %v1819_v0  ;;  %v1834_v20 = vsel %vm937_vm2, %v11182_v17, -inf  ;;  %v9532_v42 = vpop.eup %9531  ;;  %v1841_v34 = vsel %vm937_vm2, %v649_v50, -inf }
 0x201   :  { %v11227_v40 = vmax.f32 %v11175_v60, %v1826_v16  ;;  %v2918_v48 = vsub.f32 0.0, %v11218_v37  ;;  %v1835_v26 = vrot.slane %v1834_v20, 4  ;;  %v3298_v51 = vadd.f32 1.0, %v9532_v42 }
 0x202   :  { %v9534_v58 = vpop.eup %9533  ;;  %v1833_v45 = vmax.f32 %v1831_v31, %v1832_v56  ;;  %v2919_v55 = vsub.f32 0.0, %v11222_v7  ;;  %v1842_v27 = vrot.slane %v1841_v34, 4  ;;  %v1848_v18 = vsel %vm937_vm2, %v650_v52, -inf }
 0x203   :  { %v3299_v49 = vadd.f32 1.0, %v9534_v58  ;;  %v2920_v53 = vsub.f32 0.0, %v11227_v40  ;;  %v3106_v62 = vmul.f32 1.442695, %v2918_v48  ;;  %v1836_v17 = vmax.f32 %v1834_v20, %v1835_v26 }
 0x204   :  { %9539 = vrcp.f32 %v3298_v51  ;;  %v11234_v60 = vmax.f32 %v11177_v11, %v1833_v45  ;;  %v3108_v59 = vmul.f32 1.442695, %v2919_v55  ;;  %v1843_v21 = vmax.f32 %v1841_v34, %v1842_v27 }
 0x205   :  { %v9536_v41 = vpop.eup %9535  ;;  %9541 = vrcp.f32 %v3299_v49  ;;  %v3110_v46 = vmul.f32 1.442695, %v2920_v53  ;;  %v1837_v23 = vrot.slane %v1836_v17, 2  ;;  %v1849_v1 = vrot.slane %v1848_v18, 4 }
 0x206   :  { %v9538_v47 = vpop.eup %9537  ;;  %v3300_v61 = vadd.f32 1.0, %v9536_v41  ;;  %v2921_v28 = vsub.f32 0.0, %v11234_v60  ;;  %9543 = vpow2.f32 %v3106_v62  ;;  %v1844_v33 = vrot.slane %v1843_v21, 2 }
 0x207   :  { %v3301_v11 = vadd.f32 1.0, %v9538_v47  ;;  %9545 = vpow2.f32 %v3108_v59  ;;  %v1838_v12 = vmax.f32 %v1836_v17, %v1837_v23  ;;  %v1855_v3 = vsel %vm937_vm2, %v651_v24, -inf  ;;  %v402_v17 = vpop.f32.mrf.mxu0 }
 0x208   :  { %9547 = vrcp.f32 %v3300_v61  ;;  %v3112_v5 = vmul.f32 1.442695, %v2921_v28  ;;  %v1845_v54 = vmax.f32 %v1843_v21, %v1844_v33  ;;  %v1850_v10 = vmax.f32 %v1848_v18, %v1849_v1 }
 0x209   :  { %9549 = vrcp.f32 %v3301_v11  ;;  %v1839_v2 = vrot.slane %v1838_v12, 1  ;;  %v1856_v15 = vrot.slane %v1855_v3, 4  ;;  %v652_v32 = vrot.slane %v11185_v39, 2 }
 0x20a   :  { %v9540_v9 = vpop.eup %9539  ;;  %9551 = vpow2.f32 %v3110_v46  ;;  %v1846_v22 = vrot.slane %v1845_v54, 1  ;;  %v1851_v43 = vrot.slane %v1850_v10, 2  ;;  %v653_v14 = vrot.slane %v11185_v39, 4 }
 0x20b   :  { %v9542_v29 = vpop.eup %9541  ;;  %v3554_v8 = vmul.f32 %v9540_v9, %v11195_v30  ;;  %9553 = vpow2.f32 %v3112_v5  ;;  %v11249_v35 = vmax.f32 %v1838_v12, %v1839_v2  ;;  %v1857_v4 = vmax.f32 %v1855_v3, %v1856_v15 }
 0x20c   :  { %v9544_v44 = vpop.eup %9543  ;;  %v3555_v6 = vmul.f32 %v9542_v29, %v11198_v25  ;;  %v654_v50 = vrot.slane %v11185_v39, 6  ;;  %v1852_v31 = vmax.f32 %v1850_v10, %v1851_v43  ;;  %v1862_v52 = vsel %vm937_vm2, %v11185_v39, -inf }
 0x20d   :  { %v9546_v36 = vpop.eup %9545  ;;  %v3302_v0 = vadd.f32 1.0, %v9544_v44  ;;  %v1869_v30 = vsel %vm937_vm2, %v652_v32, -inf  ;;  %v1858_v20 = vrot.slane %v1857_v4, 2  ;;  %v1863_v42 = vrot.slane %v1862_v52, 4 }
 0x20e   :  { %v9548_v16 = vpop.eup %9547  ;;  %v3878_v24 = vsel %vm3822_vm3, %v3555_v6, %v3554_v8  ;;  %v3303_v56 = vadd.f32 1.0, %v9546_v36  ;;  %v1853_v26 = vrot.slane %v1852_v31, 1  ;;  %v1870_v34 = vrot.slane %v1869_v30, 4 }
 0x20f   :  { %v9550_v25 = vpop.eup %9549  ;;  %v3556_v48 = vmul.f32 %v9548_v16, %v11204_v63  ;;  %9555 = vrcp.f32 %v3302_v0  ;;  %v11257_v51 = vmax.f32 %v1845_v54, %v1846_v22  ;;  %v1859_v45 = vmax.f32 %v1857_v4, %v1858_v20 }
 0x210   :  { %v9552_v58 = vpop.eup %9551  ;;  %9557 = vrcp.f32 %v3303_v56  ;;  %v1864_v39 = vmax.f32 %v1862_v52, %v1863_v42  ;;  %v3557_v27 = vmul.f32 %v9550_v25, %v11207_v13  ;;  %v1871_v62 = vmax.f32 %v1869_v30, %v1870_v34  ;;  %v69_v13 = vld [vmem:[%s14494_s0 + $0x1a0] sm:$0xff]  ;;  %v11289_v56 = vpop.f32.mrf.mxu0 }
 0x211   :  { %v9554_v55 = vpop.eup %9553  ;;  %v3879_v49 = vsel %vm3824_vm4, %v3556_v48, %v3878_v24  ;;  %v3304_v53 = vadd.f32 1.0, %v9552_v58  ;;  %v11261_v21 = vmax.f32 %v1852_v31, %v1853_v26  ;;  %v1860_v63 = vrot.slane %v1859_v45, 1  ;;  %8832 = vmatmul.msk.f32.gmra.mxu0 %vm87_vm0, %v69_v13 }
 0x212   :  { %v3305_v59 = vadd.f32 1.0, %v9554_v55  ;;  %v1865_v41 = vrot.slane %v1864_v39, 2  ;;  %v1872_v46 = vrot.slane %v1871_v62, 2  ;;  %v1876_v23 = vsel %vm937_vm2, %v653_v14, -inf }
 0x213   :  { %9559 = vrcp.f32 %v3304_v53  ;;  %v1883_v18 = vsel %vm937_vm2, %v654_v50, -inf  ;;  %v3880_v19 = vsel %vm3826_vm5, %v3557_v27, %v3879_v49  ;;  %v1877_v61 = vrot.slane %v1876_v23, 4 }
 0x214   :  { %9561 = vrcp.f32 %v3305_v59  ;;  %v1866_v47 = vmax.f32 %v1864_v39, %v1865_v41  ;;  %v11270_v33 = vmax.f32 %v1859_v45, %v1860_v63  ;;  %v1873_v11 = vmax.f32 %v1871_v62, %v1872_v46 }
 0x215   :  { %v9556_v28 = vpop.eup %9555  ;;  %v1884_v12 = vrot.slane %v1883_v18, 4  ;;  %v400_v1 = vadd.f32 %v11149_v38, %v11242_v57  ;;  %v1878_v2 = vmax.f32 %v1876_v23, %v1877_v61  ;;  %v11276_v10 = vadd.f32 %v11149_v38, %v402_v17 }
 0x216   :  { %v9558_v5 = vpop.eup %9557  ;;  %v3558_v54 = vmul.f32 %v9556_v28, %v11218_v37  ;;  %v1867_v3 = vrot.slane %v1866_v47, 1  ;;  %v1874_v9 = vrot.slane %v1873_v11, 1 }
 0x217   :  { %v3559_v15 = vmul.f32 %v9558_v5, %v11222_v7  ;;  %v1885_v22 = vmax.f32 %v1883_v18, %v1884_v12  ;;  %v655_v32 = vrot.slane %v400_v1, 2  ;;  %v1879_v43 = vrot.slane %v1878_v2, 2 }
 0x218   :  { %v3881_v29 = vsel %vm3828_vm6, %v3558_v54, %v3880_v19  ;;  %v11280_v8 = vmax.f32 %v1866_v47, %v1867_v3  ;;  %v656_v14 = vrot.slane %v400_v1, 4  ;;  %v11283_v37 = vmax.f32 %v1873_v11, %v1874_v9  ;;  %v70_v11 = vld [vmem:[%s14494_s0 + $0x1a8] sm:$0xff]  ;;  %v3981_v9 = vld [vmem:[#allocation2 + $0x100] sm:$0xff] }
 0x219   :  { %v9560_v57 = vpop.eup %9559  ;;  %v3882_v44 = vsel %vm3830_vm7, %v3559_v15, %v3881_v29  ;;  %v1886_v6 = vrot.slane %v1885_v22, 2  ;;  %v657_v4 = vrot.slane %v400_v1, 6  ;;  %v1880_v7 = vmax.f32 %v1878_v2, %v1879_v43  ;;  %8833 = vmatmul.msk.f32.gmra.mxu0 %vm87_vm0, %v70_v11  ;;  %8868 = vmatmul.msk.f32.gmra.mxu2 %vm3626_vm1, %v3981_v9  ;;  %v3982_v11 = vld [vmem:[#allocation2 + $0x110] sm:$0xff] }
 0x21a   :  { %v9562_v50 = vpop.eup %9561  ;;  %v3560_v36 = vmul.f32 %v9560_v57, %v11227_v40  ;;  %v1890_v0 = vsel %vm937_vm2, %v400_v1, -inf  ;;  %v1897_v31 = vsel %vm937_vm2, %v655_v32, -inf  ;;  %v1904_v25 = vsel %vm937_vm2, %v656_v14, -inf  ;;  %v11312_v57 = vpop.f32.mrf.mxu0 }
 0x21b   :  { %v3561_v52 = vmul.f32 %v9562_v50, %v11234_v60  ;;  %v1887_v30 = vmax.f32 %v1885_v22, %v1886_v6  ;;  %v1891_v16 = vrot.slane %v1890_v0, 4  ;;  %v1898_v24 = vrot.slane %v1897_v31, 4  ;;  %v4390_v22 = vld [vmem:[#allocation2 + $0x106] sm:$0xff] }
 0x21c   :  { %v3883_v20 = vsel %vm3832_vm8, %v3560_v36, %v3882_v44  ;;  %v1881_v42 = vrot.slane %v1880_v7, 1  ;;  %v1911_v48 = vsel %vm937_vm2, %v657_v4, -inf  ;;  %v1905_v45 = vrot.slane %v1904_v25, 4  ;;  %8900 = vmatmul.msk.f32.gmra.mxu1 %vm3626_vm1, %v4390_v22 }
 0x21d   :  { %v3884_v40 = vsel %vm3834_vm9, %v3561_v52, %v3883_v20  ;;  %v1888_v26 = vrot.slane %v1887_v30, 1  ;;  %v1892_v34 = vmax.f32 %v1890_v0, %v1891_v16  ;;  %v1899_v58 = vmax.f32 %v1897_v31, %v1898_v24 }
 0x21e   :  { %3964 = vst.msk [vmem:[#allocation2 + $0xb4] sm:$0xff] %vm3626_vm1, %v3884_v40  ;;  %v11296_v60 = vmax.f32 %v1880_v7, %v1881_v42  ;;  %v1912_v39 = vrot.slane %v1911_v48, 4  ;;  %v658_v55 = vrot.slane %v11276_v10, 2  ;;  %v659_v62 = vrot.slane %v11276_v10, 4 }
 0x21f   :  { %v11299_v27 = vmax.f32 %v1887_v30, %v1888_v26  ;;  %v1893_v49 = vrot.slane %v1892_v34, 2  ;;  %v1900_v53 = vrot.slane %v1899_v58, 2  ;;  %v1906_v17 = vmax.f32 %v1904_v25, %v1905_v45 }
 0x220   :  { %v1913_v59 = vmax.f32 %v1911_v48, %v1912_v39  ;;  %v660_v63 = vrot.slane %v11276_v10, 6  ;;  %v1918_v41 = vsel %vm937_vm2, %v11276_v10, -inf  ;;  %v1925_v13 = vsel %vm937_vm2, %v658_v55, -inf }
 0x221   :  { %v1894_v46 = vmax.f32 %v1892_v34, %v1893_v49  ;;  %v1901_v23 = vmax.f32 %v1899_v58, %v1900_v53  ;;  %v1919_v18 = vrot.slane %v1918_v41, 4  ;;  %v1907_v19 = vrot.slane %v1906_v17, 2  ;;  %8869 = vmatmul.msk.f32.gmra.mxu2 %vm3626_vm1, %v3982_v11 }
 0x222   :  { %v1914_v47 = vrot.slane %v1913_v59, 2  ;;  %v1926_v61 = vrot.slane %v1925_v13, 4  ;;  %v1932_v28 = vsel %vm937_vm2, %v659_v62, -inf  ;;  %v1939_v15 = vsel %vm937_vm2, %v660_v63, -inf }
 0x223   :  { %v1895_v12 = vrot.slane %v1894_v46, 1  ;;  %v1902_v1 = vrot.slane %v1901_v23, 1  ;;  %v1920_v5 = vmax.f32 %v1918_v41, %v1919_v18  ;;  %v1933_v54 = vrot.slane %v1932_v28, 4 }
 0x224   :  { %v1908_v3 = vmax.f32 %v1906_v17, %v1907_v19  ;;  %v1915_v2 = vmax.f32 %v1913_v59, %v1914_v47  ;;  %v1927_v10 = vmax.f32 %v1925_v13, %v1926_v61  ;;  %v1940_v50 = vrot.slane %v1939_v15, 4  ;;  %v11344_v19 = vpop.f32.mrf.mxu0 }
 0x225   :  { %v1896_v32 = vmax.f32 %v1894_v46, %v1895_v12  ;;  %v1903_v29 = vmax.f32 %v1901_v23, %v1902_v1  ;;  %v1921_v43 = vrot.slane %v1920_v5, 2  ;;  %v1934_v14 = vmax.f32 %v1932_v28, %v1933_v54  ;;  %v4391_v12 = vld [vmem:[#allocation2 + $0x116] sm:$0xff] }
 0x226   :  { %v1909_v44 = vrot.slane %v1908_v3, 1  ;;  %v1916_v6 = vrot.slane %v1915_v2, 1  ;;  %v1928_v4 = vrot.slane %v1927_v10, 2  ;;  %v1941_v24 = vmax.f32 %v1939_v15, %v1940_v50  ;;  %8901 = vmatmul.msk.f32.gmra.mxu1 %vm3626_vm1, %v4391_v12 }
 0x227   :  { %v11317_v36 = vmax.f32 %v11249_v35, %v1896_v32  ;;  %v11320_v7 = vmax.f32 %v11257_v51, %v1903_v29  ;;  %v1922_v0 = vmax.f32 %v1920_v5, %v1921_v43  ;;  %v1935_v31 = vrot.slane %v1934_v14, 2 }
 0x228   :  { %v1910_v52 = vmax.f32 %v1908_v3, %v1909_v44  ;;  %v1917_v30 = vmax.f32 %v1915_v2, %v1916_v6  ;;  %v1929_v16 = vmax.f32 %v1927_v10, %v1928_v4  ;;  %v1942_v26 = vrot.slane %v1941_v24, 2 }
 0x229   :  { %v2922_v20 = vsub.f32 0.0, %v11317_v36  ;;  %v2923_v42 = vsub.f32 0.0, %v11320_v7  ;;  %v1923_v25 = vrot.slane %v1922_v0, 1  ;;  %v1936_v48 = vmax.f32 %v1934_v14, %v1935_v31 }
 0x22a   :  { %v11325_v40 = vmax.f32 %v11261_v21, %v1910_v52  ;;  %v11328_v35 = vmax.f32 %v11270_v33, %v1917_v30  ;;  %v1930_v51 = vrot.slane %v1929_v16, 1  ;;  %v1943_v62 = vmax.f32 %v1941_v24, %v1942_v26 }
 0x22b   :  { %v3114_v34 = vmul.f32 1.442695, %v2922_v20  ;;  %v3116_v58 = vmul.f32 1.442695, %v2923_v42  ;;  %v1924_v45 = vmax.f32 %v1922_v0, %v1923_v25  ;;  %v1937_v39 = vrot.slane %v1936_v48, 1  ;;  %v72_v20 = vld [vmem:[%s14494_s0 + $0x1b8] sm:$0xff] }
 0x22c   :  { %v2924_v55 = vsub.f32 0.0, %v11325_v40  ;;  %v2925_v49 = vsub.f32 0.0, %v11328_v35  ;;  %v1931_v53 = vmax.f32 %v1929_v16, %v1930_v51  ;;  %v406_v33 = vadd.f32 %v11149_v38, %v11289_v56 }
 0x22d   :  { %9563 = vpow2.f32 %v3114_v34  ;;  %v1938_v17 = vmax.f32 %v1936_v48, %v1937_v39  ;;  %v11333_v21 = vmax.f32 %v11280_v8, %v1924_v45  ;;  %v1944_v41 = vrot.slane %v1943_v62, 1  ;;  %v71_v8 = vld [vmem:[%s14494_s0 + $0x1b0] sm:$0xff]  ;;  %v11368_v45 = vpop.f32.mrf.mxu0  ;;  %v3983_v39 = vld [vmem:[#allocation2 + $0x120] sm:$0xff] }
 0x22e   :  { %9565 = vpow2.f32 %v3116_v58  ;;  %v3118_v59 = vmul.f32 1.442695, %v2924_v55  ;;  %v3120_v63 = vmul.f32 1.442695, %v2925_v49  ;;  %v11338_v46 = vmax.f32 %v11283_v37, %v1931_v53  ;;  %8834 = vmatmul.msk.f32.gmra.mxu0 %vm87_vm0, %v71_v8  ;;  %v4392_v55 = vld [vmem:[#allocation2 + $0x126] sm:$0xff]  ;;  %8870 = vmatmul.msk.f32.gmra.mxu2 %vm3626_vm1, %v3983_v39 }
 0x22f   :  { %v11341_v23 = vmax.f32 %v11296_v60, %v1938_v17  ;;  %v2926_v18 = vsub.f32 0.0, %v11333_v21  ;;  %v661_v13 = vrot.slane %v406_v33, 2  ;;  %v1945_v56 = vmax.f32 %v1943_v62, %v1944_v41  ;;  %8902 = vmatmul.msk.f32.gmra.mxu1 %vm3626_vm1, %v4392_v55 }
 0x230   :  { %9567 = vpow2.f32 %v3118_v59  ;;  %v662_v47 = vrot.slane %v406_v33, 4  ;;  %v663_v61 = vrot.slane %v406_v33, 6  ;;  %v2927_v37 = vsub.f32 0.0, %v11338_v46 }
 0x231   :  { %9569 = vpow2.f32 %v3120_v63  ;;  %v2928_v60 = vsub.f32 0.0, %v11341_v23  ;;  %v3122_v28 = vmul.f32 1.442695, %v2926_v18  ;;  %v11353_v1 = vmax.f32 %v11299_v27, %v1945_v56 }
 0x232   :  { %v1946_v5 = vsel %vm937_vm2, %v406_v33, -inf  ;;  %v1953_v54 = vsel %vm937_vm2, %v661_v13, -inf  ;;  %v1960_v3 = vsel %vm937_vm2, %v662_v47, -inf  ;;  %v3124_v10 = vmul.f32 1.442695, %v2927_v37 }
 0x233   :  { %v9564_v2 = vpop.eup %9563  ;;  %9571 = vpow2.f32 %v3122_v28  ;;  %v3126_v15 = vmul.f32 1.442695, %v2928_v60  ;;  %v1947_v9 = vrot.slane %v1946_v5, 4  ;;  %v2929_v27 = vsub.f32 0.0, %v11353_v1 }
 0x234   :  { %v9566_v22 = vpop.eup %9565  ;;  %v3306_v32 = vadd.f32 1.0, %v9564_v2  ;;  %v1954_v29 = vrot.slane %v1953_v54, 4  ;;  %v1961_v43 = vrot.slane %v1960_v3, 4  ;;  %9573 = vpow2.f32 %v3124_v10 }
 0x235   :  { %v3307_v14 = vadd.f32 1.0, %v9566_v22  ;;  %v1948_v44 = vmax.f32 %v1946_v5, %v1947_v9  ;;  %v1967_v6 = vsel %vm937_vm2, %v663_v61, -inf  ;;  %v3128_v50 = vmul.f32 1.442695, %v2929_v27 }
 0x236   :  { %v9568_v4 = vpop.eup %9567  ;;  %9575 = vrcp.f32 %v3306_v32  ;;  %v1955_v0 = vmax.f32 %v1953_v54, %v1954_v29  ;;  %v1962_v31 = vmax.f32 %v1960_v3, %v1961_v43  ;;  %v1968_v24 = vrot.slane %v1967_v6, 4  ;;  %8835 = vmatmul.msk.f32.gmra.mxu0 %vm87_vm0, %v72_v20 }
 0x237   :  { %v9570_v52 = vpop.eup %9569  ;;  %v3308_v30 = vadd.f32 1.0, %v9568_v4  ;;  %9577 = vrcp.f32 %v3307_v14  ;;  %v1949_v16 = vrot.slane %v1948_v44, 2  ;;  %v409_v58 = vadd.f32 %v11149_v38, %v11312_v57 }
 0x238   :  { %v3309_v42 = vadd.f32 1.0, %v9570_v52  ;;  %9579 = vpow2.f32 %v3126_v15  ;;  %v1956_v25 = vrot.slane %v1955_v0, 2  ;;  %v1963_v48 = vrot.slane %v1962_v31, 2  ;;  %v417_v52 = vpop.f32.mrf.mxu0 }
 0x239   :  { %v9572_v51 = vpop.eup %9571  ;;  %9581 = vrcp.f32 %v3308_v30  ;;  %v1950_v26 = vmax.f32 %v1948_v44, %v1949_v16  ;;  %v1969_v34 = vmax.f32 %v1967_v6, %v1968_v24  ;;  %v664_v63 = vrot.slane %v409_v58, 2 }
 0x23a   :  { %9583 = vrcp.f32 %v3309_v42  ;;  %v3310_v49 = vadd.f32 1.0, %v9572_v51  ;;  %v1957_v53 = vmax.f32 %v1955_v0, %v1956_v25  ;;  %v1964_v62 = vmax.f32 %v1962_v31, %v1963_v48  ;;  %v9574_v17 = vpop.eup %9573 }
 0x23b   :  { %9585 = vpow2.f32 %v3128_v50  ;;  %v1951_v33 = vrot.slane %v1950_v26, 1  ;;  %v1970_v59 = vrot.slane %v1969_v34, 2  ;;  %v3311_v18 = vadd.f32 1.0, %v9574_v17 }
 0x23c   :  { %v9576_v41 = vpop.eup %9575  ;;  %9587 = vrcp.f32 %v3310_v49  ;;  %v1958_v57 = vrot.slane %v1957_v53, 1  ;;  %v1965_v13 = vrot.slane %v1964_v62, 1  ;;  %v665_v11 = vrot.slane %v409_v58, 4 }
 0x23d   :  { %v9578_v8 = vpop.eup %9577  ;;  %v3562_v56 = vmul.f32 %v9576_v41, %v11317_v36  ;;  %v11373_v47 = vmax.f32 %v1950_v26, %v1951_v33  ;;  %v11375_v61 = vmax.f32 %v1969_v34, %v1970_v59  ;;  %9589 = vrcp.f32 %v3311_v18  ;;  %v3984_v33 = vld [vmem:[#allocation2 + $0x130] sm:$0xff] }
 0x23e   :  { %v9580_v37 = vpop.eup %9579  ;;  %v3563_v60 = vmul.f32 %v9578_v8, %v11320_v7  ;;  %v11378_v28 = vmax.f32 %v1957_v53, %v1958_v57  ;;  %v11380_v54 = vmax.f32 %v1964_v62, %v1965_v13  ;;  %v666_v3 = vrot.slane %v409_v58, 6  ;;  %v4393_v59 = vld [vmem:[#allocation2 + $0x136] sm:$0xff]  ;;  %8871 = vmatmul.msk.f32.gmra.mxu2 %vm3626_vm1, %v3984_v33 }
 0x23f   :  { %v9582_v12 = vpop.eup %9581  ;;  %v3312_v5 = vadd.f32 1.0, %v9580_v37  ;;  %v1974_v2 = vsel %vm937_vm2, %v409_v58, -inf  ;;  %v1981_v22 = vsel %vm937_vm2, %v664_v63, -inf  ;;  %v1972_v27 = vrot.slane %v11375_v61, 1  ;;  %v73_v58 = vld [vmem:[%s14494_s0 + $0x1c0] sm:$0xff]  ;;  %8903 = vmatmul.msk.f32.gmra.mxu1 %vm3626_vm1, %v4393_v59 }
 0x240   :  { %v9584_v10 = vpop.eup %9583  ;;  %v3564_v36 = vmul.f32 %v9582_v12, %v11325_v40  ;;  %v3885_v15 = vsel %vm3822_vm3, %v3563_v60, %v3562_v56  ;;  %v1975_v9 = vrot.slane %v1974_v2, 4  ;;  %v1982_v29 = vrot.slane %v1981_v22, 4  ;;  %8836 = vmatmul.msk.f32.gmra.mxu0 %vm87_vm0, %v73_v58 }
 0x241   :  { %v9586_v7 = vpop.eup %9585  ;;  %v3565_v32 = vmul.f32 %v9584_v10, %v11328_v35  ;;  %9591 = vrcp.f32 %v3312_v5  ;;  %v1988_v4 = vsel %vm937_vm2, %v665_v11, -inf  ;;  %v1995_v16 = vsel %vm937_vm2, %v666_v3, -inf }
 0x242   :  { %v9588_v43 = vpop.eup %9587  ;;  %v3886_v14 = vsel %vm3824_vm4, %v3564_v36, %v3885_v15  ;;  %v3313_v44 = vadd.f32 1.0, %v9586_v7  ;;  %v1976_v6 = vmax.f32 %v1974_v2, %v1975_v9  ;;  %v1983_v0 = vmax.f32 %v1981_v22, %v1982_v29  ;;  %v420_v7 = vpop.f32.mrf.mxu0 }
 0x243   :  { %v3887_v40 = vsel %vm3826_vm5, %v3565_v32, %v3886_v14  ;;  %v3566_v50 = vmul.f32 %v9588_v43, %v11333_v21  ;;  %v1989_v31 = vrot.slane %v1988_v4, 4  ;;  %v9590_v30 = vpop.eup %9589  ;;  %v412_v24 = vadd.f32 %v11149_v38, %v11344_v19 }
 0x244   :  { %9593 = vrcp.f32 %v3313_v44  ;;  %v1977_v35 = vrot.slane %v1976_v6, 2  ;;  %v3567_v20 = vmul.f32 %v9590_v30, %v11338_v46  ;;  %v1984_v25 = vrot.slane %v1983_v0, 2  ;;  %v11425_v44 = vld [vmem:[%s14495_s3] ss:$0 sm:$0xff] }
 0x245   :  { %v3888_v42 = vsel %vm3828_vm6, %v3566_v50, %v3887_v40  ;;  %v1990_v48 = vmax.f32 %v1988_v4, %v1989_v31  ;;  %v1996_v26 = vrot.slane %v1995_v16, 4  ;;  %v667_v21 = vrot.slane %v412_v24, 2 }
 0x246   :  { %v1978_v51 = vmax.f32 %v1976_v6, %v1977_v35  ;;  %v668_v34 = vrot.slane %v412_v24, 4  ;;  %v3889_v55 = vsel %vm3830_vm7, %v3567_v20, %v3888_v42  ;;  %v1985_v49 = vmax.f32 %v1983_v0, %v1984_v25  ;;  %v74_v20 = vld [vmem:[%s14494_s0 + $0x1c8] sm:$0xff] }
 0x247   :  { %v9592_v39 = vpop.eup %9591  ;;  %v1991_v53 = vrot.slane %v1990_v48, 2  ;;  %v669_v38 = vrot.slane %v412_v24, 6  ;;  %v1997_v62 = vmax.f32 %v1995_v16, %v1996_v26  ;;  %v2002_v17 = vsel %vm937_vm2, %v412_v24, -inf }
 0x248   :  { %v3568_v46 = vmul.f32 %v9592_v39, %v11341_v23  ;;  %v1979_v19 = vrot.slane %v1978_v51, 1  ;;  %v1986_v63 = vrot.slane %v1985_v49, 1  ;;  %v2003_v18 = vrot.slane %v2002_v17, 4  ;;  %8837 = vmatmul.msk.f32.gmra.mxu0 %vm87_vm0, %v74_v20 }
 0x249   :  { %v1992_v41 = vmax.f32 %v1990_v48, %v1991_v53  ;;  %v2009_v57 = vsel %vm937_vm2, %v667_v21, -inf  ;;  %v11409_v23 = vmax.f32 %v11375_v61, %v1972_v27  ;;  %v1998_v56 = vrot.slane %v1997_v62, 2 }
 0x24a   :  { %v9594_v13 = vpop.eup %9593  ;;  %v3890_v8 = vsel %vm3832_vm8, %v3568_v46, %v3889_v55  ;;  %v2010_v37 = vrot.slane %v2009_v57, 4  ;;  %v11412_v11 = vmax.f32 %v1978_v51, %v1979_v19  ;;  %v2004_v5 = vmax.f32 %v2002_v17, %v2003_v18 }
 0x24b   :  { %v3569_v60 = vmul.f32 %v9594_v13, %v11353_v1  ;;  %v1993_v12 = vrot.slane %v1992_v41, 1  ;;  %v1999_v3 = vmax.f32 %v1997_v62, %v1998_v56  ;;  %v2016_v10 = vsel %vm937_vm2, %v668_v34, -inf }
 0x24c   :  { %v2011_v2 = vmax.f32 %v2009_v57, %v2010_v37  ;;  %v2023_v36 = vsel %vm937_vm2, %v669_v38, -inf  ;;  %v11417_v9 = vmax.f32 %v1985_v49, %v1986_v63  ;;  %v2005_v61 = vrot.slane %v2004_v5, 2 }
 0x24d   :  { %v3891_v15 = vsel %vm3834_vm9, %v3569_v60, %v3890_v8  ;;  %v2017_v22 = vrot.slane %v2016_v10, 4  ;;  %v11420_v1 = vmax.f32 %v1992_v41, %v1993_v12  ;;  %v2000_v32 = vrot.slane %v1999_v3, 1 }
 0x24e   :  { %3965 = vst.msk [vmem:[#allocation2 + $0x144] sm:$0xff] %vm3626_vm1, %v3891_v15  ;;  %v2012_v27 = vrot.slane %v2011_v2, 2  ;;  %v2024_v29 = vrot.slane %v2023_v36, 4  ;;  %v2006_v43 = vmax.f32 %v2004_v5, %v2005_v61  ;;  %v415_v6 = vadd.f32 %v11425_v44, %v11368_v45 }
 0x24f   :  { %v2018_v14 = vmax.f32 %v2016_v10, %v2017_v22  ;;  %v11430_v4 = vadd.f32 %v11425_v44, %v417_v52  ;;  %v11432_v40 = vmax.f32 %v1999_v3, %v2000_v32  ;;  %v11435_v31 = vadd.f32 %v11425_v44, %v420_v7  ;;  %v75_v32 = vld [vmem:[%s14494_s0 + $0x1d0] sm:$0xff] }
 0x250   :  { %v2013_v50 = vmax.f32 %v2011_v2, %v2012_v27  ;;  %v2025_v0 = vmax.f32 %v2023_v36, %v2024_v29  ;;  %v2007_v30 = vrot.slane %v2006_v43, 1  ;;  %v670_v16 = vrot.slane %v415_v6, 2  ;;  %8838 = vmatmul.msk.f32.gmra.mxu0 %vm87_vm0, %v75_v32 }
 0x251   :  { %v2019_v35 = vrot.slane %v2018_v14, 2  ;;  %v671_v24 = vrot.slane %v415_v6, 4  ;;  %v672_v25 = vrot.slane %v415_v6, 6  ;;  %v2030_v52 = vsel %vm937_vm2, %v415_v6, -inf }
 0x252   :  { %v2014_v42 = vrot.slane %v2013_v50, 1  ;;  %v2026_v45 = vrot.slane %v2025_v0, 2  ;;  %v2008_v48 = vmax.f32 %v2006_v43, %v2007_v30  ;;  %v2031_v26 = vrot.slane %v2030_v52, 4 }
 0x253   :  { %v2020_v51 = vmax.f32 %v2018_v14, %v2019_v35  ;;  %v2037_v21 = vsel %vm937_vm2, %v670_v16, -inf  ;;  %v2044_v55 = vsel %vm937_vm2, %v671_v24, -inf  ;;  %v2051_v41 = vsel %vm937_vm2, %v672_v25, -inf }
 0x254   :  { %v2015_v34 = vmax.f32 %v2013_v50, %v2014_v42  ;;  %v2027_v58 = vmax.f32 %v2025_v0, %v2026_v45  ;;  %v2038_v39 = vrot.slane %v2037_v21, 4  ;;  %v11445_v53 = vmax.f32 %v11373_v47, %v2008_v48  ;;  %v11474_v42 = vpop.f32.mrf.mxu0 }
 0x255   :  { %v2021_v49 = vrot.slane %v2020_v51, 1  ;;  %v2032_v38 = vmax.f32 %v2030_v52, %v2031_v26  ;;  %v2045_v46 = vrot.slane %v2044_v55, 4  ;;  %v4003_v19 = vld [vmem:[#allocation2 + $0x142] sm:$0xff]  ;;  %v673_v6 = vrot.slane %v11430_v4, 2 }
 0x256   :  { %v3985_v62 = vld [vmem:[#allocation2 + $0x140] sm:$0xff]  ;;  %v2028_v33 = vrot.slane %v2027_v58, 1  ;;  %v11448_v59 = vmax.f32 %v11378_v28, %v2015_v34  ;;  %v2039_v63 = vmax.f32 %v2037_v21, %v2038_v39  ;;  %8856 = vmatmul.msk.f32.vlgmr.msra.gmra.mxu3 %vm3626_vm1, %v4003_v19  ;;  %v2930_v47 = vsub.f32 0.0, %v11445_v53 }
 0x257   :  { %v4394_v17 = vld [vmem:[#allocation2 + $0x146] sm:$0xff]  ;;  %8872 = vmatmul.msk.f32.gmra.mxu2 %vm3626_vm1, %v3985_v62  ;;  %v2022_v18 = vmax.f32 %v2020_v51, %v2021_v49  ;;  %v2033_v57 = vrot.slane %v2032_v38, 2  ;;  %v2046_v13 = vmax.f32 %v2044_v55, %v2045_v46  ;;  %v2052_v28 = vrot.slane %v2051_v41, 4 }
 0x258   :  { %8904 = vmatmul.msk.f32.gmra.mxu1 %vm3626_vm1, %v4394_v17  ;;  %v2029_v8 = vmax.f32 %v2027_v58, %v2028_v33  ;;  %v2931_v56 = vsub.f32 0.0, %v11448_v59  ;;  %v2040_v37 = vrot.slane %v2039_v63, 2  ;;  %v3130_v12 = vmul.f32 1.442695, %v2930_v47 }
 0x259   :  { %v11457_v60 = vmax.f32 %v11380_v54, %v2022_v18  ;;  %v2034_v5 = vmax.f32 %v2032_v38, %v2033_v57  ;;  %v2047_v3 = vrot.slane %v2046_v13, 2  ;;  %v2053_v15 = vmax.f32 %v2051_v41, %v2052_v28  ;;  %v76_v18 = vld [vmem:[%s14494_s0 + $0x1d8] sm:$0xff] }
 0x25a   :  { %v11460_v2 = vmax.f32 %v11409_v23, %v2029_v8  ;;  %v3132_v10 = vmul.f32 1.442695, %v2931_v56  ;;  %v2041_v36 = vmax.f32 %v2039_v63, %v2040_v37  ;;  %9595 = vpow2.f32 %v3130_v12  ;;  %8839 = vmatmul.msk.f32.gmra.mxu0 %vm87_vm0, %v76_v18 }
 0x25b   :  { %v2932_v61 = vsub.f32 0.0, %v11457_v60  ;;  %v2035_v22 = vrot.slane %v2034_v5, 1  ;;  %v2048_v7 = vmax.f32 %v2046_v13, %v2047_v3  ;;  %v2054_v29 = vrot.slane %v2053_v15, 2 }
 0x25c   :  { %v2933_v54 = vsub.f32 0.0, %v11460_v2  ;;  %9597 = vpow2.f32 %v3132_v10  ;;  %v2042_v27 = vrot.slane %v2041_v36, 1  ;;  %v674_v35 = vrot.slane %v11430_v4, 4 }
 0x25d   :  { %v3134_v23 = vmul.f32 1.442695, %v2932_v61  ;;  %v2036_v43 = vmax.f32 %v2034_v5, %v2035_v22  ;;  %v2049_v14 = vrot.slane %v2048_v7, 1  ;;  %v2055_v30 = vmax.f32 %v2053_v15, %v2054_v29  ;;  %v426_v15 = vpop.f32.mrf.mxu0 }
 0x25e   :  { %v3136_v50 = vmul.f32 1.442695, %v2933_v54  ;;  %v2043_v0 = vmax.f32 %v2041_v36, %v2042_v27  ;;  %v675_v20 = vrot.slane %v11430_v4, 6  ;;  %v2058_v52 = vsel %vm937_vm2, %v11430_v4, -inf }
 0x25f   :  { %9599 = vpow2.f32 %v3134_v23  ;;  %v2050_v16 = vmax.f32 %v2048_v7, %v2049_v14  ;;  %v11471_v24 = vmax.f32 %v11412_v11, %v2036_v43  ;;  %v2056_v45 = vrot.slane %v2055_v30, 1 }
 0x260   :  { %9601 = vpow2.f32 %v3136_v50  ;;  %v11477_v25 = vmax.f32 %v11417_v9, %v2043_v0  ;;  %v9596_v48 = vpop.eup %9595  ;;  %v2059_v11 = vrot.slane %v2058_v52, 4  ;;  %v2065_v21 = vsel %vm937_vm2, %v673_v6, -inf }
 0x261   :  { %v11482_v51 = vmax.f32 %v11420_v1, %v2050_v16  ;;  %v2934_v26 = vsub.f32 0.0, %v11471_v24  ;;  %v3314_v58 = vadd.f32 1.0, %v9596_v48  ;;  %v2057_v39 = vmax.f32 %v2055_v30, %v2056_v45 }
 0x262   :  { %v9598_v34 = vpop.eup %9597  ;;  %v2935_v55 = vsub.f32 0.0, %v11477_v25  ;;  %v2066_v49 = vrot.slane %v2065_v21, 4  ;;  %v2060_v4 = vmax.f32 %v2058_v52, %v2059_v11  ;;  %v2072_v41 = vsel %vm937_vm2, %v674_v35, -inf }
 0x263   :  { %v3315_v9 = vadd.f32 1.0, %v9598_v34  ;;  %v2936_v38 = vsub.f32 0.0, %v11482_v51  ;;  %v3138_v46 = vmul.f32 1.442695, %v2934_v26  ;;  %9603 = vrcp.f32 %v3314_v58 }
 0x264   :  { %v11489_v1 = vmax.f32 %v11432_v40, %v2057_v39  ;;  %v3140_v19 = vmul.f32 1.442695, %v2935_v55  ;;  %v2067_v62 = vmax.f32 %v2065_v21, %v2066_v49  ;;  %v2061_v63 = vrot.slane %v2060_v4, 2 }
 0x265   :  { %v9600_v17 = vpop.eup %9599  ;;  %9605 = vrcp.f32 %v3315_v9  ;;  %v3142_v33 = vmul.f32 1.442695, %v2936_v38  ;;  %v2073_v37 = vrot.slane %v2072_v41, 4  ;;  %v2079_v5 = vsel %vm937_vm2, %v675_v20, -inf  ;;  %v429_v18 = vpop.f32.mrf.mxu0 }
 0x266   :  { %v9602_v47 = vpop.eup %9601  ;;  %v3316_v57 = vadd.f32 1.0, %v9600_v17  ;;  %v2937_v13 = vsub.f32 0.0, %v11489_v1  ;;  %9607 = vpow2.f32 %v3138_v46  ;;  %v2068_v8 = vrot.slane %v2067_v62, 2 }
 0x267   :  { %v3317_v40 = vadd.f32 1.0, %v9602_v47  ;;  %9609 = vpow2.f32 %v3140_v19  ;;  %v2062_v56 = vmax.f32 %v2060_v4, %v2061_v63  ;;  %v2074_v10 = vmax.f32 %v2072_v41, %v2073_v37  ;;  %v77_v47 = vld [vmem:[%s14494_s0 + $0x1e0] sm:$0xff] }
 0x268   :  { %9611 = vrcp.f32 %v3316_v57  ;;  %v3144_v28 = vmul.f32 1.442695, %v2937_v13  ;;  %v2069_v12 = vmax.f32 %v2067_v62, %v2068_v8  ;;  %v2080_v36 = vrot.slane %v2079_v5, 4  ;;  %8840 = vmatmul.msk.f32.gmra.mxu0 %vm87_vm0, %v77_v47 }
 0x269   :  { %9613 = vrcp.f32 %v3317_v40  ;;  %v2063_v3 = vrot.slane %v2062_v56, 1  ;;  %v9604_v61 = vpop.eup %9603  ;;  %v676_v7 = vrot.slane %v11435_v31, 2  ;;  %v677_v32 = vrot.slane %v11435_v31, 4 }
 0x26a   :  { %9615 = vpow2.f32 %v3142_v33  ;;  %v2070_v22 = vrot.slane %v2069_v12, 1  ;;  %v3570_v27 = vmul.f32 %v9604_v61, %v11445_v53  ;;  %v2075_v23 = vrot.slane %v2074_v10, 2 }
 0x26b   :  { %v9606_v54 = vpop.eup %9605  ;;  %9617 = vpow2.f32 %v3144_v28  ;;  %v11501_v29 = vmax.f32 %v2062_v56, %v2063_v3  ;;  %v2081_v50 = vmax.f32 %v2079_v5, %v2080_v36  ;;  %v678_v0 = vrot.slane %v11435_v31, 6 }
 0x26c   :  { %v9608_v43 = vpop.eup %9607  ;;  %v3571_v14 = vmul.f32 %v9606_v54, %v11448_v59  ;;  %v11504_v6 = vmax.f32 %v2069_v12, %v2070_v22  ;;  %v2076_v16 = vmax.f32 %v2074_v10, %v2075_v23  ;;  %v2086_v20 = vsel %vm937_vm2, %v11435_v31, -inf }
 0x26d   :  { %v9610_v30 = vpop.eup %9609  ;;  %v3318_v35 = vadd.f32 1.0, %v9608_v43  ;;  %v2093_v53 = vsel %vm937_vm2, %v676_v7, -inf  ;;  %v2082_v26 = vrot.slane %v2081_v50, 2  ;;  %v2087_v11 = vrot.slane %v2086_v20, 4 }
 0x26e   :  { %v9612_v45 = vpop.eup %9611  ;;  %v3892_v52 = vsel %vm3822_vm3, %v3571_v14, %v3570_v27  ;;  %v3319_v48 = vadd.f32 1.0, %v9610_v30  ;;  %v2077_v34 = vrot.slane %v2076_v16, 1  ;;  %v2094_v58 = vrot.slane %v2093_v53, 4 }
 0x26f   :  { %v9614_v59 = vpop.eup %9613  ;;  %v3572_v21 = vmul.f32 %v9612_v45, %v11457_v60  ;;  %9619 = vrcp.f32 %v3318_v35  ;;  %v2083_v49 = vmax.f32 %v2081_v50, %v2082_v26  ;;  %v2088_v31 = vmax.f32 %v2086_v20, %v2087_v11 }
 0x270   :  { %v9616_v39 = vpop.eup %9615  ;;  %v3573_v55 = vmul.f32 %v9614_v59, %v11460_v2  ;;  %9621 = vrcp.f32 %v3319_v48  ;;  %v11514_v4 = vmax.f32 %v2076_v16, %v2077_v34  ;;  %v2095_v19 = vmax.f32 %v2093_v53, %v2094_v58 }
 0x271   :  { %v9618_v9 = vpop.eup %9617  ;;  %v3893_v38 = vsel %vm3824_vm4, %v3572_v21, %v3892_v52  ;;  %v3320_v46 = vadd.f32 1.0, %v9616_v39  ;;  %v2084_v60 = vrot.slane %v2083_v49, 1  ;;  %v2089_v33 = vrot.slane %v2088_v31, 2 }
 0x272   :  { %v3894_v62 = vsel %vm3826_vm5, %v3573_v55, %v3893_v38  ;;  %v3321_v17 = vadd.f32 1.0, %v9618_v9  ;;  %v2096_v63 = vrot.slane %v2095_v19, 2  ;;  %v2100_v41 = vsel %vm937_vm2, %v677_v32, -inf }
 0x273   :  { %9623 = vrcp.f32 %v3320_v46  ;;  %v2107_v2 = vsel %vm937_vm2, %v678_v0, -inf  ;;  %v11522_v57 = vmax.f32 %v2083_v49, %v2084_v60  ;;  %v2090_v13 = vmax.f32 %v2088_v31, %v2089_v33 }
 0x274   :  { %9625 = vrcp.f32 %v3321_v17  ;;  %v2101_v8 = vrot.slane %v2100_v41, 4  ;;  %v2097_v56 = vmax.f32 %v2095_v19, %v2096_v63  ;;  %v2108_v37 = vrot.slane %v2107_v2, 4  ;;  %v78_v63 = vld [vmem:[%s14494_s0 + $0x1e8] sm:$0xff] }
 0x275   :  { %v9620_v40 = vpop.eup %9619  ;;  %v424_v28 = vadd.f32 %v11425_v44, %v11474_v42  ;;  %v11528_v12 = vadd.f32 %v11425_v44, %v426_v15  ;;  %v2091_v10 = vrot.slane %v2090_v13, 1  ;;  %v11532_v61 = vadd.f32 %v11425_v44, %v429_v18  ;;  %8841 = vmatmul.msk.f32.gmra.mxu0 %vm87_vm0, %v78_v63 }
 0x276   :  { %v9622_v5 = vpop.eup %9621  ;;  %v3574_v3 = vmul.f32 %v9620_v40, %v11471_v24  ;;  %v2102_v36 = vmax.f32 %v2100_v41, %v2101_v8  ;;  %v2098_v7 = vrot.slane %v2097_v56, 1  ;;  %v2109_v32 = vmax.f32 %v2107_v2, %v2108_v37 }
 0x277   :  { %v3575_v22 = vmul.f32 %v9622_v5, %v11477_v25  ;;  %v679_v54 = vrot.slane %v424_v28, 2  ;;  %v11536_v23 = vmax.f32 %v2090_v13, %v2091_v10  ;;  %v680_v15 = vrot.slane %v424_v28, 4 }
 0x278   :  { %v3895_v27 = vsel %vm3828_vm6, %v3574_v3, %v3894_v62  ;;  %v2103_v42 = vrot.slane %v2102_v36, 2  ;;  %v11539_v24 = vmax.f32 %v2097_v56, %v2098_v7  ;;  %v2110_v50 = vrot.slane %v2109_v32, 2 }
 0x279   :  { %v9624_v43 = vpop.eup %9623  ;;  %v3896_v14 = vsel %vm3830_vm7, %v3575_v22, %v3895_v27  ;;  %v681_v0 = vrot.slane %v424_v28, 6  ;;  %v2114_v16 = vsel %vm937_vm2, %v424_v28, -inf  ;;  %v2121_v20 = vsel %vm937_vm2, %v679_v54, -inf }
 0x27a   :  { %v9626_v30 = vpop.eup %9625  ;;  %v3576_v35 = vmul.f32 %v9624_v43, %v11482_v51  ;;  %v2104_v25 = vmax.f32 %v2102_v36, %v2103_v42  ;;  %v2111_v45 = vmax.f32 %v2109_v32, %v2110_v50  ;;  %v2115_v52 = vrot.slane %v2114_v16, 4 }
 0x27b   :  { %v3577_v53 = vmul.f32 %v9626_v30, %v11489_v1  ;;  %v2122_v48 = vrot.slane %v2121_v20, 4  ;;  %v2128_v59 = vsel %vm937_vm2, %v680_v15, -inf  ;;  %v2135_v21 = vsel %vm937_vm2, %v681_v0, -inf }
 0x27c   :  { %v3897_v26 = vsel %vm3832_vm8, %v3576_v35, %v3896_v14  ;;  %v2105_v11 = vrot.slane %v2104_v25, 1  ;;  %v2112_v51 = vrot.slane %v2111_v45, 1  ;;  %v2116_v58 = vmax.f32 %v2114_v16, %v2115_v52 }
 0x27d   :  { %v3898_v34 = vsel %vm3834_vm9, %v3577_v53, %v3897_v26  ;;  %v2123_v39 = vmax.f32 %v2121_v20, %v2122_v48  ;;  %v2129_v1 = vrot.slane %v2128_v59, 4  ;;  %v2136_v49 = vrot.slane %v2135_v21, 4 }
 0x27e   :  { %3966 = vst.msk [vmem:[#allocation2 + $0x154] sm:$0xff] %vm3626_vm1, %v3898_v34  ;;  %v11550_v55 = vmax.f32 %v2104_v25, %v2105_v11  ;;  %v682_v31 = vrot.slane %v11528_v12, 2  ;;  %v11553_v9 = vmax.f32 %v2111_v45, %v2112_v51  ;;  %v2117_v38 = vrot.slane %v2116_v58, 2 }
 0x27f   :  { %v2124_v46 = vrot.slane %v2123_v39, 2  ;;  %v683_v19 = vrot.slane %v11528_v12, 4  ;;  %v2130_v62 = vmax.f32 %v2128_v59, %v2129_v1  ;;  %v2137_v17 = vmax.f32 %v2135_v21, %v2136_v49 }
 0x280   :  { %v684_v60 = vrot.slane %v11528_v12, 6  ;;  %v2142_v33 = vsel %vm937_vm2, %v11528_v12, -inf  ;;  %v2118_v41 = vmax.f32 %v2116_v58, %v2117_v38  ;;  %v2149_v47 = vsel %vm937_vm2, %v682_v31, -inf  ;;  %v79_v31 = vld [vmem:[%s14494_s0 + $0x1f0] sm:$0xff] }
 0x281   :  { %v2125_v2 = vmax.f32 %v2123_v39, %v2124_v46  ;;  %v2143_v18 = vrot.slane %v2142_v33, 4  ;;  %v2131_v13 = vrot.slane %v2130_v62, 2  ;;  %v2138_v8 = vrot.slane %v2137_v17, 2  ;;  %8842 = vmatmul.msk.f32.gmra.mxu0 %vm87_vm0, %v79_v31  ;;  %v6164_v31 = vld [vmem:[%s14496_s1 + $0xf0] sm:$0xff] }
 0x282   :  { %v2150_v40 = vrot.slane %v2149_v47, 4  ;;  %v2156_v56 = vsel %vm937_vm2, %v683_v19, -inf  ;;  %v2119_v37 = vrot.slane %v2118_v41, 1  ;;  %v2163_v22 = vsel %vm937_vm2, %v684_v60, -inf }
 0x283   :  { %v2126_v28 = vrot.slane %v2125_v2, 1  ;;  %v2144_v5 = vmax.f32 %v2142_v33, %v2143_v18  ;;  %v2157_v12 = vrot.slane %v2156_v56, 4  ;;  %v2132_v3 = vmax.f32 %v2130_v62, %v2131_v13  ;;  %v432_v13 = vpop.f32.mrf.mxu0 }
 0x284   :  { %v2139_v10 = vmax.f32 %v2137_v17, %v2138_v8  ;;  %v2151_v36 = vmax.f32 %v2149_v47, %v2150_v40  ;;  %v2120_v7 = vmax.f32 %v2118_v41, %v2119_v37  ;;  %v2164_v30 = vrot.slane %v2163_v22, 4 }
 0x285   :  { %v2127_v32 = vmax.f32 %v2125_v2, %v2126_v28  ;;  %v2145_v54 = vrot.slane %v2144_v5, 2  ;;  %v2158_v27 = vmax.f32 %v2156_v56, %v2157_v12  ;;  %v4004_v42 = vld [vmem:[#allocation2 + $0x152] sm:$0xff]  ;;  %v2133_v14 = vrot.slane %v2132_v3, 1 }
 0x286   :  { %v3986_v15 = vld [vmem:[#allocation2 + $0x150] sm:$0xff]  ;;  %v2140_v50 = vrot.slane %v2139_v10, 1  ;;  %v2152_v0 = vrot.slane %v2151_v36, 2  ;;  %8857 = vmatmul.msk.f32.gmra.mxu3 %vm3626_vm1, %v4004_v42  ;;  %v11569_v35 = vmax.f32 %v11501_v29, %v2120_v7  ;;  %v2165_v48 = vmax.f32 %v2163_v22, %v2164_v30 }
 0x287   :  { %v4395_v43 = vld [vmem:[#allocation2 + $0x156] sm:$0xff]  ;;  %8873 = vmatmul.msk.f32.gmra.mxu2 %vm3626_vm1, %v3986_v15  ;;  %v11572_v25 = vmax.f32 %v11504_v6, %v2127_v32  ;;  %v2146_v16 = vmax.f32 %v2144_v5, %v2145_v54  ;;  %v2159_v20 = vrot.slane %v2158_v27, 2  ;;  %v2134_v53 = vmax.f32 %v2132_v3, %v2133_v14 }
 0x288   :  { %8905 = vmatmul.msk.f32.gmra.mxu1 %vm3626_vm1, %v4395_v43  ;;  %v2141_v45 = vmax.f32 %v2139_v10, %v2140_v50  ;;  %v2153_v52 = vmax.f32 %v2151_v36, %v2152_v0  ;;  %v2938_v26 = vsub.f32 0.0, %v11569_v35  ;;  %v2166_v51 = vrot.slane %v2165_v48, 2 }
 0x289   :  { %v2939_v11 = vsub.f32 0.0, %v11572_v25  ;;  %v2147_v59 = vrot.slane %v2146_v16, 1  ;;  %v2160_v21 = vmax.f32 %v2158_v27, %v2159_v20  ;;  %v11578_v29 = vmax.f32 %v11514_v4, %v2134_v53 }
 0x28a   :  { %v11581_v6 = vmax.f32 %v11522_v57, %v2141_v45  ;;  %v2154_v34 = vrot.slane %v2153_v52, 1  ;;  %v3146_v58 = vmul.f32 1.442695, %v2938_v26  ;;  %v2167_v4 = vmax.f32 %v2165_v48, %v2166_v51 }
 0x28b   :  { %v3148_v39 = vmul.f32 1.442695, %v2939_v11  ;;  %v2148_v1 = vmax.f32 %v2146_v16, %v2147_v59  ;;  %v2161_v49 = vrot.slane %v2160_v21, 1  ;;  %v2940_v38 = vsub.f32 0.0, %v11578_v29  ;;  %v6165_v11 = vld [vmem:[%s14496_s1 + $0xf8] sm:$0xff] }
 0x28c   :  { %v2941_v46 = vsub.f32 0.0, %v11581_v6  ;;  %v2155_v19 = vmax.f32 %v2153_v52, %v2154_v34  ;;  %9627 = vpow2.f32 %v3146_v58  ;;  %v685_v17 = vrot.slane %v11532_v61, 2  ;;  %v11621_v58 = vpop.f32.mrf.mxu0  ;;  %6228 = vmatpush.msrb.mxu0 %v6165_v11 }
 0x28d   :  { %v2162_v57 = vmax.f32 %v2160_v21, %v2161_v49  ;;  %v11590_v62 = vmax.f32 %v11536_v23, %v2148_v1  ;;  %9629 = vpow2.f32 %v3148_v39  ;;  %v3150_v60 = vmul.f32 1.442695, %v2940_v38 }
 0x28e   :  { %v3152_v33 = vmul.f32 1.442695, %v2941_v46  ;;  %v2168_v63 = vrot.slane %v2167_v4, 1  ;;  %v11594_v41 = vmax.f32 %v11539_v24, %v2155_v19  ;;  %v686_v47 = vrot.slane %v11532_v61, 4  ;;  %6229 = vmatpush.msrb.mxu0 %v6164_v31 }
 0x28f   :  { %v11597_v2 = vmax.f32 %v11550_v55, %v2162_v57  ;;  %v2942_v18 = vsub.f32 0.0, %v11590_v62  ;;  %9631 = vpow2.f32 %v3150_v60  ;;  %v687_v8 = vrot.slane %v11532_v61, 6  ;;  %v6148_v57 = vld [vmem:[#allocation2 + $0x60] sm:$0xff] }
 0x290   :  { %v2169_v23 = vmax.f32 %v2167_v4, %v2168_v63  ;;  %v2170_v40 = vsel %vm937_vm2, %v11532_v61, -inf  ;;  %9633 = vpow2.f32 %v3152_v33  ;;  %v2943_v56 = vsub.f32 0.0, %v11594_v41  ;;  %v80_v61 = vld [vmem:[%s14494_s0 + $0x1f8] sm:$0xff] }
 0x291   :  { %v2944_v24 = vsub.f32 0.0, %v11597_v2  ;;  %v3154_v37 = vmul.f32 1.442695, %v2942_v18  ;;  %v2171_v28 = vrot.slane %v2170_v40, 4  ;;  %v2177_v5 = vsel %vm937_vm2, %v685_v17, -inf  ;;  %8843 = vmatmul.msk.f32.gmra.mxu0 %vm87_vm0, %v80_v61 }
 0x292   :  { %v11607_v55 = vmax.f32 %v11553_v9, %v2169_v23  ;;  %v2184_v12 = vsel %vm937_vm2, %v686_v47, -inf  ;;  %v9628_v3 = vpop.eup %9627  ;;  %v3156_v10 = vmul.f32 1.442695, %v2943_v56  ;;  %v2178_v22 = vrot.slane %v2177_v5, 4 }
 0x293   :  { %9635 = vpow2.f32 %v3154_v37  ;;  %v3158_v36 = vmul.f32 1.442695, %v2944_v24  ;;  %v9630_v7 = vpop.eup %9629  ;;  %v3322_v32 = vadd.f32 1.0, %v9628_v3  ;;  %v2172_v9 = vmax.f32 %v2170_v40, %v2171_v28 }
 0x294   :  { %v2945_v54 = vsub.f32 0.0, %v11607_v55  ;;  %v2185_v27 = vrot.slane %v2184_v12, 4  ;;  %v3323_v42 = vadd.f32 1.0, %v9630_v7  ;;  %9637 = vpow2.f32 %v3156_v10 }
 0x295   :  { %v2179_v15 = vmax.f32 %v2177_v5, %v2178_v22  ;;  %v2191_v43 = vsel %vm937_vm2, %v687_v8, -inf  ;;  %v9632_v14 = vpop.eup %9631  ;;  %9639 = vrcp.f32 %v3322_v32  ;;  %v2173_v0 = vrot.slane %v2172_v9, 2 }
 0x296   :  { %v3160_v50 = vmul.f32 1.442695, %v2945_v54  ;;  %v2186_v30 = vmax.f32 %v2184_v12, %v2185_v27  ;;  %v9634_v16 = vpop.eup %9633  ;;  %v3324_v20 = vadd.f32 1.0, %v9632_v14  ;;  %9641 = vrcp.f32 %v3323_v42 }
 0x297   :  { %v2180_v53 = vrot.slane %v2179_v15, 2  ;;  %v2192_v45 = vrot.slane %v2191_v43, 4  ;;  %v3325_v52 = vadd.f32 1.0, %v9634_v16  ;;  %9643 = vpow2.f32 %v3158_v36  ;;  %v438_v16 = vpop.f32.mrf.mxu0 }
 0x298   :  { %v2174_v48 = vmax.f32 %v2172_v9, %v2173_v0  ;;  %v2187_v26 = vrot.slane %v2186_v30, 2  ;;  %9645 = vrcp.f32 %v3324_v20  ;;  %v433_v51 = vadd.f32 %v11425_v44, %v432_v13 }
 0x299   :  { %v9636_v59 = vpop.eup %9635  ;;  %v2181_v21 = vmax.f32 %v2179_v15, %v2180_v53  ;;  %v2193_v34 = vmax.f32 %v2191_v43, %v2192_v45  ;;  %9647 = vrcp.f32 %v3325_v52  ;;  %9084 = vmatmul.msk.f32.vlgmr.msrb.gmra.mxu0 %vm3626_vm1, %v6148_v57  ;;  %v11655_v57 = vpop.f32.mrf.mxu1 }
 0x29a   :  { %v3326_v39 = vadd.f32 1.0, %v9636_v59  ;;  %v2175_v1 = vrot.slane %v2174_v48, 1  ;;  %v2188_v49 = vmax.f32 %v2186_v30, %v2187_v26  ;;  %v9638_v38 = vpop.eup %9637  ;;  %9649 = vpow2.f32 %v3160_v50 }
 0x29b   :  { %v2182_v46 = vrot.slane %v2181_v21, 1  ;;  %v2194_v19 = vrot.slane %v2193_v34, 2  ;;  %v688_v4 = vrot.slane %v433_v51, 2  ;;  %v9640_v17 = vpop.eup %9639  ;;  %v3327_v60 = vadd.f32 1.0, %v9638_v38 }
 0x29c   :  { %9651 = vrcp.f32 %v3326_v39  ;;  %v11626_v33 = vmax.f32 %v2174_v48, %v2175_v1  ;;  %v2189_v63 = vrot.slane %v2188_v49, 1  ;;  %v9642_v18 = vpop.eup %9641  ;;  %v3578_v47 = vmul.f32 %v9640_v17, %v11569_v35 }
 0x29d   :  { %v11630_v13 = vmax.f32 %v2181_v21, %v2182_v46  ;;  %v2195_v23 = vmax.f32 %v2193_v34, %v2194_v19  ;;  %v689_v8 = vrot.slane %v433_v51, 4  ;;  %v9644_v40 = vpop.eup %9643  ;;  %v3579_v56 = vmul.f32 %v9642_v18, %v11572_v25 }
 0x29e   :  { %9653 = vrcp.f32 %v3327_v60  ;;  %v11633_v24 = vmax.f32 %v2188_v49, %v2189_v63  ;;  %v690_v37 = vrot.slane %v433_v51, 6  ;;  %v9646_v28 = vpop.eup %9645  ;;  %v3328_v5 = vadd.f32 1.0, %v9644_v40 }
 0x29f   :  { %v2196_v12 = vrot.slane %v2195_v23, 1  ;;  %v2198_v3 = vsel %vm937_vm2, %v433_v51, -inf  ;;  %v2205_v10 = vsel %vm937_vm2, %v688_v4, -inf  ;;  %v9648_v36 = vpop.eup %9647  ;;  %v3580_v35 = vmul.f32 %v9646_v28, %v11578_v29  ;;  %v6150_v28 = vld [vmem:[#allocation2 + $0x80] sm:$0xff] }
 0x2a0   :  { %v3899_v22 = vsel %vm3822_vm3, %v3579_v56, %v3578_v47  ;;  %v2199_v61 = vrot.slane %v2198_v3, 4  ;;  %v2206_v7 = vrot.slane %v2205_v10, 4  ;;  %v9650_v32 = vpop.eup %9649  ;;  %v3581_v25 = vmul.f32 %v9648_v36, %v11581_v6  ;;  %v6149_v6 = vld [vmem:[#allocation2 + $0x70] sm:$0xff] }
 0x2a1   :  { %9655 = vrcp.f32 %v3328_v5  ;;  %v11640_v54 = vmax.f32 %v2195_v23, %v2196_v12  ;;  %v2212_v9 = vsel %vm937_vm2, %v689_v8, -inf  ;;  %v3900_v42 = vsel %vm3824_vm4, %v3580_v35, %v3899_v22  ;;  %9085 = vmatmul.msk.f32.gmra.mxu0 %vm3626_vm1, %v6149_v6 }
 0x2a2   :  { %v9652_v27 = vpop.eup %9651  ;;  %v3329_v15 = vadd.f32 1.0, %v9650_v32  ;;  %v2200_v43 = vmax.f32 %v2198_v3, %v2199_v61  ;;  %v2207_v14 = vmax.f32 %v2205_v10, %v2206_v7  ;;  %v3901_v29 = vsel %vm3826_vm5, %v3581_v25, %v3900_v42 }
 0x2a3   :  { %v3582_v50 = vmul.f32 %v9652_v27, %v11590_v62  ;;  %v2213_v0 = vrot.slane %v2212_v9, 4  ;;  %v2219_v30 = vsel %vm937_vm2, %v690_v37, -inf  ;;  %v436_v62 = vadd.f32 %v11425_v44, %v11621_v58 }
 0x2a4   :  { %v9654_v20 = vpop.eup %9653  ;;  %9657 = vrcp.f32 %v3329_v15  ;;  %v2201_v53 = vrot.slane %v2200_v43, 2  ;;  %v2208_v45 = vrot.slane %v2207_v14, 2  ;;  %v2220_v52 = vrot.slane %v2219_v30, 4 }
 0x2a5   :  { %v3583_v48 = vmul.f32 %v9654_v20, %v11594_v41  ;;  %v3902_v26 = vsel %vm3828_vm6, %v3582_v50, %v3901_v29  ;;  %v2214_v11 = vmax.f32 %v2212_v9, %v2213_v0  ;;  %v439_v51 = vadd.f32 %v11425_v44, %v438_v16 }
 0x2a6   :  { %v2202_v59 = vmax.f32 %v2200_v43, %v2201_v53  ;;  %v2209_v21 = vmax.f32 %v2207_v14, %v2208_v45  ;;  %v2221_v34 = vmax.f32 %v2219_v30, %v2220_v52  ;;  %v691_v31 = vrot.slane %v436_v62, 2 }
 0x2a7   :  { %v9656_v39 = vpop.eup %9655  ;;  %v3903_v1 = vsel %vm3830_vm7, %v3583_v48, %v3902_v26  ;;  %v2215_v49 = vrot.slane %v2214_v11, 2  ;;  %v692_v38 = vrot.slane %v436_v62, 4  ;;  %v693_v58 = vrot.slane %v436_v62, 6  ;;  %v11677_v48 = vpop.f32.mrf.mxu1 }
 0x2a8   :  { %v3584_v46 = vmul.f32 %v9656_v39, %v11597_v2  ;;  %v2203_v41 = vrot.slane %v2202_v59, 1  ;;  %v2210_v19 = vrot.slane %v2209_v21, 1  ;;  %v2222_v4 = vrot.slane %v2221_v34, 2 }
 0x2a9   :  { %v2216_v17 = vmax.f32 %v2214_v11, %v2215_v49  ;;  %v2226_v60 = vsel %vm937_vm2, %v436_v62, -inf  ;;  %v2233_v63 = vsel %vm937_vm2, %v691_v31, -inf  ;;  %v2240_v12 = vsel %vm937_vm2, %v692_v38, -inf  ;;  %9086 = vmatmul.msk.f32.gmra.mxu0 %vm3626_vm1, %v6150_v28 }
 0x2aa   :  { %v9658_v44 = vpop.eup %9657  ;;  %v3904_v18 = vsel %vm3832_vm8, %v3584_v46, %v3903_v1  ;;  %v11660_v47 = vmax.f32 %v2202_v59, %v2203_v41  ;;  %v11662_v23 = vmax.f32 %v2209_v21, %v2210_v19  ;;  %v2223_v8 = vmax.f32 %v2221_v34, %v2222_v4  ;;  %v6151_v21 = vld [vmem:[#allocation2 + $0x90] sm:$0xff] }
 0x2ab   :  { %v3585_v2 = vmul.f32 %v9658_v44, %v11607_v55  ;;  %v2217_v40 = vrot.slane %v2216_v17, 1  ;;  %v2227_v56 = vrot.slane %v2226_v60, 4  ;;  %v2234_v37 = vrot.slane %v2233_v63, 4 }
 0x2ac   :  { %v2224_v5 = vrot.slane %v2223_v8, 1  ;;  %v2247_v3 = vsel %vm937_vm2, %v693_v58, -inf  ;;  %v694_v10 = vrot.slane %v439_v51, 2  ;;  %v2241_v7 = vrot.slane %v2240_v12, 4 }
 0x2ad   :  { %v3905_v36 = vsel %vm3834_vm9, %v3585_v2, %v3904_v18  ;;  %v11669_v35 = vmax.f32 %v2216_v17, %v2217_v40  ;;  %v2228_v22 = vmax.f32 %v2226_v60, %v2227_v56  ;;  %v2235_v61 = vmax.f32 %v2233_v63, %v2234_v37 }
 0x2ae   :  { %3967 = vst.msk [vmem:[#allocation2 + $0x164] sm:$0xff] %vm3626_vm1, %v3905_v36  ;;  %v11672_v55 = vmax.f32 %v2223_v8, %v2224_v5  ;;  %v2248_v32 = vrot.slane %v2247_v3, 4  ;;  %v695_v25 = vrot.slane %v439_v51, 4  ;;  %v696_v42 = vrot.slane %v439_v51, 6 }
 0x2af   :  { %v2229_v9 = vrot.slane %v2228_v22, 2  ;;  %v2236_v27 = vrot.slane %v2235_v61, 2  ;;  %v2254_v15 = vsel %vm937_vm2, %v439_v51, -inf  ;;  %v2242_v43 = vmax.f32 %v2240_v12, %v2241_v7 }
 0x2b0   :  { %v2249_v14 = vmax.f32 %v2247_v3, %v2248_v32  ;;  %v2255_v29 = vrot.slane %v2254_v15, 4  ;;  %v2261_v50 = vsel %vm937_vm2, %v694_v10, -inf  ;;  %v2268_v6 = vsel %vm937_vm2, %v695_v25, -inf }
 0x2b1   :  { %v2230_v0 = vmax.f32 %v2228_v22, %v2229_v9  ;;  %v2237_v30 = vmax.f32 %v2235_v61, %v2236_v27  ;;  %v2262_v16 = vrot.slane %v2261_v50, 4  ;;  %v2243_v20 = vrot.slane %v2242_v43, 2  ;;  %9087 = vmatmul.msk.f32.gmra.mxu0 %vm3626_vm1, %v6151_v21  ;;  %v6152_v9 = vld [vmem:[#allocation2 + $0xa0] sm:$0xff] }
 0x2b2   :  { %v2250_v53 = vrot.slane %v2249_v14, 2  ;;  %v2256_v45 = vmax.f32 %v2254_v15, %v2255_v29  ;;  %v2269_v52 = vrot.slane %v2268_v6, 4  ;;  %v2275_v59 = vsel %vm937_vm2, %v696_v42, -inf }
 0x2b3   :  { %v2231_v26 = vrot.slane %v2230_v0, 1  ;;  %v2238_v11 = vrot.slane %v2237_v30, 1  ;;  %v2263_v62 = vmax.f32 %v2261_v50, %v2262_v16  ;;  %v2244_v34 = vmax.f32 %v2242_v43, %v2243_v20  ;;  %v11715_v50 = vld [vmem:[%s14495_s3] ss:$0 sm:$0xff] }
 0x2b4   :  { %v2251_v51 = vmax.f32 %v2249_v14, %v2250_v53  ;;  %v2257_v39 = vrot.slane %v2256_v45, 2  ;;  %v2270_v1 = vmax.f32 %v2268_v6, %v2269_v52  ;;  %v2276_v46 = vrot.slane %v2275_v59, 4 }
 0x2b5   :  { %v2232_v49 = vmax.f32 %v2230_v0, %v2231_v26  ;;  %v2239_v31 = vmax.f32 %v2237_v30, %v2238_v11  ;;  %v2264_v38 = vrot.slane %v2263_v62, 2  ;;  %v4005_v41 = vld [vmem:[#allocation2 + $0x162] sm:$0xff]  ;;  %v2245_v17 = vrot.slane %v2244_v34, 1 }
 0x2b6   :  { %v11681_v19 = vld [vmem:[#allocation2 + $0x160] sm:$0xff]  ;;  %v2252_v58 = vrot.slane %v2251_v51, 1  ;;  %v2258_v60 = vmax.f32 %v2256_v45, %v2257_v39  ;;  %v2271_v63 = vrot.slane %v2270_v1, 2  ;;  %8858 = vmatmul.msk.f32.gmra.mxu3 %vm3626_vm1, %v4005_v41  ;;  %v2277_v2 = vmax.f32 %v2275_v59, %v2276_v46 }
 0x2b7   :  { %v4396_v4 = vld [vmem:[#allocation2 + $0x166] sm:$0xff]  ;;  %8874 = vmatmul.msk.f32.gmra.mxu2 %vm3626_vm1, %v11681_v19  ;;  %v11687_v44 = vmax.f32 %v11626_v33, %v2232_v49  ;;  %v11690_v18 = vmax.f32 %v11630_v13, %v2239_v31  ;;  %v2265_v8 = vmax.f32 %v2263_v62, %v2264_v38  ;;  %v2246_v40 = vmax.f32 %v2244_v34, %v2245_v17  ;;  %v6153_v31 = vld [vmem:[#allocation2 + $0xb0] sm:$0xff] }
 0x2b8   :  { %8906 = vmatmul.msk.f32.gmra.mxu1 %vm3626_vm1, %v4396_v4  ;;  %v2253_v56 = vmax.f32 %v2251_v51, %v2252_v58  ;;  %v2259_v37 = vrot.slane %v2258_v60, 1  ;;  %v2272_v28 = vmax.f32 %v2270_v1, %v2271_v63  ;;  %v2278_v10 = vrot.slane %v2277_v2, 2 }
 0x2b9   :  { %v2946_v5 = vsub.f32 0.0, %v11687_v44  ;;  %v2947_v12 = vsub.f32 0.0, %v11690_v18  ;;  %v2266_v3 = vrot.slane %v2265_v8, 1  ;;  %v11696_v33 = vmax.f32 %v11633_v24, %v2246_v40  ;;  %v441_v24 = vpop.f32.mrf.mxu0  ;;  %9088 = vmatmul.msk.f32.gmra.mxu0 %vm3626_vm1, %v6152_v9 }
 0x2ba   :  { %v11699_v13 = vmax.f32 %v11640_v54, %v2253_v56  ;;  %v2260_v36 = vmax.f32 %v2258_v60, %v2259_v37  ;;  %v2273_v22 = vrot.slane %v2272_v28, 1  ;;  %v2279_v25 = vmax.f32 %v2277_v2, %v2278_v10  ;;  %v11707_v54 = vpop.f32.mrf.mxu1 }
 0x2bb   :  { %v3162_v61 = vmul.f32 1.442695, %v2946_v5  ;;  %v3164_v7 = vmul.f32 1.442695, %v2947_v12  ;;  %v2267_v32 = vmax.f32 %v2265_v8, %v2266_v3  ;;  %v2948_v27 = vsub.f32 0.0, %v11696_v33 }
 0x2bc   :  { %v2949_v42 = vsub.f32 0.0, %v11699_v13  ;;  %v2274_v15 = vmax.f32 %v2272_v28, %v2273_v22  ;;  %v11704_v43 = vmax.f32 %v11660_v47, %v2260_v36  ;;  %v2280_v14 = vrot.slane %v2279_v25, 1 }
 0x2bd   :  { %9659 = vpow2.f32 %v3162_v61  ;;  %v11710_v29 = vmax.f32 %v11662_v23, %v2267_v32  ;;  %v442_v0 = vadd.f32 %v11715_v50, %v441_v24  ;;  %v3166_v47 = vmul.f32 1.442695, %v2948_v27  ;;  %v4252_v61 = vld [vmem:[%s14496_s1 + $0x28] sm:$0xff] }
 0x2be   :  { %9661 = vpow2.f32 %v3164_v7  ;;  %v3168_v30 = vmul.f32 1.442695, %v2949_v42  ;;  %v11719_v16 = vmax.f32 %v11669_v35, %v2274_v15  ;;  %v2281_v6 = vmax.f32 %v2279_v25, %v2280_v14  ;;  %v4546_v7 = vld [vmem:[%s14496_s1 + $0x48] sm:$0xff]  ;;  %4315 = vmatpush.msrb.mxu3 %v4252_v61  ;;  %v6154_v42 = vld [vmem:[#allocation2 + $0xc0] sm:$0xff] }
 0x2bf   :  { %v2950_v20 = vsub.f32 0.0, %v11704_v43  ;;  %v2951_v53 = vsub.f32 0.0, %v11710_v29  ;;  %v697_v23 = vrot.slane %v442_v0, 2  ;;  %9663 = vpow2.f32 %v3166_v47  ;;  %v4841_v32 = vld [vmem:[%s14496_s1 + $0x68] sm:$0xff]  ;;  %4609 = vmatpush.msra.mxu2 %v4546_v7  ;;  %v4545_v47 = vld [vmem:[%s14496_s1 + $0x40] sm:$0xff] }
 0x2c0   :  { %v2952_v45 = vsub.f32 0.0, %v11719_v16  ;;  %v698_v52 = vrot.slane %v442_v0, 4  ;;  %v699_v26 = vrot.slane %v442_v0, 6  ;;  %9665 = vpow2.f32 %v3168_v30  ;;  %4904 = vmatpush.msra.mxu1 %v4841_v32  ;;  %v4840_v30 = vld [vmem:[%s14496_s1 + $0x60] sm:$0xff] }
 0x2c1   :  { %v11725_v11 = vmax.f32 %v11672_v55, %v2281_v6  ;;  %v3170_v62 = vmul.f32 1.442695, %v2950_v20  ;;  %v3172_v59 = vmul.f32 1.442695, %v2951_v53  ;;  %v2282_v35 = vsel %vm937_vm2, %v442_v0, -inf  ;;  %9089 = vmatmul.msk.f32.gmra.mxu0 %vm3626_vm1, %v6153_v31  ;;  %v444_v56 = vpop.f32.mrf.mxu0  ;;  %v4251_v0 = vld [vmem:[%s14496_s1 + $0x20] sm:$0xff]  ;;  %4610 = vmatpush.msra.mxu2 %v4545_v47  ;;  %v11786_v47 = vpop.f32.mrf.mxu2 }
 0x2c2   :  { %v3174_v21 = vmul.f32 1.442695, %v2952_v45  ;;  %v2289_v34 = vsel %vm937_vm2, %v697_v23, -inf  ;;  %v2296_v51 = vsel %vm937_vm2, %v698_v52, -inf  ;;  %v2283_v49 = vrot.slane %v2282_v35, 4  ;;  %v11733_v8 = vpop.f32.mrf.mxu1  ;;  %4316 = vmatpush.msrb.mxu3 %v4251_v0  ;;  %4905 = vmatpush.msra.mxu1 %v4840_v30 }
 0x2c3   :  { %v9660_v39 = vpop.eup %9659  ;;  %v2953_v1 = vsub.f32 0.0, %v11725_v11  ;;  %9667 = vpow2.f32 %v3170_v62  ;;  %v2290_v55 = vrot.slane %v2289_v34, 4  ;;  %v2297_v17 = vrot.slane %v2296_v51, 4 }
 0x2c4   :  { %v9662_v38 = vpop.eup %9661  ;;  %v3330_v46 = vadd.f32 1.0, %v9660_v39  ;;  %9669 = vpow2.f32 %v3172_v59  ;;  %v2303_v60 = vsel %vm937_vm2, %v699_v26, -inf  ;;  %v2284_v40 = vmax.f32 %v2282_v35, %v2283_v49 }
 0x2c5   :  { %v3331_v41 = vadd.f32 1.0, %v9662_v38  ;;  %9671 = vpow2.f32 %v3174_v21  ;;  %v3176_v4 = vmul.f32 1.442695, %v2953_v1  ;;  %v9664_v58 = vpop.eup %9663  ;;  %v445_v28 = vadd.f32 %v11715_v50, %v444_v56 }
 0x2c6   :  { %9673 = vrcp.f32 %v3330_v46  ;;  %v9666_v63 = vpop.eup %9665  ;;  %v3332_v2 = vadd.f32 1.0, %v9664_v58  ;;  %v11736_v12 = vmax.f32 %v2289_v34, %v2290_v55  ;;  %v11738_v3 = vmax.f32 %v2296_v51, %v2297_v17 }
 0x2c7   :  { %9675 = vrcp.f32 %v3331_v41  ;;  %v3333_v37 = vadd.f32 1.0, %v9666_v63  ;;  %v2304_v10 = vrot.slane %v2303_v60, 4  ;;  %v2285_v27 = vrot.slane %v2284_v40, 2 }
 0x2c8   :  { %9677 = vpow2.f32 %v3176_v4  ;;  %v700_v14 = vrot.slane %v445_v28, 2  ;;  %v2292_v20 = vrot.slane %v11736_v12, 2  ;;  %v2299_v53 = vrot.slane %v11738_v3, 2 }
 0x2c9   :  { %v9668_v5 = vpop.eup %9667  ;;  %9679 = vrcp.f32 %v3332_v2  ;;  %9090 = vmatmul.msk.f32.gmra.mxu0 %vm3626_vm1, %v6154_v42  ;;  %v2305_v23 = vmax.f32 %v2303_v60, %v2304_v10  ;;  %v701_v62 = vrot.slane %v445_v28, 4  ;;  %v11763_v35 = vmax.f32 %v2284_v40, %v2285_v27  ;;  %v447_v41 = vpop.f32.mrf.mxu0 }
 0x2ca   :  { %v9670_v36 = vpop.eup %9669  ;;  %9681 = vrcp.f32 %v3333_v37  ;;  %v3334_v22 = vadd.f32 1.0, %v9668_v5  ;;  %v702_v34 = vrot.slane %v445_v28, 6  ;;  %v2310_v51 = vsel %vm937_vm2, %v445_v28, -inf  ;;  %v11769_v38 = vpop.f32.mrf.mxu1 }
 0x2cb   :  { %v9672_v25 = vpop.eup %9671  ;;  %v3335_v9 = vadd.f32 1.0, %v9670_v36  ;;  %v2311_v31 = vrot.slane %v2310_v51, 4  ;;  %v2306_v46 = vrot.slane %v2305_v23, 2  ;;  %v2324_v60 = vsel %vm937_vm2, %v701_v62, -inf }
 0x2cc   :  { %v9674_v15 = vpop.eup %9673  ;;  %v3336_v24 = vadd.f32 1.0, %v9672_v25  ;;  %9683 = vrcp.f32 %v3334_v22  ;;  %v2325_v37 = vrot.slane %v2324_v60, 4  ;;  %v448_v22 = vadd.f32 %v11715_v50, %v447_v41 }
 0x2cd   :  { %v9676_v6 = vpop.eup %9675  ;;  %9685 = vrcp.f32 %v3335_v9  ;;  %v3586_v52 = vmul.f32 %v9674_v15, %v11687_v44  ;;  %v2317_v44 = vsel %vm937_vm2, %v700_v14, -inf  ;;  %v2312_v58 = vmax.f32 %v2310_v51, %v2311_v31 }
 0x2ce   :  { %v9678_v45 = vpop.eup %9677  ;;  %v3587_v26 = vmul.f32 %v9676_v6, %v11690_v18  ;;  %9687 = vrcp.f32 %v3336_v24  ;;  %v2318_v55 = vrot.slane %v2317_v44, 4  ;;  %v2293_v32 = vmax.f32 %v11736_v12, %v2292_v20 }
 0x2cf   :  { %v9680_v59 = vpop.eup %9679  ;;  %v3337_v21 = vadd.f32 1.0, %v9678_v45  ;;  %v2313_v10 = vrot.slane %v2312_v58, 2  ;;  %v2326_v9 = vmax.f32 %v2324_v60, %v2325_v37  ;;  %v703_v42 = vrot.slane %v448_v22, 2 }
 0x2d0   :  { %v9682_v39 = vpop.eup %9681  ;;  %v3588_v1 = vmul.f32 %v9680_v59, %v11696_v33  ;;  %v3906_v49 = vsel %vm3822_vm3, %v3587_v26, %v3586_v52  ;;  %v2331_v33 = vsel %vm937_vm2, %v702_v34, -inf  ;;  %v2319_v56 = vmax.f32 %v2317_v44, %v2318_v55 }
 0x2d1   :  { %v3589_v18 = vmul.f32 %v9682_v39, %v11699_v13  ;;  %9689 = vrcp.f32 %v3337_v21  ;;  %v6155_v13 = vld [vmem:[#allocation2 + $0xd0] sm:$0xff]  ;;  %v2332_v36 = vrot.slane %v2331_v33, 4  ;;  %v2300_v24 = vmax.f32 %v11738_v3, %v2299_v53  ;;  %v450_v39 = vpop.f32.mrf.mxu0 }
 0x2d2   :  { %v9684_v4 = vpop.eup %9683  ;;  %v3907_v17 = vsel %vm3824_vm4, %v3588_v1, %v3906_v49  ;;  %9091 = vmatmul.msk.f32.gmra.mxu0 %vm3626_vm1, %v6155_v13  ;;  %v2320_v25 = vrot.slane %v2319_v56, 2  ;;  %v2307_v14 = vmax.f32 %v2305_v23, %v2306_v46  ;;  %v704_v0 = vrot.slane %v448_v22, 4  ;;  %v11790_v20 = vpop.f32.mrf.mxu1 }
 0x2d3   :  { %v9686_v63 = vpop.eup %9685  ;;  %v3908_v2 = vsel %vm3826_vm5, %v3589_v18, %v3907_v17  ;;  %v3590_v40 = vmul.f32 %v9684_v4, %v11704_v43  ;;  %v2333_v27 = vmax.f32 %v2331_v33, %v2332_v36  ;;  %v2287_v30 = vrot.slane %v11763_v35, 1 }
 0x2d4   :  { %v9688_v28 = vpop.eup %9687  ;;  %v3591_v5 = vmul.f32 %v9686_v63, %v11710_v29  ;;  %v2314_v12 = vmax.f32 %v2312_v58, %v2313_v10  ;;  %v705_v6 = vrot.slane %v448_v22, 6  ;;  %v2294_v45 = vrot.slane %v2293_v32, 1 }
 0x2d5   :  { %v3592_v61 = vmul.f32 %v9688_v28, %v11719_v16  ;;  %v3909_v7 = vsel %vm3828_vm6, %v3590_v40, %v3908_v2  ;;  %v2321_v52 = vmax.f32 %v2319_v56, %v2320_v25  ;;  %v2338_v26 = vsel %vm937_vm2, %v448_v22, -inf  ;;  %v11812_v22 = vpop.f32.mrf.mxu2 }
 0x2d6   :  { %v3910_v43 = vsel %vm3830_vm7, %v3591_v5, %v3909_v7  ;;  %v2345_v62 = vsel %vm937_vm2, %v703_v42, -inf  ;;  %v2327_v53 = vrot.slane %v2326_v9, 2  ;;  %v2334_v23 = vrot.slane %v2333_v27, 2  ;;  %14510 = vst [vmem:[#allocation3_spill] sm:$0xff] %v11812_v22 }
 0x2d7   :  { %v9690_v15 = vpop.eup %9689  ;;  %v3911_v29 = vsel %vm3832_vm8, %v3592_v61, %v3910_v43  ;;  %v2339_v59 = vrot.slane %v2338_v26, 4  ;;  %v2308_v21 = vrot.slane %v2307_v14, 1  ;;  %v2346_v34 = vrot.slane %v2345_v62, 4 }
 0x2d8   :  { %v3593_v16 = vmul.f32 %v9690_v15, %v11725_v11  ;;  %v2301_v11 = vrot.slane %v2300_v24, 1  ;;  %v2352_v51 = vsel %vm937_vm2, %v704_v0, -inf  ;;  %v2315_v1 = vrot.slane %v2314_v12, 1 }
 0x2d9   :  { %v2340_v49 = vmax.f32 %v2338_v26, %v2339_v59  ;;  %v2353_v31 = vrot.slane %v2352_v51, 4  ;;  %v2359_v44 = vsel %vm937_vm2, %v705_v6, -inf  ;;  %v2288_v18 = vmax.f32 %v11763_v35, %v2287_v30  ;;  %v453_v26 = vpop.f32.mrf.mxu0 }
 0x2da   :  { %v3912_v3 = vsel %vm3834_vm9, %v3593_v16, %v3911_v29  ;;  %9092 = vmatmul.msk.f32.gmra.mxu0 %vm3626_vm1, %v11681_v19  ;;  %v2322_v46 = vrot.slane %v2321_v52, 1  ;;  %v2347_v55 = vmax.f32 %v2345_v62, %v2346_v34  ;;  %v2360_v41 = vrot.slane %v2359_v44, 4  ;;  %v11807_v28 = vpop.f32.mrf.mxu1 }
 0x2db   :  { %3968 = vst.msk [vmem:[#allocation2 + $0x174] sm:$0xff] %vm3626_vm1, %v3912_v3  ;;  %v11801_v4 = vmax.f32 %v2326_v9, %v2327_v53  ;;  %v11803_v17 = vmax.f32 %v2333_v27, %v2334_v23  ;;  %v2341_v58 = vrot.slane %v2340_v49, 2  ;;  %v2354_v60 = vmax.f32 %v2352_v51, %v2353_v31  ;;  %v4235_v31 = vld [vmem:[#allocation2 + $0x4] sm:$0xff] }
 0x2dc   :  { %v2295_v33 = vmax.f32 %v2293_v32, %v2294_v45  ;;  %v2302_v63 = vmax.f32 %v2300_v24, %v2301_v11  ;;  %v2348_v2 = vrot.slane %v2347_v55, 2  ;;  %v2361_v40 = vmax.f32 %v2359_v44, %v2360_v41  ;;  %v4529_v44 = vld [vmem:[#allocation2 + $0x8] sm:$0xff] }
 0x2dd   :  { %v2309_v56 = vmax.f32 %v2307_v14, %v2308_v21  ;;  %v11805_v37 = vmax.f32 %v2314_v12, %v2315_v1  ;;  %v2342_v13 = vmax.f32 %v2340_v49, %v2341_v58  ;;  %v2355_v19 = vrot.slane %v2354_v60, 2 }
 0x2de   :  { %v11809_v35 = vmax.f32 %v2321_v52, %v2322_v46  ;;  %v2349_v5 = vmax.f32 %v2347_v55, %v2348_v2  ;;  %v2362_v10 = vrot.slane %v2361_v40, 2  ;;  %v451_v36 = vadd.f32 %v11715_v50, %v450_v39 }
 0x2df   :  { %v2329_v61 = vrot.slane %v11801_v4, 1  ;;  %v2336_v7 = vrot.slane %v11803_v17, 1  ;;  %v2343_v32 = vrot.slane %v2342_v13, 1  ;;  %v2356_v25 = vmax.f32 %v2354_v60, %v2355_v19  ;;  %v4824_v60 = vld [vmem:[#allocation2 + $0x22] sm:$0xff] }
 0x2e0   :  { %v2350_v42 = vrot.slane %v2349_v5, 1  ;;  %v2363_v15 = vmax.f32 %v2361_v40, %v2362_v10  ;;  %v706_v29 = vrot.slane %v451_v36, 2  ;;  %v707_v24 = vrot.slane %v451_v36, 4 }
 0x2e1   :  { %v2344_v14 = vmax.f32 %v2342_v13, %v2343_v32  ;;  %v2357_v0 = vrot.slane %v2356_v25, 1  ;;  %v708_v16 = vrot.slane %v451_v36, 6  ;;  %v2366_v30 = vsel %vm937_vm2, %v451_v36, -inf }
 0x2e2   :  { %v4006_v43 = vld [vmem:[#allocation2 + $0x172] sm:$0xff]  ;;  %v2351_v12 = vmax.f32 %v2349_v5, %v2350_v42  ;;  %v2364_v6 = vrot.slane %v2363_v15, 1  ;;  %v2367_v45 = vrot.slane %v2366_v30, 4  ;;  %v2373_v52 = vsel %vm937_vm2, %v706_v29, -inf  ;;  %v11831_v46 = vpop.f32.mrf.mxu1 }
 0x2e3   :  { %v3988_v9 = vld [vmem:[#allocation2 + $0x170] sm:$0xff]  ;;  %8859 = vmatmul.msk.f32.gmra.mxu3 %vm3626_vm1, %v4006_v43  ;;  %v2358_v62 = vmax.f32 %v2356_v25, %v2357_v0  ;;  %v11822_v3 = vmax.f32 %v2288_v18, %v2344_v14  ;;  %v2374_v53 = vrot.slane %v2373_v52, 4  ;;  %v2380_v23 = vsel %vm937_vm2, %v707_v24, -inf }
 0x2e4   :  { %v4397_v27 = vld [vmem:[#allocation2 + $0x176] sm:$0xff]  ;;  %8875 = vmatmul.msk.f32.gmra.mxu2 %vm3626_vm1, %v3988_v9  ;;  %9093 = vmatmul.msk.f32.gmra.mxu0 %vm3626_vm1, %v3988_v9  ;;  %v2365_v59 = vmax.f32 %v2363_v15, %v2364_v6  ;;  %v11825_v11 = vmax.f32 %v2295_v33, %v2351_v12  ;;  %v2368_v21 = vmax.f32 %v2366_v30, %v2367_v45  ;;  %v2381_v34 = vrot.slane %v2380_v23, 4 }
 0x2e5   :  { %8907 = vmatmul.msk.f32.gmra.mxu1 %vm3626_vm1, %v4397_v27  ;;  %v11827_v51 = vmax.f32 %v2302_v63, %v2358_v62  ;;  %v2954_v39 = vsub.f32 0.0, %v11822_v3  ;;  %v2375_v1 = vmax.f32 %v2373_v52, %v2374_v53  ;;  %v2387_v49 = vsel %vm937_vm2, %v708_v16, -inf  ;;  %v456_v16 = vpop.f32.mrf.mxu0  ;;  %v4236_v45 = vld [vmem:[#allocation2 + $0x14] sm:$0xff] }
 0x2e6   :  { %v11833_v18 = vmax.f32 %v2309_v56, %v2365_v59  ;;  %v2955_v55 = vsub.f32 0.0, %v11825_v11  ;;  %v2369_v41 = vrot.slane %v2368_v21, 2  ;;  %v2382_v58 = vmax.f32 %v2380_v23, %v2381_v34  ;;  %v11840_v56 = vpop.f32.mrf.mxu2  ;;  %v4530_v52 = vld [vmem:[#allocation2 + $0x18] sm:$0xff] }
 0x2e7   :  { %v2956_v33 = vsub.f32 0.0, %v11827_v51  ;;  %v3178_v63 = vmul.f32 1.442695, %v2954_v39  ;;  %v2376_v2 = vrot.slane %v2375_v1, 2  ;;  %v2388_v40 = vrot.slane %v2387_v49, 4  ;;  %14511 = vst [vmem:[#allocation4_spill] sm:$0xff] %v11840_v56 }
 0x2e8   :  { %v2957_v13 = vsub.f32 0.0, %v11833_v18  ;;  %v3180_v19 = vmul.f32 1.442695, %v2955_v55  ;;  %v2370_v5 = vmax.f32 %v2368_v21, %v2369_v41  ;;  %v2383_v10 = vrot.slane %v2382_v58, 2  ;;  %v4825_v23 = vld [vmem:[#allocation2 + $0x32] sm:$0xff] }
 0x2e9   :  { %9691 = vpow2.f32 %v3178_v63  ;;  %v3182_v36 = vmul.f32 1.442695, %v2956_v33  ;;  %v2377_v32 = vmax.f32 %v2375_v1, %v2376_v2  ;;  %v2389_v25 = vmax.f32 %v2387_v49, %v2388_v40 }
 0x2ea   :  { %9693 = vpow2.f32 %v3180_v19  ;;  %v3184_v43 = vmul.f32 1.442695, %v2957_v13  ;;  %v2371_v9 = vrot.slane %v2370_v5, 1  ;;  %v2384_v27 = vmax.f32 %v2382_v58, %v2383_v10 }
 0x2eb   :  { %8876 = vmatmul.msk.f32.vlgmr.msrb.gmra.mxu3 %vm3626_vm1, %v4235_v31  ;;  %v2330_v42 = vmax.f32 %v11801_v4, %v2329_v61  ;;  %9695 = vpow2.f32 %v3182_v36  ;;  %v2378_v15 = vrot.slane %v2377_v32, 1  ;;  %v2390_v29 = vrot.slane %v2389_v25, 2 }
 0x2ec   :  { %8908 = vmatmul.msk.f32.vlgmr.msra.gmra.mxu2 %vm3626_vm1, %v4529_v44  ;;  %9697 = vpow2.f32 %v3184_v43  ;;  %v2372_v24 = vmax.f32 %v2370_v5, %v2371_v9  ;;  %v2385_v14 = vrot.slane %v2384_v27, 1  ;;  %v454_v0 = vadd.f32 %v11715_v50, %v453_v26 }
 0x2ed   :  { %8940 = vmatmul.msk.f32.vlgmr.msra.gmra.mxu1 %vm3626_vm1, %v4824_v60  ;;  %v2337_v30 = vmax.f32 %v11803_v17, %v2336_v7  ;;  %v2379_v12 = vmax.f32 %v2377_v32, %v2378_v15  ;;  %v2391_v6 = vmax.f32 %v2389_v25, %v2390_v29  ;;  %v11857_v7 = vpop.f32.mrf.mxu1 }
 0x2ee   :  { %v2386_v62 = vmax.f32 %v2384_v27, %v2385_v14  ;;  %v11851_v4 = vmax.f32 %v11805_v37, %v2372_v24  ;;  %v709_v61 = vrot.slane %v454_v0, 2  ;;  %v710_v53 = vrot.slane %v454_v0, 4  ;;  %v11868_v40 = vpop.f32.mrf.mxu2  ;;  %v4237_v27 = vld [vmem:[#allocation2 + $0x24] sm:$0xff]  ;;  %v11875_v14 = vpop.f32.mrf.mxu0 }
 0x2ef   :  { %v9692_v59 = vpop.eup %9691  ;;  %v2392_v21 = vrot.slane %v2391_v6, 1  ;;  %v11854_v26 = vmax.f32 %v11809_v35, %v2379_v12  ;;  %v711_v34 = vrot.slane %v454_v0, 6  ;;  %v2394_v39 = vsel %vm937_vm2, %v454_v0, -inf  ;;  %14512 = vst [vmem:[#allocation5_spill] sm:$0xff] %v11868_v40 }
 0x2f0   :  { %v9694_v17 = vpop.eup %9693  ;;  %v3338_v1 = vadd.f32 1.0, %v9692_v59  ;;  %v11859_v49 = vmax.f32 %v2330_v42, %v2386_v62  ;;  %v2958_v37 = vsub.f32 0.0, %v11851_v4  ;;  %v2395_v31 = vrot.slane %v2394_v39, 4  ;;  %v4531_v42 = vld [vmem:[#allocation2 + $0x28] sm:$0xff] }
 0x2f1   :  { %v9696_v44 = vpop.eup %9695  ;;  %v3339_v55 = vadd.f32 1.0, %v9694_v17  ;;  %v2393_v35 = vmax.f32 %v2391_v6, %v2392_v21  ;;  %v2959_v41 = vsub.f32 0.0, %v11854_v26  ;;  %v2401_v58 = vsel %vm937_vm2, %v709_v61, -inf  ;;  %v4826_v61 = vld [vmem:[#allocation2 + $0x42] sm:$0xff] }
 0x2f2   :  { %v9698_v60 = vpop.eup %9697  ;;  %v3340_v33 = vadd.f32 1.0, %v9696_v44  ;;  %9699 = vrcp.f32 %v3338_v1  ;;  %v2960_v63 = vsub.f32 0.0, %v11859_v49  ;;  %v3186_v2 = vmul.f32 1.442695, %v2958_v37 }
 0x2f3   :  { %8877 = vmatmul.msk.f32.gmra.mxu3 %vm3626_vm1, %v4236_v45  ;;  %v3341_v13 = vadd.f32 1.0, %v9698_v60  ;;  %9701 = vrcp.f32 %v3339_v55  ;;  %v11870_v19 = vmax.f32 %v2337_v30, %v2393_v35  ;;  %v3188_v5 = vmul.f32 1.442695, %v2959_v41 }
 0x2f4   :  { %8909 = vmatmul.msk.f32.gmra.mxu2 %vm3626_vm1, %v4530_v52  ;;  %9703 = vrcp.f32 %v3340_v33  ;;  %v3190_v10 = vmul.f32 1.442695, %v2960_v63  ;;  %v2396_v36 = vmax.f32 %v2394_v39, %v2395_v31  ;;  %v2402_v32 = vrot.slane %v2401_v58, 4 }
 0x2f5   :  { %8941 = vmatmul.msk.f32.gmra.mxu1 %vm3626_vm1, %v4825_v23  ;;  %9705 = vrcp.f32 %v3341_v13  ;;  %v2961_v25 = vsub.f32 0.0, %v11870_v19  ;;  %v2408_v43 = vsel %vm937_vm2, %v710_v53, -inf  ;;  %v2415_v9 = vsel %vm937_vm2, %v711_v34, -inf }
 0x2f6   :  { %9707 = vpow2.f32 %v3186_v2  ;;  %v2397_v15 = vrot.slane %v2396_v36, 2  ;;  %v2403_v29 = vmax.f32 %v2401_v58, %v2402_v32  ;;  %v2409_v24 = vrot.slane %v2408_v43, 4  ;;  %v11894_v33 = vpop.f32.mrf.mxu2 }
 0x2f7   :  { %9709 = vpow2.f32 %v3188_v5  ;;  %v3192_v0 = vmul.f32 1.442695, %v2961_v25  ;;  %v2416_v30 = vrot.slane %v2415_v9, 4  ;;  %v11878_v12 = vadd.f32 %v11715_v50, %v456_v16  ;;  %v11884_v16 = vpop.f32.mrf.mxu1  ;;  %v4238_v5 = vld [vmem:[#allocation2 + $0x34] sm:$0xff] }
 0x2f8   :  { %v9700_v6 = vpop.eup %9699  ;;  %9711 = vpow2.f32 %v3190_v10  ;;  %v2398_v45 = vmax.f32 %v2396_v36, %v2397_v15  ;;  %v2404_v52 = vrot.slane %v2403_v29, 2  ;;  %v2410_v62 = vmax.f32 %v2408_v43, %v2409_v24  ;;  %v4532_v10 = vld [vmem:[#allocation2 + $0x38] sm:$0xff] }
 0x2f9   :  { %v9702_v53 = vpop.eup %9701  ;;  %v3594_v23 = vmul.f32 %v9700_v6, %v11822_v3  ;;  %9713 = vpow2.f32 %v3192_v0  ;;  %v2417_v59 = vmax.f32 %v2415_v9, %v2416_v30  ;;  %v712_v44 = vrot.slane %v11878_v12, 2  ;;  %v462_v30 = vpop.f32.mrf.mxu0 }
 0x2fa   :  { %v9704_v21 = vpop.eup %9703  ;;  %v3595_v34 = vmul.f32 %v9702_v53, %v11825_v11  ;;  %v2405_v39 = vmax.f32 %v2403_v29, %v2404_v52  ;;  %v2411_v17 = vrot.slane %v2410_v62, 2  ;;  %v2422_v3 = vsel %vm937_vm2, %v11878_v12, -inf }
 0x2fb   :  { %8878 = vmatmul.msk.f32.gmra.mxu3 %vm3626_vm1, %v4237_v27  ;;  %v9706_v1 = vpop.eup %9705  ;;  %v3596_v37 = vmul.f32 %v9704_v21, %v11827_v51  ;;  %v2418_v31 = vrot.slane %v2417_v59, 2  ;;  %v2399_v41 = vrot.slane %v2398_v45, 1  ;;  %v713_v58 = vrot.slane %v11878_v12, 4 }
 0x2fc   :  { %8910 = vmatmul.msk.f32.gmra.mxu2 %vm3626_vm1, %v4531_v42  ;;  %v9708_v55 = vpop.eup %9707  ;;  %v3913_v35 = vsel %vm3822_vm3, %v3595_v34, %v3594_v23  ;;  %v714_v60 = vrot.slane %v11878_v12, 6  ;;  %v3597_v63 = vmul.f32 %v9706_v1, %v11833_v18  ;;  %v2412_v2 = vmax.f32 %v2410_v62, %v2411_v17  ;;  %v4827_v12 = vld [vmem:[#allocation2 + $0x52] sm:$0xff] }
 0x2fd   :  { %8942 = vmatmul.msk.f32.gmra.mxu1 %vm3626_vm1, %v4826_v61  ;;  %v9710_v11 = vpop.eup %9709  ;;  %v3342_v51 = vadd.f32 1.0, %v9708_v55  ;;  %v2419_v13 = vmax.f32 %v2417_v59, %v2418_v31  ;;  %v3914_v32 = vsel %vm3824_vm4, %v3596_v37, %v3913_v35  ;;  %v2406_v43 = vrot.slane %v2405_v39, 1 }
 0x2fe   :  { %v9712_v36 = vpop.eup %9711  ;;  %v3343_v25 = vadd.f32 1.0, %v9710_v11  ;;  %v2423_v9 = vrot.slane %v2422_v3, 4  ;;  %v2413_v15 = vrot.slane %v2412_v2, 1  ;;  %v2429_v18 = vsel %vm937_vm2, %v712_v44, -inf }
 0x2ff   :  { %v9714_v27 = vpop.eup %9713  ;;  %v3344_v42 = vadd.f32 1.0, %v9712_v36  ;;  %9715 = vrcp.f32 %v3342_v51  ;;  %v2420_v29 = vrot.slane %v2419_v13, 1  ;;  %v3915_v6 = vsel %vm3826_vm5, %v3597_v63, %v3914_v32  ;;  %v11909_v1 = vpop.f32.mrf.mxu1  ;;  %v4239_v32 = vld [vmem:[#allocation2 + $0x44] sm:$0xff] }
 0x300   :  { %v3345_v24 = vadd.f32 1.0, %v9714_v27  ;;  %9717 = vrcp.f32 %v3343_v25  ;;  %v2424_v0 = vmax.f32 %v2422_v3, %v2423_v9  ;;  %v11902_v52 = vmax.f32 %v2398_v45, %v2399_v41  ;;  %v4533_v25 = vld [vmem:[#allocation2 + $0x48] sm:$0xff] }
 0x301   :  { %9719 = vrcp.f32 %v3344_v42  ;;  %v2430_v62 = vrot.slane %v2429_v18, 4  ;;  %v2436_v53 = vsel %vm937_vm2, %v713_v58, -inf  ;;  %v2443_v23 = vsel %vm937_vm2, %v714_v60, -inf }
 0x302   :  { %9721 = vrcp.f32 %v3345_v24  ;;  %v2425_v61 = vrot.slane %v2424_v0, 2  ;;  %v2437_v21 = vrot.slane %v2436_v53, 4  ;;  %v2444_v34 = vrot.slane %v2443_v23, 4 }
 0x303   :  { %8879 = vmatmul.msk.f32.gmra.mxu3 %vm3626_vm1, %v4238_v5  ;;  %v2431_v59 = vmax.f32 %v2429_v18, %v2430_v62  ;;  %v460_v17 = vadd.f32 %v11715_v50, %v11875_v14  ;;  %v11911_v37 = vmax.f32 %v2405_v39, %v2406_v43  ;;  %v11913_v45 = vmax.f32 %v2412_v2, %v2413_v15  ;;  %v11921_v5 = vpop.f32.mrf.mxu2  ;;  %v4828_v15 = vld [vmem:[#allocation2 + $0x62] sm:$0xff] }
 0x304   :  { %8911 = vmatmul.msk.f32.gmra.mxu2 %vm3626_vm1, %v4532_v10  ;;  %v11915_v31 = vmax.f32 %v2419_v13, %v2420_v29  ;;  %v2426_v44 = vmax.f32 %v2424_v0, %v2425_v61  ;;  %v2438_v35 = vmax.f32 %v2436_v53, %v2437_v21  ;;  %v2445_v41 = vmax.f32 %v2443_v23, %v2444_v34 }
 0x305   :  { %8943 = vmatmul.msk.f32.gmra.mxu1 %vm3626_vm1, %v4827_v12  ;;  %v9716_v3 = vpop.eup %9715  ;;  %v2432_v55 = vrot.slane %v2431_v59, 2  ;;  %v11918_v58 = vadd.f32 %v11715_v50, %v462_v30  ;;  %v715_v63 = vrot.slane %v460_v17, 2  ;;  %v716_v51 = vrot.slane %v460_v17, 4 }
 0x306   :  { %v9718_v60 = vpop.eup %9717  ;;  %v3598_v11 = vmul.f32 %v9716_v3, %v11851_v4  ;;  %v2427_v14 = vrot.slane %v2426_v44, 1  ;;  %v2439_v10 = vrot.slane %v2438_v35, 2  ;;  %v2446_v36 = vrot.slane %v2445_v41, 2 }
 0x307   :  { %v9720_v39 = vpop.eup %9719  ;;  %v3599_v2 = vmul.f32 %v9718_v60, %v11854_v26  ;;  %v2433_v13 = vmax.f32 %v2431_v59, %v2432_v55  ;;  %v717_v42 = vrot.slane %v460_v17, 6  ;;  %v2450_v4 = vsel %vm937_vm2, %v460_v17, -inf }
 0x308   :  { %v9722_v43 = vpop.eup %9721  ;;  %v3600_v9 = vmul.f32 %v9720_v39, %v11859_v49  ;;  %v3916_v27 = vsel %vm3828_vm6, %v3598_v11, %v3915_v6  ;;  %v2440_v0 = vmax.f32 %v2438_v35, %v2439_v10  ;;  %v11933_v18 = vmax.f32 %v2445_v41, %v2446_v36  ;;  %v465_v6 = vpop.f32.mrf.mxu0 }
 0x309   :  { %v3601_v26 = vmul.f32 %v9722_v43, %v11870_v19  ;;  %v3917_v29 = vsel %vm3830_vm7, %v3599_v2, %v3916_v27  ;;  %v2434_v24 = vrot.slane %v2433_v13, 1  ;;  %v2451_v30 = vrot.slane %v2450_v4, 4  ;;  %v11947_v41 = vpop.f32.mrf.mxu1  ;;  %v4240_v2 = vld [vmem:[#allocation2 + $0x54] sm:$0xff] }
 0x30a   :  { %v3918_v49 = vsel %vm3832_vm8, %v3600_v9, %v3917_v29  ;;  %v2457_v12 = vsel %vm937_vm2, %v715_v63, -inf  ;;  %v11937_v61 = vmax.f32 %v2426_v44, %v2427_v14  ;;  %v11940_v19 = vadd.f32 %v11715_v50, %v465_v6  ;;  %v4829_v43 = vld [vmem:[#allocation2 + $0x72] sm:$0xff] }
 0x30b   :  { %8880 = vmatmul.msk.f32.gmra.mxu3 %vm3626_vm1, %v4239_v32  ;;  %v3919_v62 = vsel %vm3834_vm9, %v3601_v26, %v3918_v49  ;;  %v2458_v53 = vrot.slane %v2457_v12, 4  ;;  %v11943_v23 = vmax.f32 %v2433_v13, %v2434_v24  ;;  %v2452_v59 = vmax.f32 %v2450_v4, %v2451_v30  ;;  %v4534_v13 = vld [vmem:[#allocation2 + $0x58] sm:$0xff]  ;;  %v11959_v9 = vpop.f32.mrf.mxu2 }
 0x30c   :  { %8912 = vmatmul.msk.f32.gmra.mxu2 %vm3626_vm1, %v4533_v25  ;;  %3969 = vst.msk [vmem:[#allocation2 + $0x184] sm:$0xff] %vm3626_vm1, %v3919_v62  ;;  %v2464_v21 = vsel %vm937_vm2, %v716_v51, -inf  ;;  %v2471_v34 = vsel %vm937_vm2, %v717_v42, -inf  ;;  %v2441_v17 = vrot.slane %v2440_v0, 1  ;;  %v2448_v44 = vrot.slane %v11933_v18, 1 }
 0x30d   :  { %8944 = vmatmul.msk.f32.gmra.mxu1 %vm3626_vm1, %v4828_v15  ;;  %v2459_v3 = vmax.f32 %v2457_v12, %v2458_v53  ;;  %v2465_v55 = vrot.slane %v2464_v21, 4  ;;  %v2472_v35 = vrot.slane %v2471_v34, 4  ;;  %v2453_v60 = vrot.slane %v2452_v59, 2 }
 0x30e   :  { %v718_v50 = vrot.slane %v11918_v58, 2  ;;  %v719_v11 = vrot.slane %v11918_v58, 4  ;;  %v720_v51 = vrot.slane %v11918_v58, 6  ;;  %v2478_v36 = vsel %vm937_vm2, %v11918_v58, -inf  ;;  %v4694_v58 = vld [vmem:[%s14496_s1 + $0x58] sm:$0xff] }
 0x30f   :  { %v2460_v14 = vrot.slane %v2459_v3, 2  ;;  %v2466_v63 = vmax.f32 %v2464_v21, %v2465_v55  ;;  %v2473_v39 = vmax.f32 %v2471_v34, %v2472_v35  ;;  %v2454_v10 = vmax.f32 %v2452_v59, %v2453_v60  ;;  %4757 = vmatpush.msra.mxu3 %v4694_v58 }
 0x310   :  { %v2485_v32 = vsel %vm937_vm2, %v718_v50, -inf  ;;  %v2492_v25 = vsel %vm937_vm2, %v719_v11, -inf  ;;  %v2479_v15 = vrot.slane %v2478_v36, 4  ;;  %v2442_v26 = vmax.f32 %v2440_v0, %v2441_v17 }
 0x311   :  { %v2461_v27 = vmax.f32 %v2459_v3, %v2460_v14  ;;  %v2467_v42 = vrot.slane %v2466_v63, 2  ;;  %v2474_v4 = vrot.slane %v2473_v39, 2  ;;  %v2455_v29 = vrot.slane %v2454_v10, 1  ;;  %v11969_v14 = vpop.f32.mrf.mxu0 }
 0x312   :  { %v2486_v24 = vrot.slane %v2485_v32, 4  ;;  %v2493_v49 = vrot.slane %v2492_v25, 4  ;;  %v2480_v62 = vmax.f32 %v2478_v36, %v2479_v15  ;;  %v2499_v34 = vsel %vm937_vm2, %v720_v51, -inf  ;;  %v4535_v51 = vld [vmem:[#allocation2 + $0x68] sm:$0xff]  ;;  %v11974_v36 = vpop.f32.mrf.mxu1 }
 0x313   :  { %8881 = vmatmul.msk.f32.gmra.mxu3 %vm3626_vm1, %v4240_v2  ;;  %v2462_v30 = vrot.slane %v2461_v27, 1  ;;  %v2468_v12 = vmax.f32 %v2466_v63, %v2467_v42  ;;  %v2475_v6 = vmax.f32 %v2473_v39, %v2474_v4  ;;  %v2456_v53 = vmax.f32 %v2454_v10, %v2455_v29  ;;  %v4241_v10 = vld [vmem:[#allocation2 + $0x64] sm:$0xff] }
 0x314   :  { %8913 = vmatmul.msk.f32.gmra.mxu2 %vm3626_vm1, %v4534_v13  ;;  %v2487_v59 = vmax.f32 %v2485_v32, %v2486_v24  ;;  %v2494_v21 = vmax.f32 %v2492_v25, %v2493_v49  ;;  %v2481_v17 = vrot.slane %v2480_v62, 2  ;;  %v2500_v11 = vrot.slane %v2499_v34, 4 }
 0x315   :  { %8945 = vmatmul.msk.f32.gmra.mxu1 %vm3626_vm1, %v4829_v43  ;;  %v2463_v3 = vmax.f32 %v2461_v27, %v2462_v30  ;;  %v2469_v55 = vrot.slane %v2468_v12, 1  ;;  %v2476_v0 = vrot.slane %v2475_v6, 1  ;;  %v11967_v35 = vmax.f32 %v11902_v52, %v2456_v53  ;;  %v4830_v27 = vld [vmem:[#allocation2 + $0x82] sm:$0xff]  ;;  %v11987_v30 = vpop.f32.mrf.mxu2 }
 0x316   :  { %v2488_v60 = vrot.slane %v2487_v59, 2  ;;  %v2495_v50 = vrot.slane %v2494_v21, 2  ;;  %v2482_v13 = vmax.f32 %v2480_v62, %v2481_v17  ;;  %v2501_v43 = vmax.f32 %v2499_v34, %v2500_v11 }
 0x317   :  { %v2470_v63 = vmax.f32 %v2468_v12, %v2469_v55  ;;  %v2477_v39 = vmax.f32 %v2475_v6, %v2476_v0  ;;  %v11972_v2 = vmax.f32 %v11911_v37, %v2463_v3  ;;  %v2962_v32 = vsub.f32 0.0, %v11967_v35 }
 0x318   :  { %v2489_v25 = vmax.f32 %v2487_v59, %v2488_v60  ;;  %v2496_v52 = vmax.f32 %v2494_v21, %v2495_v50  ;;  %v2483_v15 = vrot.slane %v2482_v13, 1  ;;  %v2502_v49 = vrot.slane %v2501_v43, 2 }
 0x319   :  { %v11980_v42 = vmax.f32 %v11913_v45, %v2470_v63  ;;  %v11983_v37 = vmax.f32 %v11915_v31, %v2477_v39  ;;  %v2963_v4 = vsub.f32 0.0, %v11972_v2  ;;  %v3194_v29 = vmul.f32 1.442695, %v2962_v32  ;;  %v4242_v39 = vld [vmem:[#allocation2 + $0x74] sm:$0xff] }
 0x31a   :  { %v2490_v58 = vrot.slane %v2489_v25, 1  ;;  %v2497_v24 = vrot.slane %v2496_v52, 1  ;;  %v2484_v62 = vmax.f32 %v2482_v13, %v2483_v15  ;;  %v2503_v59 = vmax.f32 %v2501_v43, %v2502_v49  ;;  %v12016_v43 = vpop.f32.mrf.mxu1 }
 0x31b   :  { %8882 = vmatmul.msk.f32.gmra.mxu3 %vm3626_vm1, %v4241_v10  ;;  %v2964_v12 = vsub.f32 0.0, %v11980_v42  ;;  %v2965_v6 = vsub.f32 0.0, %v11983_v37  ;;  %v3196_v45 = vmul.f32 1.442695, %v2963_v4  ;;  %9723 = vpow2.f32 %v3194_v29 }
 0x31c   :  { %8914 = vmatmul.msk.f32.gmra.mxu2 %vm3626_vm1, %v4535_v51  ;;  %v2491_v31 = vmax.f32 %v2489_v25, %v2490_v58  ;;  %v2498_v53 = vmax.f32 %v2496_v52, %v2497_v24  ;;  %v11992_v3 = vmax.f32 %v11937_v61, %v2484_v62  ;;  %v2449_v55 = vmax.f32 %v11933_v18, %v2448_v44  ;;  %v4536_v61 = vld [vmem:[#allocation2 + $0x78] sm:$0xff]  ;;  %v12007_v44 = vpop.f32.mrf.mxu0 }
 0x31d   :  { %8946 = vmatmul.msk.f32.gmra.mxu1 %vm3626_vm1, %v4830_v27  ;;  %9725 = vpow2.f32 %v3196_v45  ;;  %v3198_v21 = vmul.f32 1.442695, %v2964_v12  ;;  %v3200_v34 = vmul.f32 1.442695, %v2965_v6  ;;  %v2504_v0 = vrot.slane %v2503_v59, 1 }
 0x31e   :  { %v11998_v17 = vmax.f32 %v11943_v23, %v2491_v31  ;;  %v12000_v60 = vmax.f32 %v2442_v26, %v2498_v53  ;;  %v2966_v50 = vsub.f32 0.0, %v11992_v3  ;;  %v721_v11 = vrot.slane %v11940_v19, 2  ;;  %v4831_v23 = vld [vmem:[#allocation2 + $0x92] sm:$0xff]  ;;  %v12022_v31 = vpop.f32.mrf.mxu2 }
 0x31f   :  { %9727 = vpow2.f32 %v3198_v21  ;;  %v722_v63 = vrot.slane %v11940_v19, 4  ;;  %v2505_v13 = vmax.f32 %v2503_v59, %v2504_v0  ;;  %v723_v51 = vrot.slane %v11940_v19, 6 }
 0x320   :  { %9729 = vpow2.f32 %v3200_v34  ;;  %v2967_v10 = vsub.f32 0.0, %v11998_v17  ;;  %v2968_v18 = vsub.f32 0.0, %v12000_v60  ;;  %v3202_v26 = vmul.f32 1.442695, %v2966_v50 }
 0x321   :  { %v2506_v32 = vsel %vm937_vm2, %v11940_v19, -inf  ;;  %v2513_v25 = vsel %vm937_vm2, %v721_v11, -inf  ;;  %v9724_v52 = vpop.eup %9723  ;;  %v12018_v27 = vmax.f32 %v2449_v55, %v2505_v13  ;;  %v2520_v12 = vsel %vm937_vm2, %v722_v63, -inf }
 0x322   :  { %v3204_v4 = vmul.f32 1.442695, %v2967_v10  ;;  %v3206_v15 = vmul.f32 1.442695, %v2968_v18  ;;  %v2507_v29 = vrot.slane %v2506_v32, 4  ;;  %v3346_v24 = vadd.f32 1.0, %v9724_v52 }
 0x323   :  { %8883 = vmatmul.msk.f32.gmra.mxu3 %vm3626_vm1, %v4242_v39  ;;  %v9726_v58 = vpop.eup %9725  ;;  %9731 = vpow2.f32 %v3202_v26  ;;  %v2514_v49 = vrot.slane %v2513_v25, 4  ;;  %v2969_v19 = vsub.f32 0.0, %v12018_v27  ;;  %v2521_v59 = vrot.slane %v2520_v12, 4  ;;  %v12028_v26 = vld [vmem:[%s14495_s3] ss:$0 sm:$0xff] }
 0x324   :  { %8915 = vmatmul.msk.f32.gmra.mxu2 %vm3626_vm1, %v4536_v61  ;;  %v3347_v6 = vadd.f32 1.0, %v9726_v58  ;;  %9733 = vpow2.f32 %v3204_v4  ;;  %v2508_v45 = vmax.f32 %v2506_v32, %v2507_v29  ;;  %v2527_v21 = vsel %vm937_vm2, %v723_v51, -inf }
 0x325   :  { %8947 = vmatmul.msk.f32.gmra.mxu1 %vm3626_vm1, %v4831_v23  ;;  %v9728_v62 = vpop.eup %9727  ;;  %9735 = vrcp.f32 %v3346_v24  ;;  %v2515_v53 = vmax.f32 %v2513_v25, %v2514_v49  ;;  %v3208_v0 = vmul.f32 1.442695, %v2969_v19  ;;  %v2522_v39 = vmax.f32 %v2520_v12, %v2521_v59 }
 0x326   :  { %v9730_v34 = vpop.eup %9729  ;;  %v3348_v55 = vadd.f32 1.0, %v9728_v62  ;;  %9737 = vrcp.f32 %v3347_v6  ;;  %v2509_v50 = vrot.slane %v2508_v45, 2  ;;  %v2528_v13 = vrot.slane %v2527_v21, 4  ;;  %v12034_v6 = vpop.f32.mrf.mxu1 }
 0x327   :  { %v3349_v11 = vadd.f32 1.0, %v9730_v34  ;;  %9739 = vpow2.f32 %v3206_v15  ;;  %v2516_v63 = vrot.slane %v2515_v53, 2  ;;  %v2523_v23 = vrot.slane %v2522_v39, 2  ;;  %v12032_v15 = vpop.f32.mrf.mxu0 }
 0x328   :  { %9741 = vrcp.f32 %v3348_v55  ;;  %v2510_v61 = vmax.f32 %v2508_v45, %v2509_v50  ;;  %v469_v51 = vadd.f32 %v12028_v26, %v11969_v14  ;;  %v2529_v4 = vmax.f32 %v2527_v21, %v2528_v13 }
 0x329   :  { %v9732_v10 = vpop.eup %9731  ;;  %9743 = vrcp.f32 %v3349_v11  ;;  %v2517_v18 = vmax.f32 %v2515_v53, %v2516_v63  ;;  %v2524_v49 = vmax.f32 %v2522_v39, %v2523_v23  ;;  %v12037_v53 = vpop.f32.mrf.mxu2 }
 0x32a   :  { %v9734_v32 = vpop.eup %9733  ;;  %9745 = vpow2.f32 %v3208_v0  ;;  %v3350_v25 = vadd.f32 1.0, %v9732_v10  ;;  %v2511_v52 = vrot.slane %v2510_v61, 1  ;;  %v2530_v45 = vrot.slane %v2529_v4, 2 }
 0x32b   :  { %v9736_v29 = vpop.eup %9735  ;;  %v3351_v58 = vadd.f32 1.0, %v9734_v32  ;;  %v2518_v24 = vrot.slane %v2517_v18, 1  ;;  %v724_v62 = vrot.slane %v469_v51, 2  ;;  %v2525_v50 = vrot.slane %v2524_v49, 1 }
 0x32c   :  { %v9738_v12 = vpop.eup %9737  ;;  %v3602_v19 = vmul.f32 %v9736_v29, %v11967_v35  ;;  %9747 = vrcp.f32 %v3350_v25  ;;  %v12040_v21 = vmax.f32 %v2510_v61, %v2511_v52  ;;  %v2531_v11 = vmax.f32 %v2529_v4, %v2530_v45 }
 0x32d   :  { %v9740_v14 = vpop.eup %9739  ;;  %v3603_v59 = vmul.f32 %v9738_v12, %v11972_v2  ;;  %9749 = vrcp.f32 %v3351_v58  ;;  %v12042_v34 = vmax.f32 %v2517_v18, %v2518_v24  ;;  %v725_v63 = vrot.slane %v469_v51, 4 }
 0x32e   :  { %v9742_v55 = vpop.eup %9741  ;;  %v3352_v0 = vadd.f32 1.0, %v9740_v14  ;;  %v726_v10 = vrot.slane %v469_v51, 6  ;;  %v2534_v23 = vsel %vm937_vm2, %v469_v51, -inf  ;;  %v2532_v61 = vrot.slane %v2531_v11, 1 }
 0x32f   :  { %v9744_v39 = vpop.eup %9743  ;;  %v3604_v35 = vmul.f32 %v9742_v55, %v11980_v42  ;;  %v3920_v13 = vsel %vm3822_vm3, %v3603_v59, %v3602_v19  ;;  %v2535_v18 = vrot.slane %v2534_v23, 4  ;;  %v2541_v4 = vsel %vm937_vm2, %v724_v62, -inf }
 0x330   :  { %v9746_v32 = vpop.eup %9745  ;;  %v3605_v2 = vmul.f32 %v9744_v39, %v11983_v37  ;;  %9751 = vrcp.f32 %v3352_v0  ;;  %v2548_v29 = vsel %vm937_vm2, %v725_v63, -inf  ;;  %v12052_v24 = vmax.f32 %v2524_v49, %v2525_v50  ;;  %v477_v63 = vpop.f32.mrf.mxu0 }
 0x331   :  { %v3921_v25 = vsel %vm3824_vm4, %v3604_v35, %v3920_v13  ;;  %v3353_v52 = vadd.f32 1.0, %v9746_v32  ;;  %v2536_v12 = vmax.f32 %v2534_v23, %v2535_v18  ;;  %v2542_v51 = vrot.slane %v2541_v4, 4  ;;  %v12057_v39 = vpop.f32.mrf.mxu2  ;;  %v12064_v23 = vpop.f32.mrf.mxu1 }
 0x332   :  { %v9748_v58 = vpop.eup %9747  ;;  %v3922_v42 = vsel %vm3826_vm5, %v3605_v2, %v3921_v25  ;;  %v2549_v45 = vrot.slane %v2548_v29, 4  ;;  %v2555_v14 = vsel %vm937_vm2, %v726_v10, -inf  ;;  %v12060_v50 = vmax.f32 %v2531_v11, %v2532_v61 }
 0x333   :  { %v9750_v19 = vpop.eup %9749  ;;  %9753 = vrcp.f32 %v3353_v52  ;;  %v3606_v37 = vmul.f32 %v9748_v58, %v11992_v3  ;;  %v2537_v55 = vrot.slane %v2536_v12, 2  ;;  %v2543_v62 = vmax.f32 %v2541_v4, %v2542_v51 }
 0x334   :  { %v3607_v59 = vmul.f32 %v9750_v19, %v11998_v17  ;;  %v2556_v0 = vrot.slane %v2555_v14, 4  ;;  %v2550_v35 = vmax.f32 %v2548_v29, %v2549_v45  ;;  %v472_v13 = vadd.f32 %v12028_v26, %v12007_v44 }
 0x335   :  { %v3923_v49 = vsel %vm3828_vm6, %v3606_v37, %v3922_v42  ;;  %v2538_v17 = vmax.f32 %v2536_v12, %v2537_v55  ;;  %v2544_v32 = vrot.slane %v2543_v62, 2 }
 0x336   :  { %v9752_v3 = vpop.eup %9751  ;;  %v3924_v10 = vsel %vm3830_vm7, %v3607_v59, %v3923_v49  ;;  %v2557_v2 = vmax.f32 %v2555_v14, %v2556_v0  ;;  %v2551_v25 = vrot.slane %v2550_v35, 2  ;;  %v727_v52 = vrot.slane %v472_v13, 2 }
 0x337   :  { %v3608_v18 = vmul.f32 %v9752_v3, %v12000_v60  ;;  %v728_v4 = vrot.slane %v472_v13, 4  ;;  %v2539_v58 = vrot.slane %v2538_v17, 1  ;;  %v2545_v11 = vmax.f32 %v2543_v62, %v2544_v32 }
 0x338   :  { %v2558_v61 = vrot.slane %v2557_v2, 2  ;;  %v729_v29 = vrot.slane %v472_v13, 6  ;;  %v2552_v51 = vmax.f32 %v2550_v35, %v2551_v25  ;;  %v2562_v19 = vsel %vm937_vm2, %v472_v13, -inf }
 0x339   :  { %v9754_v42 = vpop.eup %9753  ;;  %v3925_v44 = vsel %vm3832_vm8, %v3608_v18, %v3924_v10  ;;  %v2569_v37 = vsel %vm937_vm2, %v727_v52, -inf  ;;  %v12072_v45 = vmax.f32 %v2538_v17, %v2539_v58  ;;  %v2546_v60 = vrot.slane %v2545_v11, 1  ;;  %v12078_v13 = vpop.f32.mrf.mxu2 }
 0x33a   :  { %v3609_v12 = vmul.f32 %v9754_v42, %v12018_v27  ;;  %v2559_v14 = vmax.f32 %v2557_v2, %v2558_v61  ;;  %v2553_v59 = vrot.slane %v2552_v51, 1  ;;  %v2563_v55 = vrot.slane %v2562_v19, 4  ;;  %v12084_v18 = vpop.f32.mrf.mxu1 }
 0x33b   :  { %v2570_v0 = vrot.slane %v2569_v37, 4  ;;  %v2576_v62 = vsel %vm937_vm2, %v728_v4, -inf  ;;  %v12076_v3 = vmax.f32 %v2545_v11, %v2546_v60  ;;  %v2583_v2 = vsel %vm937_vm2, %v729_v29, -inf  ;;  %14513 = vst [vmem:[#allocation6_spill] sm:$0xff] %v12084_v18  ;;  %v480_v11 = vpop.f32.mrf.mxu0 }
 0x33c   :  { %v3926_v49 = vsel %vm3834_vm9, %v3609_v12, %v3925_v44  ;;  %v2560_v35 = vrot.slane %v2559_v14, 1  ;;  %v2577_v10 = vrot.slane %v2576_v62, 4  ;;  %v12081_v27 = vmax.f32 %v2552_v51, %v2553_v59 }
 0x33d   :  { %3970 = vst.msk [vmem:[#allocation2 + $0x194] sm:$0xff] %vm3626_vm1, %v3926_v49  ;;  %v2564_v17 = vmax.f32 %v2562_v19, %v2563_v55  ;;  %v2571_v32 = vmax.f32 %v2569_v37, %v2570_v0  ;;  %v2584_v4 = vrot.slane %v2583_v2, 4  ;;  %v475_v58 = vadd.f32 %v12028_v26, %v12032_v15 }
 0x33e   :  { %v12086_v25 = vmax.f32 %v2559_v14, %v2560_v35  ;;  %v2578_v52 = vmax.f32 %v2576_v62, %v2577_v10  ;;  %v12091_v44 = vadd.f32 %v12028_v26, %v477_v63  ;;  %v12094_v51 = vadd.f32 %v12028_v26, %v480_v11 }
 0x33f   :  { %v2565_v61 = vrot.slane %v2564_v17, 2  ;;  %v2572_v42 = vrot.slane %v2571_v32, 2  ;;  %v2585_v29 = vmax.f32 %v2583_v2, %v2584_v4  ;;  %v730_v37 = vrot.slane %v475_v58, 2 }
 0x340   :  { %v2579_v19 = vrot.slane %v2578_v52, 2  ;;  %v731_v12 = vrot.slane %v475_v58, 4  ;;  %v732_v59 = vrot.slane %v475_v58, 6  ;;  %v2590_v55 = vsel %vm937_vm2, %v475_v58, -inf }
 0x341   :  { %v2566_v60 = vmax.f32 %v2564_v17, %v2565_v61  ;;  %v2573_v14 = vmax.f32 %v2571_v32, %v2572_v42  ;;  %v2586_v15 = vrot.slane %v2585_v29, 2  ;;  %v2591_v62 = vrot.slane %v2590_v55, 4  ;;  %v12100_v58 = vpop.f32.mrf.mxu2 }
 0x342   :  { %v2580_v0 = vmax.f32 %v2578_v52, %v2579_v19  ;;  %v2597_v49 = vsel %vm937_vm2, %v730_v37, -inf  ;;  %v2604_v11 = vsel %vm937_vm2, %v731_v12, -inf  ;;  %v2611_v61 = vsel %vm937_vm2, %v732_v59, -inf }
 0x343   :  { %v2567_v35 = vrot.slane %v2566_v60, 1  ;;  %v2574_v63 = vrot.slane %v2573_v14, 1  ;;  %v2598_v10 = vrot.slane %v2597_v49, 4  ;;  %v2587_v56 = vmax.f32 %v2585_v29, %v2586_v15  ;;  %v12108_v15 = vpop.f32.mrf.mxu1 }
 0x344   :  { %v2581_v40 = vrot.slane %v2580_v0, 1  ;;  %v2592_v2 = vmax.f32 %v2590_v55, %v2591_v62  ;;  %v2605_v4 = vrot.slane %v2604_v11, 4  ;;  %v2612_v55 = vrot.slane %v2611_v61, 4  ;;  %14514 = vst [vmem:[#allocation7_spill] sm:$0xff] %v12108_v15 }
 0x345   :  { %v2568_v22 = vmax.f32 %v2566_v60, %v2567_v35  ;;  %v2575_v17 = vmax.f32 %v2573_v14, %v2574_v63  ;;  %v2599_v32 = vmax.f32 %v2597_v49, %v2598_v10  ;;  %v2588_v42 = vrot.slane %v2587_v56, 1  ;;  %v4537_v35 = vld [vmem:[#allocation2 + $0x108] sm:$0xff] }
 0x346   :  { %v2582_v52 = vmax.f32 %v2580_v0, %v2581_v40  ;;  %v2593_v19 = vrot.slane %v2592_v2, 2  ;;  %v2606_v37 = vmax.f32 %v2604_v11, %v2605_v4  ;;  %8916 = vmatmul.msk.f32.gmra.mxu2 %vm3626_vm1, %v4537_v35 }
 0x347   :  { %v12103_v18 = vmax.f32 %v12040_v21, %v2568_v22  ;;  %v12106_v12 = vmax.f32 %v12042_v34, %v2575_v17  ;;  %v2600_v29 = vrot.slane %v2599_v32, 2  ;;  %v2589_v60 = vmax.f32 %v2587_v56, %v2588_v42  ;;  %v4243_v21 = vld [vmem:[#allocation2 + $0x104] sm:$0xff] }
 0x348   :  { %v12111_v14 = vmax.f32 %v12052_v24, %v2582_v52  ;;  %v2594_v59 = vmax.f32 %v2592_v2, %v2593_v19  ;;  %v2607_v62 = vrot.slane %v2606_v37, 2  ;;  %v2613_v22 = vmax.f32 %v2611_v61, %v2612_v55  ;;  %v4832_v34 = vld [vmem:[#allocation2 + $0x122] sm:$0xff]  ;;  %8884 = vmatmul.msk.f32.gmra.mxu3 %vm3626_vm1, %v4243_v21 }
 0x349   :  { %v2970_v40 = vsub.f32 0.0, %v12103_v18  ;;  %v2971_v0 = vsub.f32 0.0, %v12106_v12  ;;  %v2601_v49 = vmax.f32 %v2599_v32, %v2600_v29  ;;  %v12116_v63 = vmax.f32 %v12060_v50, %v2589_v60  ;;  %8948 = vmatmul.msk.f32.gmra.mxu1 %vm3626_vm1, %v4832_v34 }
 0x34a   :  { %v2972_v10 = vsub.f32 0.0, %v12111_v14  ;;  %v2595_v56 = vrot.slane %v2594_v59, 1  ;;  %v2608_v11 = vmax.f32 %v2606_v37, %v2607_v62  ;;  %v2614_v17 = vrot.slane %v2613_v22, 2 }
 0x34b   :  { %v3210_v24 = vmul.f32 1.442695, %v2970_v40  ;;  %v3212_v2 = vmul.f32 1.442695, %v2971_v0  ;;  %v2602_v4 = vrot.slane %v2601_v49, 1  ;;  %v2973_v32 = vsub.f32 0.0, %v12116_v63 }
 0x34c   :  { %v3214_v61 = vmul.f32 1.442695, %v2972_v10  ;;  %v2596_v52 = vmax.f32 %v2594_v59, %v2595_v56  ;;  %v2609_v50 = vrot.slane %v2608_v11, 1  ;;  %v2615_v19 = vmax.f32 %v2613_v22, %v2614_v17  ;;  %v12131_v59 = vpop.f32.mrf.mxu2  ;;  %v12142_v10 = vpop.f32.mrf.mxu1 }
 0x34d   :  { %9755 = vpow2.f32 %v3210_v24  ;;  %v2603_v42 = vmax.f32 %v2601_v49, %v2602_v4  ;;  %v733_v37 = vrot.slane %v12091_v44, 2  ;;  %v3216_v29 = vmul.f32 1.442695, %v2973_v32  ;;  %14515 = vst [vmem:[#allocation8_spill] sm:$0xff] %v12131_v59  ;;  %v483_v59 = vpop.f32.mrf.mxu0 }
 0x34e   :  { %9757 = vpow2.f32 %v3212_v2  ;;  %v2610_v55 = vmax.f32 %v2608_v11, %v2609_v50  ;;  %v12125_v60 = vmax.f32 %v12072_v45, %v2596_v52  ;;  %v2616_v62 = vrot.slane %v2615_v19, 1  ;;  %14516 = vst [vmem:[#allocation9_spill] sm:$0xff] %v12142_v10 }
 0x34f   :  { %9759 = vpow2.f32 %v3214_v61  ;;  %v12128_v40 = vmax.f32 %v12076_v3, %v2603_v42  ;;  %v734_v0 = vrot.slane %v12091_v44, 4  ;;  %v735_v21 = vrot.slane %v12091_v44, 6 }
 0x350   :  { %9761 = vpow2.f32 %v3216_v29  ;;  %v12134_v49 = vmax.f32 %v12081_v27, %v2610_v55  ;;  %v2974_v22 = vsub.f32 0.0, %v12125_v60  ;;  %v2617_v35 = vmax.f32 %v2615_v19, %v2616_v62  ;;  %v4244_v62 = vld [vmem:[#allocation2 + $0x114] sm:$0xff] }
 0x351   :  { %v2975_v45 = vsub.f32 0.0, %v12128_v40  ;;  %v2618_v34 = vsel %vm937_vm2, %v12091_v44, -inf  ;;  %v2625_v3 = vsel %vm937_vm2, %v733_v37, -inf  ;;  %v2632_v32 = vsel %vm937_vm2, %v734_v0, -inf  ;;  %8885 = vmatmul.msk.f32.gmra.mxu3 %vm3626_vm1, %v4244_v62 }
 0x352   :  { %v2976_v56 = vsub.f32 0.0, %v12134_v49  ;;  %v3218_v11 = vmul.f32 1.442695, %v2974_v22  ;;  %v2619_v24 = vrot.slane %v2618_v34, 4  ;;  %v2626_v27 = vrot.slane %v2625_v3, 4  ;;  %v4538_v22 = vld [vmem:[#allocation2 + $0x118] sm:$0xff] }
 0x353   :  { %v9756_v2 = vpop.eup %9755  ;;  %v12146_v4 = vmax.f32 %v12086_v25, %v2617_v35  ;;  %v3220_v17 = vmul.f32 1.442695, %v2975_v45  ;;  %v2639_v61 = vsel %vm937_vm2, %v735_v21, -inf  ;;  %v4833_v25 = vld [vmem:[#allocation2 + $0x132] sm:$0xff]  ;;  %v2633_v10 = vrot.slane %v2632_v32, 4  ;;  %8917 = vmatmul.msk.f32.gmra.mxu2 %vm3626_vm1, %v4538_v22 }
 0x354   :  { %v9758_v52 = vpop.eup %9757  ;;  %v3354_v44 = vadd.f32 1.0, %v9756_v2  ;;  %9763 = vpow2.f32 %v3218_v11  ;;  %v3222_v50 = vmul.f32 1.442695, %v2976_v56  ;;  %v2620_v42 = vmax.f32 %v2618_v34, %v2619_v24  ;;  %8949 = vmatmul.msk.f32.gmra.mxu1 %vm3626_vm1, %v4833_v25 }
 0x355   :  { %v9760_v19 = vpop.eup %9759  ;;  %v3355_v37 = vadd.f32 1.0, %v9758_v52  ;;  %v2977_v29 = vsub.f32 0.0, %v12146_v4  ;;  %9765 = vpow2.f32 %v3220_v17  ;;  %v2627_v55 = vmax.f32 %v2625_v3, %v2626_v27  ;;  %v12156_v17 = vpop.f32.mrf.mxu2 }
 0x356   :  { %v9762_v35 = vpop.eup %9761  ;;  %v3356_v45 = vadd.f32 1.0, %v9760_v19  ;;  %9767 = vrcp.f32 %v3354_v44  ;;  %v2621_v0 = vrot.slane %v2620_v42, 2  ;;  %v2634_v11 = vmax.f32 %v2632_v32, %v2633_v10  ;;  %14517 = vst [vmem:[#allocation10_spill] sm:$0xff] %v12156_v17 }
 0x357   :  { %v3357_v21 = vadd.f32 1.0, %v9762_v35  ;;  %9769 = vrcp.f32 %v3355_v37  ;;  %v3224_v34 = vmul.f32 1.442695, %v2977_v29  ;;  %v2628_v56 = vrot.slane %v2627_v55, 2 }
 0x358   :  { %9771 = vrcp.f32 %v3356_v45  ;;  %v2622_v3 = vmax.f32 %v2620_v42, %v2621_v0  ;;  %v2640_v24 = vrot.slane %v2639_v61, 4  ;;  %v2635_v52 = vrot.slane %v2634_v11, 2  ;;  %v12160_v42 = vpop.f32.mrf.mxu1  ;;  %v12166_v45 = vld [vmem:[#allocation2 + $0x124] sm:$0xff] }
 0x359   :  { %9773 = vrcp.f32 %v3357_v21  ;;  %v12154_v27 = vmax.f32 %v2627_v55, %v2628_v56  ;;  %v736_v29 = vrot.slane %v12094_v51, 2  ;;  %v737_v62 = vrot.slane %v12094_v51, 4  ;;  %14518 = vst [vmem:[#allocation11_spill] sm:$0xff] %v12160_v42  ;;  %v12168_v0 = vld [vmem:[#allocation2 + $0x128] sm:$0xff]  ;;  %8886 = vmatmul.msk.f32.gmra.mxu3 %vm3626_vm1, %v12166_v45 }
 0x35a   :  { %v9764_v2 = vpop.eup %9763  ;;  %9775 = vpow2.f32 %v3222_v50  ;;  %v2641_v44 = vmax.f32 %v2639_v61, %v2640_v24  ;;  %v2623_v32 = vrot.slane %v2622_v3, 1  ;;  %v2636_v55 = vmax.f32 %v2634_v11, %v2635_v52  ;;  %14519 = vst [vmem:[#allocation12_spill] sm:$0xff] %v12166_v45 }
 0x35b   :  { %v9766_v19 = vpop.eup %9765  ;;  %9777 = vpow2.f32 %v3224_v34  ;;  %v3358_v37 = vadd.f32 1.0, %v9764_v2  ;;  %v2630_v50 = vrot.slane %v12154_v27, 1  ;;  %v2646_v61 = vsel %vm937_vm2, %v12094_v51, -inf  ;;  %14520 = vst [vmem:[#allocation13_spill] sm:$0xff] %v12168_v0  ;;  %8918 = vmatmul.msk.f32.gmra.mxu2 %vm3626_vm1, %v12168_v0 }
 0x35c   :  { %v9768_v22 = vpop.eup %9767  ;;  %v3359_v10 = vadd.f32 1.0, %v9766_v19  ;;  %v2642_v56 = vrot.slane %v2641_v44, 2  ;;  %v738_v11 = vrot.slane %v12094_v51, 6  ;;  %v2647_v52 = vrot.slane %v2646_v61, 4 }
 0x35d   :  { %v9770_v25 = vpop.eup %9769  ;;  %v3610_v35 = vmul.f32 %v9768_v22, %v12103_v18  ;;  %9779 = vrcp.f32 %v3358_v37  ;;  %v4834_v18 = vld [vmem:[#allocation2 + $0x142] sm:$0xff]  ;;  %v2653_v19 = vsel %vm937_vm2, %v736_v29, -inf  ;;  %v2660_v37 = vsel %vm937_vm2, %v737_v62, -inf }
 0x35e   :  { %v9772_v21 = vpop.eup %9771  ;;  %v3611_v34 = vmul.f32 %v9770_v25, %v12106_v12  ;;  %9781 = vrcp.f32 %v3359_v10  ;;  %8950 = vmatmul.msk.f32.gmra.mxu1 %vm3626_vm1, %v4834_v18  ;;  %v12182_v10 = vmax.f32 %v2622_v3, %v2623_v32  ;;  %v2637_v25 = vrot.slane %v2636_v55, 1 }
 0x35f   :  { %v9774_v24 = vpop.eup %9773  ;;  %v3612_v2 = vmul.f32 %v9772_v21, %v12111_v14  ;;  %v2648_v14 = vmax.f32 %v2646_v61, %v2647_v52  ;;  %v2654_v21 = vrot.slane %v2653_v19, 4  ;;  %v2643_v0 = vmax.f32 %v2641_v44, %v2642_v56  ;;  %v12192_v56 = vld [vmem:[#allocation2 + $0x134] sm:$0xff] }
 0x360   :  { %v9776_v12 = vpop.eup %9775  ;;  %v3613_v51 = vmul.f32 %v9774_v24, %v12116_v63  ;;  %v3927_v22 = vsel %vm3822_vm3, %v3611_v34, %v3610_v35  ;;  %v2661_v18 = vrot.slane %v2660_v37, 4  ;;  %v2667_v3 = vsel %vm937_vm2, %v738_v11, -inf  ;;  %v12187_v35 = vpop.f32.mrf.mxu2 }
 0x361   :  { %v9778_v42 = vpop.eup %9777  ;;  %v3928_v17 = vsel %vm3824_vm4, %v3612_v2, %v3927_v22  ;;  %v3360_v15 = vadd.f32 1.0, %v9776_v12  ;;  %v2649_v63 = vrot.slane %v2648_v14, 2  ;;  %v2655_v24 = vmax.f32 %v2653_v19, %v2654_v21  ;;  %14521 = vst [vmem:[#allocation14_spill] sm:$0xff] %v12187_v35  ;;  %v12196_v19 = vpop.f32.mrf.mxu1  ;;  %8887 = vmatmul.msk.f32.gmra.mxu3 %vm3626_vm1, %v12192_v56 }
 0x362   :  { %v3929_v29 = vsel %vm3826_vm5, %v3613_v51, %v3928_v17  ;;  %v3361_v62 = vadd.f32 1.0, %v9778_v42  ;;  %v2662_v61 = vmax.f32 %v2660_v37, %v2661_v18  ;;  %v2668_v2 = vrot.slane %v2667_v3, 4  ;;  %14522 = vst [vmem:[#allocation15_spill] sm:$0xff] %v12196_v19  ;;  %v12222_v19 = vpop.f32.mrf.mxu3 }
 0x363   :  { %v9780_v45 = vpop.eup %9779  ;;  %9783 = vrcp.f32 %v3360_v15  ;;  %v2650_v17 = vmax.f32 %v2648_v14, %v2649_v63  ;;  %v2656_v42 = vrot.slane %v2655_v24, 2  ;;  %v484_v44 = vadd.f32 %v12028_v26, %v483_v59  ;;  %v12194_v15 = vld [vmem:[#allocation2 + $0x138] sm:$0xff]  ;;  %14523 = vst [vmem:[#allocation16_spill] sm:$0xff] %v12222_v19 }
 0x364   :  { %v9782_v32 = vpop.eup %9781  ;;  %9785 = vrcp.f32 %v3361_v62  ;;  %v3614_v34 = vmul.f32 %v9780_v45, %v12125_v60  ;;  %v12200_v12 = vmax.f32 %v12154_v27, %v2630_v50  ;;  %v2663_v60 = vrot.slane %v2662_v61, 2  ;;  %8919 = vmatmul.msk.f32.gmra.mxu2 %vm3626_vm1, %v12194_v15 }
 0x365   :  { %v3615_v52 = vmul.f32 %v9782_v32, %v12128_v40  ;;  %v2669_v45 = vmax.f32 %v2667_v3, %v2668_v2  ;;  %v4835_v40 = vld [vmem:[#allocation2 + $0x152] sm:$0xff]  ;;  %v12206_v59 = vmax.f32 %v2636_v55, %v2637_v25  ;;  %v2644_v37 = vrot.slane %v2643_v0, 1 }
 0x366   :  { %v3930_v11 = vsel %vm3828_vm6, %v3614_v34, %v3929_v29  ;;  %v2657_v51 = vmax.f32 %v2655_v24, %v2656_v42  ;;  %v739_v22 = vrot.slane %v484_v44, 2  ;;  %8951 = vmatmul.msk.f32.gmra.mxu1 %vm3626_vm1, %v4835_v40  ;;  %v2651_v14 = vrot.slane %v2650_v17, 1  ;;  %v486_v40 = vpop.f32.mrf.mxu0 }
 0x367   :  { %v2664_v21 = vmax.f32 %v2662_v61, %v2663_v60  ;;  %v2670_v27 = vrot.slane %v2669_v45, 2  ;;  %v740_v50 = vrot.slane %v484_v44, 4  ;;  %v3931_v62 = vsel %vm3830_vm7, %v3615_v52, %v3930_v11 }
 0x368   :  { %v741_v18 = vrot.slane %v484_v44, 6  ;;  %v2674_v63 = vsel %vm937_vm2, %v484_v44, -inf  ;;  %v2681_v3 = vsel %vm937_vm2, %v739_v22, -inf  ;;  %v2658_v25 = vrot.slane %v2657_v51, 1 }
 0x369   :  { %v9784_v29 = vpop.eup %9783  ;;  %v2665_v24 = vrot.slane %v2664_v21, 1  ;;  %v2675_v34 = vrot.slane %v2674_v63, 4  ;;  %v12214_v42 = vmax.f32 %v2669_v45, %v2670_v27  ;;  %v2682_v61 = vrot.slane %v2681_v3, 4  ;;  %v12226_v45 = vld [vmem:[#allocation2 + $0x144] sm:$0xff] }
 0x36a   :  { %v9786_v32 = vpop.eup %9785  ;;  %v3616_v55 = vmul.f32 %v9784_v29, %v12134_v49  ;;  %v2688_v60 = vsel %vm937_vm2, %v740_v50, -inf  ;;  %v12218_v11 = vmax.f32 %v2643_v0, %v2644_v37  ;;  %v12220_v44 = vmax.f32 %v2650_v17, %v2651_v14  ;;  %14524 = vst [vmem:[#allocation17_spill] sm:$0xff] %v12226_v45  ;;  %v12228_v27 = vld [vmem:[#allocation2 + $0x148] sm:$0xff]  ;;  %v12230_v50 = vld [vmem:[#allocation2 + $0x180] sm:$0xff]  ;;  %v12237_v17 = vpop.f32.mrf.mxu1  ;;  %8888 = vmatmul.msk.f32.gmra.mxu3 %vm3626_vm1, %v12226_v45  ;;  %v12259_v45 = vld [vmem:[#allocation2 + $0x154] sm:$0xff] }
 0x36b   :  { %v3617_v2 = vmul.f32 %v9786_v32, %v12146_v4  ;;  %v2676_v22 = vmax.f32 %v2674_v63, %v2675_v34  ;;  %v2683_v29 = vmax.f32 %v2681_v3, %v2682_v61  ;;  %v2689_v35 = vrot.slane %v2688_v60, 4  ;;  %14525 = vst [vmem:[#allocation18_spill] sm:$0xff] %v12228_v27  ;;  %9094 = vmatmul.msk.f32.gmra.mxu0 %vm3626_vm1, %v12230_v50 }
 0x36c   :  { %v3932_v52 = vsel %vm3832_vm8, %v3616_v55, %v3931_v62  ;;  %v2695_v4 = vsel %vm937_vm2, %v741_v18, -inf  ;;  %14526 = vst [vmem:[#allocation19_spill] sm:$0xff] %v12230_v50  ;;  %v12232_v62 = vpop.f32.mrf.mxu2  ;;  %v12235_v0 = vmax.f32 %v2657_v51, %v2658_v25  ;;  %v487_v63 = vadd.f32 %v12028_v26, %v486_v40  ;;  %8920 = vmatmul.msk.f32.gmra.mxu2 %vm3626_vm1, %v12228_v27  ;;  %v4836_v18 = vld [vmem:[#allocation2 + $0x162] sm:$0xff] }
 0x36d   :  { %v3933_v49 = vsel %vm3834_vm9, %v3617_v2, %v3932_v52  ;;  %14527 = vst [vmem:[#allocation20_spill] sm:$0xff] %v12232_v62  ;;  %v2677_v37 = vrot.slane %v2676_v22, 2  ;;  %v2696_v14 = vrot.slane %v2695_v4, 4  ;;  %v12244_v3 = vmax.f32 %v2664_v21, %v2665_v24  ;;  %v12256_v62 = vpop.f32.mrf.mxu3 }
 0x36e   :  { %3971 = vst.msk [vmem:[#allocation2 + $0x1a4] sm:$0xff] %vm3626_vm1, %v3933_v49  ;;  %v2684_v55 = vrot.slane %v2683_v29, 2  ;;  %v2690_v51 = vmax.f32 %v2688_v60, %v2689_v35  ;;  %8952 = vmatmul.msk.f32.gmra.mxu1 %vm3626_vm1, %v4836_v18  ;;  %v742_v34 = vrot.slane %v487_v63, 2  ;;  %v743_v2 = vrot.slane %v487_v63, 4  ;;  %v4693_v35 = vld [vmem:[%s14496_s1 + $0x50] sm:$0xff] }
 0x36f   :  { %14528 = vst [vmem:[#allocation21_spill] sm:$0xff] %v12237_v17  ;;  %v2678_v25 = vmax.f32 %v2676_v22, %v2677_v37  ;;  %v2697_v26 = vmax.f32 %v2695_v4, %v2696_v14  ;;  %v744_v52 = vrot.slane %v487_v63, 6  ;;  %v2702_v49 = vsel %vm937_vm2, %v487_v63, -inf  ;;  %4758 = vmatpush.msra.mxu3 %v4693_v35 }
 0x370   :  { %v2685_v61 = vmax.f32 %v2683_v29, %v2684_v55  ;;  %v2691_v40 = vrot.slane %v2690_v51, 2  ;;  %v2703_v60 = vrot.slane %v2702_v49, 4  ;;  %v2709_v18 = vsel %vm937_vm2, %v742_v34, -inf  ;;  %v12261_v34 = vld [vmem:[#allocation2 + $0x158] sm:$0xff] }
 0x371   :  { %v2679_v21 = vrot.slane %v2678_v25, 1  ;;  %v2698_v24 = vrot.slane %v2697_v26, 2  ;;  %v2710_v22 = vrot.slane %v2709_v18, 4  ;;  %v2716_v4 = vsel %vm937_vm2, %v743_v2, -inf }
 0x372   :  { %v2686_v32 = vrot.slane %v2685_v61, 1  ;;  %v2692_v50 = vmax.f32 %v2690_v51, %v2691_v40  ;;  %v2704_v14 = vmax.f32 %v2702_v49, %v2703_v60  ;;  %v2717_v55 = vrot.slane %v2716_v4, 4  ;;  %v12263_v51 = vld [vmem:[#allocation2 + $0x190] sm:$0xff]  ;;  %8889 = vmatmul.msk.f32.gmra.mxu3 %vm3626_vm1, %v12259_v45 }
 0x373   :  { %v2680_v29 = vmax.f32 %v2678_v25, %v2679_v21  ;;  %v2699_v37 = vmax.f32 %v2697_v26, %v2698_v24  ;;  %v2711_v19 = vmax.f32 %v2709_v18, %v2710_v22  ;;  %v2723_v27 = vsel %vm937_vm2, %v744_v52, -inf  ;;  %14529 = vst [vmem:[#allocation22_spill] sm:$0xff] %v12263_v51  ;;  %v4837_v52 = vld [vmem:[#allocation2 + $0x172] sm:$0xff]  ;;  %9095 = vmatmul.msk.f32.gmra.mxu0 %vm3626_vm1, %v12263_v51 }
 0x374   :  { %v2687_v63 = vmax.f32 %v2685_v61, %v2686_v32  ;;  %v2693_v17 = vrot.slane %v2692_v50, 1  ;;  %v12268_v25 = vpop.f32.mrf.mxu2  ;;  %v2705_v26 = vrot.slane %v2704_v14, 2  ;;  %v2718_v32 = vmax.f32 %v2716_v4, %v2717_v55  ;;  %v12270_v61 = vpop.f32.mrf.mxu1  ;;  %8921 = vmatmul.msk.f32.gmra.mxu2 %vm3626_vm1, %v12261_v34 }
 0x375   :  { %v2700_v40 = vrot.slane %v2699_v37, 1  ;;  %v12266_v2 = vmax.f32 %v12182_v10, %v2680_v29  ;;  %14530 = vst [vmem:[#allocation23_spill] sm:$0xff] %v12270_v61  ;;  %v2712_v24 = vrot.slane %v2711_v19, 2  ;;  %v2724_v10 = vrot.slane %v2723_v27, 4 }
 0x376   :  { %v2694_v49 = vmax.f32 %v2692_v50, %v2693_v17  ;;  %v12277_v21 = vmax.f32 %v12200_v12, %v2687_v63  ;;  %8953 = vmatmul.msk.f32.gmra.mxu1 %vm3626_vm1, %v4837_v52  ;;  %v2706_v18 = vmax.f32 %v2704_v14, %v2705_v26  ;;  %v2719_v22 = vrot.slane %v2718_v32, 2 }
 0x377   :  { %v2701_v35 = vmax.f32 %v2699_v37, %v2700_v40  ;;  %v2978_v60 = vsub.f32 0.0, %v12266_v2  ;;  %v2713_v17 = vmax.f32 %v2711_v19, %v2712_v24  ;;  %v2725_v12 = vmax.f32 %v2723_v27, %v2724_v10  ;;  %v12294_v24 = vpop.f32.mrf.mxu3  ;;  %v12296_v10 = vld [vmem:[#allocation2 + $0x168] sm:$0xff] }
 0x378   :  { %v12284_v4 = vmax.f32 %v12206_v59, %v2694_v49  ;;  %v2979_v50 = vsub.f32 0.0, %v12277_v21  ;;  %v2707_v63 = vrot.slane %v2706_v18, 1  ;;  %v2720_v52 = vmax.f32 %v2718_v32, %v2719_v22  ;;  %v12292_v49 = vld [vmem:[#allocation2 + $0x164] sm:$0xff] }
 0x379   :  { %v12288_v29 = vmax.f32 %v12218_v11, %v2701_v35  ;;  %v3226_v55 = vmul.f32 1.442695, %v2978_v60  ;;  %v2714_v40 = vrot.slane %v2713_v17, 1  ;;  %v2726_v61 = vrot.slane %v2725_v12, 2  ;;  %v4838_v32 = vld [vmem:[#allocation2 + $0x182] sm:$0xff] }
 0x37a   :  { %v2980_v51 = vsub.f32 0.0, %v12284_v4  ;;  %v3228_v37 = vmul.f32 1.442695, %v2979_v50  ;;  %v2708_v59 = vmax.f32 %v2706_v18, %v2707_v63  ;;  %v2721_v26 = vrot.slane %v2720_v52, 1  ;;  %v6160_v35 = vld [vmem:[#allocation2 + $0x1a0] sm:$0xff]  ;;  %8890 = vmatmul.msk.f32.gmra.mxu3 %vm3626_vm1, %v12292_v49 }
 0x37b   :  { %v2981_v14 = vsub.f32 0.0, %v12288_v29  ;;  %9787 = vpow2.f32 %v3226_v55  ;;  %v2715_v27 = vmax.f32 %v2713_v17, %v2714_v40  ;;  %v2727_v11 = vmax.f32 %v2725_v12, %v2726_v61  ;;  %9096 = vmatmul.msk.f32.gmra.mxu0 %vm3626_vm1, %v6160_v35 }
 0x37c   :  { %9789 = vpow2.f32 %v3228_v37  ;;  %v3230_v19 = vmul.f32 1.442695, %v2980_v51  ;;  %v2722_v22 = vmax.f32 %v2720_v52, %v2721_v26  ;;  %v12299_v50 = vmax.f32 %v12220_v44, %v2708_v59  ;;  %v12301_v55 = vpop.f32.mrf.mxu2  ;;  %8922 = vmatmul.msk.f32.gmra.mxu2 %vm3626_vm1, %v12296_v10  ;;  %v12307_v51 = vpop.f32.mrf.mxu1 }
 0x37d   :  { %v3232_v60 = vmul.f32 1.442695, %v2981_v14  ;;  %v14531_v61 = vrot.slane %v12214_v42, 1  ;;  %v2728_v17 = vrot.slane %v2727_v11, 1  ;;  %v12313_v12 = vmax.f32 %v12235_v0, %v2715_v27 }
 0x37e   :  { %9791 = vpow2.f32 %v3230_v19  ;;  %8954 = vmatmul.msk.f32.gmra.mxu1 %vm3626_vm1, %v4838_v32  ;;  %v12318_v44 = vmax.f32 %v12244_v3, %v2722_v22  ;;  %v2982_v63 = vsub.f32 0.0, %v12299_v50  ;;  %v4839_v32 = vld [vmem:[#allocation2 + $0x192] sm:$0xff] }
 0x37f   :  { %v2673_v18 = vmax.f32 %v12214_v42, %v14531_v61  ;;  %9793 = vpow2.f32 %v3232_v60  ;;  %v2729_v52 = vmax.f32 %v2727_v11, %v2728_v17  ;;  %v2983_v37 = vsub.f32 0.0, %v12313_v12  ;;  %v12326_v60 = vld [vmem:[#allocation2 + $0x174] sm:$0xff] }
 0x380   :  { %v2984_v42 = vsub.f32 0.0, %v12318_v44  ;;  %v3234_v14 = vmul.f32 1.442695, %v2982_v63  ;;  %v12328_v11 = vld [vmem:[#allocation2 + $0x178] sm:$0xff] }
 0x381   :  { %v9788_v40 = vpop.eup %9787  ;;  %v12323_v26 = vmax.f32 %v2673_v18, %v2729_v52  ;;  %v3236_v19 = vmul.f32 1.442695, %v2983_v37  ;;  %v4119_v18 = vpop.f32.mrf.mxu3  ;;  %v4988_v52 = vld [vmem:[%s14496_s1 + $0x78] sm:$0xff] }
 0x382   :  { %v9790_v59 = vpop.eup %9789  ;;  %v3362_v0 = vadd.f32 1.0, %v9788_v40  ;;  %9795 = vpow2.f32 %v3234_v14  ;;  %v3238_v17 = vmul.f32 1.442695, %v2984_v42  ;;  %8891 = vmatmul.msk.f32.gmra.mxu3 %vm3626_vm1, %v12326_v60  ;;  %v5282_v37 = vld [vmem:[%s14496_s1 + $0x98] sm:$0xff]  ;;  %v4987_v40 = vld [vmem:[%s14496_s1 + $0x70] sm:$0xff]  ;;  %5051 = vmatpush.msrb.mxu2 %v4988_v52 }
 0x383   :  { %v3363_v27 = vadd.f32 1.0, %v9790_v59  ;;  %v2985_v3 = vsub.f32 0.0, %v12323_v26  ;;  %5345 = vmatpush.msrb.mxu1 %v5282_v37 }
 0x384   :  { %v9792_v35 = vpop.eup %9791  ;;  %9797 = vrcp.f32 %v3362_v0  ;;  %8923 = vmatmul.msk.f32.gmra.mxu2 %vm3626_vm1, %v12328_v11  ;;  %v4232_v63 = vpop.f32.mrf.mxu2 }
 0x385   :  { %v9794_v22 = vpop.eup %9793  ;;  %v3364_v61 = vadd.f32 1.0, %v9792_v35  ;;  %9799 = vrcp.f32 %v3363_v27  ;;  %v3240_v14 = vmul.f32 1.442695, %v2985_v3  ;;  %v12344_v59 = vadd.f32 %v4232_v63, %v4119_v18  ;;  %v12346_v0 = vpop.f32.mrf.mxu1  ;;  %v5281_v27 = vld [vmem:[%s14496_s1 + $0x90] sm:$0xff]  ;;  %v5135_v35 = vld [vmem:[%s14496_s1 + $0x88] sm:$0xff]  ;;  %5052 = vmatpush.msrb.mxu2 %v4987_v40 }
 0x386   :  { %v3365_v42 = vadd.f32 1.0, %v9794_v22  ;;  %9801 = vpow2.f32 %v3236_v19  ;;  %8955 = vmatmul.msk.f32.gmra.mxu1 %vm3626_vm1, %v4839_v32  ;;  %14532 = vst [vmem:[#allocation24_spill] sm:$0xff] %v12346_v0  ;;  %5198 = vmatpush.msrb.mxu3 %v5135_v35  ;;  %v4677_v22 = vld [vmem:[#allocation2 + $0x20] sm:$0xff]  ;;  %v4188_v0 = vadd.f32 %v11894_v33, %v11655_v57 }
 0x387   :  { %9803 = vrcp.f32 %v3364_v61  ;;  %5346 = vmatpush.msrb.mxu1 %v5281_v27 }
 0x388   :  { %9805 = vrcp.f32 %v3365_v42  ;;  %v9796_v19 = vpop.eup %9795 }
 0x389   :  { %9807 = vpow2.f32 %v3238_v17  ;;  %v3366_v3 = vadd.f32 1.0, %v9796_v19  ;;  %v9999_v17 = vld [vmem:[#allocation2 + $0x24] sm:$0xff]  ;;  %v4318_v40 = vpop.f32.mrf.mxu3 }
 0x38a   :  { %v9798_v32 = vpop.eup %9797  ;;  %9809 = vpow2.f32 %v3240_v14  ;;  %8924 = vmatmul.msk.f32.vlgmr.msra.gmra.mxu3 %vm3626_vm1, %v4677_v22  ;;  %v10000_v19 = vld [vmem:[#allocation2 + $0x28] sm:$0xff]  ;;  %v4366_v57 = vadd.f32 %v4318_v40, %v4188_v0  ;;  %v4678_v0 = vld [vmem:[#allocation2 + $0x30] sm:$0xff] }
 0x38b   :  { %v9800_v18 = vpop.eup %9799  ;;  %v3618_v63 = vmul.f32 %v9798_v32, %v12266_v2  ;;  %9811 = vrcp.f32 %v3366_v3 }
 0x38c   :  { %v9802_v52 = vpop.eup %9801  ;;  %v3619_v61 = vmul.f32 %v9800_v18, %v12277_v21  ;;  %8956 = vmatmul.msk.f32.vlgmr.msrb.gmra.mxu2 %vm3626_vm1, %v9999_v17  ;;  %v4612_v14 = vpop.f32.mrf.mxu2 }
 0x38d   :  { %v9804_v37 = vpop.eup %9803  ;;  %v3367_v42 = vadd.f32 1.0, %v9802_v52  ;;  %v12363_v33 = vpop.f32.mrf.mxu1  ;;  %v4513_v52 = vadd.f32 %v11857_v7, %v4366_v57  ;;  %v10001_v7 = vld [vmem:[#allocation2 + $0x34] sm:$0xff] }
 0x38e   :  { %v9806_v27 = vpop.eup %9805  ;;  %v3620_v35 = vmul.f32 %v9804_v37, %v12284_v4  ;;  %v3934_v2 = vsel %vm3822_vm3, %v3619_v61, %v3618_v63  ;;  %8988 = vmatmul.msk.f32.vlgmr.msrb.gmra.mxu1 %vm3626_vm1, %v10000_v19 }
 0x38f   :  { %v9808_v21 = vpop.eup %9807  ;;  %v3621_v32 = vmul.f32 %v9806_v27, %v12288_v29  ;;  %9813 = vrcp.f32 %v3367_v42  ;;  %v12369_v61 = vadd.f32 %v4612_v14, %v4513_v52  ;;  %v4191_v29 = vadd.f32 %v11921_v5, %v11677_v48  ;;  %v6753_v14 = vld [vmem:[%s14496_s1 + $0x138] sm:$0xff] }
 0x390   :  { %v9810_v3 = vpop.eup %9809  ;;  %v3935_v22 = vsel %vm3824_vm4, %v3620_v35, %v3934_v2  ;;  %v3368_v18 = vadd.f32 1.0, %v9808_v21  ;;  %v10002_v5 = vld [vmem:[#allocation2 + $0x38] sm:$0xff]  ;;  %6816 = vmatpush.msra.mxu0 %v6753_v14 }
 0x391   :  { %v3369_v17 = vadd.f32 1.0, %v9810_v3  ;;  %v9812_v4 = vpop.eup %9811  ;;  %v3936_v63 = vsel %vm3826_vm5, %v3621_v32, %v3935_v22  ;;  %v4321_v27 = vpop.f32.mrf.mxu3  ;;  %v10005_v14 = vld [vmem:[#allocation2 + $0x54] sm:$0xff] }
 0x392   :  { %9815 = vrcp.f32 %v3368_v18  ;;  %v3622_v37 = vmul.f32 %v9812_v4, %v12299_v50  ;;  %8925 = vmatmul.msk.f32.gmra.mxu3 %vm3626_vm1, %v4678_v0  ;;  %v6752_v50 = vld [vmem:[%s14496_s1 + $0x130] sm:$0xff]  ;;  %v4367_v2 = vadd.f32 %v4321_v27, %v4191_v29  ;;  %v10004_v0 = vld [vmem:[#allocation2 + $0x48] sm:$0xff] }
 0x393   :  { %9817 = vrcp.f32 %v3369_v17  ;;  %6817 = vmatpush.msra.mxu0 %v6752_v50  ;;  %v4194_v17 = vadd.f32 %v11959_v9, %v11707_v54 }
 0x394   :  { %v3937_v40 = vsel %vm3828_vm6, %v3622_v37, %v3936_v63  ;;  %8957 = vmatmul.msk.f32.gmra.mxu2 %vm3626_vm1, %v10001_v7  ;;  %v4615_v35 = vpop.f32.mrf.mxu2  ;;  %v4514_v32 = vadd.f32 %v11884_v16, %v4367_v2  ;;  %v12397_v63 = vld [vmem:[#allocation2 + $0x40] sm:$0xff]  ;;  %v12413_v7 = vld [vmem:[#allocation2 + $0x50] sm:$0xff]  ;;  %v4200_v2 = vadd.f32 %v12022_v31, %v11769_v38 }
 0x395   :  { %v9814_v42 = vpop.eup %9813  ;;  %v12385_v19 = vpop.f32.mrf.mxu1  ;;  %v10003_v16 = vld [vmem:[#allocation2 + $0x44] sm:$0xff]  ;;  %v6163_v31 = vld [vmem:[#allocation2 + $0x1d0] sm:$0xff] }
 0x396   :  { %v3623_v48 = vmul.f32 %v9814_v42, %v12313_v12  ;;  %8989 = vmatmul.msk.f32.gmra.mxu1 %vm3626_vm1, %v10002_v5  ;;  %v12391_v52 = vadd.f32 %v4615_v35, %v4514_v32  ;;  %v4197_v42 = vadd.f32 %v11987_v30, %v11733_v8 }
 0x398   :  { %v9816_v57 = vpop.eup %9815  ;;  %v3938_v21 = vsel %vm3830_vm7, %v3623_v48, %v3937_v40  ;;  %v6162_v48 = vld [vmem:[#allocation2 + $0x1c0] sm:$0xff] }
 0x399   :  { %v9818_v3 = vpop.eup %9817  ;;  %v3624_v22 = vmul.f32 %v9816_v57, %v12318_v44  ;;  %v4324_v44 = vpop.f32.mrf.mxu3  ;;  %v12428_v57 = vld [vmem:[#allocation2 + $0x60] sm:$0xff] }
 0x39a   :  { %v3625_v18 = vmul.f32 %v9818_v3, %v12323_v26  ;;  %8926 = vmatmul.msk.f32.gmra.mxu3 %vm3626_vm1, %v12397_v63  ;;  %v4368_v37 = vadd.f32 %v4324_v44, %v4194_v17  ;;  %v10007_v3 = vld [vmem:[#allocation2 + $0x64] sm:$0xff]  ;;  %v4203_v17 = vadd.f32 %v12037_v53, %v11790_v20 }
 0x39b   :  { %v3939_v12 = vsel %vm3832_vm8, %v3624_v22, %v3938_v21  ;;  %v10008_v22 = vld [vmem:[#allocation2 + $0x68] sm:$0xff] }
 0x39c   :  { %v3940_v4 = vsel %vm3834_vm9, %v3625_v18, %v3939_v12  ;;  %8958 = vmatmul.msk.f32.gmra.mxu2 %vm3626_vm1, %v10003_v16  ;;  %v4618_v26 = vpop.f32.mrf.mxu2  ;;  %v4515_v54 = vadd.f32 %v11909_v1, %v4368_v37  ;;  %v10006_v1 = vld [vmem:[#allocation2 + $0x58] sm:$0xff] }
 0x39d   :  { %3972 = vst.msk [vmem:[#allocation2 + $0x1b4] sm:$0xff] %vm3626_vm1, %v3940_v4  ;;  %v12404_v29 = vpop.f32.mrf.mxu1  ;;  %v12442_v4 = vld [vmem:[#allocation2 + $0x70] sm:$0xff] }
 0x39e   :  { %8990 = vmatmul.msk.f32.gmra.mxu1 %vm3626_vm1, %v10004_v0  ;;  %v12407_v9 = vadd.f32 %v4618_v26, %v4515_v54  ;;  %v10009_v26 = vld [vmem:[#allocation2 + $0x74] sm:$0xff]  ;;  %v4206_v54 = vadd.f32 %v12057_v39, %v11807_v28 }
 0x39f   :  { %v10010_v0 = vld [vmem:[#allocation2 + $0x78] sm:$0xff] }
 0x3a1   :  { %v4327_v27 = vpop.f32.mrf.mxu3 }
 0x3a2   :  { %8927 = vmatmul.msk.f32.gmra.mxu3 %vm3626_vm1, %v12413_v7  ;;  %v4369_v50 = vadd.f32 %v4327_v27, %v4197_v42  ;;  %v12456_v42 = vld [vmem:[#allocation2 + $0x80] sm:$0xff]  ;;  %v6738_v27 = vld [vmem:[#allocation2 + $0x88] sm:$0xff] }
 0x3a4   :  { %v12411_v40 = vld [vmem:[#allocation2 + $0x1b0] sm:$0xff]  ;;  %v4621_v35 = vpop.f32.mrf.mxu2  ;;  %8959 = vmatmul.msk.f32.gmra.mxu2 %vm3626_vm1, %v10005_v14  ;;  %v4516_v30 = vadd.f32 %v11947_v41, %v4369_v50 }
 0x3a5   :  { %9097 = vmatmul.msk.f32.gmra.mxu0 %vm3626_vm1, %v12411_v40  ;;  %v12421_v8 = vpop.f32.mrf.mxu1 }
 0x3a6   :  { %8991 = vmatmul.msk.f32.gmra.mxu1 %vm3626_vm1, %v10006_v1  ;;  %v12424_v5 = vadd.f32 %v4621_v35, %v4516_v30  ;;  %v12461_v35 = vld [vmem:[#allocation2 + $0x84] sm:$0xff]  ;;  %v4209_v30 = vadd.f32 %v12078_v13, %v11831_v46 }
 0x3a9   :  { %v4330_v21 = vpop.f32.mrf.mxu3 }
 0x3aa   :  { %8928 = vmatmul.msk.f32.gmra.mxu3 %vm3626_vm1, %v12428_v57  ;;  %v4370_v41 = vadd.f32 %v4330_v21, %v4200_v2  ;;  %v6739_v2 = vld [vmem:[#allocation2 + $0x98] sm:$0xff] }
 0x3ab   :  { %v12478_v21 = vld [vmem:[#allocation2 + $0x94] sm:$0xff] }
 0x3ac   :  { %v4624_v32 = vpop.f32.mrf.mxu2  ;;  %8960 = vmatmul.msk.f32.gmra.mxu2 %vm3626_vm1, %v10007_v3  ;;  %v4517_v38 = vadd.f32 %v11974_v36, %v4370_v41 }
 0x3ad   :  { %9098 = vmatmul.msk.f32.gmra.mxu0 %vm3626_vm1, %v6162_v48  ;;  %v12435_v18 = vpop.f32.mrf.mxu1  ;;  %v12473_v48 = vld [vmem:[#allocation2 + $0x90] sm:$0xff] }
 0x3ae   :  { %8992 = vmatmul.msk.f32.gmra.mxu1 %vm3626_vm1, %v10008_v22  ;;  %v12438_v12 = vadd.f32 %v4624_v32, %v4517_v38  ;;  %v4685_v38 = vld [vmem:[#allocation2 + $0x120] sm:$0xff] }
 0x3b1   :  { %v4333_v16 = vpop.f32.mrf.mxu3 }
 0x3b2   :  { %8929 = vmatmul.msk.f32.gmra.mxu3 %vm3626_vm1, %v12442_v4  ;;  %v4371_v36 = vadd.f32 %v4333_v16, %v4203_v17  ;;  %v14533_v16 = vld [vmem:[#allocation12_spill] sm:$0xff] }
 0x3b4   :  { %v4627_v44 = vpop.f32.mrf.mxu2  ;;  %8961 = vmatmul.msk.f32.gmra.mxu2 %vm3626_vm1, %v10009_v26  ;;  %v4518_v20 = vadd.f32 %v12016_v43, %v4371_v36 }
 0x3b5   :  { %9099 = vmatmul.msk.f32.gmra.mxu0 %vm3626_vm1, %v6163_v31  ;;  %v12449_v37 = vpop.f32.mrf.mxu1  ;;  %v4212_v31 = vadd.f32 %v12100_v58, %v11786_v47  ;;  %v14536_v47 = vld [vmem:[#allocation3_spill] sm:$0xff]  ;;  %v14537_v58 = vld [vmem:[#allocation8_spill] sm:$0xff] }
 0x3b6   :  { %8993 = vmatmul.msk.f32.gmra.mxu1 %vm3626_vm1, %v10010_v0  ;;  %v12452_v53 = vadd.f32 %v4627_v44, %v4518_v20  ;;  %v14534_v44 = vld [vmem:[#allocation13_spill] sm:$0xff] }
 0x3b9   :  { %v4336_v14 = vpop.f32.mrf.mxu3 }
 0x3ba   :  { %8930 = vmatmul.msk.f32.gmra.mxu3 %vm3626_vm1, %v12456_v42  ;;  %v4372_v43 = vadd.f32 %v4336_v14, %v4206_v54  ;;  %v4686_v54 = vld [vmem:[#allocation2 + $0x130] sm:$0xff] }
 0x3bc   :  { %v4630_v1 = vpop.f32.mrf.mxu2  ;;  %8962 = vmatmul.msk.f32.gmra.mxu2 %vm3626_vm1, %v12461_v35  ;;  %v4519_v28 = vadd.f32 %v12034_v6, %v4372_v43  ;;  %v5134_v6 = vld [vmem:[%s14496_s1 + $0x80] sm:$0xff] }
 0x3bd   :  { %9148 = vmatmul.msk.f32.vlgmr.msra.gmra.mxu0 %vm3626_vm1, %v10008_v22  ;;  %v12466_v50 = vpop.f32.mrf.mxu1  ;;  %5199 = vmatpush.msrb.mxu3 %v5134_v6  ;;  %v6740_v6 = vld [vmem:[#allocation2 + $0xa8] sm:$0xff] }
 0x3be   :  { %8994 = vmatmul.msk.f32.gmra.mxu1 %vm3626_vm1, %v6738_v27  ;;  %v12469_v39 = vadd.f32 %v4630_v1, %v4519_v28 }
 0x3c1   :  { %v4339_v32 = vpop.f32.mrf.mxu3 }
 0x3c2   :  { %8931 = vmatmul.msk.f32.gmra.mxu3 %vm3626_vm1, %v12473_v48  ;;  %v4373_v46 = vadd.f32 %v4339_v32, %v4209_v30  ;;  %v14538_v30 = vld [vmem:[#allocation7_spill] sm:$0xff] }
 0x3c4   :  { %v4633_v3 = vpop.f32.mrf.mxu2  ;;  %8963 = vmatmul.msk.f32.gmra.mxu2 %vm3626_vm1, %v12478_v21  ;;  %v4520_v13 = vadd.f32 %v12064_v23, %v4373_v46  ;;  %v12517_v46 = vpop.f32.mrf.mxu0 }
 0x3c5   :  { %9149 = vmatmul.msk.f32.gmra.mxu0 %vm3626_vm1, %v10010_v0  ;;  %v14535_v0 = vld [vmem:[#allocation6_spill] sm:$0xff]  ;;  %14539 = vst [vmem:[#allocation12_spill] sm:$0xff] %v12517_v46  ;;  %v12784_v46 = vld [vmem:[#allocation2 + $0xa6] sm:$0xff] }
 0x3c6   :  { %8995 = vmatmul.msk.f32.gmra.mxu1 %vm3626_vm1, %v6739_v2  ;;  %v12487_v22 = vpop.f32.mrf.mxu1  ;;  %v12489_v41 = vadd.f32 %v4633_v3, %v4520_v13  ;;  %v14541_v13 = vld [vmem:[#allocation18_spill] sm:$0xff] }
 0x3ca   :  { %8932 = vmatmul.msk.f32.gmra.mxu3 %vm3626_vm1, %v4685_v38  ;;  %v14542_v38 = vld [vmem:[#allocation4_spill] sm:$0xff] }
 0x3cb   :  { %v4342_v17 = vpop.f32.mrf.mxu3 }
 0x3cc   :  { %8964 = vmatmul.msk.f32.gmra.mxu2 %vm3626_vm1, %v14533_v16  ;;  %v4374_v23 = vadd.f32 %v4342_v17, %v4212_v31  ;;  %v4636_v26 = vpop.f32.mrf.mxu2  ;;  %v14543_v31 = vld [vmem:[#allocation10_spill] sm:$0xff] }
 0x3cd   :  { %9150 = vmatmul.msk.f32.gmra.mxu0 %vm3626_vm1, %v6738_v27  ;;  %v4215_v27 = vadd.f32 %v14537_v58, %v14536_v47  ;;  %v4218_v17 = vadd.f32 %v14543_v31, %v14542_v38  ;;  %v12533_v47 = vld [vmem:[#allocation2 + $0x150] sm:$0xff] }
 0x3ce   :  { %8996 = vmatmul.msk.f32.gmra.mxu1 %vm3626_vm1, %v14534_v44  ;;  %v4521_v36 = vadd.f32 %v14535_v0, %v4374_v23 }
 0x3d0   :  { %v12500_v20 = vadd.f32 %v4636_v26, %v4521_v36  ;;  %v14544_v26 = vld [vmem:[#allocation9_spill] sm:$0xff] }
 0x3d1   :  { %v12502_v14 = vpop.f32.mrf.mxu1 }
 0x3d2   :  { %8933 = vmatmul.msk.f32.gmra.mxu3 %vm3626_vm1, %v4686_v54  ;;  %v6741_v54 = vld [vmem:[#allocation2 + $0xb8] sm:$0xff] }
 0x3d4   :  { %8965 = vmatmul.msk.f32.gmra.mxu2 %vm3626_vm1, %v12192_v56  ;;  %v4345_v1 = vpop.f32.mrf.mxu3 }
 0x3d5   :  { %9151 = vmatmul.msk.f32.gmra.mxu0 %vm3626_vm1, %v6739_v2  ;;  %v4375_v28 = vadd.f32 %v4345_v1, %v4215_v27  ;;  %v12515_v2 = vld [vmem:[#allocation2 + $0x140] sm:$0xff]  ;;  %v14545_v27 = vld [vmem:[#allocation5_spill] sm:$0xff]  ;;  %v14546_v1 = vld [vmem:[#allocation14_spill] sm:$0xff] }
 0x3d6   :  { %8997 = vmatmul.msk.f32.gmra.mxu1 %vm3626_vm1, %v12194_v15  ;;  %v4639_v43 = vpop.f32.mrf.mxu2  ;;  %v14540_v15 = vld [vmem:[#allocation17_spill] sm:$0xff] }
 0x3d7   :  { %v4522_v32 = vadd.f32 %v14538_v30, %v4375_v28  ;;  %v12546_v28 = vpop.f32.mrf.mxu0 }
 0x3d8   :  { %14547 = vst [vmem:[#allocation13_spill] sm:$0xff] %v12546_v28  ;;  %v12611_v28 = vld [vmem:[#allocation2 + $0x194] sm:$0xff] }
 0x3d9   :  { %v12520_v56 = vadd.f32 %v4639_v43, %v4522_v32  ;;  %v4221_v43 = vadd.f32 %v14546_v1, %v14545_v27  ;;  %v6743_v1 = vld [vmem:[#allocation2 + $0xd8] sm:$0xff] }
 0x3da   :  { %8934 = vmatmul.msk.f32.gmra.mxu3 %vm3626_vm1, %v12515_v2 }
 0x3db   :  { %v12513_v3 = vpop.f32.mrf.mxu1 }
 0x3dc   :  { %8966 = vmatmul.msk.f32.gmra.mxu2 %vm3626_vm1, %v14540_v15  ;;  %v4348_v16 = vpop.f32.mrf.mxu3  ;;  %v6742_v15 = vld [vmem:[#allocation2 + $0xc8] sm:$0xff] }
 0x3dd   :  { %9152 = vmatmul.msk.f32.gmra.mxu0 %vm3626_vm1, %v6740_v6  ;;  %v4376_v23 = vadd.f32 %v4348_v16, %v4218_v17  ;;  %v12551_v17 = vld [vmem:[#allocation2 + $0x160] sm:$0xff] }
 0x3de   :  { %8998 = vmatmul.msk.f32.gmra.mxu1 %vm3626_vm1, %v14541_v13  ;;  %v4642_v44 = vpop.f32.mrf.mxu2  ;;  %v14548_v13 = vld [vmem:[#allocation11_spill] sm:$0xff] }
 0x3df   :  { %v4523_v0 = vadd.f32 %v14544_v26, %v4376_v23 }
 0x3e1   :  { %v12536_v58 = vadd.f32 %v4642_v44, %v4523_v0  ;;  %v14550_v44 = vld [vmem:[#allocation20_spill] sm:$0xff] }
 0x3e2   :  { %8935 = vmatmul.msk.f32.gmra.mxu3 %vm3626_vm1, %v12533_v47 }
 0x3e3   :  { %v12531_v36 = vpop.f32.mrf.mxu1 }
 0x3e4   :  { %8967 = vmatmul.msk.f32.gmra.mxu2 %vm3626_vm1, %v12259_v45  ;;  %v4351_v30 = vpop.f32.mrf.mxu3 }
 0x3e5   :  { %9153 = vmatmul.msk.f32.gmra.mxu0 %vm3626_vm1, %v6741_v54  ;;  %v4377_v6 = vadd.f32 %v4351_v30, %v4221_v43  ;;  %v12564_v54 = vpop.f32.mrf.mxu0  ;;  %v14552_v43 = vld [vmem:[#allocation15_spill] sm:$0xff] }
 0x3e6   :  { %8999 = vmatmul.msk.f32.gmra.mxu1 %vm3626_vm1, %v12261_v34  ;;  %v14549_v34 = vld [vmem:[#allocation16_spill] sm:$0xff]  ;;  %14551 = vst [vmem:[#allocation6_spill] sm:$0xff] %v12564_v54 }
 0x3e7   :  { %v4645_v32 = vpop.f32.mrf.mxu2  ;;  %v4524_v38 = vadd.f32 %v14548_v13, %v4377_v6  ;;  %v4224_v23 = vadd.f32 %v14550_v44, %v14549_v34  ;;  %v12569_v6 = vld [vmem:[#allocation2 + $0x170] sm:$0xff]  ;;  %v4227_v13 = vadd.f32 %v12268_v25, %v12256_v62  ;;  %v12593_v54 = vld [vmem:[#allocation2 + $0x184] sm:$0xff]  ;;  %v4230_v62 = vadd.f32 %v12301_v55, %v12294_v24 }
 0x3e8   :  { %v5429_v24 = vld [vmem:[%s14496_s1 + $0xa8] sm:$0xff] }
 0x3e9   :  { %v12554_v16 = vadd.f32 %v4645_v32, %v4524_v38  ;;  %v5723_v55 = vld [vmem:[%s14496_s1 + $0xc8] sm:$0xff]  ;;  %5492 = vmatpush.msra.mxu2 %v5429_v24  ;;  %v5576_v24 = vld [vmem:[%s14496_s1 + $0xb8] sm:$0xff] }
 0x3ea   :  { %8936 = vmatmul.msk.f32.gmra.mxu3 %vm3626_vm1, %v12551_v17  ;;  %5786 = vmatpush.msra.mxu1 %v5723_v55  ;;  %v5706_v55 = vld [vmem:[#allocation2 + $0x44] sm:$0xff] }
 0x3eb   :  { %v12549_v31 = vpop.f32.mrf.mxu1  ;;  %5639 = vmatpush.msra.mxu3 %v5576_v24  ;;  %v14560_v24 = vld [vmem:[#allocation24_spill] sm:$0xff] }
 0x3ec   :  { %8968 = vmatmul.msk.f32.gmra.mxu2 %vm3626_vm1, %v12292_v49 }
 0x3ed   :  { %9154 = vmatmul.msk.f32.gmra.mxu0 %vm3626_vm1, %v6742_v15  ;;  %v4354_v26 = vpop.f32.mrf.mxu3 }
 0x3ee   :  { %9000 = vmatmul.msk.f32.gmra.mxu1 %vm3626_vm1, %v12296_v10  ;;  %v4378_v27 = vadd.f32 %v4354_v26, %v4224_v23  ;;  %v12582_v23 = vpop.f32.mrf.mxu0  ;;  %v14554_v26 = vld [vmem:[#allocation21_spill] sm:$0xff] }
 0x3ef   :  { %v4648_v0 = vpop.f32.mrf.mxu2  ;;  %14553 = vst [vmem:[#allocation3_spill] sm:$0xff] %v12582_v23  ;;  %v14558_v23 = vld [vmem:[#allocation22_spill] sm:$0xff] }
 0x3f0   :  { %v4525_v30 = vadd.f32 %v14552_v43, %v4378_v27 }
 0x3f2   :  { %v12572_v15 = vadd.f32 %v4648_v0, %v4525_v30  ;;  %8937 = vmatmul.msk.f32.gmra.mxu3 %vm3626_vm1, %v12569_v6  ;;  %v14555_v30 = vld [vmem:[#allocation19_spill] sm:$0xff] }
 0x3f3   :  { %v12567_v32 = vpop.f32.mrf.mxu1 }
 0x3f4   :  { %8969 = vmatmul.msk.f32.gmra.mxu2 %vm3626_vm1, %v12326_v60 }
 0x3f5   :  { %9155 = vmatmul.msk.f32.gmra.mxu0 %vm3626_vm1, %v6743_v1  ;;  %v4357_v38 = vpop.f32.mrf.mxu3  ;;  %v6746_v1 = vld [vmem:[#allocation2 + $0x188] sm:$0xff] }
 0x3f6   :  { %9001 = vmatmul.msk.f32.gmra.mxu1 %vm3626_vm1, %v12328_v11  ;;  %v4379_v44 = vadd.f32 %v4357_v38, %v4227_v13 }
 0x3f7   :  { %v4651_v34 = vpop.f32.mrf.mxu2 }
 0x3f8   :  { %v4526_v0 = vadd.f32 %v14554_v26, %v4379_v44  ;;  %v6747_v26 = vld [vmem:[#allocation2 + $0x198] sm:$0xff] }
 0x3fa   :  { %v12589_v43 = vadd.f32 %v4651_v34, %v4526_v0  ;;  %8938 = vmatmul.msk.f32.gmra.mxu3 %vm3626_vm1, %v14555_v30  ;;  %v12603_v0 = vpop.f32.mrf.mxu0 }
 0x3fb   :  { %v12585_v27 = vpop.f32.mrf.mxu1  ;;  %14557 = vst [vmem:[#allocation8_spill] sm:$0xff] %v12603_v0 }
 0x3fc   :  { %8970 = vmatmul.msk.f32.gmra.mxu2 %vm3626_vm1, %v12593_v54 }
 0x3fd   :  { %9156 = vmatmul.msk.f32.gmra.mxu0 %vm3626_vm1, %v12296_v10  ;;  %v4360_v25 = vpop.f32.mrf.mxu3  ;;  %v14556_v10 = vld [vmem:[#allocation23_spill] sm:$0xff] }
 0x3fe   :  { %9002 = vmatmul.msk.f32.gmra.mxu1 %vm3626_vm1, %v6746_v1  ;;  %v4380_v38 = vadd.f32 %v4360_v25, %v4230_v62  ;;  %v5428_v25 = vld [vmem:[%s14496_s1 + $0xa0] sm:$0xff] }
 0x3ff   :  { %v4654_v13 = vpop.f32.mrf.mxu2  ;;  %5493 = vmatpush.msra.mxu2 %v5428_v25 }
 0x400   :  { %v4527_v44 = vadd.f32 %v14556_v10, %v4380_v38  ;;  %v5118_v38 = vld [vmem:[#allocation2 + $0x26] sm:$0xff] }
 0x402   :  { %v12607_v30 = vadd.f32 %v4654_v13, %v4527_v44  ;;  %8939 = vmatmul.msk.f32.gmra.mxu3 %vm3626_vm1, %v14558_v23  ;;  %v5722_v13 = vld [vmem:[%s14496_s1 + $0xc0] sm:$0xff] }
 0x403   :  { %v12601_v34 = vpop.f32.mrf.mxu1  ;;  %5787 = vmatpush.msra.mxu1 %v5722_v13  ;;  %v5119_v13 = vld [vmem:[#allocation2 + $0x36] sm:$0xff] }
 0x404   :  { %8971 = vmatmul.msk.f32.gmra.mxu2 %vm3626_vm1, %v12611_v28 }
 0x405   :  { %9157 = vmatmul.msk.f32.gmra.mxu0 %vm3626_vm1, %v12328_v11  ;;  %v4363_v11 = vpop.f32.mrf.mxu3 }
 0x406   :  { %9003 = vmatmul.msk.f32.gmra.mxu1 %vm3626_vm1, %v6747_v26  ;;  %v4381_v23 = vadd.f32 %v4363_v11, %v12344_v59 }
 0x407   :  { %v4657_v62 = vpop.f32.mrf.mxu2 }
 0x408   :  { %v4528_v10 = vadd.f32 %v12307_v51, %v4381_v23  ;;  %v12642_v51 = vpop.f32.mrf.mxu0 }
 0x409   :  { %14559 = vst [vmem:[#allocation7_spill] sm:$0xff] %v12642_v51 }
 0x40a   :  { %v12636_v59 = vadd.f32 %v4657_v62, %v4528_v10  ;;  %8972 = vmatmul.msk.f32.vlgmr.msrb.gmra.mxu3 %vm3626_vm1, %v5118_v38 }
 0x40b   :  { %v12630_v44 = vpop.f32.mrf.mxu1 }
 0x40c   :  { %9004 = vmatmul.msk.f32.vlgmr.msra.gmra.mxu2 %vm3626_vm1, %v12397_v63  ;;  %v5707_v63 = vld [vmem:[#allocation2 + $0x54] sm:$0xff] }
 0x40d   :  { %9158 = vmatmul.msk.f32.gmra.mxu0 %vm3626_vm1, %v6746_v1  ;;  %v4760_v11 = vpop.f32.mrf.mxu3 }
 0x40e   :  { %9036 = vmatmul.msk.f32.vlgmr.msra.gmra.mxu1 %vm3626_vm1, %v5706_v55  ;;  %v4808_v25 = vadd.f32 %v4760_v11, %v12369_v61  ;;  %v7341_v11 = vld [vmem:[%s14496_s1 + $0x170] sm:$0xff] }
 0x40f   :  { %v5054_v23 = vpop.f32.mrf.mxu2 }
 0x410   :  { %v4955_v0 = vadd.f32 %v14560_v24, %v4808_v25  ;;  %v12655_v61 = vpop.f32.mrf.mxu0  ;;  %v12667_v25 = vld [vmem:[#allocation2 + $0x46] sm:$0xff] }
 0x411   :  { %14561 = vst [vmem:[#allocation17_spill] sm:$0xff] %v12655_v61 }
 0x412   :  { %v12649_v62 = vadd.f32 %v5054_v23, %v4955_v0  ;;  %8973 = vmatmul.msk.f32.gmra.mxu3 %vm3626_vm1, %v5119_v13  ;;  %v6748_v0 = vld [vmem:[#allocation2 + $0x1a8] sm:$0xff] }
 0x413   :  { %v12646_v1 = vpop.f32.mrf.mxu1  ;;  %v12674_v13 = vld [vmem:[#allocation2 + $0x64] sm:$0xff] }
 0x414   :  { %9005 = vmatmul.msk.f32.gmra.mxu2 %vm3626_vm1, %v12413_v7 }
 0x415   :  { %9159 = vmatmul.msk.f32.gmra.mxu0 %vm3626_vm1, %v6747_v26  ;;  %v4763_v38 = vpop.f32.mrf.mxu3  ;;  %v7342_v26 = vld [vmem:[%s14496_s1 + $0x178] sm:$0xff] }
 0x416   :  { %9037 = vmatmul.msk.f32.gmra.mxu1 %vm3626_vm1, %v5707_v63  ;;  %v4809_v55 = vadd.f32 %v4763_v38, %v12391_v52  ;;  %7405 = vmatpush.msrb.mxu0 %v7342_v26  ;;  %v6749_v38 = vld [vmem:[#allocation2 + $0x1b8] sm:$0xff] }
 0x417   :  { %v5057_v10 = vpop.f32.mrf.mxu2 }
 0x418   :  { %v4956_v7 = vadd.f32 %v12363_v33, %v4809_v55  ;;  %7406 = vmatpush.msrb.mxu0 %v7341_v11  ;;  %v12681_v55 = vpop.f32.mrf.mxu0 }
 0x419   :  { %14562 = vst [vmem:[#allocation18_spill] sm:$0xff] %v12681_v55 }
 0x41a   :  { %v12670_v52 = vadd.f32 %v5057_v10, %v4956_v7  ;;  %8974 = vmatmul.msk.f32.gmra.mxu3 %vm3626_vm1, %v12667_v25 }
 0x41b   :  { %v12665_v23 = vpop.f32.mrf.mxu1 }
 0x41c   :  { %9006 = vmatmul.msk.f32.gmra.mxu2 %vm3626_vm1, %v12428_v57  ;;  %v12693_v57 = vld [vmem:[#allocation2 + $0x74] sm:$0xff] }
 0x41d   :  { %9160 = vmatmul.msk.f32.gmra.mxu0 %vm3626_vm1, %v6748_v0  ;;  %v4766_v33 = vpop.f32.mrf.mxu3  ;;  %v12686_v0 = vld [vmem:[#allocation2 + $0x56] sm:$0xff] }
 0x41e   :  { %9038 = vmatmul.msk.f32.gmra.mxu1 %vm3626_vm1, %v12674_v13  ;;  %v4810_v63 = vadd.f32 %v4766_v33, %v12407_v9  ;;  %v6750_v33 = vld [vmem:[#allocation2 + $0x1c8] sm:$0xff] }
 0x41f   :  { %v5060_v24 = vpop.f32.mrf.mxu2 }
 0x420   :  { %v4957_v10 = vadd.f32 %v12385_v19, %v4810_v63 }
 0x422   :  { %v12689_v11 = vadd.f32 %v5060_v24, %v4957_v10  ;;  %8975 = vmatmul.msk.f32.gmra.mxu3 %vm3626_vm1, %v12686_v0  ;;  %v12705_v10 = vpop.f32.mrf.mxu0 }
 0x423   :  { %v12684_v26 = vpop.f32.mrf.mxu1  ;;  %14563 = vst [vmem:[#allocation4_spill] sm:$0xff] %v12705_v10 }
 0x424   :  { %9007 = vmatmul.msk.f32.gmra.mxu2 %vm3626_vm1, %v12442_v4 }
 0x425   :  { %9161 = vmatmul.msk.f32.gmra.mxu0 %vm3626_vm1, %v6749_v38  ;;  %v4769_v19 = vpop.f32.mrf.mxu3  ;;  %v12703_v38 = vld [vmem:[#allocation2 + $0x66] sm:$0xff] }
 0x426   :  { %9039 = vmatmul.msk.f32.gmra.mxu1 %vm3626_vm1, %v12693_v57  ;;  %v4811_v9 = vadd.f32 %v4769_v19, %v12424_v5  ;;  %v6751_v19 = vld [vmem:[#allocation2 + $0x1d8] sm:$0xff] }
 0x427   :  { %v5063_v7 = vpop.f32.mrf.mxu2 }
 0x428   :  { %v4958_v63 = vadd.f32 %v12404_v29, %v4811_v9 }
 0x42a   :  { %v12708_v55 = vadd.f32 %v5063_v7, %v4958_v63  ;;  %8976 = vmatmul.msk.f32.gmra.mxu3 %vm3626_vm1, %v12703_v38  ;;  %v12720_v7 = vld [vmem:[#allocation2 + $0x76] sm:$0xff] }
 0x42b   :  { %v12701_v24 = vpop.f32.mrf.mxu1 }
 0x42c   :  { %9008 = vmatmul.msk.f32.gmra.mxu2 %vm3626_vm1, %v12456_v42 }
 0x42d   :  { %9162 = vmatmul.msk.f32.gmra.mxu0 %vm3626_vm1, %v6750_v33  ;;  %v4772_v29 = vpop.f32.mrf.mxu3 }
 0x42e   :  { %9040 = vmatmul.msk.f32.gmra.mxu1 %vm3626_vm1, %v12461_v35  ;;  %v4812_v5 = vadd.f32 %v4772_v29, %v12438_v12  ;;  %v12731_v12 = vpop.f32.mrf.mxu0 }
 0x42f   :  { %v5066_v4 = vpop.f32.mrf.mxu2  ;;  %14564 = vst [vmem:[#allocation10_spill] sm:$0xff] %v12731_v12  ;;  %v12767_v12 = vld [vmem:[#allocation2 + $0xb0] sm:$0xff] }
 0x430   :  { %v4959_v9 = vadd.f32 %v12421_v8, %v4812_v5  ;;  %v12737_v5 = vld [vmem:[#allocation2 + $0x86] sm:$0xff]  ;;  %14567 = vst [vmem:[#allocation14_spill] sm:$0xff] %v12767_v12 }
 0x432   :  { %v12723_v33 = vadd.f32 %v5066_v4, %v4959_v9  ;;  %8977 = vmatmul.msk.f32.gmra.mxu3 %vm3626_vm1, %v12720_v7 }
 0x433   :  { %v12718_v10 = vpop.f32.mrf.mxu1 }
 0x434   :  { %9009 = vmatmul.msk.f32.gmra.mxu2 %vm3626_vm1, %v12473_v48  ;;  %v12745_v48 = vld [vmem:[#allocation2 + $0xa0] sm:$0xff] }
 0x435   :  { %9163 = vmatmul.msk.f32.gmra.mxu0 %vm3626_vm1, %v6751_v19  ;;  %v4775_v8 = vpop.f32.mrf.mxu3 }
 0x436   :  { %9041 = vmatmul.msk.f32.gmra.mxu1 %vm3626_vm1, %v12478_v21  ;;  %v4813_v42 = vadd.f32 %v4775_v8, %v12452_v53  ;;  %v12747_v21 = vld [vmem:[#allocation2 + $0xa4] sm:$0xff] }
 0x437   :  { %v5069_v35 = vpop.f32.mrf.mxu2  ;;  %14565 = vst [vmem:[#allocation9_spill] sm:$0xff] %v12747_v21 }
 0x438   :  { %v4960_v63 = vadd.f32 %v12435_v18, %v4813_v42  ;;  %v12753_v18 = vpop.f32.mrf.mxu0 }
 0x439   :  { %14566 = vst [vmem:[#allocation5_spill] sm:$0xff] %v12753_v18  ;;  %v12769_v18 = vld [vmem:[#allocation2 + $0xb4] sm:$0xff] }
 0x43a   :  { %v12741_v4 = vadd.f32 %v5069_v35, %v4960_v63  ;;  %8978 = vmatmul.msk.f32.gmra.mxu3 %vm3626_vm1, %v12737_v5  ;;  %v12759_v35 = vld [vmem:[#allocation2 + $0x96] sm:$0xff]  ;;  %14568 = vst [vmem:[#allocation11_spill] sm:$0xff] %v12769_v18 }
 0x43b   :  { %v12735_v29 = vpop.f32.mrf.mxu1 }
 0x43c   :  { %9010 = vmatmul.msk.f32.gmra.mxu2 %vm3626_vm1, %v12745_v48 }
 0x43d   :  { %9212 = vmatmul.msk.f32.vlgmr.msrb.gmra.mxu0 %vm3626_vm1, %v12737_v5  ;;  %v4778_v53 = vpop.f32.mrf.mxu3 }
 0x43e   :  { %9042 = vmatmul.msk.f32.gmra.mxu1 %vm3626_vm1, %v12747_v21  ;;  %v4814_v19 = vadd.f32 %v4778_v53, %v12469_v39 }
 0x43f   :  { %v5072_v9 = vpop.f32.mrf.mxu2 }
 0x440   :  { %v4961_v8 = vadd.f32 %v12449_v37, %v4814_v19  ;;  %v12775_v39 = vpop.f32.mrf.mxu0 }
 0x441   :  { %14569 = vst [vmem:[#allocation16_spill] sm:$0xff] %v12775_v39 }
 0x442   :  { %v12763_v63 = vadd.f32 %v5072_v9, %v4961_v8  ;;  %8979 = vmatmul.msk.f32.gmra.mxu3 %vm3626_vm1, %v12759_v35  ;;  %v5126_v9 = vld [vmem:[#allocation2 + $0x126] sm:$0xff]  ;;  %v5575_v8 = vld [vmem:[%s14496_s1 + $0xb0] sm:$0xff] }
 0x443   :  { %v12757_v42 = vpop.f32.mrf.mxu1  ;;  %5640 = vmatpush.msra.mxu3 %v5575_v8  ;;  %v5127_v8 = vld [vmem:[#allocation2 + $0x136] sm:$0xff] }
 0x444   :  { %9011 = vmatmul.msk.f32.gmra.mxu2 %vm3626_vm1, %v12767_v12 }
 0x445   :  { %9213 = vmatmul.msk.f32.gmra.mxu0 %vm3626_vm1, %v12759_v35  ;;  %v4781_v37 = vpop.f32.mrf.mxu3 }
 0x446   :  { %9043 = vmatmul.msk.f32.gmra.mxu1 %vm3626_vm1, %v12769_v18  ;;  %v4815_v53 = vadd.f32 %v4781_v37, %v12489_v41  ;;  %v10011_v41 = vld [vmem:[#allocation2 + $0x144] sm:$0xff] }
 0x447   :  { %v5075_v19 = vpop.f32.mrf.mxu2 }
 0x448   :  { %v4962_v61 = vadd.f32 %v12466_v50, %v4815_v53  ;;  %v12795_v39 = vpop.f32.mrf.mxu0 }
 0x44a   :  { %v12788_v18 = vadd.f32 %v5075_v19, %v4962_v61  ;;  %8980 = vmatmul.msk.f32.gmra.mxu3 %vm3626_vm1, %v5126_v9  ;;  %v12800_v61 = vld [vmem:[#allocation2 + $0xb6] sm:$0xff]  ;;  %v7329_v9 = vld [vmem:[#allocation2 + $0xc6] sm:$0xff] }
 0x44b   :  { %v12782_v51 = vpop.f32.mrf.mxu1 }
 0x44c   :  { %9012 = vmatmul.msk.f32.gmra.mxu2 %vm3626_vm1, %v12515_v2 }
 0x44d   :  { %9214 = vmatmul.msk.f32.gmra.mxu0 %vm3626_vm1, %v12784_v46  ;;  %v4784_v37 = vpop.f32.mrf.mxu3 }
 0x44e   :  { %9044 = vmatmul.msk.f32.gmra.mxu1 %vm3626_vm1, %v10011_v41  ;;  %v4816_v50 = vadd.f32 %v4784_v37, %v12500_v20 }
 0x44f   :  { %v5078_v53 = vpop.f32.mrf.mxu2 }
 0x450   :  { %v4963_v21 = vadd.f32 %v12487_v22, %v4816_v50  ;;  %v12815_v50 = vld [vmem:[#allocation2 + $0x146] sm:$0xff] }
 0x452   :  { %v12804_v2 = vadd.f32 %v5078_v53, %v4963_v21  ;;  %8981 = vmatmul.msk.f32.gmra.mxu3 %vm3626_vm1, %v5127_v8  ;;  %v12817_v21 = vpop.f32.mrf.mxu0 }
 0x453   :  { %v12798_v12 = vpop.f32.mrf.mxu1  ;;  %14570 = vst [vmem:[#allocation20_spill] sm:$0xff] %v12817_v21 }
 0x454   :  { %9013 = vmatmul.msk.f32.gmra.mxu2 %vm3626_vm1, %v12533_v47  ;;  %v7330_v47 = vld [vmem:[#allocation2 + $0xd6] sm:$0xff] }
 0x455   :  { %9215 = vmatmul.msk.f32.gmra.mxu0 %vm3626_vm1, %v12800_v61  ;;  %v4787_v20 = vpop.f32.mrf.mxu3 }
 0x456   :  { %9045 = vmatmul.msk.f32.gmra.mxu1 %vm3626_vm1, %v12259_v45  ;;  %v4817_v22 = vadd.f32 %v4787_v20, %v12520_v56 }
 0x457   :  { %v5081_v19 = vpop.f32.mrf.mxu2 }
 0x458   :  { %v4964_v41 = vadd.f32 %v12502_v14, %v4817_v22  ;;  %v12832_v22 = vld [vmem:[#allocation2 + $0x156] sm:$0xff] }
 0x45a   :  { %v12820_v53 = vadd.f32 %v5081_v19, %v4964_v41  ;;  %8982 = vmatmul.msk.f32.gmra.mxu3 %vm3626_vm1, %v12815_v50 }
 0x45b   :  { %v12813_v37 = vpop.f32.mrf.mxu1 }
 0x45c   :  { %9014 = vmatmul.msk.f32.gmra.mxu2 %vm3626_vm1, %v12551_v17 }
 0x45d   :  { %9216 = vmatmul.msk.f32.gmra.mxu0 %vm3626_vm1, %v7329_v9  ;;  %v4790_v45 = vpop.f32.mrf.mxu3  ;;  %v7331_v9 = vld [vmem:[#allocation2 + $0xe6] sm:$0xff] }
 0x45e   :  { %9046 = vmatmul.msk.f32.gmra.mxu1 %vm3626_vm1, %v12292_v49  ;;  %v4818_v14 = vadd.f32 %v4790_v45, %v12536_v58  ;;  %v12843_v49 = vpop.f32.mrf.mxu0 }
 0x45f   :  { %v5084_v56 = vpop.f32.mrf.mxu2  ;;  %14571 = vst [vmem:[#allocation15_spill] sm:$0xff] %v12843_v49 }
 0x460   :  { %v4965_v8 = vadd.f32 %v12513_v3, %v4818_v14  ;;  %v12849_v14 = vld [vmem:[#allocation2 + $0x166] sm:$0xff] }
 0x462   :  { %v12835_v19 = vadd.f32 %v5084_v56, %v4965_v8  ;;  %8983 = vmatmul.msk.f32.gmra.mxu3 %vm3626_vm1, %v12832_v22  ;;  %v7332_v8 = vld [vmem:[#allocation2 + $0xf6] sm:$0xff] }
 0x463   :  { %v12830_v20 = vpop.f32.mrf.mxu1 }
 0x464   :  { %9015 = vmatmul.msk.f32.gmra.mxu2 %vm3626_vm1, %v12569_v6 }
 0x465   :  { %9217 = vmatmul.msk.f32.gmra.mxu0 %vm3626_vm1, %v7330_v47  ;;  %v4793_v3 = vpop.f32.mrf.mxu3 }
 0x466   :  { %9047 = vmatmul.msk.f32.gmra.mxu1 %vm3626_vm1, %v12326_v60  ;;  %v4819_v58 = vadd.f32 %v4793_v3, %v12554_v16  ;;  %v10012_v60 = vld [vmem:[#allocation2 + $0x180] sm:$0xff]  ;;  %v12859_v6 = vpop.f32.mrf.mxu0 }
 0x467   :  { %v5087_v17 = vpop.f32.mrf.mxu2  ;;  %14572 = vst [vmem:[#allocation21_spill] sm:$0xff] %v12859_v6  ;;  %v6295_v6 = vld [vmem:[#allocation2 + $0x62] sm:$0xff] }
 0x468   :  { %v4966_v41 = vadd.f32 %v12531_v36, %v4819_v58 }
 0x46a   :  { %v12852_v56 = vadd.f32 %v5087_v17, %v4966_v41  ;;  %8984 = vmatmul.msk.f32.gmra.mxu3 %vm3626_vm1, %v12849_v14  ;;  %v12865_v17 = vld [vmem:[#allocation2 + $0x176] sm:$0xff] }
 0x46b   :  { %v12847_v45 = vpop.f32.mrf.mxu1 }
 0x46c   :  { %9016 = vmatmul.msk.f32.gmra.mxu2 %vm3626_vm1, %v10012_v60 }
 0x46d   :  { %9218 = vmatmul.msk.f32.gmra.mxu0 %vm3626_vm1, %v7331_v9  ;;  %v4796_v16 = vpop.f32.mrf.mxu3 }
 0x46e   :  { %9048 = vmatmul.msk.f32.gmra.mxu1 %vm3626_vm1, %v12593_v54  ;;  %v4820_v36 = vadd.f32 %v4796_v16, %v12572_v15  ;;  %v10013_v54 = vld [vmem:[#allocation2 + $0x190] sm:$0xff]  ;;  %v12876_v60 = vpop.f32.mrf.mxu0 }
 0x46f   :  { %v5090_v47 = vpop.f32.mrf.mxu2  ;;  %14573 = vst [vmem:[#allocation19_spill] sm:$0xff] %v12876_v60  ;;  %v12906_v60 = vld [vmem:[#allocation2 + $0x196] sm:$0xff] }
 0x470   :  { %v4967_v3 = vadd.f32 %v12549_v31, %v4820_v36 }
 0x472   :  { %v12868_v9 = vadd.f32 %v5090_v47, %v4967_v3  ;;  %8985 = vmatmul.msk.f32.gmra.mxu3 %vm3626_vm1, %v12865_v17  ;;  %v12881_v47 = vld [vmem:[#allocation2 + $0x1a4] sm:$0xff] }
 0x473   :  { %v12863_v58 = vpop.f32.mrf.mxu1 }
 0x474   :  { %9017 = vmatmul.msk.f32.gmra.mxu2 %vm3626_vm1, %v10013_v54 }
 0x475   :  { %9219 = vmatmul.msk.f32.gmra.mxu0 %vm3626_vm1, %v7332_v8  ;;  %v4799_v15 = vpop.f32.mrf.mxu3  ;;  %v12883_v8 = vld [vmem:[#allocation2 + $0x186] sm:$0xff] }
 0x476   :  { %9049 = vmatmul.msk.f32.gmra.mxu1 %vm3626_vm1, %v12611_v28  ;;  %v4821_v31 = vadd.f32 %v4799_v15, %v12589_v43  ;;  %v10014_v28 = vld [vmem:[#allocation2 + $0x1a0] sm:$0xff]  ;;  %v5870_v15 = vld [vmem:[%s14496_s1 + $0xd8] sm:$0xff] }
 0x477   :  { %v5093_v41 = vpop.f32.mrf.mxu2  ;;  %5933 = vmatpush.msrb.mxu2 %v5870_v15 }
 0x478   :  { %v4968_v16 = vadd.f32 %v12567_v32, %v4821_v31  ;;  %v6312_v31 = vld [vmem:[%s14496_s1 + $0x108] sm:$0xff] }
 0x479   :  { %6375 = vmatpush.msrb.mxu1 %v6312_v31  ;;  %v5869_v31 = vld [vmem:[%s14496_s1 + $0xd0] sm:$0xff] }
 0x47a   :  { %v12887_v3 = vadd.f32 %v5093_v41, %v4968_v16  ;;  %8986 = vmatmul.msk.f32.gmra.mxu3 %vm3626_vm1, %v12883_v8  ;;  %5934 = vmatpush.msrb.mxu2 %v5869_v31 }
 0x47b   :  { %v12879_v36 = vpop.f32.mrf.mxu1 }
 0x47c   :  { %9018 = vmatmul.msk.f32.gmra.mxu2 %vm3626_vm1, %v10014_v28  ;;  %v12904_v28 = vld [vmem:[#allocation2 + $0x1b4] sm:$0xff] }
 0x47d   :  { %9220 = vmatmul.msk.f32.gmra.mxu0 %vm3626_vm1, %v12883_v8  ;;  %v4802_v32 = vpop.f32.mrf.mxu3 }
 0x47e   :  { %9050 = vmatmul.msk.f32.gmra.mxu1 %vm3626_vm1, %v12881_v47  ;;  %v4822_v43 = vadd.f32 %v4802_v32, %v12607_v30  ;;  %v12908_v30 = vpop.f32.mrf.mxu0 }
 0x47f   :  { %v5096_v54 = vpop.f32.mrf.mxu2  ;;  %14574 = vst [vmem:[#allocation23_spill] sm:$0xff] %v12908_v30 }
 0x480   :  { %v4969_v41 = vadd.f32 %v12585_v27, %v4822_v43 }
 0x482   :  { %v12912_v32 = vadd.f32 %v5096_v54, %v4969_v41  ;;  %8987 = vmatmul.msk.f32.gmra.mxu3 %vm3626_vm1, %v12906_v60  ;;  %v6311_v54 = vld [vmem:[%s14496_s1 + $0x100] sm:$0xff]  ;;  %v6017_v41 = vld [vmem:[%s14496_s1 + $0xe8] sm:$0xff] }
 0x483   :  { %v12902_v16 = vpop.f32.mrf.mxu1  ;;  %6376 = vmatpush.msrb.mxu1 %v6311_v54  ;;  %6080 = vmatpush.msrb.mxu3 %v6017_v41  ;;  %v5560_v54 = vld [vmem:[#allocation2 + $0x52] sm:$0xff] }
 0x484   :  { %9019 = vmatmul.msk.f32.gmra.mxu2 %vm3626_vm1, %v12411_v40 }
 0x485   :  { %9221 = vmatmul.msk.f32.gmra.mxu0 %vm3626_vm1, %v12906_v60  ;;  %v4805_v27 = vpop.f32.mrf.mxu3 }
 0x486   :  { %9051 = vmatmul.msk.f32.gmra.mxu1 %vm3626_vm1, %v12904_v28  ;;  %v4823_v43 = vadd.f32 %v4805_v27, %v12636_v59  ;;  %v5559_v59 = vld [vmem:[#allocation2 + $0x42] sm:$0xff] }
 0x487   :  { %v5099_v15 = vpop.f32.mrf.mxu2 }
 0x488   :  { %v4970_v40 = vadd.f32 %v12601_v34, %v4823_v43 }
 0x48a   :  { %v12933_v27 = vadd.f32 %v5099_v15, %v4970_v40  ;;  %9020 = vmatmul.msk.f32.vlgmr.msra.gmra.mxu3 %vm3626_vm1, %v5559_v59  ;;  %v6296_v15 = vld [vmem:[#allocation2 + $0x72] sm:$0xff]  ;;  %v12956_v59 = vld [vmem:[#allocation2 + $0x82] sm:$0xff] }
 0x48b   :  { %v12931_v30 = vpop.f32.mrf.mxu1 }
 0x48c   :  { %9052 = vmatmul.msk.f32.vlgmr.msrb.gmra.mxu2 %vm3626_vm1, %v12667_v25 }
 0x48d   :  { %v5201_v49 = vpop.f32.mrf.mxu3 }
 0x48e   :  { %9100 = vmatmul.msk.f32.vlgmr.msrb.gmra.mxu1 %vm3626_vm1, %v6295_v6  ;;  %v5249_v21 = vadd.f32 %v5201_v49, %v12649_v62 }
 0x48f   :  { %v5495_v34 = vpop.f32.mrf.mxu2 }
 0x490   :  { %v5396_v43 = vadd.f32 %v12630_v44, %v5249_v21 }
 0x492   :  { %v12943_v41 = vadd.f32 %v5495_v34, %v5396_v43  ;;  %9021 = vmatmul.msk.f32.gmra.mxu3 %vm3626_vm1, %v5560_v54  ;;  %v12967_v54 = vld [vmem:[#allocation2 + $0x92] sm:$0xff] }
 0x493   :  { %v12941_v31 = vpop.f32.mrf.mxu1 }
 0x494   :  { %9053 = vmatmul.msk.f32.gmra.mxu2 %vm3626_vm1, %v12686_v0 }
 0x495   :  { %v5204_v25 = vpop.f32.mrf.mxu3 }
 0x496   :  { %9101 = vmatmul.msk.f32.gmra.mxu1 %vm3626_vm1, %v6296_v15  ;;  %v5250_v40 = vadd.f32 %v5204_v25, %v12670_v52 }
 0x497   :  { %v5498_v62 = vpop.f32.mrf.mxu2 }
 0x498   :  { %v5397_v49 = vadd.f32 %v12646_v1, %v5250_v40 }
 0x49a   :  { %v12953_v21 = vadd.f32 %v5498_v62, %v5397_v49  ;;  %9022 = vmatmul.msk.f32.gmra.mxu3 %vm3626_vm1, %v6295_v6 }
 0x49b   :  { %v12951_v44 = vpop.f32.mrf.mxu1 }
 0x49c   :  { %9054 = vmatmul.msk.f32.gmra.mxu2 %vm3626_vm1, %v12703_v38 }
 0x49d   :  { %v5207_v0 = vpop.f32.mrf.mxu3 }
 0x49e   :  { %9102 = vmatmul.msk.f32.gmra.mxu1 %vm3626_vm1, %v12956_v59  ;;  %v5251_v52 = vadd.f32 %v5207_v0, %v12689_v11  ;;  %v12992_v0 = vpop.f32.mrf.mxu0 }
 0x49f   :  { %v5501_v34 = vpop.f32.mrf.mxu2  ;;  %14575 = vst [vmem:[#allocation22_spill] sm:$0xff] %v12992_v0 }
 0x4a0   :  { %v5398_v1 = vadd.f32 %v12665_v23, %v5251_v52 }
 0x4a2   :  { %v12964_v43 = vadd.f32 %v5501_v34, %v5398_v1  ;;  %9023 = vmatmul.msk.f32.gmra.mxu3 %vm3626_vm1, %v6296_v15  ;;  %v12981_v15 = vld [vmem:[#allocation2 + $0xa2] sm:$0xff] }
 0x4a3   :  { %v12969_v6 = vpop.f32.mrf.mxu1 }
 0x4a4   :  { %9055 = vmatmul.msk.f32.gmra.mxu2 %vm3626_vm1, %v12720_v7 }
 0x4a5   :  { %v5210_v38 = vpop.f32.mrf.mxu3 }
 0x4a6   :  { %9103 = vmatmul.msk.f32.gmra.mxu1 %vm3626_vm1, %v12967_v54  ;;  %v5252_v11 = vadd.f32 %v5210_v38, %v12708_v55 }
 0x4a7   :  { %v5504_v25 = vpop.f32.mrf.mxu2 }
 0x4a8   :  { %v5399_v23 = vadd.f32 %v12684_v26, %v5252_v11  ;;  %v12990_v26 = vld [vmem:[#allocation2 + $0x1a6] sm:$0xff] }
 0x4a9   :  { %9222 = vmatmul.msk.f32.gmra.mxu0 %vm3626_vm1, %v12990_v26 }
 0x4aa   :  { %v12977_v40 = vadd.f32 %v5504_v25, %v5399_v23  ;;  %9024 = vmatmul.msk.f32.gmra.mxu3 %vm3626_vm1, %v12956_v59  ;;  %v13011_v25 = vld [vmem:[#allocation2 + $0xc2] sm:$0xff] }
 0x4ab   :  { %v12987_v7 = vpop.f32.mrf.mxu1 }
 0x4ac   :  { %9056 = vmatmul.msk.f32.gmra.mxu2 %vm3626_vm1, %v12737_v5  ;;  %v13001_v5 = vld [vmem:[#allocation2 + $0xb2] sm:$0xff] }
 0x4ad   :  { %v5213_v62 = vpop.f32.mrf.mxu3 }
 0x4ae   :  { %9104 = vmatmul.msk.f32.gmra.mxu1 %vm3626_vm1, %v12981_v15  ;;  %v5253_v55 = vadd.f32 %v5213_v62, %v12723_v33 }
 0x4af   :  { %v5507_v49 = vpop.f32.mrf.mxu2 }
 0x4b0   :  { %v5400_v52 = vadd.f32 %v12701_v24, %v5253_v55 }
 0x4b2   :  { %v12997_v34 = vadd.f32 %v5507_v49, %v5400_v52  ;;  %9025 = vmatmul.msk.f32.gmra.mxu3 %vm3626_vm1, %v12967_v54 }
 0x4b3   :  { %v13008_v38 = vpop.f32.mrf.mxu1 }
 0x4b4   :  { %9057 = vmatmul.msk.f32.gmra.mxu2 %vm3626_vm1, %v12759_v35 }
 0x4b5   :  { %v5216_v33 = vpop.f32.mrf.mxu3 }
 0x4b6   :  { %9105 = vmatmul.msk.f32.gmra.mxu1 %vm3626_vm1, %v13001_v5  ;;  %v5254_v1 = vadd.f32 %v5216_v33, %v12741_v4 }
 0x4b7   :  { %v5510_v24 = vpop.f32.mrf.mxu2 }
 0x4b8   :  { %v5401_v11 = vadd.f32 %v12718_v10, %v5254_v1  ;;  %v13023_v10 = vld [vmem:[#allocation2 + $0xd2] sm:$0xff] }
 0x4ba   :  { %v13013_v23 = vadd.f32 %v5510_v24, %v5401_v11  ;;  %9026 = vmatmul.msk.f32.gmra.mxu3 %vm3626_vm1, %v12981_v15  ;;  %v5567_v24 = vld [vmem:[#allocation2 + $0x142] sm:$0xff] }
 0x4bb   :  { %v13025_v49 = vpop.f32.mrf.mxu1 }
 0x4bc   :  { %9058 = vmatmul.msk.f32.gmra.mxu2 %vm3626_vm1, %v12784_v46 }
 0x4bd   :  { %v5219_v35 = vpop.f32.mrf.mxu3 }
 0x4be   :  { %9106 = vmatmul.msk.f32.gmra.mxu1 %vm3626_vm1, %v13011_v25  ;;  %v5255_v4 = vadd.f32 %v5219_v35, %v12763_v63 }
 0x4bf   :  { %v5513_v62 = vpop.f32.mrf.mxu2 }
 0x4c0   :  { %v5402_v55 = vadd.f32 %v12735_v29, %v5255_v4  ;;  %v6016_v29 = vld [vmem:[%s14496_s1 + $0xe0] sm:$0xff] }
 0x4c1   :  { %6081 = vmatpush.msrb.mxu3 %v6016_v29 }
 0x4c2   :  { %v13027_v52 = vadd.f32 %v5513_v62, %v5402_v55  ;;  %9027 = vmatmul.msk.f32.gmra.mxu3 %vm3626_vm1, %v13001_v5  ;;  %v13049_v55 = vld [vmem:[#allocation2 + $0x1b6] sm:$0xff] }
 0x4c3   :  { %v13043_v35 = vpop.f32.mrf.mxu1 }
 0x4c4   :  { %9059 = vmatmul.msk.f32.gmra.mxu2 %vm3626_vm1, %v12800_v61  ;;  %v6303_v61 = vld [vmem:[#allocation2 + $0x162] sm:$0xff] }
 0x4c5   :  { %v5222_v46 = vpop.f32.mrf.mxu3 }
 0x4c6   :  { %9107 = vmatmul.msk.f32.gmra.mxu1 %vm3626_vm1, %v13023_v10  ;;  %v5256_v63 = vadd.f32 %v5222_v46, %v12788_v18 }
 0x4c7   :  { %v5516_v33 = vpop.f32.mrf.mxu2 }
 0x4c8   :  { %v5403_v1 = vadd.f32 %v12757_v42, %v5256_v63  ;;  %v13051_v42 = vpop.f32.mrf.mxu0  ;;  %9223 = vmatmul.msk.f32.gmra.mxu0 %vm3626_vm1, %v13049_v55  ;;  %v5568_v63 = vld [vmem:[#allocation2 + $0x152] sm:$0xff] }
 0x4c9   :  { %14576 = vst [vmem:[#allocation24_spill] sm:$0xff] %v13051_v42 }
 0x4ca   :  { %v13040_v11 = vadd.f32 %v5516_v33, %v5403_v1  ;;  %9028 = vmatmul.msk.f32.gmra.mxu3 %vm3626_vm1, %v5567_v24 }
 0x4cc   :  { %9060 = vmatmul.msk.f32.gmra.mxu2 %vm3626_vm1, %v12815_v50  ;;  %v6304_v50 = vld [vmem:[#allocation2 + $0x172] sm:$0xff] }
 0x4cd   :  { %v5225_v18 = vpop.f32.mrf.mxu3 }
 0x4ce   :  { %9108 = vmatmul.msk.f32.gmra.mxu1 %vm3626_vm1, %v6303_v61  ;;  %v5257_v4 = vadd.f32 %v5225_v18, %v12804_v2  ;;  %v13062_v2 = vpop.f32.mrf.mxu1 }
 0x4cf   :  { %v5519_v62 = vpop.f32.mrf.mxu2 }
 0x4d0   :  { %v5404_v46 = vadd.f32 %v12782_v51, %v5257_v4  ;;  %v13069_v4 = vld [vmem:[#allocation2 + $0x182] sm:$0xff] }
 0x4d2   :  { %v13056_v33 = vadd.f32 %v5519_v62, %v5404_v46  ;;  %9029 = vmatmul.msk.f32.gmra.mxu3 %vm3626_vm1, %v5568_v63 }
 0x4d4   :  { %9061 = vmatmul.msk.f32.gmra.mxu2 %vm3626_vm1, %v12832_v22 }
 0x4d5   :  { %v5228_v29 = vpop.f32.mrf.mxu3 }
 0x4d6   :  { %9109 = vmatmul.msk.f32.gmra.mxu1 %vm3626_vm1, %v6304_v50  ;;  %v5258_v1 = vadd.f32 %v5228_v29, %v12820_v53  ;;  %v13076_v53 = vpop.f32.mrf.mxu1 }
 0x4d7   :  { %v5522_v51 = vpop.f32.mrf.mxu2 }
 0x4d8   :  { %v5405_v24 = vadd.f32 %v12798_v12, %v5258_v1 }
 0x4da   :  { %v13066_v18 = vadd.f32 %v5522_v51, %v5405_v24  ;;  %9030 = vmatmul.msk.f32.gmra.mxu3 %vm3626_vm1, %v6303_v61  ;;  %v13082_v61 = vld [vmem:[#allocation2 + $0x192] sm:$0xff]  ;;  %v6900_v24 = vld [vmem:[%s14496_s1 + $0x140] sm:$0xff] }
 0x4dc   :  { %9062 = vmatmul.msk.f32.gmra.mxu2 %vm3626_vm1, %v12849_v14 }
 0x4dd   :  { %v5231_v22 = vpop.f32.mrf.mxu3 }
 0x4de   :  { %9110 = vmatmul.msk.f32.gmra.mxu1 %vm3626_vm1, %v13069_v4  ;;  %v5259_v62 = vadd.f32 %v5231_v22, %v12835_v19  ;;  %v13090_v51 = vpop.f32.mrf.mxu1  ;;  %v6606_v22 = vld [vmem:[%s14496_s1 + $0x128] sm:$0xff] }
 0x4df   :  { %v5525_v46 = vpop.f32.mrf.mxu2  ;;  %6669 = vmatpush.msra.mxu3 %v6606_v22 }
 0x4e0   :  { %v5406_v12 = vadd.f32 %v12813_v37, %v5259_v62 }
 0x4e2   :  { %v13079_v63 = vadd.f32 %v5525_v46, %v5406_v12  ;;  %9031 = vmatmul.msk.f32.gmra.mxu3 %vm3626_vm1, %v6304_v50  ;;  %v13096_v50 = vld [vmem:[#allocation2 + $0x1a2] sm:$0xff] }
 0x4e4   :  { %9063 = vmatmul.msk.f32.gmra.mxu2 %vm3626_vm1, %v12865_v17  ;;  %v6459_v17 = vld [vmem:[%s14496_s1 + $0x118] sm:$0xff] }
 0x4e5   :  { %v5234_v14 = vpop.f32.mrf.mxu3  ;;  %6522 = vmatpush.msra.mxu2 %v6459_v17 }
 0x4e6   :  { %9111 = vmatmul.msk.f32.gmra.mxu1 %vm3626_vm1, %v13082_v61  ;;  %v5260_v19 = vadd.f32 %v5234_v14, %v12852_v56  ;;  %v6901_v56 = vld [vmem:[%s14496_s1 + $0x148] sm:$0xff] }
 0x4e7   :  { %v5528_v29 = vpop.f32.mrf.mxu2  ;;  %6964 = vmatpush.msra.mxu1 %v6901_v56  ;;  %v13133_v56 = vld [vmem:[#allocation2 + $0x1c2] sm:$0xff] }
 0x4e8   :  { %v5407_v1 = vadd.f32 %v12830_v20, %v5260_v19  ;;  %v6458_v20 = vld [vmem:[%s14496_s1 + $0x110] sm:$0xff] }
 0x4e9   :  { %6523 = vmatpush.msra.mxu2 %v6458_v20  ;;  %6965 = vmatpush.msra.mxu1 %v6900_v24  ;;  %v13123_v19 = vld [vmem:[#allocation2 + $0x1b2] sm:$0xff] }
 0x4ea   :  { %v13092_v37 = vadd.f32 %v5528_v29, %v5407_v1  ;;  %9032 = vmatmul.msk.f32.gmra.mxu3 %vm3626_vm1, %v13069_v4  ;;  %v13125_v29 = vpop.f32.mrf.mxu1 }
 0x4ec   :  { %9064 = vmatmul.msk.f32.gmra.mxu2 %vm3626_vm1, %v12883_v8 }
 0x4ed   :  { %v5237_v62 = vpop.f32.mrf.mxu3 }
 0x4ee   :  { %9112 = vmatmul.msk.f32.gmra.mxu1 %vm3626_vm1, %v13096_v50  ;;  %v5261_v8 = vadd.f32 %v5237_v62, %v12868_v9  ;;  %v13147_v62 = vld [vmem:[#allocation2 + $0x1d2] sm:$0xff] }
 0x4ef   :  { %v5531_v46 = vpop.f32.mrf.mxu2 }
 0x4f0   :  { %v5408_v12 = vadd.f32 %v12847_v45, %v5261_v8 }
 0x4f2   :  { %v13119_v14 = vadd.f32 %v5531_v46, %v5408_v12  ;;  %9033 = vmatmul.msk.f32.gmra.mxu3 %vm3626_vm1, %v13082_v61 }
 0x4f4   :  { %9065 = vmatmul.msk.f32.gmra.mxu2 %vm3626_vm1, %v12906_v60  ;;  %v13143_v60 = vpop.f32.mrf.mxu1 }
 0x4f5   :  { %v5240_v9 = vpop.f32.mrf.mxu3 }
 0x4f6   :  { %9113 = vmatmul.msk.f32.gmra.mxu1 %vm3626_vm1, %v13123_v19  ;;  %v5262_v1 = vadd.f32 %v5240_v9, %v12887_v3  ;;  %v6000_v9 = vld [vmem:[#allocation2 + $0x48] sm:$0xff] }
 0x4f7   :  { %v5534_v17 = vpop.f32.mrf.mxu2 }
 0x4f8   :  { %v5409_v45 = vadd.f32 %v12863_v58, %v5262_v1 }
 0x4fa   :  { %v13135_v20 = vadd.f32 %v5534_v17, %v5409_v45  ;;  %9034 = vmatmul.msk.f32.gmra.mxu3 %vm3626_vm1, %v13096_v50  ;;  %v6884_v17 = vld [vmem:[#allocation2 + $0x80] sm:$0xff] }
 0x4fc   :  { %9066 = vmatmul.msk.f32.gmra.mxu2 %vm3626_vm1, %v12990_v26  ;;  %v13158_v12 = vpop.f32.mrf.mxu1 }
 0x4fd   :  { %v5243_v24 = vpop.f32.mrf.mxu3 }
 0x4fe   :  { %9114 = vmatmul.msk.f32.gmra.mxu1 %vm3626_vm1, %v13133_v56  ;;  %v5263_v3 = vadd.f32 %v5243_v24, %v12912_v32 }
 0x4ff   :  { %v5537_v22 = vpop.f32.mrf.mxu2 }
 0x500   :  { %v5410_v58 = vadd.f32 %v12879_v36, %v5263_v3 }
 0x502   :  { %v13149_v8 = vadd.f32 %v5537_v22, %v5410_v58  ;;  %9035 = vmatmul.msk.f32.gmra.mxu3 %vm3626_vm1, %v13123_v19 }
 0x504   :  { %9067 = vmatmul.msk.f32.gmra.mxu2 %vm3626_vm1, %v13049_v55  ;;  %v13169_v22 = vpop.f32.mrf.mxu1 }
 0x505   :  { %v5246_v26 = vpop.f32.mrf.mxu3 }
 0x506   :  { %9115 = vmatmul.msk.f32.gmra.mxu1 %vm3626_vm1, %v13147_v62  ;;  %v5264_v46 = vadd.f32 %v5246_v26, %v12933_v27  ;;  %v6885_v26 = vld [vmem:[#allocation2 + $0x90] sm:$0xff] }
 0x507   :  { %v5540_v32 = vpop.f32.mrf.mxu2 }
 0x508   :  { %v5411_v36 = vadd.f32 %v12902_v16, %v5264_v46  ;;  %v6001_v16 = vld [vmem:[#allocation2 + $0x58] sm:$0xff] }
 0x50a   :  { %v13161_v1 = vadd.f32 %v5540_v32, %v5411_v36  ;;  %9068 = vmatmul.msk.f32.vlgmr.msrb.gmra.mxu3 %vm3626_vm1, %v6000_v9  ;;  %v13182_v9 = vld [vmem:[#allocation2 + $0x84] sm:$0xff] }
 0x50c   :  { %9116 = vmatmul.msk.f32.vlgmr.msra.gmra.mxu2 %vm3626_vm1, %v12674_v13 }
 0x50d   :  { %v5642_v45 = vpop.f32.mrf.mxu3 }
 0x50e   :  { %9164 = vmatmul.msk.f32.vlgmr.msra.gmra.mxu1 %vm3626_vm1, %v6884_v17  ;;  %v5690_v24 = vadd.f32 %v5642_v45, %v12943_v41  ;;  %v13184_v17 = vpop.f32.mrf.mxu1 }
 0x50f   :  { %v5936_v27 = vpop.f32.mrf.mxu2 }
 0x510   :  { %v5837_v3 = vadd.f32 %v12931_v30, %v5690_v24  ;;  %v6002_v30 = vld [vmem:[#allocation2 + $0x68] sm:$0xff]  ;;  %v6003_v24 = vld [vmem:[#allocation2 + $0x78] sm:$0xff] }
 0x512   :  { %v13171_v58 = vadd.f32 %v5936_v27, %v5837_v3  ;;  %9069 = vmatmul.msk.f32.gmra.mxu3 %vm3626_vm1, %v6001_v16  ;;  %v13195_v3 = vld [vmem:[#allocation2 + $0x94] sm:$0xff] }
 0x513   :  { %v14577_v16 = vld [vmem:[#allocation14_spill] sm:$0xff] }
 0x514   :  { %9117 = vmatmul.msk.f32.gmra.mxu2 %vm3626_vm1, %v12693_v57 }
 0x515   :  { %v5645_v13 = vpop.f32.mrf.mxu3 }
 0x516   :  { %9165 = vmatmul.msk.f32.gmra.mxu1 %vm3626_vm1, %v6885_v26  ;;  %v5691_v46 = vadd.f32 %v5645_v13, %v12953_v21 }
 0x517   :  { %v5939_v41 = vpop.f32.mrf.mxu2 }
 0x518   :  { %v5838_v32 = vadd.f32 %v12941_v31, %v5691_v46  ;;  %v6888_v46 = vld [vmem:[#allocation2 + $0xc0] sm:$0xff] }
 0x51a   :  { %v13179_v36 = vadd.f32 %v5939_v41, %v5838_v32  ;;  %9070 = vmatmul.msk.f32.gmra.mxu3 %vm3626_vm1, %v6002_v30  ;;  %v13205_v41 = vld [vmem:[#allocation2 + $0x88] sm:$0xff]  ;;  %v14578_v30 = vld [vmem:[#allocation9_spill] sm:$0xff] }
 0x51c   :  { %9118 = vmatmul.msk.f32.gmra.mxu2 %vm3626_vm1, %v13182_v9 }
 0x51d   :  { %v5648_v57 = vpop.f32.mrf.mxu3 }
 0x51e   :  { %9166 = vmatmul.msk.f32.gmra.mxu1 %vm3626_vm1, %v12745_v48  ;;  %v5692_v21 = vadd.f32 %v5648_v57, %v12964_v43  ;;  %v13201_v48 = vpop.f32.mrf.mxu1 }
 0x51f   :  { %v5942_v45 = vpop.f32.mrf.mxu2 }
 0x520   :  { %v5839_v31 = vadd.f32 %v12951_v44, %v5692_v21 }
 0x522   :  { %v13192_v27 = vadd.f32 %v5942_v45, %v5839_v31  ;;  %9071 = vmatmul.msk.f32.gmra.mxu3 %vm3626_vm1, %v6003_v24  ;;  %v6889_v24 = vld [vmem:[#allocation2 + $0xd0] sm:$0xff] }
 0x524   :  { %9119 = vmatmul.msk.f32.gmra.mxu2 %vm3626_vm1, %v13195_v3 }
 0x525   :  { %v5651_v26 = vpop.f32.mrf.mxu3 }
 0x526   :  { %9167 = vmatmul.msk.f32.gmra.mxu1 %vm3626_vm1, %v14577_v16  ;;  %v5693_v43 = vadd.f32 %v5651_v26, %v12977_v40  ;;  %v6605_v40 = vld [vmem:[%s14496_s1 + $0x120] sm:$0xff]  ;;  %v13218_v45 = vpop.f32.mrf.mxu1  ;;  %v13221_v16 = vld [vmem:[#allocation2 + $0x98] sm:$0xff] }
 0x527   :  { %v5945_v13 = vpop.f32.mrf.mxu2  ;;  %6670 = vmatpush.msra.mxu3 %v6605_v40 }
 0x528   :  { %v5840_v44 = vadd.f32 %v12969_v6, %v5693_v43  ;;  %v14579_v43 = vld [vmem:[#allocation11_spill] sm:$0xff] }
 0x52a   :  { %v13207_v32 = vadd.f32 %v5945_v13, %v5840_v44  ;;  %9072 = vmatmul.msk.f32.gmra.mxu3 %vm3626_vm1, %v13205_v41 }
 0x52c   :  { %9120 = vmatmul.msk.f32.gmra.mxu2 %vm3626_vm1, %v14578_v30  ;;  %v6890_v30 = vld [vmem:[#allocation2 + $0xe0] sm:$0xff] }
 0x52d   :  { %v5654_v57 = vpop.f32.mrf.mxu3 }
 0x52e   :  { %9168 = vmatmul.msk.f32.gmra.mxu1 %vm3626_vm1, %v6888_v46  ;;  %v5694_v6 = vadd.f32 %v5654_v57, %v12997_v34  ;;  %v13234_v40 = vpop.f32.mrf.mxu1  ;;  %v13236_v57 = vld [vmem:[#allocation2 + $0xa8] sm:$0xff] }
 0x52f   :  { %v5948_v21 = vpop.f32.mrf.mxu2 }
 0x530   :  { %v5841_v31 = vadd.f32 %v12987_v7, %v5694_v6  ;;  %v13232_v7 = vld [vmem:[#allocation2 + $0xc4] sm:$0xff] }
 0x532   :  { %v13223_v26 = vadd.f32 %v5948_v21, %v5841_v31  ;;  %9073 = vmatmul.msk.f32.gmra.mxu3 %vm3626_vm1, %v13221_v16 }
 0x534   :  { %9121 = vmatmul.msk.f32.gmra.mxu2 %vm3626_vm1, %v14579_v43  ;;  %v6891_v43 = vld [vmem:[#allocation2 + $0xf0] sm:$0xff] }
 0x535   :  { %v5657_v13 = vpop.f32.mrf.mxu3 }
 0x536   :  { %9169 = vmatmul.msk.f32.gmra.mxu1 %vm3626_vm1, %v6889_v24  ;;  %v5695_v34 = vadd.f32 %v5657_v13, %v13013_v23  ;;  %v13247_v24 = vld [vmem:[#allocation2 + $0xd4] sm:$0xff] }
 0x537   :  { %v5951_v44 = vpop.f32.mrf.mxu2  ;;  %14580 = vst [vmem:[#allocation14_spill] sm:$0xff] %v13247_v24  ;;  %v13249_v13 = vld [vmem:[#allocation2 + $0xb8] sm:$0xff] }
 0x538   :  { %v5842_v46 = vadd.f32 %v13008_v38, %v5695_v34 }
 0x53a   :  { %v13238_v6 = vadd.f32 %v5951_v44, %v5842_v46  ;;  %9074 = vmatmul.msk.f32.gmra.mxu3 %vm3626_vm1, %v13236_v57  ;;  %v13255_v44 = vpop.f32.mrf.mxu1 }
 0x53c   :  { %9122 = vmatmul.msk.f32.gmra.mxu2 %vm3626_vm1, %v13232_v7 }
 0x53d   :  { %v5660_v23 = vpop.f32.mrf.mxu3 }
 0x53e   :  { %9170 = vmatmul.msk.f32.gmra.mxu1 %vm3626_vm1, %v6890_v30  ;;  %v5696_v38 = vadd.f32 %v5660_v23, %v13027_v52  ;;  %v6008_v23 = vld [vmem:[#allocation2 + $0x148] sm:$0xff] }
 0x53f   :  { %v5954_v21 = vpop.f32.mrf.mxu2 }
 0x540   :  { %v5843_v31 = vadd.f32 %v13025_v49, %v5696_v38 }
 0x542   :  { %v13251_v34 = vadd.f32 %v5954_v21, %v5843_v31  ;;  %9075 = vmatmul.msk.f32.gmra.mxu3 %vm3626_vm1, %v13249_v13  ;;  %v6450_v21 = vld [vmem:[#allocation2 + $0x164] sm:$0xff]  ;;  %v13267_v42 = vpop.f32.mrf.mxu1 }
 0x543   :  { %v6892_v31 = vld [vmem:[#allocation2 + $0x180] sm:$0xff] }
 0x544   :  { %9123 = vmatmul.msk.f32.gmra.mxu2 %vm3626_vm1, %v13247_v24 }
 0x545   :  { %v5663_v52 = vpop.f32.mrf.mxu3 }
 0x546   :  { %9171 = vmatmul.msk.f32.gmra.mxu1 %vm3626_vm1, %v6891_v43  ;;  %v5697_v49 = vadd.f32 %v5663_v52, %v13040_v11 }
 0x547   :  { %v5957_v46 = vpop.f32.mrf.mxu2 }
 0x548   :  { %v5844_v30 = vadd.f32 %v13043_v35, %v5697_v49  ;;  %v6009_v35 = vld [vmem:[#allocation2 + $0x158] sm:$0xff] }
 0x54a   :  { %v13262_v38 = vadd.f32 %v5957_v46, %v5844_v30  ;;  %9076 = vmatmul.msk.f32.gmra.mxu3 %vm3626_vm1, %v6008_v23  ;;  %v6451_v46 = vld [vmem:[#allocation2 + $0x174] sm:$0xff]  ;;  %v13277_v24 = vpop.f32.mrf.mxu1 }
 0x54b   :  { %v6893_v30 = vld [vmem:[#allocation2 + $0x190] sm:$0xff] }
 0x54c   :  { %9124 = vmatmul.msk.f32.gmra.mxu2 %vm3626_vm1, %v6450_v21 }
 0x54d   :  { %v5666_v43 = vpop.f32.mrf.mxu3 }
 0x54e   :  { %9172 = vmatmul.msk.f32.gmra.mxu1 %vm3626_vm1, %v6892_v31  ;;  %v5698_v0 = vadd.f32 %v5666_v43, %v13056_v33  ;;  %v13283_v43 = vld [vmem:[#allocation2 + $0x184] sm:$0xff] }
 0x54f   :  { %v5960_v11 = vpop.f32.mrf.mxu2 }
 0x550   :  { %v5845_v52 = vadd.f32 %v13062_v2, %v5698_v0  ;;  %v6010_v0 = vld [vmem:[#allocation2 + $0x168] sm:$0xff] }
 0x552   :  { %v13271_v49 = vadd.f32 %v5960_v11, %v5845_v52  ;;  %9077 = vmatmul.msk.f32.gmra.mxu3 %vm3626_vm1, %v6009_v35  ;;  %v6894_v11 = vld [vmem:[#allocation2 + $0x1a0] sm:$0xff] }
 0x554   :  { %9125 = vmatmul.msk.f32.gmra.mxu2 %vm3626_vm1, %v6451_v46 }
 0x555   :  { %v5669_v23 = vpop.f32.mrf.mxu3 }
 0x556   :  { %9173 = vmatmul.msk.f32.gmra.mxu1 %vm3626_vm1, %v6893_v30  ;;  %v5699_v21 = vadd.f32 %v5669_v23, %v13066_v18  ;;  %v6011_v30 = vld [vmem:[#allocation2 + $0x178] sm:$0xff] }
 0x557   :  { %v5963_v31 = vpop.f32.mrf.mxu2 }
 0x558   :  { %v5846_v33 = vadd.f32 %v13076_v53, %v5699_v21  ;;  %v13290_v53 = vpop.f32.mrf.mxu1  ;;  %v13295_v21 = vld [vmem:[#allocation2 + $0x194] sm:$0xff] }
 0x559   :  { %14581 = vst [vmem:[#allocation9_spill] sm:$0xff] %v13295_v21 }
 0x55a   :  { %v13280_v2 = vadd.f32 %v5963_v31, %v5846_v33  ;;  %9078 = vmatmul.msk.f32.gmra.mxu3 %vm3626_vm1, %v6010_v0  ;;  %v6895_v31 = vld [vmem:[#allocation2 + $0x1b0] sm:$0xff] }
 0x55c   :  { %9126 = vmatmul.msk.f32.gmra.mxu2 %vm3626_vm1, %v13283_v43 }
 0x55d   :  { %v5672_v52 = vpop.f32.mrf.mxu3 }
 0x55e   :  { %9174 = vmatmul.msk.f32.gmra.mxu1 %vm3626_vm1, %v6894_v11  ;;  %v5700_v18 = vadd.f32 %v5672_v52, %v13079_v63  ;;  %v6896_v11 = vld [vmem:[#allocation2 + $0x1c0] sm:$0xff]  ;;  %v13302_v52 = vld [vmem:[#allocation2 + $0x188] sm:$0xff] }
 0x55f   :  { %v5966_v35 = vpop.f32.mrf.mxu2 }
 0x560   :  { %v5847_v46 = vadd.f32 %v13090_v51, %v5700_v18 }
 0x562   :  { %v13292_v23 = vadd.f32 %v5966_v35, %v5847_v46  ;;  %9079 = vmatmul.msk.f32.gmra.mxu3 %vm3626_vm1, %v6011_v30  ;;  %v7048_v35 = vld [vmem:[%s14496_s1 + $0x158] sm:$0xff]  ;;  %v7489_v46 = vld [vmem:[%s14496_s1 + $0x188] sm:$0xff]  ;;  %v7488_v30 = vld [vmem:[%s14496_s1 + $0x180] sm:$0xff] }
 0x563   :  { %7111 = vmatpush.msrb.mxu2 %v7048_v35  ;;  %7552 = vmatpush.msrb.mxu1 %v7489_v46 }
 0x564   :  { %9127 = vmatmul.msk.f32.gmra.mxu2 %vm3626_vm1, %v13295_v21 }
 0x565   :  { %v5675_v33 = vpop.f32.mrf.mxu3  ;;  %7553 = vmatpush.msrb.mxu1 %v7488_v30  ;;  %v13343_v30 = vld [vmem:[#allocation2 + $0x1c4] sm:$0xff] }
 0x566   :  { %9175 = vmatmul.msk.f32.gmra.mxu1 %vm3626_vm1, %v6895_v31  ;;  %v5701_v63 = vadd.f32 %v5675_v33, %v13092_v37  ;;  %v13314_v37 = vpop.f32.mrf.mxu1  ;;  %v7195_v31 = vld [vmem:[%s14496_s1 + $0x168] sm:$0xff] }
 0x567   :  { %v5969_v0 = vpop.f32.mrf.mxu2  ;;  %7258 = vmatpush.msrb.mxu3 %v7195_v31  ;;  %v6898_v31 = vld [vmem:[#allocation2 + $0x1e0] sm:$0xff] }
 0x568   :  { %v5848_v51 = vadd.f32 %v13125_v29, %v5701_v63  ;;  %v7047_v29 = vld [vmem:[%s14496_s1 + $0x150] sm:$0xff] }
 0x569   :  { %7112 = vmatpush.msrb.mxu2 %v7047_v29 }
 0x56a   :  { %v13304_v18 = vadd.f32 %v5969_v0, %v5848_v51  ;;  %9080 = vmatmul.msk.f32.gmra.mxu3 %vm3626_vm1, %v13302_v52  ;;  %v6897_v51 = vld [vmem:[#allocation2 + $0x1d0] sm:$0xff] }
 0x56c   :  { %9128 = vmatmul.msk.f32.gmra.mxu2 %vm3626_vm1, %v12881_v47 }
 0x56d   :  { %v5678_v33 = vpop.f32.mrf.mxu3 }
 0x56e   :  { %9176 = vmatmul.msk.f32.gmra.mxu1 %vm3626_vm1, %v6896_v11  ;;  %v5702_v47 = vadd.f32 %v5678_v33, %v13119_v14  ;;  %v13330_v11 = vld [vmem:[#allocation2 + $0x198] sm:$0xff]  ;;  %v13339_v35 = vpop.f32.mrf.mxu1  ;;  %v13345_v33 = vld [vmem:[#allocation2 + $0x1a8] sm:$0xff] }
 0x56f   :  { %v5972_v63 = vpop.f32.mrf.mxu2 }
 0x570   :  { %v5849_v0 = vadd.f32 %v13143_v60, %v5702_v47 }
 0x572   :  { %v13332_v21 = vadd.f32 %v5972_v63, %v5849_v0  ;;  %9081 = vmatmul.msk.f32.gmra.mxu3 %vm3626_vm1, %v13330_v11 }
 0x574   :  { %9129 = vmatmul.msk.f32.gmra.mxu2 %vm3626_vm1, %v12904_v28 }
 0x575   :  { %v5681_v14 = vpop.f32.mrf.mxu3 }
 0x576   :  { %9177 = vmatmul.msk.f32.gmra.mxu1 %vm3626_vm1, %v6897_v51  ;;  %v5703_v46 = vadd.f32 %v5681_v14, %v13135_v20  ;;  %v13358_v51 = vld [vmem:[#allocation2 + $0x1d4] sm:$0xff] }
 0x577   :  { %v5975_v29 = vpop.f32.mrf.mxu2  ;;  %v6899_v14 = vld [vmem:[#allocation2 + $0x1f0] sm:$0xff] }
 0x578   :  { %v5850_v60 = vadd.f32 %v13158_v12, %v5703_v46  ;;  %v13355_v12 = vpop.f32.mrf.mxu1  ;;  %v13360_v46 = vld [vmem:[#allocation2 + $0x1b8] sm:$0xff] }
 0x579   :  { %14582 = vst [vmem:[#allocation11_spill] sm:$0xff] %v13355_v12 }
 0x57a   :  { %v13347_v47 = vadd.f32 %v5975_v29, %v5850_v60  ;;  %9082 = vmatmul.msk.f32.gmra.mxu3 %vm3626_vm1, %v13345_v33 }
 0x57c   :  { %9130 = vmatmul.msk.f32.gmra.mxu2 %vm3626_vm1, %v13343_v30 }
 0x57d   :  { %v5684_v28 = vpop.f32.mrf.mxu3 }
 0x57e   :  { %9178 = vmatmul.msk.f32.gmra.mxu1 %vm3626_vm1, %v6898_v31  ;;  %v5704_v20 = vadd.f32 %v5684_v28, %v13149_v8 }
 0x57f   :  { %v5978_v63 = vpop.f32.mrf.mxu2 }
 0x580   :  { %v5851_v0 = vadd.f32 %v13169_v22, %v5704_v20  ;;  %v13371_v28 = vpop.f32.mrf.mxu1  ;;  %v6589_v20 = vld [vmem:[#allocation2 + $0x66] sm:$0xff] }
 0x582   :  { %v13362_v29 = vadd.f32 %v5978_v63, %v5851_v0  ;;  %9083 = vmatmul.msk.f32.gmra.mxu3 %vm3626_vm1, %v13360_v46 }
 0x584   :  { %9131 = vmatmul.msk.f32.gmra.mxu2 %vm3626_vm1, %v13358_v51 }
 0x585   :  { %v5687_v8 = vpop.f32.mrf.mxu3 }
 0x586   :  { %9179 = vmatmul.msk.f32.gmra.mxu1 %vm3626_vm1, %v6899_v14  ;;  %v5705_v60 = vadd.f32 %v5687_v8, %v13161_v1  ;;  %v14583_v14 = vld [vmem:[#allocation12_spill] sm:$0xff] }
 0x587   :  { %v5981_v31 = vpop.f32.mrf.mxu2 }
 0x588   :  { %v5852_v22 = vadd.f32 %v13184_v17, %v5705_v60  ;;  %v6590_v17 = vld [vmem:[#allocation2 + $0x76] sm:$0xff] }
 0x58a   :  { %v13373_v12 = vadd.f32 %v5981_v31, %v5852_v22  ;;  %9132 = vmatmul.msk.f32.vlgmr.msra.gmra.mxu3 %vm3626_vm1, %v6589_v20  ;;  %v13384_v31 = vpop.f32.mrf.mxu1  ;;  %v14584_v20 = vld [vmem:[#allocation13_spill] sm:$0xff] }
 0x58c   :  { %9180 = vmatmul.msk.f32.vlgmr.msrb.gmra.mxu2 %vm3626_vm1, %v12956_v59 }
 0x58d   :  { %v6083_v63 = vpop.f32.mrf.mxu3 }
 0x58e   :  { %9228 = vmatmul.msk.f32.vlgmr.msrb.gmra.mxu1 %vm3626_vm1, %v13205_v41  ;;  %v6131_v0 = vadd.f32 %v6083_v63, %v13171_v58 }
 0x58f   :  { %v6525_v1 = vpop.f32.mrf.mxu2 }
 0x590   :  { %v6279_v8 = vadd.f32 %v14583_v14, %v6131_v0  ;;  %v6591_v0 = vld [vmem:[#allocation2 + $0x86] sm:$0xff] }
 0x592   :  { %v6426_v60 = vadd.f32 %v13201_v48, %v6279_v8  ;;  %9133 = vmatmul.msk.f32.gmra.mxu3 %vm3626_vm1, %v6590_v17  ;;  %v14585_v8 = vld [vmem:[#allocation6_spill] sm:$0xff] }
 0x594   :  { %9181 = vmatmul.msk.f32.gmra.mxu2 %vm3626_vm1, %v12967_v54  ;;  %v13390_v59 = vadd.f32 %v6525_v1, %v6426_v60  ;;  %v6592_v60 = vld [vmem:[#allocation2 + $0x96] sm:$0xff] }
 0x595   :  { %v6086_v41 = vpop.f32.mrf.mxu3 }
 0x596   :  { %9229 = vmatmul.msk.f32.gmra.mxu1 %vm3626_vm1, %v13221_v16  ;;  %v6132_v58 = vadd.f32 %v6086_v41, %v13179_v36  ;;  %v13402_v16 = vpop.f32.mrf.mxu1 }
 0x597   :  { %v6528_v22 = vpop.f32.mrf.mxu2 }
 0x598   :  { %v6280_v63 = vadd.f32 %v14584_v20, %v6132_v58 }
 0x59a   :  { %v6427_v48 = vadd.f32 %v13218_v45, %v6280_v63  ;;  %9134 = vmatmul.msk.f32.gmra.mxu3 %vm3626_vm1, %v6591_v0  ;;  %v7476_v63 = vld [vmem:[#allocation2 + $0xc8] sm:$0xff] }
 0x59c   :  { %9182 = vmatmul.msk.f32.gmra.mxu2 %vm3626_vm1, %v12981_v15  ;;  %v13400_v54 = vadd.f32 %v6528_v22, %v6427_v48  ;;  %v14586_v22 = vld [vmem:[#allocation3_spill] sm:$0xff] }
 0x59d   :  { %v6089_v1 = vpop.f32.mrf.mxu3 }
 0x59e   :  { %9230 = vmatmul.msk.f32.gmra.mxu1 %vm3626_vm1, %v13236_v57  ;;  %v6133_v36 = vadd.f32 %v6089_v1, %v13192_v27  ;;  %v13415_v58 = vpop.f32.mrf.mxu1 }
 0x59f   :  { %v6531_v14 = vpop.f32.mrf.mxu2 }
 0x5a0   :  { %v6281_v17 = vadd.f32 %v14585_v8, %v6133_v36  ;;  %v14587_v36 = vld [vmem:[#allocation8_spill] sm:$0xff] }
 0x5a2   :  { %v6428_v45 = vadd.f32 %v13234_v40, %v6281_v17  ;;  %9135 = vmatmul.msk.f32.gmra.mxu3 %vm3626_vm1, %v6592_v60  ;;  %v6593_v40 = vld [vmem:[#allocation2 + $0xa6] sm:$0xff]  ;;  %v6594_v17 = vld [vmem:[#allocation2 + $0xb6] sm:$0xff] }
 0x5a4   :  { %9183 = vmatmul.msk.f32.gmra.mxu2 %vm3626_vm1, %v13001_v5  ;;  %v13412_v15 = vadd.f32 %v6531_v14, %v6428_v45  ;;  %v7477_v14 = vld [vmem:[#allocation2 + $0xd8] sm:$0xff] }
 0x5a5   :  { %v6092_v57 = vpop.f32.mrf.mxu3 }
 0x5a6   :  { %9231 = vmatmul.msk.f32.gmra.mxu1 %vm3626_vm1, %v13249_v13  ;;  %v6134_v41 = vadd.f32 %v6092_v57, %v13207_v32  ;;  %v7194_v32 = vld [vmem:[%s14496_s1 + $0x160] sm:$0xff]  ;;  %v13430_v8 = vpop.f32.mrf.mxu1 }
 0x5a7   :  { %v6534_v27 = vpop.f32.mrf.mxu2  ;;  %7259 = vmatpush.msrb.mxu3 %v7194_v32 }
 0x5a8   :  { %v6282_v20 = vadd.f32 %v14586_v22, %v6134_v41  ;;  %v6595_v41 = vld [vmem:[#allocation2 + $0xc6] sm:$0xff] }
 0x5aa   :  { %v6429_v0 = vadd.f32 %v13255_v44, %v6282_v20  ;;  %9136 = vmatmul.msk.f32.gmra.mxu3 %vm3626_vm1, %v6593_v40  ;;  %v7037_v20 = vld [vmem:[#allocation2 + $0xe2] sm:$0xff] }
 0x5ac   :  { %9184 = vmatmul.msk.f32.gmra.mxu2 %vm3626_vm1, %v13011_v25  ;;  %v13423_v5 = vadd.f32 %v6534_v27, %v6429_v0  ;;  %v14588_v27 = vld [vmem:[#allocation7_spill] sm:$0xff] }
 0x5ad   :  { %v6095_v13 = vpop.f32.mrf.mxu3 }
 0x5ae   :  { %9232 = vmatmul.msk.f32.gmra.mxu1 %vm3626_vm1, %v7476_v63  ;;  %v6135_v48 = vadd.f32 %v6095_v13, %v13223_v26  ;;  %v7478_v63 = vld [vmem:[#allocation2 + $0xe8] sm:$0xff]  ;;  %v13443_v40 = vpop.f32.mrf.mxu1  ;;  %v6596_v13 = vld [vmem:[#allocation2 + $0xd6] sm:$0xff] }
 0x5af   :  { %v6537_v1 = vpop.f32.mrf.mxu2 }
 0x5b0   :  { %v6283_v44 = vadd.f32 %v14587_v36, %v6135_v48  ;;  %v14589_v48 = vld [vmem:[#allocation17_spill] sm:$0xff] }
 0x5b1   :  { %v7038_v36 = vld [vmem:[#allocation2 + $0xf2] sm:$0xff] }
 0x5b2   :  { %v6430_v25 = vadd.f32 %v13267_v42, %v6283_v44  ;;  %9137 = vmatmul.msk.f32.gmra.mxu3 %vm3626_vm1, %v6594_v17  ;;  %v7479_v44 = vld [vmem:[#allocation2 + $0xf8] sm:$0xff] }
 0x5b4   :  { %9185 = vmatmul.msk.f32.gmra.mxu2 %vm3626_vm1, %v13023_v10  ;;  %v13437_v60 = vadd.f32 %v6537_v1, %v6430_v25 }
 0x5b5   :  { %v6098_v45 = vpop.f32.mrf.mxu3 }
 0x5b6   :  { %9233 = vmatmul.msk.f32.gmra.mxu1 %vm3626_vm1, %v7477_v14  ;;  %v6136_v26 = vadd.f32 %v6098_v45, %v13238_v6  ;;  %v13457_v17 = vpop.f32.mrf.mxu1 }
 0x5b7   :  { %v6540_v57 = vpop.f32.mrf.mxu2 }
 0x5b8   :  { %v6284_v22 = vadd.f32 %v14588_v27, %v6136_v26  ;;  %v14590_v26 = vld [vmem:[#allocation18_spill] sm:$0xff] }
 0x5ba   :  { %v6431_v42 = vadd.f32 %v13277_v24, %v6284_v22  ;;  %9138 = vmatmul.msk.f32.gmra.mxu3 %vm3626_vm1, %v6595_v41  ;;  %v6597_v41 = vld [vmem:[#allocation2 + $0x166] sm:$0xff] }
 0x5bc   :  { %9186 = vmatmul.msk.f32.gmra.mxu2 %vm3626_vm1, %v7037_v20  ;;  %v13447_v10 = vadd.f32 %v6540_v57, %v6431_v42  ;;  %v6598_v42 = vld [vmem:[#allocation2 + $0x176] sm:$0xff] }
 0x5bd   :  { %v6101_v0 = vpop.f32.mrf.mxu3 }
 0x5be   :  { %9234 = vmatmul.msk.f32.gmra.mxu1 %vm3626_vm1, %v7478_v63  ;;  %v6137_v6 = vadd.f32 %v6101_v0, %v13251_v34  ;;  %v13474_v63 = vpop.f32.mrf.mxu1  ;;  %v6599_v0 = vld [vmem:[#allocation2 + $0x186] sm:$0xff] }
 0x5bf   :  { %v6543_v32 = vpop.f32.mrf.mxu2 }
 0x5c0   :  { %v6285_v1 = vadd.f32 %v14589_v48, %v6137_v6  ;;  %v13489_v6 = vpop.f32.mrf.mxu0 }
 0x5c2   :  { %v6432_v24 = vadd.f32 %v13290_v53, %v6285_v1  ;;  %9139 = vmatmul.msk.f32.gmra.mxu3 %vm3626_vm1, %v6596_v13  ;;  %v6600_v13 = vld [vmem:[#allocation2 + $0x196] sm:$0xff] }
 0x5c4   :  { %9187 = vmatmul.msk.f32.gmra.mxu2 %vm3626_vm1, %v7038_v36  ;;  %v13455_v14 = vadd.f32 %v6543_v32, %v6432_v24 }
 0x5c5   :  { %v6104_v25 = vpop.f32.mrf.mxu3 }
 0x5c6   :  { %9235 = vmatmul.msk.f32.gmra.mxu1 %vm3626_vm1, %v7479_v44  ;;  %v6138_v34 = vadd.f32 %v6104_v25, %v13262_v38  ;;  %v6601_v44 = vld [vmem:[#allocation2 + $0x1a6] sm:$0xff] }
 0x5c7   :  { %v6546_v45 = vpop.f32.mrf.mxu2 }
 0x5c8   :  { %v6286_v57 = vadd.f32 %v14590_v26, %v6138_v34 }
 0x5ca   :  { %v6433_v27 = vadd.f32 %v13314_v37, %v6286_v57  ;;  %9140 = vmatmul.msk.f32.gmra.mxu3 %vm3626_vm1, %v6597_v41  ;;  %v14591_v57 = vld [vmem:[#allocation20_spill] sm:$0xff] }
 0x5cc   :  { %9188 = vmatmul.msk.f32.gmra.mxu2 %vm3626_vm1, %v13069_v4  ;;  %v13467_v53 = vadd.f32 %v6546_v45, %v6433_v27 }
 0x5cd   :  { %v6107_v22 = vpop.f32.mrf.mxu3 }
 0x5ce   :  { %9236 = vmatmul.msk.f32.gmra.mxu1 %vm3626_vm1, %v13302_v52  ;;  %v13470_v20 = vadd.f32 %v6107_v22, %v13271_v49  ;;  %v13486_v49 = vpop.f32.mrf.mxu1 }
 0x5cf   :  { %v13472_v38 = vpop.f32.mrf.mxu2 }
 0x5d2   :  { %9141 = vmatmul.msk.f32.gmra.mxu3 %vm3626_vm1, %v6598_v42  ;;  %v7046_v42 = vld [vmem:[#allocation2 + $0x1f2] sm:$0xff] }
 0x5d4   :  { %9189 = vmatmul.msk.f32.gmra.mxu2 %vm3626_vm1, %v13082_v61  ;;  %v6603_v61 = vld [vmem:[#allocation2 + $0x1c6] sm:$0xff] }
 0x5d5   :  { %v6110_v4 = vpop.f32.mrf.mxu3  ;;  %9224 = vmatmul.msk.f32.gmra.mxu0 %vm3626_vm1, %v6603_v61 }
 0x5d6   :  { %9237 = vmatmul.msk.f32.gmra.mxu1 %vm3626_vm1, %v13330_v11  ;;  %v13482_v52 = vadd.f32 %v6110_v4, %v13280_v2  ;;  %v13502_v48 = vpop.f32.mrf.mxu1 }
 0x5d7   :  { %v13484_v37 = vpop.f32.mrf.mxu2 }
 0x5da   :  { %9142 = vmatmul.msk.f32.gmra.mxu3 %vm3626_vm1, %v6599_v0 }
 0x5dc   :  { %9190 = vmatmul.msk.f32.gmra.mxu2 %vm3626_vm1, %v13096_v50  ;;  %v6604_v50 = vld [vmem:[#allocation2 + $0x1d6] sm:$0xff] }
 0x5dd   :  { %v6113_v11 = vpop.f32.mrf.mxu3 }
 0x5de   :  { %9238 = vmatmul.msk.f32.gmra.mxu1 %vm3626_vm1, %v13345_v33  ;;  %v13497_v2 = vadd.f32 %v6113_v11, %v13292_v23  ;;  %v13508_v33 = vpop.f32.mrf.mxu0  ;;  %9225 = vmatmul.msk.f32.gmra.mxu0 %vm3626_vm1, %v6604_v50  ;;  %v14593_v11 = vld [vmem:[#allocation21_spill] sm:$0xff] }
 0x5df   :  { %v13499_v32 = vpop.f32.mrf.mxu2 }
 0x5e2   :  { %9143 = vmatmul.msk.f32.gmra.mxu3 %vm3626_vm1, %v6600_v13 }
 0x5e4   :  { %9191 = vmatmul.msk.f32.gmra.mxu2 %vm3626_vm1, %v13123_v19 }
 0x5e5   :  { %v6116_v1 = vpop.f32.mrf.mxu3 }
 0x5e6   :  { %9239 = vmatmul.msk.f32.gmra.mxu1 %vm3626_vm1, %v13360_v46  ;;  %v13512_v23 = vadd.f32 %v6116_v1, %v13304_v18 }
 0x5e7   :  { %v13514_v36 = vpop.f32.mrf.mxu2 }
 0x5ea   :  { %9144 = vmatmul.msk.f32.gmra.mxu3 %vm3626_vm1, %v6601_v44 }
 0x5ec   :  { %9192 = vmatmul.msk.f32.gmra.mxu2 %vm3626_vm1, %v13133_v56 }
 0x5ed   :  { %v6119_v19 = vpop.f32.mrf.mxu3 }
 0x5ee   :  { %v6143_v46 = vadd.f32 %v6119_v19, %v13332_v21  ;;  %v7045_v21 = vld [vmem:[#allocation2 + $0x1e2] sm:$0xff]  ;;  %v13552_v19 = vpop.f32.mrf.mxu1 }
 0x5ef   :  { %v6561_v24 = vpop.f32.mrf.mxu2 }
 0x5f0   :  { %v6291_v25 = vadd.f32 %v12795_v39, %v6143_v46 }
 0x5f2   :  { %v6438_v34 = vadd.f32 %v13402_v16, %v6291_v25  ;;  %9145 = vmatmul.msk.f32.gmra.mxu3 %vm3626_vm1, %v13049_v55  ;;  %v14592_v16 = vld [vmem:[#allocation15_spill] sm:$0xff] }
 0x5f4   :  { %9193 = vmatmul.msk.f32.gmra.mxu2 %vm3626_vm1, %v13147_v62  ;;  %v13526_v18 = vadd.f32 %v6561_v24, %v6438_v34  ;;  %v13567_v34 = vpop.f32.mrf.mxu0 }
 0x5f5   :  { %v6122_v45 = vpop.f32.mrf.mxu3 }
 0x5f6   :  { %v6144_v26 = vadd.f32 %v6122_v45, %v13347_v47  ;;  %v7181_v45 = vld [vmem:[#allocation2 + $0xb4] sm:$0xff] }
 0x5f7   :  { %v6564_v56 = vpop.f32.mrf.mxu2 }
 0x5f8   :  { %v6292_v41 = vadd.f32 %v14591_v57, %v6144_v26 }
 0x5fa   :  { %v6439_v27 = vadd.f32 %v13415_v58, %v6292_v41  ;;  %9146 = vmatmul.msk.f32.gmra.mxu3 %vm3626_vm1, %v6603_v61 }
 0x5fc   :  { %9194 = vmatmul.msk.f32.gmra.mxu2 %vm3626_vm1, %v7045_v21  ;;  %v13533_v39 = vadd.f32 %v6564_v56, %v6439_v27  ;;  %v14594_v27 = vld [vmem:[#allocation14_spill] sm:$0xff] }
 0x5fd   :  { %v6125_v55 = vpop.f32.mrf.mxu3 }
 0x5fe   :  { %v6145_v62 = vadd.f32 %v6125_v55, %v13362_v29 }
 0x5ff   :  { %v6567_v4 = vpop.f32.mrf.mxu2 }
 0x600   :  { %v6293_v22 = vadd.f32 %v14592_v16, %v6145_v62 }
 0x602   :  { %v6440_v47 = vadd.f32 %v13430_v8, %v6293_v22  ;;  %9147 = vmatmul.msk.f32.gmra.mxu3 %vm3626_vm1, %v6604_v50 }
 0x604   :  { %9195 = vmatmul.msk.f32.gmra.mxu2 %vm3626_vm1, %v7046_v42  ;;  %v13540_v58 = vadd.f32 %v6567_v4, %v6440_v47 }
 0x605   :  { %v6128_v0 = vpop.f32.mrf.mxu3 }
 0x606   :  { %v6146_v61 = vadd.f32 %v6128_v0, %v13373_v12  ;;  %v7185_v0 = vld [vmem:[#allocation2 + $0xf4] sm:$0xff] }
 0x607   :  { %v6570_v29 = vpop.f32.mrf.mxu2 }
 0x608   :  { %v6294_v13 = vadd.f32 %v14593_v11, %v6146_v61 }
 0x60a   :  { %v6441_v1 = vadd.f32 %v13443_v40, %v6294_v13  ;;  %9196 = vmatmul.msk.f32.vlgmr.msrb.gmra.mxu3 %vm3626_vm1, %v13182_v9  ;;  %v7180_v40 = vld [vmem:[#allocation2 + $0xa4] sm:$0xff]  ;;  %v13560_v9 = vpop.f32.mrf.mxu1 }
 0x60c   :  { %v13547_v44 = vadd.f32 %v6570_v29, %v6441_v1 }
 0x60d   :  { %v6672_v8 = vpop.f32.mrf.mxu3 }
 0x60e   :  { %v13550_v50 = vadd.f32 %v6672_v8, %v13390_v59 }
 0x60f   :  { %v13565_v59 = vpop.f32.mrf.mxu2 }
 0x612   :  { %9197 = vmatmul.msk.f32.gmra.mxu3 %vm3626_vm1, %v13195_v3  ;;  %v13570_v26 = vpop.f32.mrf.mxu1 }
 0x615   :  { %v6675_v12 = vpop.f32.mrf.mxu3 }
 0x616   :  { %v13557_v46 = vadd.f32 %v6675_v12, %v13400_v54  ;;  %v14596_v12 = vld [vmem:[#allocation9_spill] sm:$0xff] }
 0x617   :  { %v13575_v56 = vpop.f32.mrf.mxu2 }
 0x61a   :  { %9198 = vmatmul.msk.f32.gmra.mxu3 %vm3626_vm1, %v7180_v40  ;;  %v13584_v21 = vpop.f32.mrf.mxu1 }
 0x61d   :  { %v6678_v24 = vpop.f32.mrf.mxu3 }
 0x61e   :  { %v13563_v25 = vadd.f32 %v6678_v24, %v13412_v15  ;;  %v13579_v15 = vpop.f32.mrf.mxu0 }
 0x61f   :  { %v13588_v55 = vpop.f32.mrf.mxu2 }
 0x622   :  { %9199 = vmatmul.msk.f32.gmra.mxu3 %vm3626_vm1, %v7181_v45  ;;  %v13595_v22 = vpop.f32.mrf.mxu1 }
 0x625   :  { %v6681_v3 = vpop.f32.mrf.mxu3 }
 0x626   :  { %v13573_v54 = vadd.f32 %v6681_v3, %v13423_v5  ;;  %v13590_v5 = vpop.f32.mrf.mxu0  ;;  %v7188_v3 = vld [vmem:[#allocation2 + $0x1a4] sm:$0xff] }
 0x627   :  { %v13598_v42 = vpop.f32.mrf.mxu2 }
 0x62a   :  { %9200 = vmatmul.msk.f32.gmra.mxu3 %vm3626_vm1, %v13232_v7  ;;  %v7184_v7 = vld [vmem:[#allocation2 + $0xe4] sm:$0xff]  ;;  %v13606_v61 = vpop.f32.mrf.mxu1 }
 0x62d   :  { %v6684_v57 = vpop.f32.mrf.mxu3 }
 0x62e   :  { %v13582_v41 = vadd.f32 %v6684_v57, %v13437_v60  ;;  %v13603_v47 = vpop.f32.mrf.mxu0  ;;  %v7485_v57 = vld [vmem:[#allocation2 + $0x1d8] sm:$0xff] }
 0x62f   :  { %v13611_v13 = vpop.f32.mrf.mxu2 }
 0x632   :  { %9201 = vmatmul.msk.f32.gmra.mxu3 %vm3626_vm1, %v14594_v27  ;;  %v13619_v29 = vpop.f32.mrf.mxu1 }
 0x633   :  { %14595 = vst [vmem:[#allocation12_spill] sm:$0xff] %v13619_v29 }
 0x635   :  { %v6687_v62 = vpop.f32.mrf.mxu3 }
 0x636   :  { %v13593_v16 = vadd.f32 %v6687_v62, %v13447_v10  ;;  %v13613_v1 = vpop.f32.mrf.mxu0 }
 0x637   :  { %v13621_v8 = vpop.f32.mrf.mxu2 }
 0x63a   :  { %9202 = vmatmul.msk.f32.gmra.mxu3 %vm3626_vm1, %v7184_v7  ;;  %v13630_v45 = vpop.f32.mrf.mxu1  ;;  %v7189_v7 = vld [vmem:[#allocation2 + $0x1b4] sm:$0xff] }
 0x63b   :  { %14597 = vst [vmem:[#allocation13_spill] sm:$0xff] %v13630_v45 }
 0x63d   :  { %v6690_v60 = vpop.f32.mrf.mxu3 }
 0x63e   :  { %v13601_v4 = vadd.f32 %v6690_v60, %v13455_v14  ;;  %v13625_v40 = vpop.f32.mrf.mxu0 }
 0x642   :  { %9203 = vmatmul.msk.f32.gmra.mxu3 %vm3626_vm1, %v7185_v0  ;;  %v13640_v60 = vpop.f32.mrf.mxu1  ;;  %v7339_v0 = vld [vmem:[#allocation2 + $0x1e6] sm:$0xff] }
 0x643   :  { %14600 = vst [vmem:[#allocation8_spill] sm:$0xff] %v13640_v60  ;;  %9226 = vmatmul.msk.f32.gmra.mxu0 %vm3626_vm1, %v7339_v0 }
 0x645   :  { %v6693_v10 = vpop.f32.mrf.mxu3 }
 0x646   :  { %v13609_v11 = vadd.f32 %v6693_v10, %v13467_v53  ;;  %v7484_v53 = vld [vmem:[#allocation2 + $0x1c8] sm:$0xff]  ;;  %v13635_v27 = vpop.f32.mrf.mxu0 }
 0x647   :  { %9240 = vmatmul.msk.f32.gmra.mxu1 %vm3626_vm1, %v7484_v53  ;;  %14599 = vst [vmem:[#allocation3_spill] sm:$0xff] %v13635_v27  ;;  %v7486_v10 = vld [vmem:[#allocation2 + $0x1e8] sm:$0xff] }
 0x64a   :  { %9204 = vmatmul.msk.f32.gmra.mxu3 %vm3626_vm1, %v13283_v43  ;;  %v13633_v43 = vpop.f32.mrf.mxu2 }
 0x64b   :  { %14598 = vst [vmem:[#allocation6_spill] sm:$0xff] %v13633_v43  ;;  %v7340_v43 = vld [vmem:[#allocation2 + $0x1f6] sm:$0xff] }
 0x64c   :  { %9227 = vmatmul.msk.f32.gmra.mxu0 %vm3626_vm1, %v7340_v43 }
 0x64d   :  { %v13617_v14 = vpop.f32.mrf.mxu3 }
 0x64f   :  { %9241 = vmatmul.msk.f32.gmra.mxu1 %vm3626_vm1, %v7485_v57  ;;  %v13654_v57 = vpop.f32.mrf.mxu1 }
 0x650   :  { %14603 = vst [vmem:[#allocation18_spill] sm:$0xff] %v13654_v57  ;;  %v7192_v57 = vld [vmem:[#allocation2 + $0x1e4] sm:$0xff] }
 0x652   :  { %9205 = vmatmul.msk.f32.gmra.mxu3 %vm3626_vm1, %v14596_v12  ;;  %v13647_v53 = vpop.f32.mrf.mxu2 }
 0x653   :  { %14601 = vst [vmem:[#allocation7_spill] sm:$0xff] %v13647_v53 }
 0x655   :  { %v13627_v24 = vpop.f32.mrf.mxu3 }
 0x657   :  { %9242 = vmatmul.msk.f32.gmra.mxu1 %vm3626_vm1, %v7486_v10 }
 0x65a   :  { %9206 = vmatmul.msk.f32.gmra.mxu3 %vm3626_vm1, %v7188_v3  ;;  %v13649_v3 = vpop.f32.mrf.mxu0  ;;  %v13660_v10 = vpop.f32.mrf.mxu2 }
 0x65b   :  { %14602 = vst [vmem:[#allocation17_spill] sm:$0xff] %v13649_v3 }
 0x65c   :  { %14605 = vst [vmem:[#allocation15_spill] sm:$0xff] %v13660_v10 }
 0x65d   :  { %v13637_v62 = vpop.f32.mrf.mxu3 }
 0x662   :  { %9207 = vmatmul.msk.f32.gmra.mxu3 %vm3626_vm1, %v7189_v7  ;;  %v7487_v7 = vld [vmem:[#allocation2 + $0x1f8] sm:$0xff]  ;;  %v13662_v53 = vpop.f32.mrf.mxu0  ;;  %v13671_v27 = vpop.f32.mrf.mxu2 }
 0x663   :  { %9243 = vmatmul.msk.f32.gmra.mxu1 %vm3626_vm1, %v7487_v7  ;;  %14606 = vst [vmem:[#allocation21_spill] sm:$0xff] %v13662_v53  ;;  %v7193_v53 = vld [vmem:[#allocation2 + $0x1f4] sm:$0xff] }
 0x664   :  { %14609 = vst [vmem:[#allocation25_spill] sm:$0xff] %v13671_v27  ;;  %v14615_v27 = vld [vmem:[#allocation4_spill] sm:$0xff] }
 0x665   :  { %v13644_v12 = vpop.f32.mrf.mxu3 }
 0x66a   :  { %9208 = vmatmul.msk.f32.gmra.mxu3 %vm3626_vm1, %v13343_v30  ;;  %v13666_v30 = vpop.f32.mrf.mxu1 }
 0x66b   :  { %14607 = vst [vmem:[#allocation14_spill] sm:$0xff] %v13666_v30 }
 0x66d   :  { %v6708_v60 = vpop.f32.mrf.mxu3 }
 0x66e   :  { %v13658_v0 = vadd.f32 %v6708_v60, %v13526_v18  ;;  %v13674_v18 = vpop.f32.mrf.mxu0 }
 0x66f   :  { %14610 = vst [vmem:[#allocation26_spill] sm:$0xff] %v13674_v18  ;;  %v14616_v18 = vld [vmem:[#allocation10_spill] sm:$0xff] }
 0x670   :  { %14604 = vst [vmem:[#allocation20_spill] sm:$0xff] %v13658_v0  ;;  %v6288_v0 = vadd.f32 %v14616_v18, %v13482_v52 }
 0x672   :  { %9209 = vmatmul.msk.f32.gmra.mxu3 %vm3626_vm1, %v13358_v51  ;;  %v13679_v10 = vpop.f32.mrf.mxu1  ;;  %v14613_v51 = vld [vmem:[#allocation19_spill] sm:$0xff] }
 0x673   :  { %14612 = vst [vmem:[#allocation28_spill] sm:$0xff] %v13679_v10 }
 0x675   :  { %v6711_v3 = vpop.f32.mrf.mxu3 }
 0x676   :  { %v13669_v43 = vadd.f32 %v6711_v3, %v13533_v39  ;;  %v6867_v39 = vadd.f32 %v14613_v51, %v13550_v50  ;;  %v13684_v3 = vpop.f32.mrf.mxu2  ;;  %v7408_v30 = vpop.f32.mrf.mxu0 }
 0x677   :  { %14614 = vst [vmem:[#allocation19_spill] sm:$0xff] %v13684_v3  ;;  %v14619_v3 = vld [vmem:[#allocation11_spill] sm:$0xff] }
 0x678   :  { %14608 = vst [vmem:[#allocation9_spill] sm:$0xff] %v13669_v43  ;;  %v7015_v50 = vadd.f32 %v13457_v17, %v6867_v39  ;;  %v6435_v45 = vadd.f32 %v14619_v3, %v6288_v0 }
 0x67a   :  { %9210 = vmatmul.msk.f32.gmra.mxu3 %vm3626_vm1, %v7192_v57  ;;  %v6287_v57 = vadd.f32 %v14615_v27, %v13470_v20  ;;  %v7555_v20 = vpop.f32.mrf.mxu1  ;;  %v14620_v27 = vld [vmem:[#allocation23_spill] sm:$0xff]  ;;  %v7162_v18 = vadd.f32 %v13565_v59, %v7015_v50 }
 0x67b   :  { %v6868_v29 = vadd.f32 %v14620_v27, %v13557_v46  ;;  %v6872_v46 = vadd.f32 %v13508_v33, %v13593_v16 }
 0x67c   :  { %v6434_v51 = vadd.f32 %v13339_v35, %v6287_v57  ;;  %v6871_v35 = vadd.f32 %v13489_v6, %v13582_v41 }
 0x67d   :  { %v6714_v60 = vpop.f32.mrf.mxu3 }
 0x67e   :  { %v13677_v7 = vadd.f32 %v6714_v60, %v13540_v58  ;;  %v14617_v60 = vld [vmem:[#allocation5_spill] sm:$0xff]  ;;  %v6581_v0 = vadd.f32 %v13472_v38, %v6434_v51  ;;  %v7411_v59 = vpop.f32.mrf.mxu0  ;;  %v7019_v33 = vadd.f32 %v13552_v19, %v6871_v35 }
 0x67f   :  { %v6289_v10 = vadd.f32 %v14617_v60, %v13497_v2 }
 0x680   :  { %14611 = vst [vmem:[#allocation27_spill] sm:$0xff] %v13677_v7  ;;  %v6728_v38 = vadd.f32 %v13617_v14, %v6581_v0 }
 0x681   :  { %v6436_v52 = vadd.f32 %v13371_v28, %v6289_v10  ;;  %v6582_v28 = vadd.f32 %v13484_v37, %v6435_v45  ;;  %v13716_v10 = vpop.f32.mrf.mxu2 }
 0x682   :  { %9211 = vmatmul.msk.f32.gmra.mxu3 %vm3626_vm1, %v7193_v53  ;;  %v14618_v53 = vld [vmem:[#allocation16_spill] sm:$0xff]  ;;  %v6875_v45 = vadd.f32 %v13590_v5, %v6728_v38 }
 0x683   :  { %v6290_v7 = vadd.f32 %v14618_v53, %v13512_v23  ;;  %v14622_v23 = vld [vmem:[#allocation24_spill] sm:$0xff]  ;;  %v6729_v37 = vadd.f32 %v13627_v24, %v6582_v28  ;;  %v6874_v24 = vadd.f32 %v13579_v15, %v13609_v11  ;;  %v14627_v28 = vld [vmem:[#allocation6_spill] sm:$0xff] }
 0x684   :  { %v6870_v17 = vadd.f32 %v14622_v23, %v13573_v54  ;;  %v7023_v60 = vadd.f32 %v13595_v22, %v6875_v45  ;;  %v14625_v22 = vld [vmem:[#allocation20_spill] sm:$0xff]  ;;  %v14626_v23 = vld [vmem:[#allocation3_spill] sm:$0xff] }
 0x685   :  { %v6717_v43 = vpop.f32.mrf.mxu3 }
 0x686   :  { %v13691_v58 = vadd.f32 %v6717_v43, %v13547_v44  ;;  %v6437_v44 = vadd.f32 %v13384_v31, %v6290_v7  ;;  %v14621_v43 = vld [vmem:[#allocation22_spill] sm:$0xff]  ;;  %v7016_v31 = vadd.f32 %v13474_v63, %v6868_v29  ;;  %v6583_v7 = vadd.f32 %v13499_v32, %v6436_v52  ;;  %v13728_v63 = vld [vmem:[%s14495_s3 + $0x1] ss:$0 sm:$0xff]  ;;  %v7414_v51 = vpop.f32.mrf.mxu0 }
 0x687   :  { %v6869_v2 = vadd.f32 %v14621_v43, %v13563_v25  ;;  %v7018_v41 = vadd.f32 %v13502_v48, %v6870_v17  ;;  %v7020_v32 = vadd.f32 %v13560_v9, %v6872_v46  ;;  %v14623_v43 = vld [vmem:[#allocation12_spill] sm:$0xff]  ;;  %v6879_v17 = vadd.f32 %v14626_v23, %v14625_v22 }
 0x688   :  { %v6584_v54 = vadd.f32 %v13514_v36, %v6437_v44  ;;  %v6873_v36 = vadd.f32 %v13567_v34, %v13601_v4  ;;  %v7163_v48 = vadd.f32 %v13575_v56, %v7016_v31  ;;  %v13744_v34 = vadd.f32 %v13611_v13, %v7019_v33  ;;  %v14631_v33 = vld [vmem:[#allocation17_spill] sm:$0xff] }
 0x689   :  { %v7017_v6 = vadd.f32 %v13486_v49, %v6869_v2  ;;  %v6730_v49 = vadd.f32 %v13637_v62, %v6583_v7  ;;  %v13741_v9 = vadd.f32 %v13598_v42, %v7018_v41  ;;  %v6876_v4 = vadd.f32 %v13603_v47, %v6729_v37  ;;  %v14630_v41 = vld [vmem:[#allocation9_spill] sm:$0xff] }
 0x68a   :  { %v6731_v14 = vadd.f32 %v13644_v12, %v6584_v54  ;;  %v13749_v62 = vadd.f32 %v13621_v8, %v7020_v32  ;;  %v13754_v12 = vpop.f32.mrf.mxu2  ;;  %v7022_v47 = vadd.f32 %v13584_v21, %v6874_v24  ;;  %v14624_v21 = vld [vmem:[#allocation13_spill] sm:$0xff]  ;;  %v14629_v54 = vld [vmem:[#allocation15_spill] sm:$0xff]  ;;  %v6880_v37 = vadd.f32 %v14631_v33, %v14630_v41  ;;  %v14640_v33 = vld [vmem:[#allocation28_spill] sm:$0xff] }
 0x68b   :  { %v7164_v29 = vadd.f32 %v13588_v55, %v7017_v6  ;;  %v7021_v55 = vadd.f32 %v13570_v26, %v6873_v36  ;;  %v6877_v15 = vadd.f32 %v13613_v1, %v6730_v49  ;;  %v7024_v26 = vadd.f32 %v13606_v61, %v6876_v4 }
 0x68c   :  { %v6878_v5 = vadd.f32 %v13625_v40, %v6731_v14  ;;  %v13774_v6 = vadd.f32 %v14629_v54, %v7023_v60  ;;  %v14632_v14 = vld [vmem:[#allocation25_spill] sm:$0xff] }
 0x68d   :  { %v7261_v39 = vpop.f32.mrf.mxu3  ;;  %v7025_v2 = vadd.f32 %v14623_v43, %v6877_v15  ;;  %v13768_v31 = vadd.f32 %v14627_v28, %v7021_v55  ;;  %v9247_v28 = vld [vmem:[%s14493_s2 + $0x98] sm:$0xff] }
 0x68e   :  { %v7309_v25 = vadd.f32 %v7261_v39, %v7162_v18  ;;  %v7026_v18 = vadd.f32 %v14624_v21, %v6878_v5  ;;  %8509 = vmatpush.msra.mxu2 %v9247_v28 }
 0x690   :  { %v7456_v16 = vadd.f32 %v7408_v30, %v7309_v25  ;;  %v7558_v30 = vpop.f32.mrf.mxu1  ;;  %v14628_v25 = vld [vmem:[#allocation7_spill] sm:$0xff]  ;;  %v13785_v45 = vadd.f32 %v13716_v10, %v7026_v18 }
 0x691   :  { %v13771_v7 = vadd.f32 %v14628_v25, %v7022_v47  ;;  %v14635_v47 = vld [vmem:[#allocation18_spill] sm:$0xff]  ;;  %v14636_v10 = vld [vmem:[#allocation27_spill] sm:$0xff] }
 0x692   :  { %v7603_v19 = vadd.f32 %v7555_v20, %v7456_v16  ;;  %v13795_v60 = vadd.f32 %v14635_v47, %v6880_v37 }
 0x694   :  { %v7621_v56 = vadd.f32 %v13728_v63, %v7603_v19  ;;  %v14633_v19 = vld [vmem:[#allocation19_spill] sm:$0xff] }
 0x695   :  { %v7264_v11 = vpop.f32.mrf.mxu3  ;;  %v13782_v24 = vadd.f32 %v14633_v19, %v7025_v2 }
 0x696   :  { %v7653_v42 = vrot.slane %v7621_v56, 2  ;;  %v7654_v3 = vrot.slane %v7621_v56, 4  ;;  %v7655_v13 = vrot.slane %v7621_v56, 6  ;;  %v7750_v57 = vsel %vm7749_vm11, %v7621_v56, -inf }
 0x697   :  { %v7751_v8 = vrot.slane %v7750_v57, 4  ;;  %v7310_v53 = vadd.f32 %v7264_v11, %v7163_v48  ;;  %v13779_v48 = vadd.f32 %v14632_v14, %v7024_v26  ;;  %v13791_v11 = vpop.f32.mrf.mxu2 }
 0x698   :  { %v7757_v1 = vsel %vm7749_vm11, %v7653_v42, -inf  ;;  %v7764_v40 = vsel %vm7749_vm11, %v7654_v3, -inf  ;;  %v7771_v50 = vsel %vm7749_vm11, %v7655_v13, -inf  ;;  %v7561_v49 = vpop.f32.mrf.mxu1 }
 0x699   :  { %v7752_v20 = vmax.f32 %v7750_v57, %v7751_v8  ;;  %v7758_v27 = vrot.slane %v7757_v1, 4  ;;  %v7765_v52 = vrot.slane %v7764_v40, 4  ;;  %v7772_v44 = vrot.slane %v7771_v50, 4  ;;  %v14637_v8 = vld [vmem:[#allocation21_spill] sm:$0xff] }
 0x69a   :  { %v7457_v35 = vadd.f32 %v7411_v59, %v7310_v53  ;;  %v6881_v53 = vadd.f32 %v14637_v8, %v14636_v10 }
 0x69b   :  { %v7753_v61 = vrot.slane %v7752_v20, 2  ;;  %v7759_v0 = vmax.f32 %v7757_v1, %v7758_v27  ;;  %v7766_v46 = vmax.f32 %v7764_v40, %v7765_v52  ;;  %v7773_v39 = vmax.f32 %v7771_v50, %v7772_v44  ;;  %v13802_v27 = vpop.f32.mrf.mxu0  ;;  %v14638_v52 = vld [vmem:[#allocation26_spill] sm:$0xff] }
 0x69c   :  { %v7604_v38 = vadd.f32 %v7558_v30, %v7457_v35  ;;  %v14634_v30 = vld [vmem:[#allocation8_spill] sm:$0xff]  ;;  %v6882_v44 = vadd.f32 %v14638_v52, %v13691_v58  ;;  %v14639_v35 = vld [vmem:[#allocation14_spill] sm:$0xff] }
 0x69d   :  { %v7760_v16 = vrot.slane %v7759_v0, 2  ;;  %v7767_v32 = vrot.slane %v7766_v46, 2  ;;  %v7774_v59 = vrot.slane %v7773_v39, 2  ;;  %v7267_v36 = vpop.f32.mrf.mxu3  ;;  %v13789_v56 = vadd.f32 %v14634_v30, %v6879_v17 }
 0x69e   :  { %v7622_v4 = vadd.f32 %v13728_v63, %v7604_v38  ;;  %v7754_v55 = vmax.f32 %v7752_v20, %v7753_v61  ;;  %v7311_v5 = vadd.f32 %v7267_v36, %v7164_v29  ;;  %v13807_v61 = vadd.f32 %v14639_v35, %v6881_v53 }
 0x69f   :  { %v7761_v15 = vmax.f32 %v7759_v0, %v7760_v16  ;;  %v7768_v26 = vmax.f32 %v7766_v46, %v7767_v32  ;;  %v7775_v1 = vmax.f32 %v7773_v39, %v7774_v59  ;;  %v13813_v37 = vadd.f32 %v14640_v33, %v6882_v44 }
 0x6a0   :  { %v7656_v42 = vrot.slane %v7622_v4, 2  ;;  %v7657_v3 = vrot.slane %v7622_v4, 4  ;;  %v7658_v13 = vrot.slane %v7622_v4, 6  ;;  %v7778_v57 = vsel %vm7749_vm11, %v7622_v4, -inf  ;;  %v7564_v59 = vpop.f32.mrf.mxu1 }
 0x6a1   :  { %v7779_v40 = vrot.slane %v7778_v57, 4  ;;  %v7755_v43 = vrot.slane %v7754_v55, 1  ;;  %v7762_v2 = vrot.slane %v7761_v15, 1  ;;  %v7458_v17 = vadd.f32 %v7414_v51, %v7311_v5 }
 0x6a2   :  { %v7785_v50 = vsel %vm7749_vm11, %v7656_v42, -inf  ;;  %v7792_v29 = vsel %vm7749_vm11, %v7657_v3, -inf  ;;  %v7799_v20 = vsel %vm7749_vm11, %v7658_v13, -inf  ;;  %v7769_v0 = vrot.slane %v7768_v26, 1  ;;  %v7156_v13 = vpop.f32.mrf.mxu2 }
 0x6a3   :  { %v7786_v21 = vrot.slane %v7785_v50, 4  ;;  %v7780_v18 = vmax.f32 %v7778_v57, %v7779_v40  ;;  %v7793_v22 = vrot.slane %v7792_v29, 4  ;;  %v7800_v23 = vrot.slane %v7799_v20, 4  ;;  %v7420_v52 = vpop.f32.mrf.mxu0 }
 0x6a4   :  { %v7776_v46 = vrot.slane %v7775_v1, 1  ;;  %v7605_v41 = vadd.f32 %v7561_v49, %v7458_v17  ;;  %v7756_v51 = vmax.f32 %v7754_v55, %v7755_v43  ;;  %v7763_v16 = vmax.f32 %v7761_v15, %v7762_v2 }
 0x6a5   :  { %v7787_v39 = vmax.f32 %v7785_v50, %v7786_v21  ;;  %v7270_v25 = vpop.f32.mrf.mxu3  ;;  %v7781_v54 = vrot.slane %v7780_v18, 2  ;;  %v7794_v58 = vmax.f32 %v7792_v29, %v7793_v22  ;;  %v7801_v38 = vmax.f32 %v7799_v20, %v7800_v23 }
 0x6a6   :  { %v7623_v4 = vadd.f32 %v13728_v63, %v7605_v41  ;;  %v7770_v30 = vmax.f32 %v7768_v26, %v7769_v0  ;;  %v7777_v5 = vmax.f32 %v7775_v1, %v7776_v46  ;;  %v7312_v3 = vadd.f32 %v7270_v25, %v13741_v9 }
 0x6a7   :  { %v7788_v32 = vrot.slane %v7787_v39, 2  ;;  %v7782_v36 = vmax.f32 %v7780_v18, %v7781_v54  ;;  %v7795_v14 = vrot.slane %v7794_v58, 2  ;;  %v7802_v19 = vrot.slane %v7801_v38, 2 }
 0x6a8   :  { %v7659_v10 = vrot.slane %v7623_v4, 2  ;;  %v7660_v55 = vrot.slane %v7623_v4, 4  ;;  %v7661_v15 = vrot.slane %v7623_v4, 6  ;;  %v7806_v53 = vsel %vm7749_vm11, %v7623_v4, -inf  ;;  %v7567_v33 = vpop.f32.mrf.mxu1 }
 0x6a9   :  { %v7789_v42 = vmax.f32 %v7787_v39, %v7788_v32  ;;  %v7783_v49 = vrot.slane %v7782_v36, 1  ;;  %v7796_v57 = vmax.f32 %v7794_v58, %v7795_v14  ;;  %v7803_v47 = vmax.f32 %v7801_v38, %v7802_v19 }
 0x6aa   :  { %v7807_v20 = vrot.slane %v7806_v53, 4  ;;  %v7813_v1 = vsel %vm7749_vm11, %v7659_v10, -inf  ;;  %v7820_v9 = vsel %vm7749_vm11, %v7660_v55, -inf  ;;  %v7827_v44 = vsel %vm7749_vm11, %v7661_v15, -inf }
 0x6ab   :  { %v7790_v8 = vrot.slane %v7789_v42, 1  ;;  %v7784_v40 = vmax.f32 %v7782_v36, %v7783_v49  ;;  %v7797_v50 = vrot.slane %v7796_v57, 1  ;;  %v7804_v29 = vrot.slane %v7803_v47, 1 }
 0x6ac   :  { %v7808_v22 = vmax.f32 %v7806_v53, %v7807_v20  ;;  %v7814_v17 = vrot.slane %v7813_v1, 4  ;;  %v7821_v35 = vrot.slane %v7820_v9, 4  ;;  %v7828_v0 = vrot.slane %v7827_v44, 4  ;;  %v7423_v53 = vpop.f32.mrf.mxu0 }
 0x6ad   :  { %v7791_v26 = vmax.f32 %v7789_v42, %v7790_v8  ;;  %v7273_v43 = vpop.f32.mrf.mxu3  ;;  %v7798_v2 = vmax.f32 %v7796_v57, %v7797_v50  ;;  %v7805_v21 = vmax.f32 %v7803_v47, %v7804_v29  ;;  %v13821_v18 = vmax.f32 %v7756_v51, %v7784_v40 }
 0x6ae   :  { %v7809_v25 = vrot.slane %v7808_v22, 2  ;;  %v7815_v58 = vmax.f32 %v7813_v1, %v7814_v17  ;;  %v7822_v38 = vmax.f32 %v7820_v9, %v7821_v35  ;;  %v7459_v41 = vadd.f32 %v13802_v27, %v7312_v3 }
 0x6af   :  { %v13823_v23 = vmax.f32 %v7763_v16, %v7791_v26  ;;  %v13825_v46 = vmax.f32 %v7770_v30, %v7798_v2  ;;  %v13827_v39 = vmax.f32 %v7777_v5, %v7805_v21  ;;  %v8230_v28 = vsub.f32 0.0, %v13821_v18  ;;  %v7159_v5 = vpop.f32.mrf.mxu2 }
 0x6b0   :  { %v7810_v36 = vmax.f32 %v7808_v22, %v7809_v25  ;;  %v7816_v19 = vrot.slane %v7815_v58, 2  ;;  %v7823_v4 = vrot.slane %v7822_v38, 2  ;;  %v7829_v30 = vmax.f32 %v7827_v44, %v7828_v0 }
 0x6b1   :  { %v8231_v54 = vsub.f32 0.0, %v13823_v23  ;;  %v8232_v51 = vsub.f32 0.0, %v13825_v46  ;;  %v8233_v16 = vsub.f32 0.0, %v13827_v39  ;;  %v8262_v32 = vmul.f32 1.442695, %v8230_v28 }
 0x6b2   :  { %v7811_v57 = vrot.slane %v7810_v36, 1  ;;  %v13836_v47 = vadd.f32 %v13754_v12, %v13789_v56  ;;  %v13840_v27 = vadd.f32 %v13791_v11, %v13795_v60  ;;  %v7606_v3 = vadd.f32 %v7564_v59, %v7459_v41 }
 0x6b3   :  { %v8264_v14 = vmul.f32 1.442695, %v8231_v54  ;;  %9819 = vpow2.f32 %v8262_v32  ;;  %v8266_v42 = vmul.f32 1.442695, %v8232_v51  ;;  %v8268_v49 = vmul.f32 1.442695, %v8233_v16 }
 0x6b4   :  { %v7817_v8 = vmax.f32 %v7815_v58, %v7816_v19  ;;  %v7313_v55 = vadd.f32 %v7273_v43, %v13744_v34  ;;  %v13845_v40 = vadd.f32 %v7156_v13, %v13807_v61  ;;  %v13848_v12 = vadd.f32 %v7159_v5, %v13813_v37 }
 0x6b5   :  { %9821 = vpow2.f32 %v8264_v14  ;;  %v7276_v10 = vpop.f32.mrf.mxu3  ;;  %v7624_v56 = vadd.f32 %v13728_v63, %v7606_v3  ;;  %v13851_v11 = vmax.f32 %v7810_v36, %v7811_v57  ;;  %v13853_v60 = vmax.f32 %v7822_v38, %v7823_v4  ;;  %v13867_v3 = vpop.f32.mrf.mxu0 }
 0x6b6   :  { %9823 = vpow2.f32 %v8266_v42  ;;  %v7314_v15 = vadd.f32 %v7276_v10, %v13749_v62  ;;  %14641 = vst [vmem:[#allocation4_spill] sm:$0xff] %v13845_v40  ;;  %v7830_v59 = vrot.slane %v7829_v30, 2  ;;  %v7460_v50 = vadd.f32 %v7420_v52, %v7313_v55  ;;  %v7570_v52 = vpop.f32.mrf.mxu1 }
 0x6b7   :  { %14642 = vst [vmem:[#allocation10_spill] sm:$0xff] %v13848_v12  ;;  %9825 = vpow2.f32 %v8268_v49  ;;  %v7662_v29 = vrot.slane %v7624_v56, 2  ;;  %v7663_v34 = vrot.slane %v7624_v56, 4  ;;  %v7664_v20 = vrot.slane %v7624_v56, 6 }
 0x6b8   :  { %v7834_v62 = vsel %vm7749_vm11, %v7624_v56, -inf  ;;  %v7818_v61 = vrot.slane %v7817_v8, 1  ;;  %v7607_v1 = vadd.f32 %v7567_v33, %v7460_v50  ;;  %v7461_v37 = vadd.f32 %v7423_v53, %v7314_v15 }
 0x6b9   :  { %v9820_v26 = vpop.eup %9819  ;;  %v7835_v13 = vrot.slane %v7834_v62, 4  ;;  %v7841_v43 = vsel %vm7749_vm11, %v7662_v29, -inf  ;;  %v7848_v2 = vsel %vm7749_vm11, %v7663_v34, -inf  ;;  %v7855_v21 = vsel %vm7749_vm11, %v7664_v20, -inf }
 0x6ba   :  { %v8326_v44 = vadd.f32 1.0, %v9820_v26  ;;  %v7842_v35 = vrot.slane %v7841_v43, 4  ;;  %v7849_v0 = vrot.slane %v7848_v2, 4  ;;  %v7825_v28 = vrot.slane %v13853_v60, 1 }
 0x6bb   :  { %v9822_v9 = vpop.eup %9821  ;;  %v7836_v17 = vmax.f32 %v7834_v62, %v7835_v13  ;;  %v7856_v58 = vrot.slane %v7855_v21, 4  ;;  %v7625_v38 = vadd.f32 %v13728_v63, %v7607_v1  ;;  %v13861_v33 = vmax.f32 %v7829_v30, %v7830_v59 }
 0x6bc   :  { %v9824_v22 = vpop.eup %9823  ;;  %v8327_v54 = vadd.f32 1.0, %v9822_v9  ;;  %9827 = vrcp.f32 %v8326_v44  ;;  %v7843_v16 = vmax.f32 %v7841_v43, %v7842_v35  ;;  %v7608_v32 = vadd.f32 %v7570_v52, %v7461_v37  ;;  %v9246_v52 = vld [vmem:[%s14493_s2 + $0x90] sm:$0xff] }
 0x6bd   :  { %v9826_v25 = vpop.eup %9825  ;;  %v7279_v41 = vpop.f32.mrf.mxu3  ;;  %v7837_v51 = vrot.slane %v7836_v17, 2  ;;  %v8328_v36 = vadd.f32 1.0, %v9824_v22  ;;  %v7850_v14 = vmax.f32 %v7848_v2, %v7849_v0  ;;  %v7665_v19 = vrot.slane %v7625_v38, 2  ;;  %8510 = vmatpush.msra.mxu2 %v9246_v52 }
 0x6be   :  { %v13863_v4 = vmax.f32 %v7817_v8, %v7818_v61  ;;  %v8329_v5 = vadd.f32 1.0, %v9826_v25  ;;  %v13865_v49 = vmax.f32 %v7855_v21, %v7856_v58  ;;  %v7666_v57 = vrot.slane %v7625_v38, 4  ;;  %v7573_v44 = vpop.f32.mrf.mxu1 }
 0x6bf   :  { %v7838_v42 = vmax.f32 %v7836_v17, %v7837_v51  ;;  %9829 = vrcp.f32 %v8327_v54  ;;  %v7844_v10 = vrot.slane %v7843_v16, 2  ;;  %v7667_v30 = vrot.slane %v7625_v38, 6 }
 0x6c0   :  { %v7862_v55 = vsel %vm7749_vm11, %v7625_v38, -inf  ;;  %v7851_v53 = vrot.slane %v7850_v14, 2  ;;  %v7869_v59 = vsel %vm7749_vm11, %v7665_v19, -inf  ;;  %9831 = vrcp.f32 %v8328_v36 }
 0x6c1   :  { %v7839_v15 = vrot.slane %v7838_v42, 1  ;;  %v7863_v56 = vrot.slane %v7862_v55, 4  ;;  %v7870_v8 = vrot.slane %v7869_v59, 4  ;;  %v7876_v50 = vsel %vm7749_vm11, %v7666_v57, -inf }
 0x6c2   :  { %v7883_v29 = vsel %vm7749_vm11, %v7667_v30, -inf  ;;  %v9828_v34 = vpop.eup %9827  ;;  %9833 = vrcp.f32 %v8329_v5  ;;  %v7858_v62 = vrot.slane %v13865_v49, 2  ;;  %v13874_v61 = vmax.f32 %v7843_v16, %v7844_v10  ;;  %v7429_v30 = vpop.f32.mrf.mxu0 }
 0x6c3   :  { %v7840_v20 = vmax.f32 %v7838_v42, %v7839_v15  ;;  %v7864_v26 = vmax.f32 %v7862_v55, %v7863_v56  ;;  %v7871_v13 = vmax.f32 %v7869_v59, %v7870_v8  ;;  %v7877_v1 = vrot.slane %v7876_v50, 4 }
 0x6c4   :  { %v7884_v37 = vrot.slane %v7883_v29, 4  ;;  %v13876_v43 = vmax.f32 %v7850_v14, %v7851_v53  ;;  %v7626_v22 = vadd.f32 %v13728_v63, %v7608_v32  ;;  %v13886_v35 = vmul.f32 %v9828_v34, %v13821_v18 }
 0x6c5   :  { %v7282_v9 = vpop.f32.mrf.mxu3  ;;  %v13879_v2 = vmax.f32 %v13851_v11, %v7840_v20  ;;  %v7865_v21 = vrot.slane %v7864_v26, 2  ;;  %v9830_v17 = vpop.eup %9829  ;;  %v7872_v0 = vrot.slane %v7871_v13, 2  ;;  %v7878_v25 = vmax.f32 %v7876_v50, %v7877_v1 }
 0x6c6   :  { %v7885_v54 = vmax.f32 %v7883_v29, %v7884_v37  ;;  %v7668_v11 = vrot.slane %v7626_v22, 2  ;;  %v7669_v51 = vrot.slane %v7626_v22, 4  ;;  %v13889_v16 = vpop.eup %9831  ;;  %v7315_v19 = vadd.f32 %v7279_v41, %v13768_v31 }
 0x6c7   :  { %v8234_v58 = vsub.f32 0.0, %v13879_v2  ;;  %v7866_v38 = vmax.f32 %v7864_v26, %v7865_v21  ;;  %v7873_v32 = vmax.f32 %v7871_v13, %v7872_v0  ;;  %v7879_v36 = vrot.slane %v7878_v25, 2 }
 0x6c8   :  { %v7886_v14 = vrot.slane %v7885_v54, 2  ;;  %v13892_v5 = vpop.eup %9833  ;;  %v7670_v42 = vrot.slane %v7626_v22, 6  ;;  %v7890_v57 = vsel %vm7749_vm11, %v7626_v22, -inf  ;;  %v7897_v10 = vsel %vm7749_vm11, %v7668_v11, -inf  ;;  %v7576_v22 = vpop.f32.mrf.mxu1 }
 0x6c9   :  { %v8270_v18 = vmul.f32 1.442695, %v8234_v58  ;;  %v7846_v55 = vrot.slane %v13874_v61, 1  ;;  %v7880_v15 = vmax.f32 %v7878_v25, %v7879_v36  ;;  %v7891_v53 = vrot.slane %v7890_v57, 4 }
 0x6ca   :  { %v7316_v56 = vadd.f32 %v7282_v9, %v13771_v7  ;;  %v13899_v59 = vmul.f32 %v9830_v17, %v13823_v23  ;;  %v7867_v8 = vrot.slane %v7866_v38, 1  ;;  %v7898_v31 = vrot.slane %v7897_v10, 4 }
 0x6cb   :  { %v7904_v41 = vsel %vm7749_vm11, %v7669_v51, -inf  ;;  %9835 = vpow2.f32 %v8270_v18  ;;  %v7874_v50 = vrot.slane %v7873_v32, 1  ;;  %v13902_v29 = vmax.f32 %v7885_v54, %v7886_v14 }
 0x6cc   :  { %v7892_v34 = vmax.f32 %v7890_v57, %v7891_v53  ;;  %v7899_v20 = vmax.f32 %v7897_v10, %v7898_v31  ;;  %v7905_v26 = vrot.slane %v7904_v41, 4  ;;  %v7911_v13 = vsel %vm7749_vm11, %v7670_v42, -inf }
 0x6cd   :  { %v7462_v1 = vadd.f32 %v13867_v3, %v7315_v19  ;;  %v7881_v37 = vrot.slane %v7880_v15, 1  ;;  %v7912_v9 = vrot.slane %v7911_v13, 4  ;;  %v7463_v23 = vadd.f32 %v7429_v30, %v7316_v56  ;;  %v7285_v21 = vpop.f32.mrf.mxu3  ;;  %v9245_v56 = vld [vmem:[%s14493_s2 + $0x88] sm:$0xff] }
 0x6ce   :  { %v7893_v7 = vrot.slane %v7892_v34, 2  ;;  %v7868_v52 = vmax.f32 %v7866_v38, %v7867_v8  ;;  %v7900_v17 = vrot.slane %v7899_v20, 2  ;;  %v7906_v0 = vmax.f32 %v7904_v41, %v7905_v26  ;;  %v7432_v8 = vpop.f32.mrf.mxu0  ;;  %8511 = vmatpush.msra.mxu2 %v9245_v56  ;;  %v9244_v26 = vld [vmem:[%s14493_s2 + $0x80] sm:$0xff] }
 0x6cf   :  { %v7609_v25 = vadd.f32 %v7573_v44, %v7462_v1  ;;  %v13906_v58 = vmax.f32 %v7873_v32, %v7874_v50  ;;  %v7913_v11 = vmax.f32 %v7911_v13, %v7912_v9  ;;  %v7610_v51 = vadd.f32 %v7576_v22, %v7463_v23 }
 0x6d0   :  { %v7894_v54 = vmax.f32 %v7892_v34, %v7893_v7  ;;  %v7901_v36 = vmax.f32 %v7899_v20, %v7900_v17  ;;  %v7907_v14 = vrot.slane %v7906_v0, 2  ;;  %v7317_v3 = vadd.f32 %v7285_v21, %v13774_v6  ;;  %8512 = vmatpush.msra.mxu2 %v9244_v26 }
 0x6d1   :  { %v7627_v18 = vadd.f32 %v13728_v63, %v7609_v25  ;;  %v9836_v19 = vpop.eup %9835  ;;  %v13910_v42 = vmax.f32 %v7880_v15, %v7881_v37  ;;  %v7914_v10 = vrot.slane %v7913_v11, 2  ;;  %v7628_v15 = vadd.f32 %v13728_v63, %v7610_v51 }
 0x6d2   :  { %v7895_v38 = vrot.slane %v7894_v54, 1  ;;  %v7902_v30 = vrot.slane %v7901_v36, 1  ;;  %v7908_v44 = vmax.f32 %v7906_v0, %v7907_v14  ;;  %v7464_v20 = vadd.f32 %v7432_v8, %v7317_v3 }
 0x6d3   :  { %v7671_v32 = vrot.slane %v7627_v18, 2  ;;  %v7672_v53 = vrot.slane %v7627_v18, 4  ;;  %v7673_v41 = vrot.slane %v7627_v18, 6  ;;  %v7918_v6 = vsel %vm7749_vm11, %v7627_v18, -inf }
 0x6d4   :  { %v7896_v31 = vmax.f32 %v7894_v54, %v7895_v38  ;;  %v7919_v50 = vrot.slane %v7918_v6, 4  ;;  %v13925_v13 = vmax.f32 %v13853_v60, %v7825_v28  ;;  %v13927_v1 = vmax.f32 %v7913_v11, %v7914_v10  ;;  %v7579_v54 = vpop.f32.mrf.mxu1 }
 0x6d5   :  { %v7925_v34 = vsel %vm7749_vm11, %v7671_v32, -inf  ;;  %v7932_v9 = vsel %vm7749_vm11, %v7672_v53, -inf  ;;  %v13932_v23 = vadd.f32 1.0, %v9836_v19  ;;  %v13934_v21 = vmax.f32 %v7901_v36, %v7902_v30  ;;  %v7288_v53 = vpop.f32.mrf.mxu3 }
 0x6d6   :  { %v13929_v37 = vmax.f32 %v7868_v52, %v7896_v31  ;;  %v7926_v7 = vrot.slane %v7925_v34, 4  ;;  %v7909_v22 = vrot.slane %v7908_v44, 1  ;;  %v7920_v17 = vmax.f32 %v7918_v6, %v7919_v50 }
 0x6d7   :  { %v7933_v25 = vrot.slane %v7932_v9, 4  ;;  %v13938_v60 = vsel %vm7749_vm11, %v7673_v41, -inf  ;;  %v7674_v28 = vrot.slane %v7628_v15, 2  ;;  %v7675_v51 = vrot.slane %v7628_v15, 4 }
 0x6d8   :  { %14643 = vst [vmem:[#allocation5_spill] sm:$0xff] %v13929_v37  ;;  %v8238_v0 = vsub.f32 0.0, %v13929_v37  ;;  %v7921_v52 = vrot.slane %v7920_v17, 2  ;;  %v13940_v11 = vmax.f32 %v7925_v34, %v7926_v7  ;;  %v7676_v14 = vrot.slane %v7628_v15, 6 }
 0x6d9   :  { %v7946_v36 = vsel %vm7749_vm11, %v7628_v15, -inf  ;;  %v7953_v19 = vsel %vm7749_vm11, %v7674_v28, -inf  ;;  %v7960_v32 = vsel %vm7749_vm11, %v7675_v51, -inf  ;;  %v13948_v56 = vmax.f32 %v7908_v44, %v7909_v22  ;;  %v7435_v28 = vpop.f32.mrf.mxu0 }
 0x6da   :  { %v8278_v3 = vmul.f32 1.442695, %v8238_v0  ;;  %v13945_v38 = vmax.f32 %v7920_v17, %v7921_v52  ;;  %v7947_v10 = vrot.slane %v7946_v36, 4  ;;  %v7954_v30 = vrot.slane %v7953_v19, 4 }
 0x6db   :  { %v13952_v31 = vsel %vm7749_vm11, %v7676_v14, -inf  ;;  %v7611_v41 = vadd.f32 %v7579_v54, %v7464_v20  ;;  %v13955_v15 = vmax.f32 %v7932_v9, %v7933_v25  ;;  %v7961_v34 = vrot.slane %v7960_v32, 4 }
 0x6dc   :  { %v7948_v50 = vmax.f32 %v7946_v36, %v7947_v10  ;;  %9837 = vpow2.f32 %v8278_v3  ;;  %v7318_v44 = vadd.f32 %v7288_v53, %v13779_v48  ;;  %v13960_v17 = vmax.f32 %v7953_v19, %v7954_v30  ;;  %v7582_v53 = vpop.f32.mrf.mxu1 }
 0x6dd   :  { %v7629_v7 = vadd.f32 %v13728_v63, %v7611_v41  ;;  %v7853_v20 = vrot.slane %v13876_v43, 1  ;;  %v13965_v51 = vmax.f32 %v7960_v32, %v7961_v34  ;;  %v7847_v48 = vmax.f32 %v13874_v61, %v7846_v55 }
 0x6de   :  { %v7949_v22 = vrot.slane %v7948_v50, 2  ;;  %v7465_v3 = vadd.f32 %v7435_v28, %v7318_v44  ;;  %v7832_v30 = vrot.slane %v13861_v33, 1 }
 0x6df   :  { %v7677_v54 = vrot.slane %v7629_v7, 2  ;;  %v7678_v9 = vrot.slane %v7629_v7, 4  ;;  %v7679_v25 = vrot.slane %v7629_v7, 6  ;;  %v7974_v52 = vsel %vm7749_vm11, %v7629_v7, -inf }
 0x6e0   :  { %v7975_v14 = vrot.slane %v7974_v52, 4  ;;  %v7854_v34 = vmax.f32 %v13876_v43, %v7853_v20  ;;  %v13976_v28 = vmax.f32 %v7948_v50, %v7949_v22  ;;  %v7612_v55 = vadd.f32 %v7582_v53, %v7465_v3 }
 0x6e1   :  { %v7981_v36 = vsel %vm7749_vm11, %v7677_v54, -inf  ;;  %v7988_v19 = vsel %vm7749_vm11, %v7678_v9, -inf  ;;  %v7995_v10 = vsel %vm7749_vm11, %v7679_v25, -inf  ;;  %v7859_v9 = vmax.f32 %v13865_v49, %v7858_v62  ;;  %v7291_v49 = vpop.f32.mrf.mxu3 }
 0x6e2   :  { %v7976_v7 = vmax.f32 %v7974_v52, %v7975_v14  ;;  %v7982_v32 = vrot.slane %v7981_v36, 4  ;;  %v9838_v44 = vpop.eup %9837  ;;  %v7989_v0 = vrot.slane %v7988_v19, 4  ;;  %v7996_v61 = vrot.slane %v7995_v10, 4 }
 0x6e3   :  { %v13982_v25 = vmax.f32 %v13863_v4, %v7847_v48  ;;  %v7630_v14 = vadd.f32 %v13728_v63, %v7612_v55  ;;  %v7833_v43 = vmax.f32 %v13861_v33, %v7832_v30  ;;  %v8334_v50 = vadd.f32 1.0, %v9838_v44 }
 0x6e4   :  { %v7977_v54 = vrot.slane %v7976_v7, 2  ;;  %v7983_v8 = vmax.f32 %v7981_v36, %v7982_v32  ;;  %v7990_v41 = vmax.f32 %v7988_v19, %v7989_v0  ;;  %v7997_v52 = vmax.f32 %v7995_v10, %v7996_v61 }
 0x6e5   :  { %v13987_v3 = vmax.f32 %v13925_v13, %v7854_v34  ;;  %v7680_v32 = vrot.slane %v7630_v14, 2  ;;  %v7681_v6 = vrot.slane %v7630_v14, 4  ;;  %v7682_v4 = vrot.slane %v7630_v14, 6 }
 0x6e6   :  { %v7978_v22 = vmax.f32 %v7976_v7, %v7977_v54  ;;  %v7984_v20 = vrot.slane %v7983_v8, 2  ;;  %v7991_v36 = vrot.slane %v7990_v41, 2  ;;  %v7998_v53 = vrot.slane %v7997_v52, 2  ;;  %v7438_v7 = vpop.f32.mrf.mxu0 }
 0x6e7   :  { %v8002_v0 = vsel %vm7749_vm11, %v7630_v14, -inf  ;;  %v7860_v48 = vrot.slane %v7859_v9, 1  ;;  %v8009_v30 = vsel %vm7749_vm11, %v7680_v32, -inf  ;;  %9839 = vrcp.f32 %v8334_v50 }
 0x6e8   :  { %v7979_v62 = vrot.slane %v7978_v22, 1  ;;  %v7985_v10 = vmax.f32 %v7983_v8, %v7984_v20  ;;  %v8003_v33 = vrot.slane %v8002_v0, 4  ;;  %v8010_v13 = vrot.slane %v8009_v30, 4  ;;  %v7585_v20 = vpop.f32.mrf.mxu1 }
 0x6e9   :  { %v8016_v34 = vsel %vm7749_vm11, %v7681_v6, -inf  ;;  %v8235_v44 = vsub.f32 0.0, %v13982_v25  ;;  %v7992_v61 = vmax.f32 %v7990_v41, %v7991_v36  ;;  %v13994_v55 = vmax.f32 %v7997_v52, %v7998_v53 }
 0x6ea   :  { %v8004_v54 = vmax.f32 %v8002_v0, %v8003_v33  ;;  %v8017_v26 = vrot.slane %v8016_v34, 4  ;;  %v7980_v14 = vmax.f32 %v7978_v22, %v7979_v62  ;;  %v8011_v18 = vmax.f32 %v8009_v30, %v8010_v13  ;;  %v7294_v22 = vpop.f32.mrf.mxu3 }
 0x6eb   :  { %v8023_v19 = vsel %vm7749_vm11, %v7682_v4, -inf  ;;  %v7861_v8 = vmax.f32 %v7859_v9, %v7860_v48  ;;  %v7986_v57 = vrot.slane %v7985_v10, 1  ;;  %v8236_v6 = vsub.f32 0.0, %v13987_v3 }
 0x6ec   :  { %v8005_v32 = vrot.slane %v8004_v54, 2  ;;  %v8018_v12 = vmax.f32 %v8016_v34, %v8017_v26  ;;  %v8024_v50 = vrot.slane %v8023_v19, 4  ;;  %v8012_v40 = vrot.slane %v8011_v18, 2 }
 0x6ed   :  { %v13997_v37 = vmax.f32 %v7833_v43, %v7861_v8  ;;  %v8272_v41 = vmul.f32 1.442695, %v8235_v44  ;;  %9841 = vrcp.f32 %v13932_v23  ;;  %v14001_v62 = vpop.eup %9839  ;;  %v8274_v26 = vmul.f32 1.442695, %v8236_v6 }
 0x6ee   :  { %v8006_v52 = vmax.f32 %v8004_v54, %v8005_v32  ;;  %v8019_v36 = vrot.slane %v8018_v12, 2  ;;  %v8025_v53 = vmax.f32 %v8023_v19, %v8024_v50  ;;  %v8013_v9 = vmax.f32 %v8011_v18, %v8012_v40  ;;  %v7441_v30 = vpop.f32.mrf.mxu0 }
 0x6ef   :  { %v8237_v4 = vsub.f32 0.0, %v13997_v37  ;;  %9843 = vpow2.f32 %v8272_v41  ;;  %v8392_v33 = vmul.f32 %v13889_v16, %v13825_v46  ;;  %v7993_v13 = vrot.slane %v7992_v61, 1 }
 0x6f0   :  { %v8007_v0 = vrot.slane %v8006_v52, 1  ;;  %v8020_v48 = vmax.f32 %v8018_v12, %v8019_v36  ;;  %v8026_v43 = vrot.slane %v8025_v53, 2  ;;  %v8014_v34 = vrot.slane %v8013_v9, 1 }
 0x6f1   :  { %9845 = vpow2.f32 %v8274_v26  ;;  %v8276_v19 = vmul.f32 1.442695, %v8237_v4  ;;  %v8393_v40 = vmul.f32 %v13892_v5, %v13827_v39  ;;  %v8461_v18 = vsel %vm3822_vm3, %v13899_v59, %v13886_v35 }
 0x6f2   :  { %v8008_v23 = vmax.f32 %v8006_v52, %v8007_v0  ;;  %v8021_v44 = vrot.slane %v8020_v48, 1  ;;  %v14011_v54 = vmax.f32 %v8025_v53, %v8026_v43  ;;  %v8462_v12 = vsel %vm3824_vm4, %v8392_v33, %v8461_v18  ;;  %v7588_v52 = vpop.f32.mrf.mxu1 }
 0x6f3   :  { %9847 = vpow2.f32 %v8276_v19  ;;  %v7319_v46 = vadd.f32 %v7291_v49, %v13782_v24  ;;  %v9842_v16 = vpop.eup %9841  ;;  %v14015_v8 = vmax.f32 %v7985_v10, %v7986_v57  ;;  %v8000_v32 = vrot.slane %v13994_v55, 1  ;;  %v7297_v10 = vpop.f32.mrf.mxu3 }
 0x6f4   :  { %v14018_v50 = vmax.f32 %v7980_v14, %v8008_v23  ;;  %v8463_v39 = vsel %vm3826_vm5, %v8393_v40, %v8462_v12  ;;  %v14021_v6 = vmax.f32 %v7992_v61, %v7993_v13  ;;  %v8394_v35 = vmul.f32 %v9842_v16, %v13879_v2 }
 0x6f5   :  { %v9844_v5 = vpop.eup %9843  ;;  %v7466_v59 = vadd.f32 %v7438_v7, %v7319_v46  ;;  %v7320_v41 = vadd.f32 %v7294_v22, %v13785_v45  ;;  %v14025_v36 = vmax.f32 %v8013_v9, %v8014_v34  ;;  %v14027_v24 = vmax.f32 %v8020_v48, %v8021_v44 }
 0x6f6   :  { %v8246_v57 = vsub.f32 0.0, %v14018_v50  ;;  %v8331_v49 = vadd.f32 1.0, %v9844_v5  ;;  %v8028_v53 = vrot.slane %v14011_v54, 1  ;;  %v8464_v61 = vsel %vm3828_vm6, %v8394_v35, %v8463_v39  ;;  %v7444_v48 = vpop.f32.mrf.mxu0 }
 0x6f7   :  { %v9846_v14 = vpop.eup %9845  ;;  %v7613_v4 = vadd.f32 %v7585_v20, %v7466_v59  ;;  %v7467_v26 = vadd.f32 %v7441_v30, %v7320_v41  ;;  %v7321_v45 = vadd.f32 %v7297_v10, %v13836_v47  ;;  %v14644_v43 = vrot.slane %v13902_v29, 1 }
 0x6f8   :  { %v8294_v2 = vmul.f32 1.442695, %v8246_v57  ;;  %v8332_v7 = vadd.f32 1.0, %v9846_v14  ;;  %9849 = vrcp.f32 %v8331_v49  ;;  %v14645_v13 = vrot.slane %v13927_v1, 1 }
 0x6f9   :  { %v9848_v22 = vpop.eup %9847  ;;  %v7631_v9 = vadd.f32 %v13728_v63, %v7613_v4  ;;  %v7614_v0 = vadd.f32 %v7588_v52, %v7467_v26  ;;  %v14037_v33 = vmax.f32 %v13902_v29, %v14644_v43  ;;  %v14646_v34 = vrot.slane %v13945_v38, 1 }
 0x6fa   :  { %v14042_v20 = vmax.f32 %v13927_v1, %v14645_v13  ;;  %9851 = vpow2.f32 %v8294_v2  ;;  %v8333_v30 = vadd.f32 1.0, %v9848_v22  ;;  %v14647_v19 = vrot.slane %v13940_v11, 2  ;;  %v7591_v59 = vpop.f32.mrf.mxu1 }
 0x6fb   :  { %v14047_v47 = vmax.f32 %v13945_v38, %v14646_v34  ;;  %9853 = vrcp.f32 %v8332_v7  ;;  %v7683_v29 = vrot.slane %v7631_v9, 2  ;;  %v7684_v44 = vrot.slane %v7631_v9, 4 }
 0x6fc   :  { %v14052_v23 = vmax.f32 %v13940_v11, %v14647_v19  ;;  %v7685_v40 = vrot.slane %v7631_v9, 6  ;;  %9855 = vrcp.f32 %v8333_v30  ;;  %v8030_v1 = vsel %vm7749_vm11, %v7631_v9, -inf }
 0x6fd   :  { %v7632_v18 = vadd.f32 %v13728_v63, %v7614_v0  ;;  %v7468_v12 = vadd.f32 %v7444_v48, %v7321_v45  ;;  %v8031_v46 = vrot.slane %v8030_v1, 4  ;;  %v8037_v16 = vsel %vm7749_vm11, %v7683_v29, -inf }
 0x6fe   :  { %v8044_v38 = vsel %vm7749_vm11, %v7684_v44, -inf  ;;  %v7935_v39 = vrot.slane %v13955_v15, 2  ;;  %v9850_v5 = vpop.eup %9849  ;;  %v8038_v11 = vrot.slane %v8037_v16, 4  ;;  %v7930_v41 = vrot.slane %v14052_v23, 1 }
 0x6ff   :  { %v7686_v35 = vrot.slane %v7632_v18, 2  ;;  %v14648_v52 = vrot.slane %v13938_v60, 4  ;;  %v8395_v63 = vmul.f32 %v9850_v5, %v13982_v25  ;;  %v8032_v49 = vmax.f32 %v8030_v1, %v8031_v46 }
 0x700   :  { %v14065_v10 = vsel %vm7749_vm11, %v7685_v40, -inf  ;;  %v7687_v14 = vrot.slane %v7632_v18, 4  ;;  %v9852_v4 = vpop.eup %9851  ;;  %v8045_v26 = vrot.slane %v8044_v38, 4  ;;  %v7688_v2 = vrot.slane %v7632_v18, 6 }
 0x701   :  { %v7941_v57 = vmax.f32 %v13938_v60, %v14648_v52  ;;  %v8058_v7 = vsel %vm7749_vm11, %v7632_v18, -inf  ;;  %v8065_v45 = vsel %vm7749_vm11, %v7686_v35, -inf  ;;  %v9854_v22 = vpop.eup %9853  ;;  %v8465_v9 = vsel %vm3830_vm7, %v8395_v63, %v8464_v61  ;;  %v14096_v35 = vld [vmem:[%s14495_s3 + $0x1] ss:$0 sm:$0xff]  ;;  %v7300_v52 = vpop.f32.mrf.mxu3 }
 0x702   :  { %v8033_v0 = vrot.slane %v8032_v49, 2  ;;  %v8059_v48 = vrot.slane %v8058_v7, 4  ;;  %v7615_v60 = vadd.f32 %v7591_v59, %v7468_v12  ;;  %v9856_v43 = vpop.eup %9855  ;;  %v8396_v25 = vmul.f32 %v9854_v22, %v13987_v3 }
 0x703   :  { %v14071_v13 = vmax.f32 %v8037_v16, %v8038_v11  ;;  %v8066_v30 = vrot.slane %v8065_v45, 4  ;;  %v8072_v34 = vsel %vm7749_vm11, %v7687_v14, -inf  ;;  %v8397_v19 = vmul.f32 %v9856_v43, %v13997_v37 }
 0x704   :  { %v14075_v29 = vmax.f32 %v8032_v49, %v8033_v0  ;;  %v8052_v44 = vrot.slane %v14065_v10, 4  ;;  %v8060_v40 = vmax.f32 %v8058_v7, %v8059_v48  ;;  %v8466_v61 = vsel %vm3832_vm8, %v8396_v25, %v8465_v9 }
 0x705   :  { %v14079_v1 = vmax.f32 %v8044_v38, %v8045_v26  ;;  %v14081_v18 = vmax.f32 %v8065_v45, %v8066_v30  ;;  %v14084_v3 = vsel %vm7749_vm11, %v7688_v2, -inf  ;;  %v14086_v12 = vadd.f32 1.0, %v9852_v4 }
 0x706   :  { %v8467_v46 = vsel %vm3834_vm9, %v8397_v19, %v8466_v61  ;;  %v8061_v16 = vrot.slane %v8060_v40, 2  ;;  %v8073_v37 = vrot.slane %v8072_v34, 4  ;;  %v8035_v5 = vrot.slane %v14075_v29, 1 }
 0x707   :  { %9248 = vmatmul.msk.f32.vlgmr.msra.gmra.mxu2 %vm87_vm0, %v8467_v46  ;;  %v8040_v11 = vrot.slane %v14071_v13, 2  ;;  %v7633_v59 = vadd.f32 %v14096_v35, %v7615_v60  ;;  %v7936_v14 = vmax.f32 %v13955_v15, %v7935_v39  ;;  %v7942_v4 = vrot.slane %v7941_v57, 2 }
 0x708   :  { %v14099_v63 = vmax.f32 %v8060_v40, %v8061_v16  ;;  %v14104_v22 = vmax.f32 %v8072_v34, %v8073_v37  ;;  %v7322_v0 = vadd.f32 %v7300_v52, %v13840_v27  ;;  %v7931_v48 = vmax.f32 %v14052_v23, %v7930_v41 }
 0x709   :  { %v7689_v26 = vrot.slane %v7633_v59, 2  ;;  %v7690_v2 = vrot.slane %v7633_v59, 4  ;;  %v7691_v7 = vrot.slane %v7633_v59, 6  ;;  %v8086_v45 = vsel %vm7749_vm11, %v7633_v59, -inf }
 0x70a   :  { %v8087_v9 = vrot.slane %v8086_v45, 4  ;;  %v7943_v15 = vmax.f32 %v7941_v57, %v7942_v4  ;;  %v7937_v34 = vrot.slane %v7936_v14, 1  ;;  %v14649_v16 = vrot.slane %v13960_v17, 2 }
 0x70b   :  { %v8093_v60 = vsel %vm7749_vm11, %v7689_v26, -inf  ;;  %v8100_v43 = vsel %vm7749_vm11, %v7690_v2, -inf  ;;  %v8107_v25 = vsel %vm7749_vm11, %v7691_v7, -inf  ;;  %v14650_v52 = vrot.slane %v13976_v28, 1 }
 0x70c   :  { %v8088_v39 = vmax.f32 %v8086_v45, %v8087_v9  ;;  %v8094_v30 = vrot.slane %v8093_v60, 4  ;;  %v8101_v19 = vrot.slane %v8100_v43, 4  ;;  %v8108_v40 = vrot.slane %v8107_v25, 4 }
 0x70d   :  { %v7944_v46 = vrot.slane %v7943_v15, 1  ;;  %v7957_v27 = vmax.f32 %v13960_v17, %v14649_v16  ;;  %v7952_v57 = vmax.f32 %v13976_v28, %v14650_v52  ;;  %v7963_v26 = vrot.slane %v13965_v51, 2  ;;  %v7447_v17 = vpop.f32.mrf.mxu0 }
 0x70e   :  { %v8089_v23 = vrot.slane %v8088_v39, 2  ;;  %v8095_v41 = vmax.f32 %v8093_v60, %v8094_v30  ;;  %v8102_v37 = vmax.f32 %v8100_v43, %v8101_v19  ;;  %v8109_v59 = vmax.f32 %v8107_v25, %v8108_v40 }
 0x70f   :  { %v7958_v4 = vrot.slane %v7957_v27, 1  ;;  %v14651_v2 = vrot.slane %v13952_v31, 4  ;;  %v7964_v60 = vmax.f32 %v13965_v51, %v7963_v26  ;;  %v14125_v25 = vmax.f32 %v13906_v58, %v13934_v21 }
 0x710   :  { %v8090_v45 = vmax.f32 %v8088_v39, %v8089_v23  ;;  %v8096_v9 = vrot.slane %v8095_v41, 2  ;;  %v8103_v61 = vrot.slane %v8102_v37, 2  ;;  %v8110_v38 = vrot.slane %v8109_v59, 2 }
 0x711   :  { %v7969_v7 = vmax.f32 %v13952_v31, %v14651_v2  ;;  %v7959_v16 = vmax.f32 %v7957_v27, %v7958_v4  ;;  %v7965_v52 = vrot.slane %v7964_v60, 1  ;;  %v14129_v31 = vmax.f32 %v13910_v42, %v13948_v56 }
 0x712   :  { %v8091_v28 = vrot.slane %v8090_v45, 1  ;;  %v8097_v30 = vmax.f32 %v8095_v41, %v8096_v9  ;;  %v8104_v19 = vmax.f32 %v8102_v37, %v8103_v61  ;;  %v8111_v40 = vmax.f32 %v8109_v59, %v8110_v38 }
 0x713   :  { %v7970_v43 = vrot.slane %v7969_v7, 2  ;;  %v14133_v39 = vmax.f32 %v14037_v33, %v14042_v20  ;;  %v7469_v27 = vadd.f32 %v7447_v17, %v7322_v0  ;;  %v7938_v23 = vmax.f32 %v7936_v14, %v7937_v34  ;;  %v7594_v0 = vpop.f32.mrf.mxu1 }
 0x714   :  { %v8098_v51 = vrot.slane %v8097_v30, 1  ;;  %v7945_v4 = vmax.f32 %v7943_v15, %v7944_v46  ;;  %v7966_v58 = vmax.f32 %v7964_v60, %v7965_v52  ;;  %v14136_v41 = vmax.f32 %v14047_v47, %v7952_v57 }
 0x715   :  { %v7971_v49 = vmax.f32 %v7969_v7, %v7970_v43  ;;  %v14138_v38 = vmax.f32 %v7931_v48, %v7959_v16  ;;  %v14140_v61 = vmax.f32 %v8090_v45, %v8091_v28  ;;  %v8105_v37 = vrot.slane %v8104_v19, 1  ;;  %v14652_v43 = vld [vmem:[#allocation5_spill] sm:$0xff] }
 0x716   :  { %v8112_v42 = vrot.slane %v8111_v40, 1  ;;  %v8239_v56 = vsub.f32 0.0, %v14125_v25  ;;  %v14143_v33 = vmax.f32 %v7938_v23, %v7966_v58  ;;  %v8240_v20 = vsub.f32 0.0, %v14129_v31 }
 0x717   :  { %v7972_v21 = vrot.slane %v7971_v49, 1  ;;  %v8241_v14 = vsub.f32 0.0, %v14133_v39  ;;  %v14147_v15 = vmax.f32 %v8097_v30, %v8098_v51  ;;  %v8242_v47 = vsub.f32 0.0, %v14136_v41 }
 0x718   :  { %v8243_v48 = vsub.f32 0.0, %v14138_v38  ;;  %v8280_v34 = vmul.f32 1.442695, %v8239_v56  ;;  %v8244_v57 = vsub.f32 0.0, %v14143_v33  ;;  %v8282_v26 = vmul.f32 1.442695, %v8240_v20 }
 0x719   :  { %v7973_v59 = vmax.f32 %v7971_v49, %v7972_v21  ;;  %v8284_v49 = vmul.f32 1.442695, %v8241_v14  ;;  %v8286_v2 = vmul.f32 1.442695, %v8242_v47  ;;  %v7616_v45 = vadd.f32 %v7594_v0, %v7469_v27 }
 0x71a   :  { %9857 = vpow2.f32 %v8280_v34  ;;  %v8288_v7 = vmul.f32 1.442695, %v8243_v48  ;;  %v14154_v9 = vmax.f32 %v8104_v19, %v8105_v37  ;;  %v8290_v16 = vmul.f32 1.442695, %v8244_v57 }
 0x71b   :  { %v14151_v46 = vmax.f32 %v7945_v4, %v7973_v59  ;;  %9859 = vpow2.f32 %v8282_v26  ;;  %v14157_v60 = vmax.f32 %v8111_v40, %v8112_v42  ;;  %v14161_v28 = vmul.f32 %v14001_v62, %v14652_v43 }
 0x71c   :  { %9861 = vpow2.f32 %v8284_v49  ;;  %v7634_v30 = vadd.f32 %v14096_v35, %v7616_v45  ;;  %v14167_v19 = vmax.f32 %v13994_v55, %v8000_v32  ;;  %v14172_v51 = vmax.f32 %v14071_v13, %v8040_v11 }
 0x71d   :  { %v8245_v17 = vsub.f32 0.0, %v14151_v46  ;;  %9863 = vpow2.f32 %v8286_v2  ;;  %v14178_v4 = vmax.f32 %v14011_v54, %v8028_v53  ;;  %v8047_v55 = vrot.slane %v14079_v1, 2  ;;  %v7303_v53 = vpop.f32.mrf.mxu3 }
 0x71e   :  { %9865 = vpow2.f32 %v8288_v7  ;;  %v7692_v40 = vrot.slane %v7634_v30, 2  ;;  %v7693_v27 = vrot.slane %v7634_v30, 4  ;;  %v7694_v23 = vrot.slane %v7634_v30, 6 }
 0x71f   :  { %v8292_v52 = vmul.f32 1.442695, %v8245_v17  ;;  %9867 = vpow2.f32 %v8290_v16  ;;  %v8114_v62 = vsel %vm7749_vm11, %v7634_v30, -inf  ;;  %v8042_v47 = vrot.slane %v14172_v51, 1  ;;  %v7450_v17 = vpop.f32.mrf.mxu0 }
 0x720   :  { %v9858_v32 = vpop.eup %9857  ;;  %v8115_v58 = vrot.slane %v8114_v62, 4  ;;  %v8121_v13 = vsel %vm7749_vm11, %v7692_v40, -inf  ;;  %v8128_v11 = vsel %vm7749_vm11, %v7693_v27, -inf  ;;  %v8135_v59 = vsel %vm7749_vm11, %v7694_v23, -inf }
 0x721   :  { %9869 = vpow2.f32 %v8292_v52  ;;  %v9860_v21 = vpop.eup %9859  ;;  %v8335_v37 = vadd.f32 1.0, %v9858_v32  ;;  %v8122_v42 = vrot.slane %v8121_v13, 4  ;;  %v8129_v56 = vrot.slane %v8128_v11, 4  ;;  %v7597_v32 = vpop.f32.mrf.mxu1 }
 0x722   :  { %v9862_v20 = vpop.eup %9861  ;;  %v8336_v14 = vadd.f32 1.0, %v9860_v21  ;;  %v8116_v0 = vmax.f32 %v8114_v62, %v8115_v58  ;;  %v8136_v54 = vrot.slane %v8135_v59, 4 }
 0x723   :  { %v9864_v48 = vpop.eup %9863  ;;  %v8337_v34 = vadd.f32 1.0, %v9862_v20  ;;  %9871 = vrcp.f32 %v8335_v37  ;;  %v8123_v57 = vmax.f32 %v8121_v13, %v8122_v42  ;;  %v8130_v26 = vmax.f32 %v8128_v11, %v8129_v56  ;;  %v14653_v37 = vld [vmem:[#allocation4_spill] sm:$0xff] }
 0x724   :  { %v9866_v49 = vpop.eup %9865  ;;  %v8338_v2 = vadd.f32 1.0, %v9864_v48  ;;  %9873 = vrcp.f32 %v8336_v14  ;;  %v8117_v7 = vrot.slane %v8116_v0, 2  ;;  %v8137_v45 = vmax.f32 %v8135_v59, %v8136_v54 }
 0x725   :  { %v9868_v16 = vpop.eup %9867  ;;  %v8339_v43 = vadd.f32 1.0, %v9866_v49  ;;  %9875 = vrcp.f32 %v8337_v34  ;;  %v8124_v30 = vrot.slane %v8123_v57, 2  ;;  %v8131_v52 = vrot.slane %v8130_v26, 2 }
 0x726   :  { %v8340_v27 = vadd.f32 1.0, %v9868_v16  ;;  %9877 = vrcp.f32 %v8338_v2  ;;  %v8118_v23 = vmax.f32 %v8116_v0, %v8117_v7  ;;  %v8138_v62 = vrot.slane %v8137_v45, 2 }
 0x727   :  { %v9870_v40 = vpop.eup %9869  ;;  %9879 = vrcp.f32 %v8339_v43  ;;  %v8125_v13 = vmax.f32 %v8123_v57, %v8124_v30  ;;  %v8132_v11 = vmax.f32 %v8130_v26, %v8131_v52  ;;  %v7323_v42 = vadd.f32 %v7303_v53, %v14653_v37  ;;  %v7306_v26 = vpop.f32.mrf.mxu3 }
 0x728   :  { %v8341_v58 = vadd.f32 1.0, %v9870_v40  ;;  %9881 = vrcp.f32 %v8340_v27  ;;  %v8119_v21 = vrot.slane %v8118_v23, 1  ;;  %v14189_v56 = vmax.f32 %v14075_v29, %v8035_v5  ;;  %v7453_v27 = vpop.f32.mrf.mxu0 }
 0x729   :  { %v9872_v59 = vpop.eup %9871  ;;  %v8126_v20 = vrot.slane %v8125_v13, 1  ;;  %v8133_v14 = vrot.slane %v8132_v11, 1  ;;  %v14192_v0 = vmax.f32 %v14079_v1, %v8047_v55  ;;  %v7470_v57 = vadd.f32 %v7450_v17, %v7323_v42  ;;  %v14654_v17 = vld [vmem:[#allocation10_spill] sm:$0xff] }
 0x72a   :  { %9883 = vrcp.f32 %v8341_v58  ;;  %v9874_v54 = vpop.eup %9873  ;;  %v8399_v48 = vmul.f32 %v9872_v59, %v14125_v25  ;;  %v8120_v34 = vmax.f32 %v8118_v23, %v8119_v21  ;;  %v14196_v53 = vmax.f32 %v14172_v51, %v8042_v47  ;;  %v7600_v21 = vpop.f32.mrf.mxu1 }
 0x72b   :  { %v9876_v49 = vpop.eup %9875  ;;  %v8400_v29 = vmul.f32 %v9874_v54, %v14129_v31  ;;  %v8127_v5 = vmax.f32 %v8125_v13, %v8126_v20  ;;  %v8134_v2 = vmax.f32 %v8132_v11, %v8133_v14  ;;  %v14199_v7 = vmax.f32 %v8137_v45, %v8138_v62 }
 0x72c   :  { %v9878_v16 = vpop.eup %9877  ;;  %v8401_v1 = vmul.f32 %v9876_v49, %v14133_v39  ;;  %v8468_v55 = vsel %vm3822_vm3, %v8399_v48, %v14161_v28  ;;  %v14205_v25 = vmax.f32 %v14140_v61, %v8120_v34  ;;  %v7324_v43 = vadd.f32 %v7306_v26, %v14654_v17 }
 0x72d   :  { %v9880_v51 = vpop.eup %9879  ;;  %v8402_v47 = vmul.f32 %v9878_v16, %v14136_v41  ;;  %v8469_v31 = vsel %vm3824_vm4, %v8400_v29, %v8468_v55  ;;  %v14211_v30 = vmax.f32 %v14147_v15, %v8127_v5  ;;  %v14214_v45 = vmax.f32 %v14154_v9, %v8134_v2 }
 0x72e   :  { %v9882_v39 = vpop.eup %9881  ;;  %v8403_v52 = vmul.f32 %v9880_v51, %v14138_v38  ;;  %v8470_v28 = vsel %vm3826_vm5, %v8401_v1, %v8469_v31  ;;  %v8254_v61 = vsub.f32 0.0, %v14205_v25  ;;  %v7617_v40 = vadd.f32 %v7597_v32, %v7470_v57 }
 0x72f   :  { %v8404_v41 = vmul.f32 %v9882_v39, %v14143_v33  ;;  %v8471_v62 = vsel %vm3828_vm6, %v8402_v47, %v8470_v28  ;;  %v8255_v15 = vsub.f32 0.0, %v14211_v30  ;;  %v8256_v58 = vsub.f32 0.0, %v14214_v45 }
 0x730   :  { %v9884_v23 = vpop.eup %9883  ;;  %v8472_v13 = vsel %vm3830_vm7, %v8403_v52, %v8471_v62  ;;  %v8310_v38 = vmul.f32 1.442695, %v8254_v61  ;;  %v7635_v11 = vadd.f32 %v14096_v35, %v7617_v40  ;;  %v7471_v59 = vadd.f32 %v7453_v27, %v7324_v43 }
 0x731   :  { %v8405_v9 = vmul.f32 %v9884_v23, %v14151_v46  ;;  %v8473_v32 = vsel %vm3832_vm8, %v8404_v41, %v8472_v13  ;;  %v8312_v37 = vmul.f32 1.442695, %v8255_v15  ;;  %v8314_v42 = vmul.f32 1.442695, %v8256_v58 }
 0x732   :  { %9885 = vpow2.f32 %v8310_v38  ;;  %v7695_v20 = vrot.slane %v7635_v11, 2  ;;  %v7696_v14 = vrot.slane %v7635_v11, 4  ;;  %v7697_v46 = vrot.slane %v7635_v11, 6 }
 0x733   :  { %v8474_v33 = vsel %vm3834_vm9, %v8405_v9, %v8473_v32  ;;  %9887 = vpow2.f32 %v8312_v37  ;;  %v8142_v54 = vsel %vm7749_vm11, %v7635_v11, -inf  ;;  %v7618_v48 = vadd.f32 %v7600_v21, %v7471_v59 }
 0x734   :  { %9249 = vmatmul.msk.f32.gmra.mxu2 %vm87_vm0, %v8474_v33  ;;  %9889 = vpow2.f32 %v8314_v42  ;;  %v8143_v34 = vrot.slane %v8142_v54, 4  ;;  %v8149_v57 = vsel %vm7749_vm11, %v7695_v20, -inf  ;;  %v8156_v26 = vsel %vm7749_vm11, %v7696_v14, -inf }
 0x735   :  { %v8150_v49 = vrot.slane %v8149_v57, 4  ;;  %v8157_v29 = vrot.slane %v8156_v26, 4  ;;  %v8163_v5 = vsel %vm7749_vm11, %v7697_v46, -inf  ;;  %v7636_v2 = vadd.f32 %v14096_v35, %v7618_v48 }
 0x736   :  { %v8140_v16 = vrot.slane %v14199_v7, 1  ;;  %v8144_v1 = vmax.f32 %v8142_v54, %v8143_v34  ;;  %v8164_v55 = vrot.slane %v8163_v5, 4  ;;  %v8049_v17 = vrot.slane %v14192_v0, 1 }
 0x737   :  { %v8151_v43 = vmax.f32 %v8149_v57, %v8150_v49  ;;  %v8158_v51 = vmax.f32 %v8156_v26, %v8157_v29  ;;  %v7698_v47 = vrot.slane %v7636_v2, 2  ;;  %v7699_v31 = vrot.slane %v7636_v2, 4 }
 0x738   :  { %v9886_v39 = vpop.eup %9885  ;;  %v8145_v52 = vrot.slane %v8144_v1, 2  ;;  %v14236_v28 = vmax.f32 %v8163_v5, %v8164_v55  ;;  %v7700_v61 = vrot.slane %v7636_v2, 6  ;;  %v8170_v40 = vsel %vm7749_vm11, %v7636_v2, -inf }
 0x739   :  { %v9888_v27 = vpop.eup %9887  ;;  %v8350_v23 = vadd.f32 1.0, %v9886_v39  ;;  %v8152_v35 = vrot.slane %v8151_v43, 2  ;;  %v8159_v41 = vrot.slane %v8158_v51, 2  ;;  %v8171_v62 = vrot.slane %v8170_v40, 4 }
 0x73a   :  { %v9890_v15 = vpop.eup %9889  ;;  %v14240_v58 = vmax.f32 %v14199_v7, %v8140_v16  ;;  %v8351_v9 = vadd.f32 1.0, %v9888_v27  ;;  %v8146_v13 = vmax.f32 %v8144_v1, %v8145_v52  ;;  %v8177_v38 = vsel %vm7749_vm11, %v7698_v47, -inf }
 0x73b   :  { %v8352_v11 = vadd.f32 1.0, %v9890_v15  ;;  %v8166_v21 = vrot.slane %v14236_v28, 2  ;;  %v8050_v32 = vmax.f32 %v14192_v0, %v8049_v17  ;;  %v8053_v37 = vmax.f32 %v14065_v10, %v8052_v44 }
 0x73c   :  { %9891 = vrcp.f32 %v8350_v23  ;;  %v14248_v42 = vmax.f32 %v8151_v43, %v8152_v35  ;;  %v8172_v59 = vmax.f32 %v8170_v40, %v8171_v62  ;;  %v8178_v33 = vrot.slane %v8177_v38, 4 }
 0x73d   :  { %9893 = vrcp.f32 %v8351_v9  ;;  %v14250_v7 = vmax.f32 %v8158_v51, %v8159_v41  ;;  %v8184_v20 = vsel %vm7749_vm11, %v7699_v31, -inf  ;;  %v8191_v14 = vsel %vm7749_vm11, %v7700_v61, -inf }
 0x73e   :  { %v8147_v46 = vrot.slane %v8146_v13, 1  ;;  %v8173_v54 = vrot.slane %v8172_v59, 2  ;;  %v8179_v48 = vmax.f32 %v8177_v38, %v8178_v33  ;;  %v8185_v0 = vrot.slane %v8184_v20, 4 }
 0x73f   :  { %9895 = vrcp.f32 %v8352_v11  ;;  %v8192_v34 = vrot.slane %v8191_v14, 4  ;;  %v8054_v57 = vrot.slane %v8053_v37, 2  ;;  %v14655_v10 = vrot.slane %v14081_v18, 2 }
 0x740   :  { %v8174_v26 = vmax.f32 %v8172_v59, %v8173_v54  ;;  %v8180_v49 = vrot.slane %v8179_v48, 2  ;;  %v8186_v29 = vmax.f32 %v8184_v20, %v8185_v0  ;;  %v8075_v5 = vrot.slane %v14104_v22, 2 }
 0x741   :  { %v8069_v44 = vmax.f32 %v14081_v18, %v14655_v10  ;;  %v8193_v2 = vmax.f32 %v8191_v14, %v8192_v34  ;;  %v8055_v16 = vmax.f32 %v8053_v37, %v8054_v57  ;;  %v14656_v55 = vrot.slane %v14084_v3, 4 }
 0x742   :  { %v14261_v43 = vpop.eup %9891  ;;  %v8154_v51 = vrot.slane %v14248_v42, 1  ;;  %v8175_v47 = vrot.slane %v8174_v26, 1  ;;  %v8181_v31 = vmax.f32 %v8179_v48, %v8180_v49  ;;  %v14657_v18 = vrot.slane %v14099_v63, 1 }
 0x743   :  { %v8070_v1 = vrot.slane %v8069_v44, 1  ;;  %v8081_v17 = vmax.f32 %v14084_v3, %v14656_v55  ;;  %v14267_v52 = vpop.eup %9893  ;;  %v8148_v61 = vmax.f32 %v8146_v13, %v8147_v46  ;;  %v8187_v40 = vrot.slane %v8186_v29, 2 }
 0x744   :  { %v8064_v39 = vmax.f32 %v14099_v63, %v14657_v18  ;;  %v8076_v23 = vmax.f32 %v14104_v22, %v8075_v5  ;;  %v8176_v35 = vmax.f32 %v8174_v26, %v8175_v47  ;;  %v8194_v41 = vrot.slane %v8193_v2, 2 }
 0x745   :  { %v8071_v27 = vmax.f32 %v8069_v44, %v8070_v1  ;;  %v8056_v3 = vrot.slane %v8055_v16, 1  ;;  %v8082_v62 = vrot.slane %v8081_v17, 2  ;;  %v14270_v15 = vpop.eup %9895  ;;  %v8182_v9 = vrot.slane %v8181_v31, 1 }
 0x746   :  { %v8077_v38 = vrot.slane %v8076_v23, 1  ;;  %v14274_v11 = vmax.f32 %v14015_v8, %v14025_v36  ;;  %v14278_v63 = vmax.f32 %v14021_v6, %v14027_v24  ;;  %v14282_v22 = vmax.f32 %v14167_v19, %v14178_v4 }
 0x747   :  { %v8083_v13 = vmax.f32 %v8081_v17, %v8082_v62  ;;  %v14285_v37 = vmax.f32 %v14189_v56, %v8064_v39  ;;  %v14288_v59 = vmax.f32 %v14196_v53, %v8071_v27  ;;  %v8188_v33 = vmax.f32 %v8186_v29, %v8187_v40 }
 0x748   :  { %v8078_v20 = vmax.f32 %v8076_v23, %v8077_v38  ;;  %v8247_v8 = vsub.f32 0.0, %v14274_v11  ;;  %v8248_v36 = vsub.f32 0.0, %v14278_v63  ;;  %v8249_v6 = vsub.f32 0.0, %v14282_v22 }
 0x749   :  { %v8084_v14 = vrot.slane %v8083_v13, 1  ;;  %v8250_v24 = vsub.f32 0.0, %v14285_v37  ;;  %v8251_v19 = vsub.f32 0.0, %v14288_v59  ;;  %v8057_v4 = vmax.f32 %v8055_v16, %v8056_v3 }
 0x74a   :  { %v14295_v46 = vmax.f32 %v8050_v32, %v8078_v20  ;;  %v8296_v56 = vmul.f32 1.442695, %v8247_v8  ;;  %v8298_v54 = vmul.f32 1.442695, %v8248_v36  ;;  %v8300_v48 = vmul.f32 1.442695, %v8249_v6 }
 0x74b   :  { %v8085_v53 = vmax.f32 %v8083_v13, %v8084_v14  ;;  %v8302_v0 = vmul.f32 1.442695, %v8250_v24  ;;  %v8304_v34 = vmul.f32 1.442695, %v8251_v19  ;;  %v8161_v10 = vrot.slane %v14250_v7, 1 }
 0x74c   :  { %v8252_v57 = vsub.f32 0.0, %v14295_v46  ;;  %9897 = vpow2.f32 %v8296_v56  ;;  %v8167_v44 = vmax.f32 %v14236_v28, %v8166_v21  ;;  %v8183_v32 = vmax.f32 %v8181_v31, %v8182_v9 }
 0x74d   :  { %v14302_v26 = vmax.f32 %v8057_v4, %v8085_v53  ;;  %9899 = vpow2.f32 %v8298_v54  ;;  %v8189_v49 = vrot.slane %v8188_v33, 1  ;;  %v8155_v5 = vmax.f32 %v14248_v42, %v8154_v51 }
 0x74e   :  { %9901 = vpow2.f32 %v8300_v48  ;;  %v8306_v29 = vmul.f32 1.442695, %v8252_v57  ;;  %v8168_v16 = vrot.slane %v8167_v44, 1  ;;  %v8195_v17 = vmax.f32 %v8193_v2, %v8194_v41 }
 0x74f   :  { %v8253_v1 = vsub.f32 0.0, %v14302_v26  ;;  %9903 = vpow2.f32 %v8302_v0  ;;  %v8190_v55 = vmax.f32 %v8188_v33, %v8189_v49  ;;  %v8162_v47 = vmax.f32 %v14250_v7, %v8161_v10 }
 0x750   :  { %9905 = vpow2.f32 %v8304_v34  ;;  %v14309_v28 = vmax.f32 %v14157_v60, %v14240_v58  ;;  %v14311_v21 = vmax.f32 %v8148_v61, %v8176_v35  ;;  %v8196_v18 = vrot.slane %v8195_v17, 1  ;;  %v9259_v61 = vld [vmem:[%s14493_s2 + $0x138] sm:$0xff] }
 0x751   :  { %9907 = vpow2.f32 %v8306_v29  ;;  %v8308_v31 = vmul.f32 1.442695, %v8253_v1  ;;  %v14313_v39 = vmax.f32 %v8155_v5, %v8183_v32  ;;  %v8169_v51 = vmax.f32 %v8167_v44, %v8168_v16  ;;  %8582 = vmatpush.msra.mxu3 %v9259_v61 }
 0x752   :  { %v9898_v42 = vpop.eup %9897  ;;  %9909 = vrcp.f32 %v14086_v12  ;;  %v14316_v40 = vmax.f32 %v8162_v47, %v8190_v55  ;;  %v8257_v2 = vsub.f32 0.0, %v14309_v28  ;;  %v8197_v60 = vmax.f32 %v8195_v17, %v8196_v18  ;;  %v9258_v12 = vld [vmem:[%s14493_s2 + $0x130] sm:$0xff] }
 0x753   :  { %v9900_v7 = vpop.eup %9899  ;;  %9911 = vpow2.f32 %v8308_v31  ;;  %v8343_v27 = vadd.f32 1.0, %v9898_v42  ;;  %v8415_v58 = vmul.f32 %v14267_v52, %v14211_v30  ;;  %v8414_v35 = vmul.f32 %v14261_v43, %v14205_v25  ;;  %8583 = vmatpush.msra.mxu3 %v9258_v12 }
 0x754   :  { %v9902_v23 = vpop.eup %9901  ;;  %v8344_v41 = vadd.f32 1.0, %v9900_v7  ;;  %v8258_v3 = vsub.f32 0.0, %v14311_v21  ;;  %v14330_v30 = vmax.f32 %v8169_v51, %v8197_v60  ;;  %v8259_v52 = vsub.f32 0.0, %v14313_v39 }
 0x755   :  { %v9904_v62 = vpop.eup %9903  ;;  %v8345_v9 = vadd.f32 1.0, %v9902_v23  ;;  %9913 = vrcp.f32 %v8343_v27  ;;  %v8260_v33 = vsub.f32 0.0, %v14316_v40  ;;  %v8416_v20 = vmul.f32 %v14270_v15, %v14214_v45 }
 0x756   :  { %v9906_v38 = vpop.eup %9905  ;;  %v8346_v13 = vadd.f32 1.0, %v9904_v62  ;;  %9915 = vrcp.f32 %v8344_v41  ;;  %v8316_v8 = vmul.f32 1.442695, %v8257_v2  ;;  %v8482_v36 = vsel %vm3822_vm3, %v8415_v58, %v8414_v35 }
 0x757   :  { %v9908_v25 = vpop.eup %9907  ;;  %v8347_v43 = vadd.f32 1.0, %v9906_v38  ;;  %9917 = vrcp.f32 %v8345_v9  ;;  %v8261_v24 = vsub.f32 0.0, %v14330_v30  ;;  %v8483_v19 = vsel %vm3824_vm4, %v8416_v20, %v8482_v36  ;;  %v9252_v36 = vld [vmem:[%s14493_s2 + $0x100] sm:$0xff] }
 0x758   :  { %v9910_v14 = vpop.eup %9909  ;;  %v8348_v6 = vadd.f32 1.0, %v9908_v25  ;;  %9919 = vrcp.f32 %v8346_v13  ;;  %v8318_v56 = vmul.f32 1.442695, %v8258_v3  ;;  %v8320_v45 = vmul.f32 1.442695, %v8259_v52 }
 0x759   :  { %v9912_v4 = vpop.eup %9911  ;;  %9921 = vrcp.f32 %v8347_v43  ;;  %v8322_v53 = vmul.f32 1.442695, %v8260_v33  ;;  %v8406_v0 = vmul.f32 %v9910_v14, %v14018_v50  ;;  %v8324_v57 = vmul.f32 1.442695, %v8261_v24  ;;  %v9302_v43 = vld [vmem:[%s14495_s3 + $0x2] ss:$0 sm:$0xff] }
 0x75a   :  { %v8349_v54 = vadd.f32 1.0, %v9912_v4  ;;  %9923 = vrcp.f32 %v8348_v6 }
 0x75b   :  { %v9914_v15 = vpop.eup %9913  ;;  %9925 = vpow2.f32 %v8316_v8  ;;  %v9253_v8 = vld [vmem:[%s14493_s2 + $0x108] sm:$0xff] }
 0x75c   :  { %v9916_v48 = vpop.eup %9915  ;;  %9927 = vrcp.f32 %v8349_v54  ;;  %v8407_v34 = vmul.f32 %v9914_v15, %v14274_v11 }
 0x75d   :  { %v9918_v10 = vpop.eup %9917  ;;  %v8408_v44 = vmul.f32 %v9916_v48, %v14278_v63  ;;  %9929 = vpow2.f32 %v8318_v56 }
 0x75e   :  { %v9920_v32 = vpop.eup %9919  ;;  %v8409_v49 = vmul.f32 %v9918_v10, %v14282_v22  ;;  %v8475_v29 = vsel %vm3822_vm3, %v8407_v34, %v8406_v0  ;;  %9931 = vpow2.f32 %v8320_v45 }
 0x75f   :  { %v9922_v5 = vpop.eup %9921  ;;  %v8410_v16 = vmul.f32 %v9920_v32, %v14285_v37  ;;  %v8476_v1 = vsel %vm3824_vm4, %v8408_v44, %v8475_v29  ;;  %9933 = vpow2.f32 %v8322_v53 }
 0x760   :  { %v9924_v50 = vpop.eup %9923  ;;  %v8411_v11 = vmul.f32 %v9922_v5, %v14288_v59  ;;  %v8477_v55 = vsel %vm3826_vm5, %v8409_v49, %v8476_v1  ;;  %9935 = vpow2.f32 %v8324_v57 }
 0x761   :  { %v9926_v63 = vpop.eup %9925  ;;  %v8412_v17 = vmul.f32 %v9924_v50, %v14295_v46  ;;  %v8478_v22 = vsel %vm3828_vm6, %v8410_v16, %v8477_v55 }
 0x762   :  { %v9928_v47 = vpop.eup %9927  ;;  %v8479_v31 = vsel %vm3830_vm7, %v8411_v11, %v8478_v22  ;;  %v8353_v18 = vadd.f32 1.0, %v9926_v63 }
 0x763   :  { %v9930_v42 = vpop.eup %9929  ;;  %v8413_v37 = vmul.f32 %v9928_v47, %v14302_v26  ;;  %v8480_v51 = vsel %vm3832_vm8, %v8412_v17, %v8479_v31 }
 0x764   :  { %v9932_v2 = vpop.eup %9931  ;;  %v8354_v7 = vadd.f32 1.0, %v9930_v42  ;;  %9937 = vrcp.f32 %v8353_v18 }
 0x765   :  { %v9934_v59 = vpop.eup %9933  ;;  %v8481_v27 = vsel %vm3834_vm9, %v8413_v37, %v8480_v51  ;;  %v8355_v60 = vadd.f32 1.0, %v9932_v2  ;;  %v9279_v37 = vld [vmem:[%s14493_s2 + $0x1f8] sm:$0xff]  ;;  %v9278_v51 = vld [vmem:[%s14493_s2 + $0x1f0] sm:$0xff]  ;;  %v9277_v2 = vld [vmem:[%s14493_s2 + $0x1e8] sm:$0xff] }
 0x766   :  { %v9936_v58 = vpop.eup %9935  ;;  %9250 = vmatmul.msk.f32.gmra.mxu2 %vm87_vm0, %v8481_v27  ;;  %v8356_v46 = vadd.f32 1.0, %v9934_v59  ;;  %9939 = vrcp.f32 %v8354_v7  ;;  %8673 = vmatpush.msra.mxu0 %v9279_v37  ;;  %v9276_v7 = vld [vmem:[%s14493_s2 + $0x1e0] sm:$0xff]  ;;  %v9275_v59 = vld [vmem:[%s14493_s2 + $0x1d8] sm:$0xff]  ;;  %v9274_v27 = vld [vmem:[%s14493_s2 + $0x1d0] sm:$0xff] }
 0x767   :  { %v8357_v61 = vadd.f32 1.0, %v9936_v58  ;;  %9941 = vrcp.f32 %v8355_v60  ;;  %v9273_v60 = vld [vmem:[%s14493_s2 + $0x1c8] sm:$0xff] }
 0x768   :  { %9943 = vrcp.f32 %v8356_v46  ;;  %8674 = vmatpush.msra.mxu0 %v9278_v51 }
 0x769   :  { %9945 = vrcp.f32 %v8357_v61  ;;  %v9303_v61 = vld [vmem:[%s14495_s3 + $0x3] ss:$0 sm:$0xff] }
 0x76a   :  { %v9938_v12 = vpop.eup %9937  ;;  %8675 = vmatpush.msra.mxu0 %v9277_v2 }
 0x76b   :  { %v8417_v26 = vmul.f32 %v9938_v12, %v14309_v28 }
 0x76c   :  { %v9940_v23 = vpop.eup %9939  ;;  %8676 = vmatpush.msra.mxu0 %v9276_v7 }
 0x76d   :  { %v9942_v35 = vpop.eup %9941  ;;  %v8418_v41 = vmul.f32 %v9940_v23, %v14311_v21  ;;  %v8484_v3 = vsel %vm3826_vm5, %v8417_v26, %v8483_v19  ;;  %v9257_v21 = vld [vmem:[%s14493_s2 + $0x128] sm:$0xff] }
 0x76e   :  { %v9944_v62 = vpop.eup %9943  ;;  %v8419_v9 = vmul.f32 %v9942_v35, %v14313_v39  ;;  %v9256_v39 = vld [vmem:[%s14493_s2 + $0x120] sm:$0xff]  ;;  %8584 = vmatpush.msra.mxu3 %v9257_v21  ;;  %8677 = vmatpush.msra.mxu0 %v9275_v59 }
 0x76f   :  { %v9946_v52 = vpop.eup %9945  ;;  %v8420_v38 = vmul.f32 %v9944_v62, %v14316_v40  ;;  %v8485_v13 = vsel %vm3828_vm6, %v8418_v41, %v8484_v3  ;;  %v9255_v40 = vld [vmem:[%s14493_s2 + $0x118] sm:$0xff]  ;;  %v9272_v35 = vld [vmem:[%s14493_s2 + $0x1c0] sm:$0xff]  ;;  %v9270_v62 = vld [vmem:[%s14493_s2 + $0x1b0] sm:$0xff] }
 0x770   :  { %v8421_v33 = vmul.f32 %v9946_v52, %v14330_v30  ;;  %v8486_v20 = vsel %vm3830_vm7, %v8419_v9, %v8485_v13  ;;  %8585 = vmatpush.msra.mxu3 %v9256_v39  ;;  %v9254_v30 = vld [vmem:[%s14493_s2 + $0x110] sm:$0xff]  ;;  %8678 = vmatpush.msra.mxu0 %v9274_v27  ;;  %v9271_v41 = vld [vmem:[%s14493_s2 + $0x1b8] sm:$0xff]  ;;  %v9269_v52 = vld [vmem:[%s14493_s2 + $0x1a8] sm:$0xff] }
 0x771   :  { %v8487_v28 = vsel %vm3832_vm8, %v8420_v38, %v8486_v20 }
 0x772   :  { %v8488_v25 = vsel %vm3834_vm9, %v8421_v33, %v8487_v28  ;;  %8586 = vmatpush.msra.mxu3 %v9255_v40  ;;  %8679 = vmatpush.msra.mxu0 %v9273_v60 }
 0x773   :  { %9251 = vmatmul.msk.f32.gmra.mxu2 %vm87_vm0, %v8488_v25 }
 0x774   :  { %8587 = vmatpush.msra.mxu3 %v9254_v30  ;;  %8680 = vmatpush.msra.mxu0 %v9272_v35  ;;  %v9304_v35 = vld [vmem:[%s14495_s3 + $0x4] ss:$0 sm:$0xff] }
 0x776   :  { %8588 = vmatpush.msra.mxu3 %v9253_v8  ;;  %8681 = vmatpush.msra.mxu0 %v9271_v41  ;;  %v9283_v41 = vld [vmem:[%s14493_s2 + $0x218] sm:$0xff] }
 0x778   :  { %8589 = vmatpush.msra.mxu3 %v9252_v36  ;;  %8682 = vmatpush.msra.mxu0 %v9270_v62 }
 0x77a   :  { %8683 = vmatpush.msra.mxu0 %v9269_v52  ;;  %v9281_v52 = vld [vmem:[%s14493_s2 + $0x208] sm:$0xff] }
 0x78a   :  { %v8514_v14 = vpop.f32.mrf.mxu2 }
 0x78b   :  { %v8515_v6 = vadd.f32 %v9302_v43, %v8514_v14 }
 0x78d   :  { %v8526_v24 = vsub.f32 0.0, %v8515_v6 }
 0x78f   :  { %v8530_v19 = vmul.f32 1.442695, %v8526_v24  ;;  %v9267_v24 = vld [vmem:[%s14493_s2 + $0x198] sm:$0xff] }
 0x791   :  { %9947 = vpow2.f32 %v8530_v19 }
 0x797   :  { %v9948_v4 = vpop.eup %9947 }
 0x798   :  { %v8538_v56 = vadd.f32 1.0, %v9948_v4 }
 0x79a   :  { %9949 = vrcp.f32 %v8538_v56 }
 0x7a0   :  { %v9950_v54 = vpop.eup %9949 }
 0x7a1   :  { %v8546_v45 = vmul.f32 %v9950_v54, %v8515_v6  ;;  %v9268_v6 = vld [vmem:[%s14493_s2 + $0x1a0] sm:$0xff]  ;;  %v9266_v54 = vld [vmem:[%s14493_s2 + $0x190] sm:$0xff] }
 0x7a2   :  { %8684 = vmatpush.msra.mxu0 %v9268_v6 }
 0x7a3   :  { %9260 = vmatmul.msk.f32.vlgmr.msra.gmra.mxu3 %vm8561_vm12, %v8546_v45 }
 0x7a4   :  { %8685 = vmatpush.msra.mxu0 %v9267_v24 }
 0x7a6   :  { %8686 = vmatpush.msra.mxu0 %v9266_v54 }
 0x7b7   :  { %v8517_v15 = vpop.f32.mrf.mxu2 }
 0x7b8   :  { %v8518_v53 = vadd.f32 %v9302_v43, %v8517_v15  ;;  %v9265_v15 = vld [vmem:[%s14493_s2 + $0x188] sm:$0xff] }
 0x7b9   :  { %8687 = vmatpush.msra.mxu0 %v9265_v15 }
 0x7ba   :  { %v8527_v48 = vsub.f32 0.0, %v8518_v53 }
 0x7bc   :  { %v8532_v0 = vmul.f32 1.442695, %v8527_v48 }
 0x7be   :  { %9951 = vpow2.f32 %v8532_v0  ;;  %v9264_v0 = vld [vmem:[%s14493_s2 + $0x180] sm:$0xff] }
 0x7bf   :  { %8688 = vmatpush.msra.mxu0 %v9264_v0 }
 0x7c4   :  { %v9952_v34 = vpop.eup %9951 }
 0x7c5   :  { %v8539_v57 = vadd.f32 1.0, %v9952_v34  ;;  %v10017_v34 = vmov 16.0  }
 0x7c7   :  { %9953 = vrcp.f32 %v8539_v57 }
 0x7cd   :  { %v9954_v10 = vpop.eup %9953 }
 0x7ce   :  { %v8547_v44 = vmul.f32 %v9954_v10, %v8518_v53 }
 0x7d0   :  { %9261 = vmatmul.msk.f32.gmra.mxu3 %vm8561_vm12, %v8547_v44 }
 0x7e9   :  { %v8520_v32 = vpop.f32.mrf.mxu2 }
 0x7ea   :  { %v8521_v49 = vadd.f32 %v9302_v43, %v8520_v32 }
 0x7ec   :  { %v8528_v29 = vsub.f32 0.0, %v8521_v49 }
 0x7ee   :  { %v8534_v5 = vmul.f32 1.442695, %v8528_v29 }
 0x7f0   :  { %9955 = vpow2.f32 %v8534_v5 }
 0x7f6   :  { %v9956_v16 = vpop.eup %9955  ;;  %v8523_v1 = vpop.f32.mrf.mxu2 }
 0x7f7   :  { %v8540_v50 = vadd.f32 1.0, %v9956_v16  ;;  %v8524_v11 = vadd.f32 %v9302_v43, %v8523_v1 }
 0x7f9   :  { %9957 = vrcp.f32 %v8540_v50  ;;  %v8529_v55 = vsub.f32 0.0, %v8524_v11 }
 0x7fb   :  { %v8536_v63 = vmul.f32 1.442695, %v8529_v55 }
 0x7fd   :  { %9959 = vpow2.f32 %v8536_v63 }
 0x7ff   :  { %v9958_v17 = vpop.eup %9957 }
 0x800   :  { %v8548_v22 = vmul.f32 %v9958_v17, %v8521_v49 }
 0x802   :  { %9262 = vmatmul.msk.f32.gmra.mxu3 %vm8561_vm12, %v8548_v22 }
 0x803   :  { %v9960_v47 = vpop.eup %9959 }
 0x804   :  { %v8541_v31 = vadd.f32 1.0, %v9960_v47 }
 0x806   :  { %9961 = vrcp.f32 %v8541_v31 }
 0x80c   :  { %v9962_v18 = vpop.eup %9961 }
 0x80d   :  { %v8549_v42 = vmul.f32 %v9962_v18, %v8524_v11 }
 0x80f   :  { %9263 = vmatmul.msk.f32.gmra.mxu3 %vm8561_vm12, %v8549_v42 }
 0x826   :  { %v8591_v58 = vpop.f32.mrf.mxu3 }
 0x827   :  { %v8592_v26 = vadd.f32 %v9303_v61, %v8591_v58 }
 0x829   :  { %v8603_v3 = vsub.f32 0.0, %v8592_v26 }
 0x82b   :  { %v8607_v38 = vmul.f32 1.442695, %v8603_v3  ;;  %v9282_v3 = vld [vmem:[%s14493_s2 + $0x210] sm:$0xff] }
 0x853   :  { %v8594_v46 = vpop.f32.mrf.mxu3 }
 0x854   :  { %v8595_v12 = vadd.f32 %v9303_v61, %v8594_v46 }
 0x856   :  { %v8604_v23 = vsub.f32 0.0, %v8595_v12 }
 0x858   :  { %v8609_v9 = vmul.f32 1.442695, %v8604_v23  ;;  %v9284_v23 = vld [vmem:[%s14493_s2 + $0x220] sm:$0xff] }
 0x85a   :  { %9963 = vpow2.f32 %v8609_v9 }
 0x85b   :  { %9965 = vpow2.f32 %v8607_v38 }
 0x860   :  { %v9964_v20 = vpop.eup %9963 }
 0x861   :  { %v9966_v28 = vpop.eup %9965  ;;  %v8616_v21 = vadd.f32 1.0, %v9964_v20 }
 0x862   :  { %v8615_v39 = vadd.f32 1.0, %v9966_v28 }
 0x863   :  { %9967 = vrcp.f32 %v8616_v21 }
 0x864   :  { %9969 = vrcp.f32 %v8615_v39  ;;  %v9292_v39 = vld [vmem:[%s14493_s2 + $0x298] sm:$0xff] }
 0x869   :  { %v9968_v36 = vpop.eup %9967 }
 0x86a   :  { %v9970_v19 = vpop.eup %9969  ;;  %v8624_v56 = vmul.f32 %v9968_v36, %v8595_v12  ;;  %v9286_v12 = vld [vmem:[%s14493_s2 + $0x230] sm:$0xff] }
 0x86b   :  { %v8623_v45 = vmul.f32 %v9970_v19, %v8592_v26  ;;  %v9285_v26 = vld [vmem:[%s14493_s2 + $0x228] sm:$0xff] }
 0x86d   :  { %v8627_v48 = vadd.f32 %v8624_v56, %v8623_v45  ;;  %v9306_v45 = vld [vmem:[%s14495_s3 + $0x6] ss:$0 sm:$0xff] }
 0x86f   :  { %v8628_v44 = vrot.slane %v8627_v48, 4 }
 0x871   :  { %v8629_v49 = vadd.f32 %v8628_v44, %v8627_v48 }
 0x873   :  { %v8630_v1 = vrot.slane %v8629_v49, 2 }
 0x875   :  { %v8631_v17 = vadd.f32 %v8630_v1, %v8629_v49 }
 0x877   :  { %v8632_v18 = vrot.slane %v8631_v17, 1 }
 0x879   :  { %v8633_v2 = vadd.f32 %v8632_v18, %v8631_v17 }
 0x885   :  { %v8597_v13 = vpop.f32.mrf.mxu3 }
 0x886   :  { %v8598_v33 = vadd.f32 %v9303_v61, %v8597_v13  ;;  %v9280_v13 = vld [vmem:[%s14493_s2 + $0x200] sm:$0xff] }
 0x888   :  { %v8605_v25 = vsub.f32 0.0, %v8598_v33 }
 0x88a   :  { %v8611_v40 = vmul.f32 1.442695, %v8605_v25 }
 0x88c   :  { %9971 = vpow2.f32 %v8611_v40  ;;  %v9291_v40 = vld [vmem:[%s14493_s2 + $0x290] sm:$0xff] }
 0x892   :  { %v8600_v30 = vpop.f32.mrf.mxu3  ;;  %v9972_v4 = vpop.eup %9971 }
 0x893   :  { %v8601_v43 = vadd.f32 %v9303_v61, %v8600_v30  ;;  %v8617_v53 = vadd.f32 1.0, %v9972_v4  ;;  %v9287_v61 = vld [vmem:[%s14493_s2 + $0x238] sm:$0xff]  ;;  %v9290_v30 = vld [vmem:[%s14493_s2 + $0x288] sm:$0xff] }
 0x894   :  { %8721 = vmatpush.msrb.mxu0 %v9287_v61 }
 0x895   :  { %v8606_v8 = vsub.f32 0.0, %v8601_v43 }
 0x896   :  { %8722 = vmatpush.msrb.mxu0 %v9286_v12 }
 0x897   :  { %v8613_v14 = vmul.f32 1.442695, %v8606_v8  ;;  %v9305_v8 = vld [vmem:[%s14495_s3 + $0x5] ss:$0 sm:$0xff] }
 0x898   :  { %8723 = vmatpush.msrb.mxu0 %v9285_v26 }
 0x899   :  { %9973 = vpow2.f32 %v8613_v14 }
 0x89a   :  { %9975 = vrcp.f32 %v10017_v34  ;;  %8724 = vmatpush.msrb.mxu0 %v9284_v23 }
 0x89b   :  { %9977 = vrcp.f32 %v8617_v53 }
 0x89c   :  { %8725 = vmatpush.msrb.mxu0 %v9283_v41 }
 0x89e   :  { %8726 = vmatpush.msrb.mxu0 %v9282_v3 }
 0x89f   :  { %v9974_v57 = vpop.eup %9973 }
 0x8a0   :  { %v8618_v10 = vadd.f32 1.0, %v9974_v57  ;;  %v9976_v32 = vpop.eup %9975  ;;  %8727 = vmatpush.msrb.mxu0 %v9281_v52 }
 0x8a1   :  { %v9978_v29 = vpop.eup %9977  ;;  %v8642_v5 = vmul.f32 16.0, %v9976_v32  ;;  %vm8646_vm13 = vweird.f32 %v9976_v32 }
 0x8a2   :  { %9979 = vrcp.f32 %v8618_v10  ;;  %v8625_v50 = vmul.f32 %v9978_v29, %v8598_v33  ;;  %8728 = vmatpush.msrb.mxu0 %v9280_v13 }
 0x8a3   :  { %v8643_v55 = vsub.f32 1.0, %v8642_v5 }
 0x8a5   :  { %v8644_v47 = vmul.f32 %v9976_v32, %v8643_v55 }
 0x8a7   :  { %v8645_v37 = vadd.f32 %v9976_v32, %v8644_v47 }
 0x8a8   :  { %v9980_v16 = vpop.eup %9979 }
 0x8a9   :  { %v8626_v11 = vmul.f32 %v9980_v16, %v8601_v43  ;;  %v8647_v59 = vsel %vm8646_vm13, %v9976_v32, %v8645_v37  ;;  %v9289_v43 = vld [vmem:[%s14493_s2 + $0x280] sm:$0xff] }
 0x8aa   :  { %v8648_v60 = vmul.f32 %v8647_v59, %v8633_v2 }
 0x8ab   :  { %v8634_v63 = vadd.f32 %v8626_v11, %v8625_v50 }
 0x8ad   :  { %v8635_v22 = vrot.slane %v8634_v63, 4 }
 0x8af   :  { %v8636_v31 = vadd.f32 %v8635_v22, %v8634_v63 }
 0x8b1   :  { %v8637_v42 = vrot.slane %v8636_v31, 2 }
 0x8b3   :  { %v8638_v51 = vadd.f32 %v8637_v42, %v8636_v31 }
 0x8b5   :  { %v8639_v7 = vrot.slane %v8638_v51, 1 }
 0x8b7   :  { %v8640_v27 = vadd.f32 %v8639_v7, %v8638_v51 }
 0x8b9   :  { %v8649_v58 = vmul.f32 %v8647_v59, %v8640_v27 }
 0x8bb   :  { %v8671_v46 = vsel %vm3822_vm3, %v8649_v58, %v8648_v60 }
 0x8bc   :  { %8689 = vmatmul.f32.vlgmr.msra.gmra.mxu0 %v8671_v46 }
 0x8bd   :  { %8761 = vmatpush.msra.mxu0 %v9292_v39 }
 0x8bf   :  { %8762 = vmatpush.msra.mxu0 %v9291_v40 }
 0x8c1   :  { %8763 = vmatpush.msra.mxu0 %v9290_v30 }
 0x8c3   :  { %8764 = vmatpush.msra.mxu0 %v9289_v43 }
 0x939   :  { %v8690_v62 = vpop.f32.mrf.mxu0 }
 0x93a   :  { %v8691_v9 = vadd.f32 %v9304_v35, %v8690_v62 }
 0x93c   :  { %v8693_v38 = vsub.f32 0.0, %v8691_v9 }
 0x93e   :  { %v8694_v33 = vmul.f32 1.442695, %v8693_v38 }
 0x940   :  { %9981 = vpow2.f32 %v8694_v33 }
 0x946   :  { %v9982_v20 = vpop.eup %9981 }
 0x947   :  { %v8696_v28 = vadd.f32 1.0, %v9982_v20 }
 0x949   :  { %9983 = vrcp.f32 %v8696_v28 }
 0x94f   :  { %v9984_v25 = vpop.eup %9983 }
 0x950   :  { %v8698_v21 = vmul.f32 %v9984_v25, %v8691_v9 }
 0x952   :  { %9288 = vmatmul.msk.f32.vlgmr.msrb.gmra.mxu0 %vm8561_vm12, %v8698_v21 }
 0x9cf   :  { %v8730_v36 = vpop.f32.mrf.mxu0 }
 0x9d0   :  { %v8731_v14 = vadd.f32 %v9305_v8, %v8730_v36 }
 0x9d2   :  { %v8733_v6 = vsub.f32 0.0, %v8731_v14 }
 0x9d4   :  { %v8734_v24 = vmul.f32 1.442695, %v8733_v6 }
 0x9d6   :  { %9985 = vpow2.f32 %v8734_v24 }
 0x9dc   :  { %v9986_v19 = vpop.eup %9985 }
 0x9dd   :  { %v8736_v4 = vadd.f32 1.0, %v9986_v19 }
 0x9df   :  { %9987 = vrcp.f32 %v8736_v4 }
 0x9e5   :  { %v9988_v56 = vpop.eup %9987 }
 0x9e6   :  { %v8738_v54 = vmul.f32 %v9988_v56, %v8731_v14 }
 0x9e8   :  { %9293 = vmatmul.msk.f32.vlgmr.msra.gmra.mxu0 %vm87_vm0, %v8738_v54 }
 0xa65   :  { %v8766_v15 = vpop.f32.mrf.mxu0 }
 0xa66   :  { %v8767_v53 = vadd.f32 %v9306_v45, %v8766_v15 }
 0xa68   :  { %v8769_v48 = vsub.f32 0.0, %v8767_v53 }
 0xa6a   :  { %v8770_v0 = vmul.f32 1.442695, %v8769_v48 }
 0xa6c   :  { %9989 = vpow2.f32 %v8770_v0 }
 0xa72   :  { %v9990_v34 = vpop.eup %9989 }
 0xa73   :  { %v8772_v57 = vadd.f32 1.0, %v9990_v34 }
 0xa75   :  { %9991 = vrcp.f32 %v8772_v57 }
 0xa7b   :  { %v9992_v10 = vpop.eup %9991 }
 0xa7c   :  { %8775 = vst.msk [vmem:[%s14497_s4] sm:$0x3] %vm8774_vm14, %v9992_v10 }

</bundles_post_ra>
